<compile_context>
chip_gen: v7x
topology: tpu7x:2x2x1
jax: 0.10.0
libtpu: 0.0.40
codegen_flags: <defaults>
</compile_context>

<pallas_src>
import functools
import math

import jax
import jax.numpy as jnp
from jax.experimental import pallas as pl
from jax.experimental.pallas import tpu as pltpu


# ----------------------------- tiling helpers ------------------------------

def _pick_tile(n, target, mult=1):
    """Largest t <= target with n % t == 0 and t % mult == 0; fallback n (full)."""
    t = min(n, target)
    while t >= mult:
        if n % t == 0 and t % mult == 0:
            return t
        t -= 1
    return n


def _default_target_m():
    # per-generation tile budget: smaller tiles on 64 MiB-VMEM parts (v7x).
    try:
        vmem = pltpu.get_tpu_info().vmem_capacity_bytes
        return 8192 if vmem >= 100 * 1024 * 1024 else 4096
    except Exception:
        return 4096


def _cparams():
    return pltpu.CompilerParams(
        dimension_semantics=("parallel", "parallel"),
        vmem_limit_bytes=48 * 1024 * 1024,
    )


# ----------------------------- Pallas kernels ------------------------------

def _conv3x3_kernel(*refs, T, W, C, N, relu, has_res):
    """3x3 conv (+folded BN) (+residual) (+ReLU) on a row tile.

    refs (batch/tile dims squeezed):
      x_ref   : (T, W, C)  bf16   center rows of the tile
      halo_ref: (2, W, C)  bf16   row above / row below (zeros at image edge)
      w_ref   : (9*C, N)   bf16   taps ordered (ky, kx, cin), BN scale folded
      b_ref   : (1, N)     f32
      res_ref : (T, W, N)  bf16   (optional residual, added before ReLU)
      o_ref   : (T, W, N)  bf16
      slab_ref: VMEM (T+2, W, C) bf16 scratch (halo + center rows)
    """
    if has_res:
        x_ref, halo_ref, w_ref, b_ref, res_ref, o_ref, slab_ref = refs
    else:
        x_ref, halo_ref, w_ref, b_ref, o_ref, slab_ref = refs
        res_ref = None

    # assemble [top_halo; center; bottom_halo] in VMEM (offset-0 stores only).
    slab_ref[0:1] = halo_ref[0:1]
    slab_ref[1:T + 1] = x_ref[...]
    slab_ref[T + 1:T + 2] = halo_ref[1:2]

    zpad = jnp.zeros((1, C), jnp.bfloat16)

    def body(t, carry):
        taps = []
        for dy in range(3):
            r = slab_ref[t + dy]                                  # (W, C)
            rp = jnp.concatenate([zpad, r, zpad], axis=0)         # (W+2, C)
            for dx in range(3):
                taps.append(rp[dx:dx + W, :])
        xc = jnp.concatenate(taps, axis=-1)                       # (W, 9C) bf16
        y = jnp.dot(xc, w_ref[...], preferred_element_type=jnp.float32)
        y = y + b_ref[...]
        if has_res:
            y = y + res_ref[t].astype(jnp.float32)
        if relu:
            y = jnp.maximum(y, 0.0)
        o_ref[t] = y.astype(o_ref.dtype)
        return carry

    jax.lax.fori_loop(0, T, body, 0)


def _conv1x1_kernel(x_ref, w_ref, b_ref, o_ref, *, relu):
    # x: (TM, C) bf16, w: (C, N) bf16, b: (1, N) f32 -> o: (TM, N) bf16
    y = jnp.dot(x_ref[...], w_ref[...], preferred_element_type=jnp.float32)
    y = y + b_ref[...]
    if relu:
        y = jnp.maximum(y, 0.0)
    o_ref[...] = y.astype(o_ref.dtype)


def _head_kernel(x1_ref, y_ref, w1_ref, wh1_ref, wh2_ref, desc_ref, score_ref,
                 *, dim):
    """Fused head: conv1(x1)+ReLU || concat y2u/y3u/y4u || convhead1+ReLU ||
    convhead2 || sigmoid(score) || per-pixel L2-normalized descriptors."""
    t1 = jnp.dot(x1_ref[...], w1_ref[...], preferred_element_type=jnp.float32)
    t1 = jnp.maximum(t1, 0.0).astype(jnp.bfloat16)
    x1234 = jnp.concatenate([t1, y_ref[...]], axis=-1)            # (TM, dim) bf16
    h = jnp.dot(x1234, wh1_ref[...], preferred_element_type=jnp.float32)
    h = jnp.maximum(h, 0.0).astype(jnp.bfloat16)
    t = jnp.dot(h, wh2_ref[...], preferred_element_type=jnp.float32)  # (TM, dim+1)
    desc = t[:, :dim]
    inv = jax.lax.rsqrt(jnp.maximum(jnp.sum(desc * desc, axis=-1, keepdims=True),
                                    1e-24))
    desc_ref[...] = (desc * inv).astype(desc_ref.dtype)
    # score stored as (TM, 1); total volume is tiny so the lane-sparse store
    # is acceptable.
    score_ref[...] = jax.nn.sigmoid(t[:, dim:dim + 1])


def _nms_kernel(s_ref, o_ref, *, T, W, H, r, PAD, border):
    """Fused simple_nms (3x pool chain) + DKD border zeroing on a row tile.

    s_ref: (H + 2*PAD, W) f32 resident zero-padded scores (full map).
    o_ref: (T, W) f32 suppressed scores for rows [i*T, i*T+T).
    Zero-fill is equivalent to -inf here since every pooled quantity is >= 0
    and the window always contains its center.
    """
    i = pl.program_id(1)
    Ht = T + 2 * PAD
    start = i * T
    if T % 8 == 0:
        start = pl.multiple_of(start, 8)
    tile = s_ref[pl.ds(start, Ht), :]                             # (Ht, W)

    def shift_rows(v, d):
        z = jnp.zeros((abs(d), W), v.dtype)
        if d > 0:
            return jnp.concatenate([v[d:, :], z], axis=0)
        return jnp.concatenate([z, v[:d, :]], axis=0)

    def shift_cols(v, d):
        z = jnp.zeros((Ht, abs(d)), v.dtype)
        if d > 0:
            return jnp.concatenate([v[:, d:], z], axis=1)
        return jnp.concatenate([z, v[:, :d]], axis=1)

    def pool(v):
        rm = v
        for d in range(1, r + 1):
            rm = jnp.maximum(rm, jnp.maximum(shift_cols(v, d), shift_cols(v, -d)))
        out = rm
        for d in range(1, r + 1):
            out = jnp.maximum(out,
                              jnp.maximum(shift_rows(rm, d), shift_rows(rm, -d)))
        return out

    zeros = jnp.zeros_like(tile)
    max_mask = tile == pool(tile)
    for _ in range(2):
        supp_mask = pool(max_mask.astype(jnp.float32)) > 0.0
        supp_scores = jnp.where(supp_mask, zeros, tile)
        new_max = supp_scores == pool(supp_scores)
        max_mask = max_mask | (new_max & (~supp_mask))
    res = jnp.where(max_mask, tile, zeros)

    center = res[PAD:PAD + T, :]
    rg = jax.lax.broadcasted_iota(jnp.int32, (T, W), 0) + i * T
    cg = jax.lax.broadcasted_iota(jnp.int32, (T, W), 1)
    keep = ((rg >= border + 1) & (rg < H - border) &
            (cg >= border + 1) & (cg < W - border))
    o_ref[...] = jnp.where(keep, center, 0.0)


# --------------------------- Pallas call wrappers ---------------------------

def conv3x3_layer(x, p, relu=True, residual=None, target_m=4096):
    B, H, W, C = x.shape
    N = p['w'].shape[1]
    T = _pick_tile(H, max(1, target_m // W))
    nt = H // T

    # pre-gather the single halo row above / below every tile (tiny).
    zrow = jnp.zeros((B, 1, W, C), x.dtype)
    if nt > 1:
        top = jnp.concatenate([zrow, x[:, T - 1:H - 1:T]], axis=1)
        bot = jnp.concatenate([x[:, T::T], zrow], axis=1)
    else:
        top, bot = zrow, zrow
    halos = jnp.stack([top, bot], axis=2)                         # (B, nt, 2, W, C)

    has_res = residual is not None
    in_specs = [
        pl.BlockSpec((None, T, W, C), lambda b, i: (b, i, 0, 0)),
        pl.BlockSpec((None, None, 2, W, C), lambda b, i: (b, i, 0, 0, 0)),
        pl.BlockSpec((9 * C, N), lambda b, i: (0, 0)),
        pl.BlockSpec((1, N), lambda b, i: (0, 0)),
    ]
    args = [x, halos, p['w'], p['bias']]
    if has_res:
        in_specs.append(pl.BlockSpec((None, T, W, N), lambda b, i: (b, i, 0, 0)))
        args.append(residual)

    return pl.pallas_call(
        functools.partial(_conv3x3_kernel, T=T, W=W, C=C, N=N,
                          relu=relu, has_res=has_res),
        out_shape=jax.ShapeDtypeStruct((B, H, W, N), jnp.bfloat16),
        grid=(B, nt),
        in_specs=in_specs,
        out_specs=pl.BlockSpec((None, T, W, N), lambda b, i: (b, i, 0, 0)),
        scratch_shapes=[pltpu.VMEM((T + 2, W, C), jnp.bfloat16)],
        compiler_params=_cparams(),
    )(*args)


def conv1x1_layer(x, w, bias=None, relu=False, target_m=4096):
    B, H, W, C = x.shape
    N = w.shape[1]
    M = H * W
    TM = _pick_tile(M, target_m, mult=8)
    xf = x.reshape(B, M, C)
    b = jnp.zeros((1, N), jnp.float32) if bias is None else bias
    y = pl.pallas_call(
        functools.partial(_conv1x1_kernel, relu=relu),
        out_shape=jax.ShapeDtypeStruct((B, M, N), jnp.bfloat16),
        grid=(B, M // TM),
        in_specs=[pl.BlockSpec((None, TM, C), lambda bb, i: (bb, i, 0)),
                  pl.BlockSpec((C, N), lambda bb, i: (0, 0)),
                  pl.BlockSpec((1, N), lambda bb, i: (0, 0))],
        out_specs=pl.BlockSpec((None, TM, N), lambda bb, i: (bb, i, 0)),
        compiler_params=_cparams(),
    )(xf, w, b)
    return y.reshape(B, H, W, N)


def head_fused(x1, y234, w1, wh1, wh2, dim, target_m=4096):
    B, H, W, c1 = x1.shape
    d3 = y234.shape[-1]
    M = H * W
    TM = _pick_tile(M, target_m, mult=8)
    x1f = x1.reshape(B, M, c1)
    yf = y234.reshape(B, M, d3)
    desc, score = pl.pallas_call(
        functools.partial(_head_kernel, dim=dim),
        out_shape=(jax.ShapeDtypeStruct((B, M, dim), jnp.bfloat16),
                   jax.ShapeDtypeStruct((B, M, 1), jnp.float32)),
        grid=(B, M // TM),
        in_specs=[pl.BlockSpec((None, TM, c1), lambda b, i: (b, i, 0)),
                  pl.BlockSpec((None, TM, d3), lambda b, i: (b, i, 0)),
                  pl.BlockSpec((c1, dim // 4), lambda b, i: (0, 0)),
                  pl.BlockSpec((dim, dim), lambda b, i: (0, 0)),
                  pl.BlockSpec((dim, dim + 1), lambda b, i: (0, 0))],
        out_specs=(pl.BlockSpec((None, TM, dim), lambda b, i: (b, i, 0)),
                   pl.BlockSpec((None, TM, 1), lambda b, i: (b, i, 0))),
        compiler_params=_cparams(),
    )(x1f, yf, w1, wh1, wh2)
    return desc.reshape(B, H, W, dim), score.reshape(B, H, W, 1)


def nms_border(scores, nms_radius, border, target_m=4096):
    """simple_nms + DKD border zeroing, tiled over rows with a 5r halo."""
    B, H, W = scores.shape
    PAD = 5 * nms_radius                   # exact dependency radius of the chain
    T = _pick_tile(H, max(8, target_m // max(1, W)), mult=8)
    sp = jnp.pad(scores, ((0, 0), (PAD, PAD), (0, 0)))
    return pl.pallas_call(
        functools.partial(_nms_kernel, T=T, W=W, H=H, r=nms_radius,
                          PAD=PAD, border=border),
        out_shape=jax.ShapeDtypeStruct((B, H, W), jnp.float32),
        grid=(B, H // T),
        in_specs=[pl.BlockSpec((None, H + 2 * PAD, W), lambda b, i: (b, 0, 0))],
        out_specs=pl.BlockSpec((None, T, W), lambda b, i: (b, i, 0)),
        compiler_params=_cparams(),
    )(sp)


# ------------------------------- JAX glue ----------------------------------

def maxpool_ds(x, k):
    # nn.MaxPool2d(k, k) downsampling
    B, H, W, C = x.shape
    return x.reshape(B, H // k, k, W // k, k, C).max(axis=(2, 4))


def upsample_bilinear_ac(x, out_h, out_w):
    # nn.Upsample(mode='bilinear', align_corners=True)
    B, H, W, C = x.shape
    ys = (jnp.arange(out_h, dtype=jnp.float32) * (H - 1) / (out_h - 1)
          if H > 1 else jnp.zeros((out_h,), jnp.float32))
    xs = (jnp.arange(out_w, dtype=jnp.float32) * (W - 1) / (out_w - 1)
          if W > 1 else jnp.zeros((out_w,), jnp.float32))
    y0 = jnp.floor(ys).astype(jnp.int32)
    x0 = jnp.floor(xs).astype(jnp.int32)
    y1 = jnp.minimum(y0 + 1, H - 1)
    x1 = jnp.minimum(x0 + 1, W - 1)
    wy = (ys - y0.astype(jnp.float32))[None, :, None, None]
    wx = (xs - x0.astype(jnp.float32))[None, None, :, None]
    a = x[:, y0][:, :, x0]
    b = x[:, y0][:, :, x1]
    c = x[:, y1][:, :, x0]
    d = x[:, y1][:, :, x1]
    top = a * (1.0 - wx) + b * wx
    bot = c * (1.0 - wx) + d * wx
    return top * (1.0 - wy) + bot * wy


def grid_sample_bilinear(img, grid_xy):
    # img: (H, W); grid_xy: (N, 2) in [-1, 1]; align_corners=True, zero padding
    H, W = img.shape
    x = (grid_xy[:, 0] + 1.0) * 0.5 * (W - 1)
    y = (grid_xy[:, 1] + 1.0) * 0.5 * (H - 1)
    x0 = jnp.floor(x)
    y0 = jnp.floor(y)

    def gather(yi, xi):
        ok = (yi >= 0) & (yi <= H - 1) & (xi >= 0) & (xi <= W - 1)
        yc = jnp.clip(yi, 0, H - 1).astype(jnp.int32)
        xc = jnp.clip(xi, 0, W - 1).astype(jnp.int32)
        return jnp.where(ok, img[yc, xc], 0.0)

    wx1 = x - x0
    wy1 = y - y0
    wx0 = 1.0 - wx1
    wy0 = 1.0 - wy1
    return (gather(y0, x0) * wy0 * wx0 + gather(y0, x0 + 1) * wy0 * wx1 +
            gather(y0 + 1, x0) * wy1 * wx0 + gather(y0 + 1, x0 + 1) * wy1 * wx1)


def sample_descriptor_nearest(desc_map, kpts_xy, H, W):
    # desc_map: (H, W, D) bf16; kpts normalized [-1, 1]; nearest (torch .long())
    wh = jnp.array([W - 1, H - 1], jnp.float32)
    pix = jnp.floor((kpts_xy + 1.0) / 2.0 * wh).astype(jnp.int32)
    d = desc_map[pix[:, 1], pix[:, 0], :].astype(jnp.float32)
    nrm = jnp.sqrt(jnp.sum(d * d, axis=-1, keepdims=True))
    return d / jnp.maximum(nrm, 1e-12)


# ----------------------------- model forward --------------------------------

def resblock(x, p, target_m):
    out = conv3x3_layer(x, p['c1'], relu=True, target_m=target_m)
    identity = conv1x1_layer(x, p['down_w'], bias=p['down_b'], relu=False,
                             target_m=target_m)
    return conv3x3_layer(out, p['c2'], relu=True, residual=identity,
                         target_m=target_m)


def alnet_forward(params, image, dim, target_m):
    B, H, W, _ = image.shape
    x1 = conv3x3_layer(image, params['b1c1'], relu=True, target_m=target_m)
    x1 = conv3x3_layer(x1, params['b1c2'], relu=True, target_m=target_m)
    x2 = maxpool_ds(x1, 2)
    x2 = resblock(x2, params['b2'], target_m)
    x3 = maxpool_ds(x2, 4)
    x3 = resblock(x3, params['b3'], target_m)
    x4 = maxpool_ds(x3, 4)
    x4 = resblock(x4, params['b4'], target_m)

    # low-resolution Y-heads (1x1 conv + ReLU) computed at their native size
    y2 = conv1x1_layer(x2, params['conv2_w'], relu=True, target_m=target_m)
    y3 = conv1x1_layer(x3, params['conv3_w'], relu=True, target_m=target_m)
    y4 = conv1x1_layer(x4, params['conv4_w'], relu=True, target_m=target_m)

    # TODO(synk): fuse this bilinear upsample + concat into the head kernel to
    #             remove one full-resolution bf16 HBM roundtrip.
    y2u = upsample_bilinear_ac(y2.astype(jnp.float32), H, W)
    y3u = upsample_bilinear_ac(y3.astype(jnp.float32), H, W)
    y4u = upsample_bilinear_ac(y4.astype(jnp.float32), H, W)
    y234 = jnp.concatenate([y2u, y3u, y4u], axis=-1).astype(jnp.bfloat16)

    # fused: conv1(x1)+ReLU | concat | convhead1+ReLU (single_head=False) |
    #        convhead2 | sigmoid | per-pixel L2 norm
    desc_map, scores_map = head_fused(x1, y234, params['conv1_w'],
                                      params['head1_w'], params['head2_w'],
                                      dim, target_m)
    return scores_map, desc_map


def extract_dense_map(params, image, dim, target_m):
    B, H, W, _ = image.shape
    h_ = math.ceil(H / 32) * 32
    w_ = math.ceil(W / 32) * 32
    if h_ != H or w_ != W:
        image = jnp.pad(image, ((0, 0), (0, h_ - H), (0, w_ - W), (0, 0)))
    scores_map, desc_map = alnet_forward(params, image.astype(jnp.bfloat16),
                                         dim, target_m)
    if h_ != H or w_ != W:
        scores_map = scores_map[:, :H, :W, :]
        desc_map = desc_map[:, :H, :W, :]
    return desc_map, scores_map


def alike_forward(params, img_hw3, dim, top_k=16, radius=2, target_m=None):
    if target_m is None:
        target_m = _default_target_m()
    H, W, _ = img_hw3.shape
    image = (img_hw3.astype(jnp.float32) / 255.0)[None]          # (1, H, W, 3)
    desc_map, scores_map = extract_dense_map(params, image, dim, target_m)
    scores = scores_map[..., 0]                                  # (1, H, W) f32

    # --- DKD.detect_keypoints, top_k mode, sub_pixel=False ---
    nms = nms_border(scores, 2, radius, target_m)                # NMS + border
    _, idx = jax.lax.top_k(nms.reshape(1, -1), top_k)
    idx = idx[0]
    wh = jnp.array([W - 1, H - 1], jnp.float32)
    kx = (idx % W).astype(jnp.float32)
    ky = (idx // W).astype(jnp.float32)
    kp_xy = jnp.stack([kx, ky], axis=-1) / wh * 2.0 - 1.0        # normalized
    kptscores = grid_sample_bilinear(scores[0], kp_xy)
    descriptors = sample_descriptor_nearest(desc_map[0], kp_xy, H, W)
    keypoints = (kp_xy + 1.0) / 2.0 * wh                         # pixel coords

    return {'keypoints': keypoints,
            'descriptors': descriptors,
            'scores': kptscores,
            'scores_map': jnp.transpose(scores_map, (0, 3, 1, 2))}   # NCHW


# ----------------------------- parameter init -------------------------------

def init_params(key, c1, c2, c3, c4, dim):
    keys = iter(jax.random.split(key, 64))

    def nk():
        return next(keys)

    def conv3x3_bn_params(cin, cout):
        w = jax.random.normal(nk(), (3, 3, cin, cout), jnp.float32) / math.sqrt(9 * cin)
        gamma = 1.0 + 0.1 * jax.random.normal(nk(), (cout,), jnp.float32)
        beta = 0.1 * jax.random.normal(nk(), (cout,), jnp.float32)
        mean = 0.1 * jax.random.normal(nk(), (cout,), jnp.float32)
        var = 0.5 + jax.random.uniform(nk(), (cout,), jnp.float32)
        scale = gamma / jnp.sqrt(var + 1e-5)
        bias = beta - mean * scale
        wf = (w * scale[None, None, None, :]).reshape(9 * cin, cout)
        return {'w': wf.astype(jnp.bfloat16),
                'bias': bias.reshape(1, cout).astype(jnp.float32)}

    def conv1x1_w(cin, cout):
        w = jax.random.normal(nk(), (cin, cout), jnp.float32) / math.sqrt(cin)
        return w.astype(jnp.bfloat16)

    def resblock_params(cin, cout):
        return {'c1': conv3x3_bn_params(cin, cout),
                'c2': conv3x3_bn_params(cout, cout),
                'down_w': conv1x1_w(cin, cout),
                'down_b': (0.1 * jax.random.normal(nk(), (cout,), jnp.float32)
                           ).reshape(1, cout)}

    return {
        'b1c1': conv3x3_bn_params(3, c1),
        'b1c2': conv3x3_bn_params(c1, c1),
        'b2': resblock_params(c1, c2),
        'b3': resblock_params(c2, c3),
        'b4': resblock_params(c3, c4),
        'conv1_w': conv1x1_w(c1, dim // 4),
        'conv2_w': conv1x1_w(c2, dim // 4),
        'conv3_w': conv1x1_w(c3, dim // 4),
        # conv4 input channel count is c4 (the reference module requires c4==dim)
        'conv4_w': conv1x1_w(c4, dim // 4),
        'head1_w': conv1x1_w(dim, dim),
        'head2_w': conv1x1_w(dim, dim + 1),
    }


# ---------------------------------- main -------------------------------------

if __name__ == "__main__":
    key = jax.random.PRNGKey(0)
    k_img, k_par = jax.random.split(key)
    # small config consistent with ALNet(c1, c2, c3, c4, dim) with c4 == dim
    c1, c2, c3, c4, dim = 8, 16, 32, 32, 32
    H, W = 32, 32
    params = init_params(k_par, c1, c2, c3, c4, dim)
    img = jax.random.uniform(k_img, (H, W, 3), jnp.float32, minval=0.0, maxval=255.0)
    # small target_m so the multi-tile + halo paths are exercised at this size
    fwd = jax.jit(functools.partial(alike_forward, dim=dim, top_k=16, radius=2,
                                    target_m=128))
    out = fwd(params, img)
    jax.block_until_ready(out)
    print("KERNEL_OK")
</pallas_src>

<mosaic_0001>
module attributes {stable_mosaic.version = 11 : i64} {
  func.func @_conv3x3_kernel(%arg0: i32, %arg1: i32, %arg2: memref<1x4x32x3xbf16, #tpu.memory_space<vmem>>, %arg3: memref<1x1x2x32x3xbf16, #tpu.memory_space<vmem>>, %arg4: memref<27x8xbf16, #tpu.memory_space<vmem>>, %arg5: memref<1x8xf32, #tpu.memory_space<vmem>>, %arg6: memref<1x4x32x8xbf16, #tpu.memory_space<vmem>>, %arg7: memref<6x32x3xbf16, #tpu.memory_space<vmem>>) attributes {dimension_semantics = [#tpu.dimension_semantics<parallel>, #tpu.dimension_semantics<parallel>], iteration_bounds = array<i64: 1, 8>, scalar_prefetch = 0 : i64, scratch_operands = 1 : i64, tpu.core_type = #tpu.core_type<tc>, window_params = [{transform_indices = @transform_0, window_bounds = array<i64: 1, 4, 32, 3>}, {transform_indices = @transform_1, window_bounds = array<i64: 1, 1, 2, 32, 3>}, {pipeline_mode = #tpu.pipeline_mode<synchronous>, transform_indices = @transform_2, window_bounds = array<i64: 27, 8>}, {pipeline_mode = #tpu.pipeline_mode<synchronous>, transform_indices = @transform_3, window_bounds = array<i64: 1, 8>}, {transform_indices = @transform_4, window_bounds = array<i64: 1, 4, 32, 8>}]} {
    %c0 = arith.constant 0 : index
    %c0_0 = arith.constant 0 : index
    %c0_1 = arith.constant 0 : index
    %c0_2 = arith.constant 0 : index
    %c0_3 = arith.constant 0 : index
    %0 = vector.load %arg3[%c0, %c0_0, %c0_1, %c0_2, %c0_3] : memref<1x1x2x32x3xbf16, #tpu.memory_space<vmem>>, vector<1x1x1x32x3xbf16>
    %1 = vector.shape_cast %0 : vector<1x1x1x32x3xbf16> to vector<1x32x3xbf16>
    %c0_4 = arith.constant 0 : index
    %c0_5 = arith.constant 0 : index
    %c0_6 = arith.constant 0 : index
    %2 = vector.load %arg7[%c0_4, %c0_5, %c0_6] : memref<6x32x3xbf16, #tpu.memory_space<vmem>>, vector<1x32x3xbf16>
    tpu.vector_store %arg7[%c0_4, %c0_5, %c0_6], %1 {strides = array<i32>} : memref<6x32x3xbf16, #tpu.memory_space<vmem>>, vector<1x32x3xbf16>,
    %c0_7 = arith.constant 0 : index
    %c0_8 = arith.constant 0 : index
    %c0_9 = arith.constant 0 : index
    %c0_10 = arith.constant 0 : index
    %3 = vector.load %arg2[%c0_7, %c0_8, %c0_9, %c0_10] : memref<1x4x32x3xbf16, #tpu.memory_space<vmem>>, vector<1x4x32x3xbf16>
    %4 = vector.shape_cast %3 : vector<1x4x32x3xbf16> to vector<4x32x3xbf16>
    %c1 = arith.constant 1 : index
    %c0_11 = arith.constant 0 : index
    %c0_12 = arith.constant 0 : index
    %5 = vector.load %arg7[%c1, %c0_11, %c0_12] : memref<6x32x3xbf16, #tpu.memory_space<vmem>>, vector<4x32x3xbf16>
    tpu.vector_store %arg7[%c1, %c0_11, %c0_12], %4 {strides = array<i32>} : memref<6x32x3xbf16, #tpu.memory_space<vmem>>, vector<4x32x3xbf16>,
    %c0_13 = arith.constant 0 : index
    %c0_14 = arith.constant 0 : index
    %c1_15 = arith.constant 1 : index
    %c0_16 = arith.constant 0 : index
    %c0_17 = arith.constant 0 : index
    %6 = vector.load %arg3[%c0_13, %c0_14, %c1_15, %c0_16, %c0_17] : memref<1x1x2x32x3xbf16, #tpu.memory_space<vmem>>, vector<1x1x1x32x3xbf16>
    %7 = vector.shape_cast %6 : vector<1x1x1x32x3xbf16> to vector<1x32x3xbf16>
    %c5 = arith.constant 5 : index
    %c0_18 = arith.constant 0 : index
    %c0_19 = arith.constant 0 : index
    %8 = vector.load %arg7[%c5, %c0_18, %c0_19] : memref<6x32x3xbf16, #tpu.memory_space<vmem>>, vector<1x32x3xbf16>
    tpu.vector_store %arg7[%c5, %c0_18, %c0_19], %7 {strides = array<i32>} : memref<6x32x3xbf16, #tpu.memory_space<vmem>>, vector<1x32x3xbf16>,
    %cst = arith.constant 0.000000e+00 : bf16
    %9 = vector.broadcast %cst : bf16 to vector<1x3xbf16>
    %c0_i32 = arith.constant 0 : i32
    %c4_i32 = arith.constant 4 : i32
    %10 = arith.addi %c0_i32, %c4_i32 : i32
    %c1_i32 = arith.constant 1 : i32
    scf.for %arg8 = %c0_i32 to %10 step %c1_i32  : i32 {
      %c0_i32_21 = arith.constant 0 : i32
      %11 = arith.addi %arg8, %c0_i32_21 : i32
      %12 = arith.index_cast %11 : i32 to index
      %c0_22 = arith.constant 0 : index
      %c0_23 = arith.constant 0 : index
      %13 = vector.load %arg7[%12, %c0_22, %c0_23] : memref<6x32x3xbf16, #tpu.memory_space<vmem>>, vector<1x32x3xbf16>
      %14 = vector.shape_cast %13 : vector<1x32x3xbf16> to vector<32x3xbf16>
      %15 = tpu.concatenate %9, %14, %9 in 0 : vector<1x3xbf16>, vector<32x3xbf16>, vector<1x3xbf16> -> vector<34x3xbf16>
      %16 = vector.extract_strided_slice %15 {offsets = [0, 0], sizes = [32, 3], strides = [1, 1]} : vector<34x3xbf16> to vector<32x3xbf16>
      %17 = vector.extract_strided_slice %15 {offsets = [1, 0], sizes = [32, 3], strides = [1, 1]} : vector<34x3xbf16> to vector<32x3xbf16>
      %18 = vector.extract_strided_slice %15 {offsets = [2, 0], sizes = [32, 3], strides = [1, 1]} : vector<34x3xbf16> to vector<32x3xbf16>
      %c1_i32_24 = arith.constant 1 : i32
      %19 = arith.addi %arg8, %c1_i32_24 : i32
      %20 = arith.index_cast %19 : i32 to index
      %c0_25 = arith.constant 0 : index
      %c0_26 = arith.constant 0 : index
      %21 = vector.load %arg7[%20, %c0_25, %c0_26] : memref<6x32x3xbf16, #tpu.memory_space<vmem>>, vector<1x32x3xbf16>
      %22 = vector.shape_cast %21 : vector<1x32x3xbf16> to vector<32x3xbf16>
      %23 = tpu.concatenate %9, %22, %9 in 0 : vector<1x3xbf16>, vector<32x3xbf16>, vector<1x3xbf16> -> vector<34x3xbf16>
      %24 = vector.extract_strided_slice %23 {offsets = [0, 0], sizes = [32, 3], strides = [1, 1]} : vector<34x3xbf16> to vector<32x3xbf16>
      %25 = vector.extract_strided_slice %23 {offsets = [1, 0], sizes = [32, 3], strides = [1, 1]} : vector<34x3xbf16> to vector<32x3xbf16>
      %26 = vector.extract_strided_slice %23 {offsets = [2, 0], sizes = [32, 3], strides = [1, 1]} : vector<34x3xbf16> to vector<32x3xbf16>
      %c2_i32 = arith.constant 2 : i32
      %27 = arith.addi %arg8, %c2_i32 : i32
      %28 = arith.index_cast %27 : i32 to index
      %c0_27 = arith.constant 0 : index
      %c0_28 = arith.constant 0 : index
      %29 = vector.load %arg7[%28, %c0_27, %c0_28] : memref<6x32x3xbf16, #tpu.memory_space<vmem>>, vector<1x32x3xbf16>
      %30 = vector.shape_cast %29 : vector<1x32x3xbf16> to vector<32x3xbf16>
      %31 = tpu.concatenate %9, %30, %9 in 0 : vector<1x3xbf16>, vector<32x3xbf16>, vector<1x3xbf16> -> vector<34x3xbf16>
      %32 = vector.extract_strided_slice %31 {offsets = [0, 0], sizes = [32, 3], strides = [1, 1]} : vector<34x3xbf16> to vector<32x3xbf16>
      %33 = vector.extract_strided_slice %31 {offsets = [1, 0], sizes = [32, 3], strides = [1, 1]} : vector<34x3xbf16> to vector<32x3xbf16>
      %34 = vector.extract_strided_slice %31 {offsets = [2, 0], sizes = [32, 3], strides = [1, 1]} : vector<34x3xbf16> to vector<32x3xbf16>
      %35 = tpu.concatenate %16, %17, %18, %24, %25, %26, %32, %33, %34 in 1 : vector<32x3xbf16>, vector<32x3xbf16>, vector<32x3xbf16>, vector<32x3xbf16>, vector<32x3xbf16>, vector<32x3xbf16>, vector<32x3xbf16>, vector<32x3xbf16>, vector<32x3xbf16> -> vector<32x27xbf16>
      %c0_29 = arith.constant 0 : index
      %c0_30 = arith.constant 0 : index
      %36 = vector.load %arg4[%c0_29, %c0_30] : memref<27x8xbf16, #tpu.memory_space<vmem>>, vector<27x8xbf16>
      %cst_31 = arith.constant dense<0.000000e+00> : vector<32x8xf32>
      %37 = tpu.matmul %35, %36, %cst_31 {dimension_numbers = #tpu.dot_dimension_numbers<[1], [0], [0], [1], [0, 0, 1, 1], [], []>} : vector<32x27xbf16>, vector<27x8xbf16>, vector<32x8xf32> -> vector<32x8xf32>
      %c0_32 = arith.constant 0 : index
      %c0_33 = arith.constant 0 : index
      %38 = vector.load %arg5[%c0_32, %c0_33] : memref<1x8xf32, #tpu.memory_space<vmem>>, vector<1x8xf32>
      %39 = vector.broadcast %38 : vector<1x8xf32> to vector<32x8xf32>
      %40 = arith.addf %37, %39 : vector<32x8xf32>
      %cst_34 = arith.constant 0.000000e+00 : f32
      %41 = vector.broadcast %cst_34 : f32 to vector<32x8xf32>
      %42 = arith.maximumf %40, %41 : vector<32x8xf32>
      %43 = arith.truncf %42 : vector<32x8xf32> to vector<32x8xbf16>
      %c0_35 = arith.constant 0 : index
      %44 = arith.index_cast %arg8 : i32 to index
      %c0_36 = arith.constant 0 : index
      %c0_37 = arith.constant 0 : index
      %45 = vector.load %arg6[%c0_35, %44, %c0_36, %c0_37] : memref<1x4x32x8xbf16, #tpu.memory_space<vmem>>, vector<1x1x32x8xbf16>
      %46 = vector.shape_cast %45 : vector<1x1x32x8xbf16> to vector<32x8xbf16>
      %47 = vector.shape_cast %43 : vector<32x8xbf16> to vector<1x1x32x8xbf16>
      tpu.vector_store %arg6[%c0_35, %44, %c0_36, %c0_37], %47 {strides = array<i32>} : memref<1x4x32x8xbf16, #tpu.memory_space<vmem>>, vector<1x1x32x8xbf16>,
    }
    %c4_i32_20 = arith.constant 4 : i32
    return
  }
  func.func @transform_0(%arg0: i32, %arg1: i32) -> (i32, i32, i32, i32) {
    %c0_i32 = arith.constant 0 : i32
    %c0_i32_0 = arith.constant 0 : i32
    %c0_i32_1 = arith.constant 0 : i32
    return %arg0, %arg1, %c0_i32, %c0_i32_0 : i32, i32, i32, i32
  }
  func.func @transform_1(%arg0: i32, %arg1: i32) -> (i32, i32, i32, i32, i32) {
    %c0_i32 = arith.constant 0 : i32
    %c0_i32_0 = arith.constant 0 : i32
    %c0_i32_1 = arith.constant 0 : i32
    %c0_i32_2 = arith.constant 0 : i32
    return %arg0, %arg1, %c0_i32, %c0_i32_0, %c0_i32_1 : i32, i32, i32, i32, i32
  }
  func.func @transform_2(%arg0: i32, %arg1: i32) -> (i32, i32) {
    %c0_i32 = arith.constant 0 : i32
    %c0_i32_0 = arith.constant 0 : i32
    %c0_i32_1 = arith.constant 0 : i32
    return %c0_i32, %c0_i32_0 : i32, i32
  }
  func.func @transform_3(%arg0: i32, %arg1: i32) -> (i32, i32) {
    %c0_i32 = arith.constant 0 : i32
    %c0_i32_0 = arith.constant 0 : i32
    %c0_i32_1 = arith.constant 0 : i32
    return %c0_i32, %c0_i32_0 : i32, i32
  }
  func.func @transform_4(%arg0: i32, %arg1: i32) -> (i32, i32, i32, i32) {
    %c0_i32 = arith.constant 0 : i32
    %c0_i32_0 = arith.constant 0 : i32
    %c0_i32_1 = arith.constant 0 : i32
    return %arg0, %arg1, %c0_i32, %c0_i32_0 : i32, i32, i32, i32
  }
}

module attributes {stable_mosaic.version = 11 : i64} {
  func.func @_conv3x3_kernel(%arg0: i32, %arg1: i32, %arg2: memref<1x4x32x8xbf16, #tpu.memory_space<vmem>>, %arg3: memref<1x1x2x32x8xbf16, #tpu.memory_space<vmem>>, %arg4: memref<72x8xbf16, #tpu.memory_space<vmem>>, %arg5: memref<1x8xf32, #tpu.memory_space<vmem>>, %arg6: memref<1x4x32x8xbf16, #tpu.memory_space<vmem>>, %arg7: memref<6x32x8xbf16, #tpu.memory_space<vmem>>) attributes {dimension_semantics = [#tpu.dimension_semantics<parallel>, #tpu.dimension_semantics<parallel>], iteration_bounds = array<i64: 1, 8>, scalar_prefetch = 0 : i64, scratch_operands = 1 : i64, tpu.core_type = #tpu.core_type<tc>, window_params = [{transform_indices = @transform_0, window_bounds = array<i64: 1, 4, 32, 8>}, {transform_indices = @transform_1, window_bounds = array<i64: 1, 1, 2, 32, 8>}, {pipeline_mode = #tpu.pipeline_mode<synchronous>, transform_indices = @transform_2, window_bounds = array<i64: 72, 8>}, {pipeline_mode = #tpu.pipeline_mode<synchronous>, transform_indices = @transform_3, window_bounds = array<i64: 1, 8>}, {transform_indices = @transform_4, window_bounds = array<i64: 1, 4, 32, 8>}]} {
    %c0 = arith.constant 0 : index
    %c0_0 = arith.constant 0 : index
    %c0_1 = arith.constant 0 : index
    %c0_2 = arith.constant 0 : index
    %c0_3 = arith.constant 0 : index
    %0 = vector.load %arg3[%c0, %c0_0, %c0_1, %c0_2, %c0_3] : memref<1x1x2x32x8xbf16, #tpu.memory_space<vmem>>, vector<1x1x1x32x8xbf16>
    %1 = vector.shape_cast %0 : vector<1x1x1x32x8xbf16> to vector<1x32x8xbf16>
    %c0_4 = arith.constant 0 : index
    %c0_5 = arith.constant 0 : index
    %c0_6 = arith.constant 0 : index
    %2 = vector.load %arg7[%c0_4, %c0_5, %c0_6] : memref<6x32x8xbf16, #tpu.memory_space<vmem>>, vector<1x32x8xbf16>
    tpu.vector_store %arg7[%c0_4, %c0_5, %c0_6], %1 {strides = array<i32>} : memref<6x32x8xbf16, #tpu.memory_space<vmem>>, vector<1x32x8xbf16>,
    %c0_7 = arith.constant 0 : index
    %c0_8 = arith.constant 0 : index
    %c0_9 = arith.constant 0 : index
    %c0_10 = arith.constant 0 : index
    %3 = vector.load %arg2[%c0_7, %c0_8, %c0_9, %c0_10] : memref<1x4x32x8xbf16, #tpu.memory_space<vmem>>, vector<1x4x32x8xbf16>
    %4 = vector.shape_cast %3 : vector<1x4x32x8xbf16> to vector<4x32x8xbf16>
    %c1 = arith.constant 1 : index
    %c0_11 = arith.constant 0 : index
    %c0_12 = arith.constant 0 : index
    %5 = vector.load %arg7[%c1, %c0_11, %c0_12] : memref<6x32x8xbf16, #tpu.memory_space<vmem>>, vector<4x32x8xbf16>
    tpu.vector_store %arg7[%c1, %c0_11, %c0_12], %4 {strides = array<i32>} : memref<6x32x8xbf16, #tpu.memory_space<vmem>>, vector<4x32x8xbf16>,
    %c0_13 = arith.constant 0 : index
    %c0_14 = arith.constant 0 : index
    %c1_15 = arith.constant 1 : index
    %c0_16 = arith.constant 0 : index
    %c0_17 = arith.constant 0 : index
    %6 = vector.load %arg3[%c0_13, %c0_14, %c1_15, %c0_16, %c0_17] : memref<1x1x2x32x8xbf16, #tpu.memory_space<vmem>>, vector<1x1x1x32x8xbf16>
    %7 = vector.shape_cast %6 : vector<1x1x1x32x8xbf16> to vector<1x32x8xbf16>
    %c5 = arith.constant 5 : index
    %c0_18 = arith.constant 0 : index
    %c0_19 = arith.constant 0 : index
    %8 = vector.load %arg7[%c5, %c0_18, %c0_19] : memref<6x32x8xbf16, #tpu.memory_space<vmem>>, vector<1x32x8xbf16>
    tpu.vector_store %arg7[%c5, %c0_18, %c0_19], %7 {strides = array<i32>} : memref<6x32x8xbf16, #tpu.memory_space<vmem>>, vector<1x32x8xbf16>,
    %cst = arith.constant 0.000000e+00 : bf16
    %9 = vector.broadcast %cst : bf16 to vector<1x8xbf16>
    %c0_i32 = arith.constant 0 : i32
    %c4_i32 = arith.constant 4 : i32
    %10 = arith.addi %c0_i32, %c4_i32 : i32
    %c1_i32 = arith.constant 1 : i32
    scf.for %arg8 = %c0_i32 to %10 step %c1_i32  : i32 {
      %c0_i32_21 = arith.constant 0 : i32
      %11 = arith.addi %arg8, %c0_i32_21 : i32
      %12 = arith.index_cast %11 : i32 to index
      %c0_22 = arith.constant 0 : index
      %c0_23 = arith.constant 0 : index
      %13 = vector.load %arg7[%12, %c0_22, %c0_23] : memref<6x32x8xbf16, #tpu.memory_space<vmem>>, vector<1x32x8xbf16>
      %14 = vector.shape_cast %13 : vector<1x32x8xbf16> to vector<32x8xbf16>
      %15 = tpu.concatenate %9, %14, %9 in 0 : vector<1x8xbf16>, vector<32x8xbf16>, vector<1x8xbf16> -> vector<34x8xbf16>
      %16 = vector.extract_strided_slice %15 {offsets = [0, 0], sizes = [32, 8], strides = [1, 1]} : vector<34x8xbf16> to vector<32x8xbf16>
      %17 = vector.extract_strided_slice %15 {offsets = [1, 0], sizes = [32, 8], strides = [1, 1]} : vector<34x8xbf16> to vector<32x8xbf16>
      %18 = vector.extract_strided_slice %15 {offsets = [2, 0], sizes = [32, 8], strides = [1, 1]} : vector<34x8xbf16> to vector<32x8xbf16>
      %c1_i32_24 = arith.constant 1 : i32
      %19 = arith.addi %arg8, %c1_i32_24 : i32
      %20 = arith.index_cast %19 : i32 to index
      %c0_25 = arith.constant 0 : index
      %c0_26 = arith.constant 0 : index
      %21 = vector.load %arg7[%20, %c0_25, %c0_26] : memref<6x32x8xbf16, #tpu.memory_space<vmem>>, vector<1x32x8xbf16>
      %22 = vector.shape_cast %21 : vector<1x32x8xbf16> to vector<32x8xbf16>
      %23 = tpu.concatenate %9, %22, %9 in 0 : vector<1x8xbf16>, vector<32x8xbf16>, vector<1x8xbf16> -> vector<34x8xbf16>
      %24 = vector.extract_strided_slice %23 {offsets = [0, 0], sizes = [32, 8], strides = [1, 1]} : vector<34x8xbf16> to vector<32x8xbf16>
      %25 = vector.extract_strided_slice %23 {offsets = [1, 0], sizes = [32, 8], strides = [1, 1]} : vector<34x8xbf16> to vector<32x8xbf16>
      %26 = vector.extract_strided_slice %23 {offsets = [2, 0], sizes = [32, 8], strides = [1, 1]} : vector<34x8xbf16> to vector<32x8xbf16>
      %c2_i32 = arith.constant 2 : i32
      %27 = arith.addi %arg8, %c2_i32 : i32
      %28 = arith.index_cast %27 : i32 to index
      %c0_27 = arith.constant 0 : index
      %c0_28 = arith.constant 0 : index
      %29 = vector.load %arg7[%28, %c0_27, %c0_28] : memref<6x32x8xbf16, #tpu.memory_space<vmem>>, vector<1x32x8xbf16>
      %30 = vector.shape_cast %29 : vector<1x32x8xbf16> to vector<32x8xbf16>
      %31 = tpu.concatenate %9, %30, %9 in 0 : vector<1x8xbf16>, vector<32x8xbf16>, vector<1x8xbf16> -> vector<34x8xbf16>
      %32 = vector.extract_strided_slice %31 {offsets = [0, 0], sizes = [32, 8], strides = [1, 1]} : vector<34x8xbf16> to vector<32x8xbf16>
      %33 = vector.extract_strided_slice %31 {offsets = [1, 0], sizes = [32, 8], strides = [1, 1]} : vector<34x8xbf16> to vector<32x8xbf16>
      %34 = vector.extract_strided_slice %31 {offsets = [2, 0], sizes = [32, 8], strides = [1, 1]} : vector<34x8xbf16> to vector<32x8xbf16>
      %35 = tpu.concatenate %16, %17, %18, %24, %25, %26, %32, %33, %34 in 1 : vector<32x8xbf16>, vector<32x8xbf16>, vector<32x8xbf16>, vector<32x8xbf16>, vector<32x8xbf16>, vector<32x8xbf16>, vector<32x8xbf16>, vector<32x8xbf16>, vector<32x8xbf16> -> vector<32x72xbf16>
      %c0_29 = arith.constant 0 : index
      %c0_30 = arith.constant 0 : index
      %36 = vector.load %arg4[%c0_29, %c0_30] : memref<72x8xbf16, #tpu.memory_space<vmem>>, vector<72x8xbf16>
      %cst_31 = arith.constant dense<0.000000e+00> : vector<32x8xf32>
      %37 = tpu.matmul %35, %36, %cst_31 {dimension_numbers = #tpu.dot_dimension_numbers<[1], [0], [0], [1], [0, 0, 1, 1], [], []>} : vector<32x72xbf16>, vector<72x8xbf16>, vector<32x8xf32> -> vector<32x8xf32>
      %c0_32 = arith.constant 0 : index
      %c0_33 = arith.constant 0 : index
      %38 = vector.load %arg5[%c0_32, %c0_33] : memref<1x8xf32, #tpu.memory_space<vmem>>, vector<1x8xf32>
      %39 = vector.broadcast %38 : vector<1x8xf32> to vector<32x8xf32>
      %40 = arith.addf %37, %39 : vector<32x8xf32>
      %cst_34 = arith.constant 0.000000e+00 : f32
      %41 = vector.broadcast %cst_34 : f32 to vector<32x8xf32>
      %42 = arith.maximumf %40, %41 : vector<32x8xf32>
      %43 = arith.truncf %42 : vector<32x8xf32> to vector<32x8xbf16>
      %c0_35 = arith.constant 0 : index
      %44 = arith.index_cast %arg8 : i32 to index
      %c0_36 = arith.constant 0 : index
      %c0_37 = arith.constant 0 : index
      %45 = vector.load %arg6[%c0_35, %44, %c0_36, %c0_37] : memref<1x4x32x8xbf16, #tpu.memory_space<vmem>>, vector<1x1x32x8xbf16>
      %46 = vector.shape_cast %45 : vector<1x1x32x8xbf16> to vector<32x8xbf16>
      %47 = vector.shape_cast %43 : vector<32x8xbf16> to vector<1x1x32x8xbf16>
      tpu.vector_store %arg6[%c0_35, %44, %c0_36, %c0_37], %47 {strides = array<i32>} : memref<1x4x32x8xbf16, #tpu.memory_space<vmem>>, vector<1x1x32x8xbf16>,
    }
    %c4_i32_20 = arith.constant 4 : i32
    return
  }
  func.func @transform_0(%arg0: i32, %arg1: i32) -> (i32, i32, i32, i32) {
    %c0_i32 = arith.constant 0 : i32
    %c0_i32_0 = arith.constant 0 : i32
    %c0_i32_1 = arith.constant 0 : i32
    return %arg0, %arg1, %c0_i32, %c0_i32_0 : i32, i32, i32, i32
  }
  func.func @transform_1(%arg0: i32, %arg1: i32) -> (i32, i32, i32, i32, i32) {
    %c0_i32 = arith.constant 0 : i32
    %c0_i32_0 = arith.constant 0 : i32
    %c0_i32_1 = arith.constant 0 : i32
    %c0_i32_2 = arith.constant 0 : i32
    return %arg0, %arg1, %c0_i32, %c0_i32_0, %c0_i32_1 : i32, i32, i32, i32, i32
  }
  func.func @transform_2(%arg0: i32, %arg1: i32) -> (i32, i32) {
    %c0_i32 = arith.constant 0 : i32
    %c0_i32_0 = arith.constant 0 : i32
    %c0_i32_1 = arith.constant 0 : i32
    return %c0_i32, %c0_i32_0 : i32, i32
  }
  func.func @transform_3(%arg0: i32, %arg1: i32) -> (i32, i32) {
    %c0_i32 = arith.constant 0 : i32
    %c0_i32_0 = arith.constant 0 : i32
    %c0_i32_1 = arith.constant 0 : i32
    return %c0_i32, %c0_i32_0 : i32, i32
  }
  func.func @transform_4(%arg0: i32, %arg1: i32) -> (i32, i32, i32, i32) {
    %c0_i32 = arith.constant 0 : i32
    %c0_i32_0 = arith.constant 0 : i32
    %c0_i32_1 = arith.constant 0 : i32
    return %arg0, %arg1, %c0_i32, %c0_i32_0 : i32, i32, i32, i32
  }
}

module attributes {stable_mosaic.version = 11 : i64} {
  func.func @_conv3x3_kernel(%arg0: i32, %arg1: i32, %arg2: memref<1x8x16x8xbf16, #tpu.memory_space<vmem>>, %arg3: memref<1x1x2x16x8xbf16, #tpu.memory_space<vmem>>, %arg4: memref<72x16xbf16, #tpu.memory_space<vmem>>, %arg5: memref<1x16xf32, #tpu.memory_space<vmem>>, %arg6: memref<1x8x16x16xbf16, #tpu.memory_space<vmem>>, %arg7: memref<10x16x8xbf16, #tpu.memory_space<vmem>>) attributes {dimension_semantics = [#tpu.dimension_semantics<parallel>, #tpu.dimension_semantics<parallel>], iteration_bounds = array<i64: 1, 2>, scalar_prefetch = 0 : i64, scratch_operands = 1 : i64, tpu.core_type = #tpu.core_type<tc>, window_params = [{transform_indices = @transform_0, window_bounds = array<i64: 1, 8, 16, 8>}, {transform_indices = @transform_1, window_bounds = array<i64: 1, 1, 2, 16, 8>}, {pipeline_mode = #tpu.pipeline_mode<synchronous>, transform_indices = @transform_2, window_bounds = array<i64: 72, 16>}, {pipeline_mode = #tpu.pipeline_mode<synchronous>, transform_indices = @transform_3, window_bounds = array<i64: 1, 16>}, {transform_indices = @transform_4, window_bounds = array<i64: 1, 8, 16, 16>}]} {
    %c0 = arith.constant 0 : index
    %c0_0 = arith.constant 0 : index
    %c0_1 = arith.constant 0 : index
    %c0_2 = arith.constant 0 : index
    %c0_3 = arith.constant 0 : index
    %0 = vector.load %arg3[%c0, %c0_0, %c0_1, %c0_2, %c0_3] : memref<1x1x2x16x8xbf16, #tpu.memory_space<vmem>>, vector<1x1x1x16x8xbf16>
    %1 = vector.shape_cast %0 : vector<1x1x1x16x8xbf16> to vector<1x16x8xbf16>
    %c0_4 = arith.constant 0 : index
    %c0_5 = arith.constant 0 : index
    %c0_6 = arith.constant 0 : index
    %2 = vector.load %arg7[%c0_4, %c0_5, %c0_6] : memref<10x16x8xbf16, #tpu.memory_space<vmem>>, vector<1x16x8xbf16>
    tpu.vector_store %arg7[%c0_4, %c0_5, %c0_6], %1 {strides = array<i32>} : memref<10x16x8xbf16, #tpu.memory_space<vmem>>, vector<1x16x8xbf16>,
    %c0_7 = arith.constant 0 : index
    %c0_8 = arith.constant 0 : index
    %c0_9 = arith.constant 0 : index
    %c0_10 = arith.constant 0 : index
    %3 = vector.load %arg2[%c0_7, %c0_8, %c0_9, %c0_10] : memref<1x8x16x8xbf16, #tpu.memory_space<vmem>>, vector<1x8x16x8xbf16>
    %4 = vector.shape_cast %3 : vector<1x8x16x8xbf16> to vector<8x16x8xbf16>
    %c1 = arith.constant 1 : index
    %c0_11 = arith.constant 0 : index
    %c0_12 = arith.constant 0 : index
    %5 = vector.load %arg7[%c1, %c0_11, %c0_12] : memref<10x16x8xbf16, #tpu.memory_space<vmem>>, vector<8x16x8xbf16>
    tpu.vector_store %arg7[%c1, %c0_11, %c0_12], %4 {strides = array<i32>} : memref<10x16x8xbf16, #tpu.memory_space<vmem>>, vector<8x16x8xbf16>,
    %c0_13 = arith.constant 0 : index
    %c0_14 = arith.constant 0 : index
    %c1_15 = arith.constant 1 : index
    %c0_16 = arith.constant 0 : index
    %c0_17 = arith.constant 0 : index
    %6 = vector.load %arg3[%c0_13, %c0_14, %c1_15, %c0_16, %c0_17] : memref<1x1x2x16x8xbf16, #tpu.memory_space<vmem>>, vector<1x1x1x16x8xbf16>
    %7 = vector.shape_cast %6 : vector<1x1x1x16x8xbf16> to vector<1x16x8xbf16>
    %c9 = arith.constant 9 : index
    %c0_18 = arith.constant 0 : index
    %c0_19 = arith.constant 0 : index
    %8 = vector.load %arg7[%c9, %c0_18, %c0_19] : memref<10x16x8xbf16, #tpu.memory_space<vmem>>, vector<1x16x8xbf16>
    tpu.vector_store %arg7[%c9, %c0_18, %c0_19], %7 {strides = array<i32>} : memref<10x16x8xbf16, #tpu.memory_space<vmem>>, vector<1x16x8xbf16>,
    %cst = arith.constant 0.000000e+00 : bf16
    %9 = vector.broadcast %cst : bf16 to vector<1x8xbf16>
    %c0_i32 = arith.constant 0 : i32
    %c8_i32 = arith.constant 8 : i32
    %10 = arith.addi %c0_i32, %c8_i32 : i32
    %c1_i32 = arith.constant 1 : i32
    scf.for %arg8 = %c0_i32 to %10 step %c1_i32  : i32 {
      %c0_i32_21 = arith.constant 0 : i32
      %11 = arith.addi %arg8, %c0_i32_21 : i32
      %12 = arith.index_cast %11 : i32 to index
      %c0_22 = arith.constant 0 : index
      %c0_23 = arith.constant 0 : index
      %13 = vector.load %arg7[%12, %c0_22, %c0_23] : memref<10x16x8xbf16, #tpu.memory_space<vmem>>, vector<1x16x8xbf16>
      %14 = vector.shape_cast %13 : vector<1x16x8xbf16> to vector<16x8xbf16>
      %15 = tpu.concatenate %9, %14, %9 in 0 : vector<1x8xbf16>, vector<16x8xbf16>, vector<1x8xbf16> -> vector<18x8xbf16>
      %16 = vector.extract_strided_slice %15 {offsets = [0, 0], sizes = [16, 8], strides = [1, 1]} : vector<18x8xbf16> to vector<16x8xbf16>
      %17 = vector.extract_strided_slice %15 {offsets = [1, 0], sizes = [16, 8], strides = [1, 1]} : vector<18x8xbf16> to vector<16x8xbf16>
      %18 = vector.extract_strided_slice %15 {offsets = [2, 0], sizes = [16, 8], strides = [1, 1]} : vector<18x8xbf16> to vector<16x8xbf16>
      %c1_i32_24 = arith.constant 1 : i32
      %19 = arith.addi %arg8, %c1_i32_24 : i32
      %20 = arith.index_cast %19 : i32 to index
      %c0_25 = arith.constant 0 : index
      %c0_26 = arith.constant 0 : index
      %21 = vector.load %arg7[%20, %c0_25, %c0_26] : memref<10x16x8xbf16, #tpu.memory_space<vmem>>, vector<1x16x8xbf16>
      %22 = vector.shape_cast %21 : vector<1x16x8xbf16> to vector<16x8xbf16>
      %23 = tpu.concatenate %9, %22, %9 in 0 : vector<1x8xbf16>, vector<16x8xbf16>, vector<1x8xbf16> -> vector<18x8xbf16>
      %24 = vector.extract_strided_slice %23 {offsets = [0, 0], sizes = [16, 8], strides = [1, 1]} : vector<18x8xbf16> to vector<16x8xbf16>
      %25 = vector.extract_strided_slice %23 {offsets = [1, 0], sizes = [16, 8], strides = [1, 1]} : vector<18x8xbf16> to vector<16x8xbf16>
      %26 = vector.extract_strided_slice %23 {offsets = [2, 0], sizes = [16, 8], strides = [1, 1]} : vector<18x8xbf16> to vector<16x8xbf16>
      %c2_i32 = arith.constant 2 : i32
      %27 = arith.addi %arg8, %c2_i32 : i32
      %28 = arith.index_cast %27 : i32 to index
      %c0_27 = arith.constant 0 : index
      %c0_28 = arith.constant 0 : index
      %29 = vector.load %arg7[%28, %c0_27, %c0_28] : memref<10x16x8xbf16, #tpu.memory_space<vmem>>, vector<1x16x8xbf16>
      %30 = vector.shape_cast %29 : vector<1x16x8xbf16> to vector<16x8xbf16>
      %31 = tpu.concatenate %9, %30, %9 in 0 : vector<1x8xbf16>, vector<16x8xbf16>, vector<1x8xbf16> -> vector<18x8xbf16>
      %32 = vector.extract_strided_slice %31 {offsets = [0, 0], sizes = [16, 8], strides = [1, 1]} : vector<18x8xbf16> to vector<16x8xbf16>
      %33 = vector.extract_strided_slice %31 {offsets = [1, 0], sizes = [16, 8], strides = [1, 1]} : vector<18x8xbf16> to vector<16x8xbf16>
      %34 = vector.extract_strided_slice %31 {offsets = [2, 0], sizes = [16, 8], strides = [1, 1]} : vector<18x8xbf16> to vector<16x8xbf16>
      %35 = tpu.concatenate %16, %17, %18, %24, %25, %26, %32, %33, %34 in 1 : vector<16x8xbf16>, vector<16x8xbf16>, vector<16x8xbf16>, vector<16x8xbf16>, vector<16x8xbf16>, vector<16x8xbf16>, vector<16x8xbf16>, vector<16x8xbf16>, vector<16x8xbf16> -> vector<16x72xbf16>
      %c0_29 = arith.constant 0 : index
      %c0_30 = arith.constant 0 : index
      %36 = vector.load %arg4[%c0_29, %c0_30] : memref<72x16xbf16, #tpu.memory_space<vmem>>, vector<72x16xbf16>
      %cst_31 = arith.constant dense<0.000000e+00> : vector<16x16xf32>
      %37 = tpu.matmul %35, %36, %cst_31 {dimension_numbers = #tpu.dot_dimension_numbers<[1], [0], [0], [1], [0, 0, 1, 1], [], []>} : vector<16x72xbf16>, vector<72x16xbf16>, vector<16x16xf32> -> vector<16x16xf32>
      %c0_32 = arith.constant 0 : index
      %c0_33 = arith.constant 0 : index
      %38 = vector.load %arg5[%c0_32, %c0_33] : memref<1x16xf32, #tpu.memory_space<vmem>>, vector<1x16xf32>
      %39 = vector.broadcast %38 : vector<1x16xf32> to vector<16x16xf32>
      %40 = arith.addf %37, %39 : vector<16x16xf32>
      %cst_34 = arith.constant 0.000000e+00 : f32
      %41 = vector.broadcast %cst_34 : f32 to vector<16x16xf32>
      %42 = arith.maximumf %40, %41 : vector<16x16xf32>
      %43 = arith.truncf %42 : vector<16x16xf32> to vector<16x16xbf16>
      %c0_35 = arith.constant 0 : index
      %44 = arith.index_cast %arg8 : i32 to index
      %c0_36 = arith.constant 0 : index
      %c0_37 = arith.constant 0 : index
      %45 = vector.load %arg6[%c0_35, %44, %c0_36, %c0_37] : memref<1x8x16x16xbf16, #tpu.memory_space<vmem>>, vector<1x1x16x16xbf16>
      %46 = vector.shape_cast %45 : vector<1x1x16x16xbf16> to vector<16x16xbf16>
      %47 = vector.shape_cast %43 : vector<16x16xbf16> to vector<1x1x16x16xbf16>
      tpu.vector_store %arg6[%c0_35, %44, %c0_36, %c0_37], %47 {strides = array<i32>} : memref<1x8x16x16xbf16, #tpu.memory_space<vmem>>, vector<1x1x16x16xbf16>,
    }
    %c8_i32_20 = arith.constant 8 : i32
    return
  }
  func.func @transform_0(%arg0: i32, %arg1: i32) -> (i32, i32, i32, i32) {
    %c0_i32 = arith.constant 0 : i32
    %c0_i32_0 = arith.constant 0 : i32
    %c0_i32_1 = arith.constant 0 : i32
    return %arg0, %arg1, %c0_i32, %c0_i32_0 : i32, i32, i32, i32
  }
  func.func @transform_1(%arg0: i32, %arg1: i32) -> (i32, i32, i32, i32, i32) {
    %c0_i32 = arith.constant 0 : i32
    %c0_i32_0 = arith.constant 0 : i32
    %c0_i32_1 = arith.constant 0 : i32
    %c0_i32_2 = arith.constant 0 : i32
    return %arg0, %arg1, %c0_i32, %c0_i32_0, %c0_i32_1 : i32, i32, i32, i32, i32
  }
  func.func @transform_2(%arg0: i32, %arg1: i32) -> (i32, i32) {
    %c0_i32 = arith.constant 0 : i32
    %c0_i32_0 = arith.constant 0 : i32
    %c0_i32_1 = arith.constant 0 : i32
    return %c0_i32, %c0_i32_0 : i32, i32
  }
  func.func @transform_3(%arg0: i32, %arg1: i32) -> (i32, i32) {
    %c0_i32 = arith.constant 0 : i32
    %c0_i32_0 = arith.constant 0 : i32
    %c0_i32_1 = arith.constant 0 : i32
    return %c0_i32, %c0_i32_0 : i32, i32
  }
  func.func @transform_4(%arg0: i32, %arg1: i32) -> (i32, i32, i32, i32) {
    %c0_i32 = arith.constant 0 : i32
    %c0_i32_0 = arith.constant 0 : i32
    %c0_i32_1 = arith.constant 0 : i32
    return %arg0, %arg1, %c0_i32, %c0_i32_0 : i32, i32, i32, i32
  }
}

module attributes {stable_mosaic.version = 11 : i64} {
  func.func @_conv1x1_kernel(%arg0: i32, %arg1: i32, %arg2: memref<1x128x8xbf16, #tpu.memory_space<vmem>>, %arg3: memref<8x16xbf16, #tpu.memory_space<vmem>>, %arg4: memref<1x16xf32, #tpu.memory_space<vmem>>, %arg5: memref<1x128x16xbf16, #tpu.memory_space<vmem>>) attributes {dimension_semantics = [#tpu.dimension_semantics<parallel>, #tpu.dimension_semantics<parallel>], iteration_bounds = array<i64: 1, 2>, scalar_prefetch = 0 : i64, scratch_operands = 0 : i64, tpu.core_type = #tpu.core_type<tc>, window_params = [{transform_indices = @transform_0, window_bounds = array<i64: 1, 128, 8>}, {pipeline_mode = #tpu.pipeline_mode<synchronous>, transform_indices = @transform_1, window_bounds = array<i64: 8, 16>}, {pipeline_mode = #tpu.pipeline_mode<synchronous>, transform_indices = @transform_2, window_bounds = array<i64: 1, 16>}, {transform_indices = @transform_3, window_bounds = array<i64: 1, 128, 16>}]} {
    %c0 = arith.constant 0 : index
    %c0_0 = arith.constant 0 : index
    %c0_1 = arith.constant 0 : index
    %0 = vector.load %arg2[%c0, %c0_0, %c0_1] : memref<1x128x8xbf16, #tpu.memory_space<vmem>>, vector<1x128x8xbf16>
    %1 = vector.shape_cast %0 : vector<1x128x8xbf16> to vector<128x8xbf16>
    %c0_2 = arith.constant 0 : index
    %c0_3 = arith.constant 0 : index
    %2 = vector.load %arg3[%c0_2, %c0_3] : memref<8x16xbf16, #tpu.memory_space<vmem>>, vector<8x16xbf16>
    %cst = arith.constant dense<0.000000e+00> : vector<128x16xf32>
    %3 = tpu.matmul %1, %2, %cst {dimension_numbers = #tpu.dot_dimension_numbers<[1], [0], [0], [1], [0, 0, 1, 1], [], []>} : vector<128x8xbf16>, vector<8x16xbf16>, vector<128x16xf32> -> vector<128x16xf32>
    %c0_4 = arith.constant 0 : index
    %c0_5 = arith.constant 0 : index
    %4 = vector.load %arg4[%c0_4, %c0_5] : memref<1x16xf32, #tpu.memory_space<vmem>>, vector<1x16xf32>
    %5 = vector.broadcast %4 : vector<1x16xf32> to vector<128x16xf32>
    %6 = arith.addf %3, %5 : vector<128x16xf32>
    %7 = arith.truncf %6 : vector<128x16xf32> to vector<128x16xbf16>
    %c0_6 = arith.constant 0 : index
    %c0_7 = arith.constant 0 : index
    %c0_8 = arith.constant 0 : index
    %8 = vector.load %arg5[%c0_6, %c0_7, %c0_8] : memref<1x128x16xbf16, #tpu.memory_space<vmem>>, vector<1x128x16xbf16>
    %9 = vector.shape_cast %8 : vector<1x128x16xbf16> to vector<128x16xbf16>
    %10 = vector.shape_cast %7 : vector<128x16xbf16> to vector<1x128x16xbf16>
    tpu.vector_store %arg5[%c0_6, %c0_7, %c0_8], %10 {strides = array<i32>} : memref<1x128x16xbf16, #tpu.memory_space<vmem>>, vector<1x128x16xbf16>,
    return
  }
  func.func @transform_0(%arg0: i32, %arg1: i32) -> (i32, i32, i32) {
    %c0_i32 = arith.constant 0 : i32
    %c0_i32_0 = arith.constant 0 : i32
    return %arg0, %arg1, %c0_i32 : i32, i32, i32
  }
  func.func @transform_1(%arg0: i32, %arg1: i32) -> (i32, i32) {
    %c0_i32 = arith.constant 0 : i32
    %c0_i32_0 = arith.constant 0 : i32
    %c0_i32_1 = arith.constant 0 : i32
    return %c0_i32, %c0_i32_0 : i32, i32
  }
  func.func @transform_2(%arg0: i32, %arg1: i32) -> (i32, i32) {
    %c0_i32 = arith.constant 0 : i32
    %c0_i32_0 = arith.constant 0 : i32
    %c0_i32_1 = arith.constant 0 : i32
    return %c0_i32, %c0_i32_0 : i32, i32
  }
  func.func @transform_3(%arg0: i32, %arg1: i32) -> (i32, i32, i32) {
    %c0_i32 = arith.constant 0 : i32
    %c0_i32_0 = arith.constant 0 : i32
    return %arg0, %arg1, %c0_i32 : i32, i32, i32
  }
}

module attributes {stable_mosaic.version = 11 : i64} {
  func.func @_conv3x3_kernel(%arg0: i32, %arg1: i32, %arg2: memref<1x8x16x16xbf16, #tpu.memory_space<vmem>>, %arg3: memref<1x1x2x16x16xbf16, #tpu.memory_space<vmem>>, %arg4: memref<144x16xbf16, #tpu.memory_space<vmem>>, %arg5: memref<1x16xf32, #tpu.memory_space<vmem>>, %arg6: memref<1x8x16x16xbf16, #tpu.memory_space<vmem>>, %arg7: memref<1x8x16x16xbf16, #tpu.memory_space<vmem>>, %arg8: memref<10x16x16xbf16, #tpu.memory_space<vmem>>) attributes {dimension_semantics = [#tpu.dimension_semantics<parallel>, #tpu.dimension_semantics<parallel>], iteration_bounds = array<i64: 1, 2>, scalar_prefetch = 0 : i64, scratch_operands = 1 : i64, tpu.core_type = #tpu.core_type<tc>, window_params = [{transform_indices = @transform_0, window_bounds = array<i64: 1, 8, 16, 16>}, {transform_indices = @transform_1, window_bounds = array<i64: 1, 1, 2, 16, 16>}, {pipeline_mode = #tpu.pipeline_mode<synchronous>, transform_indices = @transform_2, window_bounds = array<i64: 144, 16>}, {pipeline_mode = #tpu.pipeline_mode<synchronous>, transform_indices = @transform_3, window_bounds = array<i64: 1, 16>}, {transform_indices = @transform_4, window_bounds = array<i64: 1, 8, 16, 16>}, {transform_indices = @transform_5, window_bounds = array<i64: 1, 8, 16, 16>}]} {
    %c0 = arith.constant 0 : index
    %c0_0 = arith.constant 0 : index
    %c0_1 = arith.constant 0 : index
    %c0_2 = arith.constant 0 : index
    %c0_3 = arith.constant 0 : index
    %0 = vector.load %arg3[%c0, %c0_0, %c0_1, %c0_2, %c0_3] : memref<1x1x2x16x16xbf16, #tpu.memory_space<vmem>>, vector<1x1x1x16x16xbf16>
    %1 = vector.shape_cast %0 : vector<1x1x1x16x16xbf16> to vector<1x16x16xbf16>
    %c0_4 = arith.constant 0 : index
    %c0_5 = arith.constant 0 : index
    %c0_6 = arith.constant 0 : index
    %2 = vector.load %arg8[%c0_4, %c0_5, %c0_6] : memref<10x16x16xbf16, #tpu.memory_space<vmem>>, vector<1x16x16xbf16>
    tpu.vector_store %arg8[%c0_4, %c0_5, %c0_6], %1 {strides = array<i32>} : memref<10x16x16xbf16, #tpu.memory_space<vmem>>, vector<1x16x16xbf16>,
    %c0_7 = arith.constant 0 : index
    %c0_8 = arith.constant 0 : index
    %c0_9 = arith.constant 0 : index
    %c0_10 = arith.constant 0 : index
    %3 = vector.load %arg2[%c0_7, %c0_8, %c0_9, %c0_10] : memref<1x8x16x16xbf16, #tpu.memory_space<vmem>>, vector<1x8x16x16xbf16>
    %4 = vector.shape_cast %3 : vector<1x8x16x16xbf16> to vector<8x16x16xbf16>
    %c1 = arith.constant 1 : index
    %c0_11 = arith.constant 0 : index
    %c0_12 = arith.constant 0 : index
    %5 = vector.load %arg8[%c1, %c0_11, %c0_12] : memref<10x16x16xbf16, #tpu.memory_space<vmem>>, vector<8x16x16xbf16>
    tpu.vector_store %arg8[%c1, %c0_11, %c0_12], %4 {strides = array<i32>} : memref<10x16x16xbf16, #tpu.memory_space<vmem>>, vector<8x16x16xbf16>,
    %c0_13 = arith.constant 0 : index
    %c0_14 = arith.constant 0 : index
    %c1_15 = arith.constant 1 : index
    %c0_16 = arith.constant 0 : index
    %c0_17 = arith.constant 0 : index
    %6 = vector.load %arg3[%c0_13, %c0_14, %c1_15, %c0_16, %c0_17] : memref<1x1x2x16x16xbf16, #tpu.memory_space<vmem>>, vector<1x1x1x16x16xbf16>
    %7 = vector.shape_cast %6 : vector<1x1x1x16x16xbf16> to vector<1x16x16xbf16>
    %c9 = arith.constant 9 : index
    %c0_18 = arith.constant 0 : index
    %c0_19 = arith.constant 0 : index
    %8 = vector.load %arg8[%c9, %c0_18, %c0_19] : memref<10x16x16xbf16, #tpu.memory_space<vmem>>, vector<1x16x16xbf16>
    tpu.vector_store %arg8[%c9, %c0_18, %c0_19], %7 {strides = array<i32>} : memref<10x16x16xbf16, #tpu.memory_space<vmem>>, vector<1x16x16xbf16>,
    %cst = arith.constant 0.000000e+00 : bf16
    %9 = vector.broadcast %cst : bf16 to vector<1x16xbf16>
    %c0_i32 = arith.constant 0 : i32
    %c8_i32 = arith.constant 8 : i32
    %10 = arith.addi %c0_i32, %c8_i32 : i32
    %c1_i32 = arith.constant 1 : i32
    scf.for %arg9 = %c0_i32 to %10 step %c1_i32  : i32 {
      %c0_i32_21 = arith.constant 0 : i32
      %11 = arith.addi %arg9, %c0_i32_21 : i32
      %12 = arith.index_cast %11 : i32 to index
      %c0_22 = arith.constant 0 : index
      %c0_23 = arith.constant 0 : index
      %13 = vector.load %arg8[%12, %c0_22, %c0_23] : memref<10x16x16xbf16, #tpu.memory_space<vmem>>, vector<1x16x16xbf16>
      %14 = vector.shape_cast %13 : vector<1x16x16xbf16> to vector<16x16xbf16>
      %15 = tpu.concatenate %9, %14, %9 in 0 : vector<1x16xbf16>, vector<16x16xbf16>, vector<1x16xbf16> -> vector<18x16xbf16>
      %16 = vector.extract_strided_slice %15 {offsets = [0, 0], sizes = [16, 16], strides = [1, 1]} : vector<18x16xbf16> to vector<16x16xbf16>
      %17 = vector.extract_strided_slice %15 {offsets = [1, 0], sizes = [16, 16], strides = [1, 1]} : vector<18x16xbf16> to vector<16x16xbf16>
      %18 = vector.extract_strided_slice %15 {offsets = [2, 0], sizes = [16, 16], strides = [1, 1]} : vector<18x16xbf16> to vector<16x16xbf16>
      %c1_i32_24 = arith.constant 1 : i32
      %19 = arith.addi %arg9, %c1_i32_24 : i32
      %20 = arith.index_cast %19 : i32 to index
      %c0_25 = arith.constant 0 : index
      %c0_26 = arith.constant 0 : index
      %21 = vector.load %arg8[%20, %c0_25, %c0_26] : memref<10x16x16xbf16, #tpu.memory_space<vmem>>, vector<1x16x16xbf16>
      %22 = vector.shape_cast %21 : vector<1x16x16xbf16> to vector<16x16xbf16>
      %23 = tpu.concatenate %9, %22, %9 in 0 : vector<1x16xbf16>, vector<16x16xbf16>, vector<1x16xbf16> -> vector<18x16xbf16>
      %24 = vector.extract_strided_slice %23 {offsets = [0, 0], sizes = [16, 16], strides = [1, 1]} : vector<18x16xbf16> to vector<16x16xbf16>
      %25 = vector.extract_strided_slice %23 {offsets = [1, 0], sizes = [16, 16], strides = [1, 1]} : vector<18x16xbf16> to vector<16x16xbf16>
      %26 = vector.extract_strided_slice %23 {offsets = [2, 0], sizes = [16, 16], strides = [1, 1]} : vector<18x16xbf16> to vector<16x16xbf16>
      %c2_i32 = arith.constant 2 : i32
      %27 = arith.addi %arg9, %c2_i32 : i32
      %28 = arith.index_cast %27 : i32 to index
      %c0_27 = arith.constant 0 : index
      %c0_28 = arith.constant 0 : index
      %29 = vector.load %arg8[%28, %c0_27, %c0_28] : memref<10x16x16xbf16, #tpu.memory_space<vmem>>, vector<1x16x16xbf16>
      %30 = vector.shape_cast %29 : vector<1x16x16xbf16> to vector<16x16xbf16>
      %31 = tpu.concatenate %9, %30, %9 in 0 : vector<1x16xbf16>, vector<16x16xbf16>, vector<1x16xbf16> -> vector<18x16xbf16>
      %32 = vector.extract_strided_slice %31 {offsets = [0, 0], sizes = [16, 16], strides = [1, 1]} : vector<18x16xbf16> to vector<16x16xbf16>
      %33 = vector.extract_strided_slice %31 {offsets = [1, 0], sizes = [16, 16], strides = [1, 1]} : vector<18x16xbf16> to vector<16x16xbf16>
      %34 = vector.extract_strided_slice %31 {offsets = [2, 0], sizes = [16, 16], strides = [1, 1]} : vector<18x16xbf16> to vector<16x16xbf16>
      %35 = tpu.concatenate %16, %17, %18, %24, %25, %26, %32, %33, %34 in 1 : vector<16x16xbf16>, vector<16x16xbf16>, vector<16x16xbf16>, vector<16x16xbf16>, vector<16x16xbf16>, vector<16x16xbf16>, vector<16x16xbf16>, vector<16x16xbf16>, vector<16x16xbf16> -> vector<16x144xbf16>
      %c0_29 = arith.constant 0 : index
      %c0_30 = arith.constant 0 : index
      %36 = vector.load %arg4[%c0_29, %c0_30] : memref<144x16xbf16, #tpu.memory_space<vmem>>, vector<144x16xbf16>
      %cst_31 = arith.constant dense<0.000000e+00> : vector<16x16xf32>
      %37 = tpu.matmul %35, %36, %cst_31 {dimension_numbers = #tpu.dot_dimension_numbers<[1], [0], [0], [1], [0, 0, 1, 1], [], []>} : vector<16x144xbf16>, vector<144x16xbf16>, vector<16x16xf32> -> vector<16x16xf32>
      %c0_32 = arith.constant 0 : index
      %c0_33 = arith.constant 0 : index
      %38 = vector.load %arg5[%c0_32, %c0_33] : memref<1x16xf32, #tpu.memory_space<vmem>>, vector<1x16xf32>
      %39 = vector.broadcast %38 : vector<1x16xf32> to vector<16x16xf32>
      %40 = arith.addf %37, %39 : vector<16x16xf32>
      %c0_34 = arith.constant 0 : index
      %41 = arith.index_cast %arg9 : i32 to index
      %c0_35 = arith.constant 0 : index
      %c0_36 = arith.constant 0 : index
      %42 = vector.load %arg6[%c0_34, %41, %c0_35, %c0_36] : memref<1x8x16x16xbf16, #tpu.memory_space<vmem>>, vector<1x1x16x16xbf16>
      %43 = vector.shape_cast %42 : vector<1x1x16x16xbf16> to vector<16x16xbf16>
      %44 = arith.extf %43 : vector<16x16xbf16> to vector<16x16xf32>
      %45 = arith.addf %40, %44 : vector<16x16xf32>
      %cst_37 = arith.constant 0.000000e+00 : f32
      %46 = vector.broadcast %cst_37 : f32 to vector<16x16xf32>
      %47 = arith.maximumf %45, %46 : vector<16x16xf32>
      %48 = arith.truncf %47 : vector<16x16xf32> to vector<16x16xbf16>
      %c0_38 = arith.constant 0 : index
      %49 = arith.index_cast %arg9 : i32 to index
      %c0_39 = arith.constant 0 : index
      %c0_40 = arith.constant 0 : index
      %50 = vector.load %arg7[%c0_38, %49, %c0_39, %c0_40] : memref<1x8x16x16xbf16, #tpu.memory_space<vmem>>, vector<1x1x16x16xbf16>
      %51 = vector.shape_cast %50 : vector<1x1x16x16xbf16> to vector<16x16xbf16>
      %52 = vector.shape_cast %48 : vector<16x16xbf16> to vector<1x1x16x16xbf16>
      tpu.vector_store %arg7[%c0_38, %49, %c0_39, %c0_40], %52 {strides = array<i32>} : memref<1x8x16x16xbf16, #tpu.memory_space<vmem>>, vector<1x1x16x16xbf16>,
    }
    %c8_i32_20 = arith.constant 8 : i32
    return
  }
  func.func @transform_0(%arg0: i32, %arg1: i32) -> (i32, i32, i32, i32) {
    %c0_i32 = arith.constant 0 : i32
    %c0_i32_0 = arith.constant 0 : i32
    %c0_i32_1 = arith.constant 0 : i32
    return %arg0, %arg1, %c0_i32, %c0_i32_0 : i32, i32, i32, i32
  }
  func.func @transform_1(%arg0: i32, %arg1: i32) -> (i32, i32, i32, i32, i32) {
    %c0_i32 = arith.constant 0 : i32
    %c0_i32_0 = arith.constant 0 : i32
    %c0_i32_1 = arith.constant 0 : i32
    %c0_i32_2 = arith.constant 0 : i32
    return %arg0, %arg1, %c0_i32, %c0_i32_0, %c0_i32_1 : i32, i32, i32, i32, i32
  }
  func.func @transform_2(%arg0: i32, %arg1: i32) -> (i32, i32) {
    %c0_i32 = arith.constant 0 : i32
    %c0_i32_0 = arith.constant 0 : i32
    %c0_i32_1 = arith.constant 0 : i32
    return %c0_i32, %c0_i32_0 : i32, i32
  }
  func.func @transform_3(%arg0: i32, %arg1: i32) -> (i32, i32) {
    %c0_i32 = arith.constant 0 : i32
    %c0_i32_0 = arith.constant 0 : i32
    %c0_i32_1 = arith.constant 0 : i32
    return %c0_i32, %c0_i32_0 : i32, i32
  }
  func.func @transform_4(%arg0: i32, %arg1: i32) -> (i32, i32, i32, i32) {
    %c0_i32 = arith.constant 0 : i32
    %c0_i32_0 = arith.constant 0 : i32
    %c0_i32_1 = arith.constant 0 : i32
    return %arg0, %arg1, %c0_i32, %c0_i32_0 : i32, i32, i32, i32
  }
  func.func @transform_5(%arg0: i32, %arg1: i32) -> (i32, i32, i32, i32) {
    %c0_i32 = arith.constant 0 : i32
    %c0_i32_0 = arith.constant 0 : i32
    %c0_i32_1 = arith.constant 0 : i32
    return %arg0, %arg1, %c0_i32, %c0_i32_0 : i32, i32, i32, i32
  }
}

module attributes {stable_mosaic.version = 11 : i64} {
  func.func @_conv1x1_kernel(%arg0: i32, %arg1: i32, %arg2: memref<1x128x16xbf16, #tpu.memory_space<vmem>>, %arg3: memref<16x8xbf16, #tpu.memory_space<vmem>>, %arg4: memref<1x8xf32, #tpu.memory_space<vmem>>, %arg5: memref<1x128x8xbf16, #tpu.memory_space<vmem>>) attributes {dimension_semantics = [#tpu.dimension_semantics<parallel>, #tpu.dimension_semantics<parallel>], iteration_bounds = array<i64: 1, 2>, scalar_prefetch = 0 : i64, scratch_operands = 0 : i64, tpu.core_type = #tpu.core_type<tc>, window_params = [{transform_indices = @transform_0, window_bounds = array<i64: 1, 128, 16>}, {pipeline_mode = #tpu.pipeline_mode<synchronous>, transform_indices = @transform_1, window_bounds = array<i64: 16, 8>}, {pipeline_mode = #tpu.pipeline_mode<synchronous>, transform_indices = @transform_2, window_bounds = array<i64: 1, 8>}, {transform_indices = @transform_3, window_bounds = array<i64: 1, 128, 8>}]} {
    %c0 = arith.constant 0 : index
    %c0_0 = arith.constant 0 : index
    %c0_1 = arith.constant 0 : index
    %0 = vector.load %arg2[%c0, %c0_0, %c0_1] : memref<1x128x16xbf16, #tpu.memory_space<vmem>>, vector<1x128x16xbf16>
    %1 = vector.shape_cast %0 : vector<1x128x16xbf16> to vector<128x16xbf16>
    %c0_2 = arith.constant 0 : index
    %c0_3 = arith.constant 0 : index
    %2 = vector.load %arg3[%c0_2, %c0_3] : memref<16x8xbf16, #tpu.memory_space<vmem>>, vector<16x8xbf16>
    %cst = arith.constant dense<0.000000e+00> : vector<128x8xf32>
    %3 = tpu.matmul %1, %2, %cst {dimension_numbers = #tpu.dot_dimension_numbers<[1], [0], [0], [1], [0, 0, 1, 1], [], []>} : vector<128x16xbf16>, vector<16x8xbf16>, vector<128x8xf32> -> vector<128x8xf32>
    %c0_4 = arith.constant 0 : index
    %c0_5 = arith.constant 0 : index
    %4 = vector.load %arg4[%c0_4, %c0_5] : memref<1x8xf32, #tpu.memory_space<vmem>>, vector<1x8xf32>
    %5 = vector.broadcast %4 : vector<1x8xf32> to vector<128x8xf32>
    %6 = arith.addf %3, %5 : vector<128x8xf32>
    %cst_6 = arith.constant 0.000000e+00 : f32
    %7 = vector.broadcast %cst_6 : f32 to vector<128x8xf32>
    %8 = arith.maximumf %6, %7 : vector<128x8xf32>
    %9 = arith.truncf %8 : vector<128x8xf32> to vector<128x8xbf16>
    %c0_7 = arith.constant 0 : index
    %c0_8 = arith.constant 0 : index
    %c0_9 = arith.constant 0 : index
    %10 = vector.load %arg5[%c0_7, %c0_8, %c0_9] : memref<1x128x8xbf16, #tpu.memory_space<vmem>>, vector<1x128x8xbf16>
    %11 = vector.shape_cast %10 : vector<1x128x8xbf16> to vector<128x8xbf16>
    %12 = vector.shape_cast %9 : vector<128x8xbf16> to vector<1x128x8xbf16>
    tpu.vector_store %arg5[%c0_7, %c0_8, %c0_9], %12 {strides = array<i32>} : memref<1x128x8xbf16, #tpu.memory_space<vmem>>, vector<1x128x8xbf16>,
    return
  }
  func.func @transform_0(%arg0: i32, %arg1: i32) -> (i32, i32, i32) {
    %c0_i32 = arith.constant 0 : i32
    %c0_i32_0 = arith.constant 0 : i32
    return %arg0, %arg1, %c0_i32 : i32, i32, i32
  }
  func.func @transform_1(%arg0: i32, %arg1: i32) -> (i32, i32) {
    %c0_i32 = arith.constant 0 : i32
    %c0_i32_0 = arith.constant 0 : i32
    %c0_i32_1 = arith.constant 0 : i32
    return %c0_i32, %c0_i32_0 : i32, i32
  }
  func.func @transform_2(%arg0: i32, %arg1: i32) -> (i32, i32) {
    %c0_i32 = arith.constant 0 : i32
    %c0_i32_0 = arith.constant 0 : i32
    %c0_i32_1 = arith.constant 0 : i32
    return %c0_i32, %c0_i32_0 : i32, i32
  }
  func.func @transform_3(%arg0: i32, %arg1: i32) -> (i32, i32, i32) {
    %c0_i32 = arith.constant 0 : i32
    %c0_i32_0 = arith.constant 0 : i32
    return %arg0, %arg1, %c0_i32 : i32, i32, i32
  }
}

module attributes {stable_mosaic.version = 11 : i64} {
  func.func @_conv1x1_kernel(%arg0: i32, %arg1: i32, %arg2: memref<1x16x16xbf16, #tpu.memory_space<vmem>>, %arg3: memref<16x32xbf16, #tpu.memory_space<vmem>>, %arg4: memref<1x32xf32, #tpu.memory_space<vmem>>, %arg5: memref<1x16x32xbf16, #tpu.memory_space<vmem>>) attributes {dimension_semantics = [#tpu.dimension_semantics<parallel>, #tpu.dimension_semantics<parallel>], iteration_bounds = array<i64: 1, 1>, scalar_prefetch = 0 : i64, scratch_operands = 0 : i64, tpu.core_type = #tpu.core_type<tc>, window_params = [{transform_indices = @transform_0, window_bounds = array<i64: 1, 16, 16>}, {pipeline_mode = #tpu.pipeline_mode<synchronous>, transform_indices = @transform_1, window_bounds = array<i64: 16, 32>}, {pipeline_mode = #tpu.pipeline_mode<synchronous>, transform_indices = @transform_2, window_bounds = array<i64: 1, 32>}, {transform_indices = @transform_3, window_bounds = array<i64: 1, 16, 32>}]} {
    %c0 = arith.constant 0 : index
    %c0_0 = arith.constant 0 : index
    %c0_1 = arith.constant 0 : index
    %0 = vector.load %arg2[%c0, %c0_0, %c0_1] : memref<1x16x16xbf16, #tpu.memory_space<vmem>>, vector<1x16x16xbf16>
    %1 = vector.shape_cast %0 : vector<1x16x16xbf16> to vector<16x16xbf16>
    %c0_2 = arith.constant 0 : index
    %c0_3 = arith.constant 0 : index
    %2 = vector.load %arg3[%c0_2, %c0_3] : memref<16x32xbf16, #tpu.memory_space<vmem>>, vector<16x32xbf16>
    %cst = arith.constant dense<0.000000e+00> : vector<16x32xf32>
    %3 = tpu.matmul %1, %2, %cst {dimension_numbers = #tpu.dot_dimension_numbers<[1], [0], [0], [1], [0, 0, 1, 1], [], []>} : vector<16x16xbf16>, vector<16x32xbf16>, vector<16x32xf32> -> vector<16x32xf32>
    %c0_4 = arith.constant 0 : index
    %c0_5 = arith.constant 0 : index
    %4 = vector.load %arg4[%c0_4, %c0_5] : memref<1x32xf32, #tpu.memory_space<vmem>>, vector<1x32xf32>
    %5 = vector.broadcast %4 : vector<1x32xf32> to vector<16x32xf32>
    %6 = arith.addf %3, %5 : vector<16x32xf32>
    %7 = arith.truncf %6 : vector<16x32xf32> to vector<16x32xbf16>
    %c0_6 = arith.constant 0 : index
    %c0_7 = arith.constant 0 : index
    %c0_8 = arith.constant 0 : index
    %8 = vector.load %arg5[%c0_6, %c0_7, %c0_8] : memref<1x16x32xbf16, #tpu.memory_space<vmem>>, vector<1x16x32xbf16>
    %9 = vector.shape_cast %8 : vector<1x16x32xbf16> to vector<16x32xbf16>
    %10 = vector.shape_cast %7 : vector<16x32xbf16> to vector<1x16x32xbf16>
    tpu.vector_store %arg5[%c0_6, %c0_7, %c0_8], %10 {strides = array<i32>} : memref<1x16x32xbf16, #tpu.memory_space<vmem>>, vector<1x16x32xbf16>,
    return
  }
  func.func @transform_0(%arg0: i32, %arg1: i32) -> (i32, i32, i32) {
    %c0_i32 = arith.constant 0 : i32
    %c0_i32_0 = arith.constant 0 : i32
    return %arg0, %arg1, %c0_i32 : i32, i32, i32
  }
  func.func @transform_1(%arg0: i32, %arg1: i32) -> (i32, i32) {
    %c0_i32 = arith.constant 0 : i32
    %c0_i32_0 = arith.constant 0 : i32
    %c0_i32_1 = arith.constant 0 : i32
    return %c0_i32, %c0_i32_0 : i32, i32
  }
  func.func @transform_2(%arg0: i32, %arg1: i32) -> (i32, i32) {
    %c0_i32 = arith.constant 0 : i32
    %c0_i32_0 = arith.constant 0 : i32
    %c0_i32_1 = arith.constant 0 : i32
    return %c0_i32, %c0_i32_0 : i32, i32
  }
  func.func @transform_3(%arg0: i32, %arg1: i32) -> (i32, i32, i32) {
    %c0_i32 = arith.constant 0 : i32
    %c0_i32_0 = arith.constant 0 : i32
    return %arg0, %arg1, %c0_i32 : i32, i32, i32
  }
}

module attributes {stable_mosaic.version = 11 : i64} {
  func.func @_conv3x3_kernel(%arg0: i32, %arg1: i32, %arg2: memref<1x4x4x16xbf16, #tpu.memory_space<vmem>>, %arg3: memref<1x1x2x4x16xbf16, #tpu.memory_space<vmem>>, %arg4: memref<144x32xbf16, #tpu.memory_space<vmem>>, %arg5: memref<1x32xf32, #tpu.memory_space<vmem>>, %arg6: memref<1x4x4x32xbf16, #tpu.memory_space<vmem>>, %arg7: memref<6x4x16xbf16, #tpu.memory_space<vmem>>) attributes {dimension_semantics = [#tpu.dimension_semantics<parallel>, #tpu.dimension_semantics<parallel>], iteration_bounds = array<i64: 1, 1>, scalar_prefetch = 0 : i64, scratch_operands = 1 : i64, tpu.core_type = #tpu.core_type<tc>, window_params = [{transform_indices = @transform_0, window_bounds = array<i64: 1, 4, 4, 16>}, {transform_indices = @transform_1, window_bounds = array<i64: 1, 1, 2, 4, 16>}, {pipeline_mode = #tpu.pipeline_mode<synchronous>, transform_indices = @transform_2, window_bounds = array<i64: 144, 32>}, {pipeline_mode = #tpu.pipeline_mode<synchronous>, transform_indices = @transform_3, window_bounds = array<i64: 1, 32>}, {transform_indices = @transform_4, window_bounds = array<i64: 1, 4, 4, 32>}]} {
    %c0 = arith.constant 0 : index
    %c0_0 = arith.constant 0 : index
    %c0_1 = arith.constant 0 : index
    %c0_2 = arith.constant 0 : index
    %c0_3 = arith.constant 0 : index
    %0 = vector.load %arg3[%c0, %c0_0, %c0_1, %c0_2, %c0_3] : memref<1x1x2x4x16xbf16, #tpu.memory_space<vmem>>, vector<1x1x1x4x16xbf16>
    %1 = vector.shape_cast %0 : vector<1x1x1x4x16xbf16> to vector<1x4x16xbf16>
    %c0_4 = arith.constant 0 : index
    %c0_5 = arith.constant 0 : index
    %c0_6 = arith.constant 0 : index
    %2 = vector.load %arg7[%c0_4, %c0_5, %c0_6] : memref<6x4x16xbf16, #tpu.memory_space<vmem>>, vector<1x4x16xbf16>
    tpu.vector_store %arg7[%c0_4, %c0_5, %c0_6], %1 {strides = array<i32>} : memref<6x4x16xbf16, #tpu.memory_space<vmem>>, vector<1x4x16xbf16>,
    %c0_7 = arith.constant 0 : index
    %c0_8 = arith.constant 0 : index
    %c0_9 = arith.constant 0 : index
    %c0_10 = arith.constant 0 : index
    %3 = vector.load %arg2[%c0_7, %c0_8, %c0_9, %c0_10] : memref<1x4x4x16xbf16, #tpu.memory_space<vmem>>, vector<1x4x4x16xbf16>
    %4 = vector.shape_cast %3 : vector<1x4x4x16xbf16> to vector<4x4x16xbf16>
    %c1 = arith.constant 1 : index
    %c0_11 = arith.constant 0 : index
    %c0_12 = arith.constant 0 : index
    %5 = vector.load %arg7[%c1, %c0_11, %c0_12] : memref<6x4x16xbf16, #tpu.memory_space<vmem>>, vector<4x4x16xbf16>
    tpu.vector_store %arg7[%c1, %c0_11, %c0_12], %4 {strides = array<i32>} : memref<6x4x16xbf16, #tpu.memory_space<vmem>>, vector<4x4x16xbf16>,
    %c0_13 = arith.constant 0 : index
    %c0_14 = arith.constant 0 : index
    %c1_15 = arith.constant 1 : index
    %c0_16 = arith.constant 0 : index
    %c0_17 = arith.constant 0 : index
    %6 = vector.load %arg3[%c0_13, %c0_14, %c1_15, %c0_16, %c0_17] : memref<1x1x2x4x16xbf16, #tpu.memory_space<vmem>>, vector<1x1x1x4x16xbf16>
    %7 = vector.shape_cast %6 : vector<1x1x1x4x16xbf16> to vector<1x4x16xbf16>
    %c5 = arith.constant 5 : index
    %c0_18 = arith.constant 0 : index
    %c0_19 = arith.constant 0 : index
    %8 = vector.load %arg7[%c5, %c0_18, %c0_19] : memref<6x4x16xbf16, #tpu.memory_space<vmem>>, vector<1x4x16xbf16>
    tpu.vector_store %arg7[%c5, %c0_18, %c0_19], %7 {strides = array<i32>} : memref<6x4x16xbf16, #tpu.memory_space<vmem>>, vector<1x4x16xbf16>,
    %cst = arith.constant 0.000000e+00 : bf16
    %9 = vector.broadcast %cst : bf16 to vector<1x16xbf16>
    %c0_i32 = arith.constant 0 : i32
    %c4_i32 = arith.constant 4 : i32
    %10 = arith.addi %c0_i32, %c4_i32 : i32
    %c1_i32 = arith.constant 1 : i32
    scf.for %arg8 = %c0_i32 to %10 step %c1_i32  : i32 {
      %c0_i32_21 = arith.constant 0 : i32
      %11 = arith.addi %arg8, %c0_i32_21 : i32
      %12 = arith.index_cast %11 : i32 to index
      %c0_22 = arith.constant 0 : index
      %c0_23 = arith.constant 0 : index
      %13 = vector.load %arg7[%12, %c0_22, %c0_23] : memref<6x4x16xbf16, #tpu.memory_space<vmem>>, vector<1x4x16xbf16>
      %14 = vector.shape_cast %13 : vector<1x4x16xbf16> to vector<4x16xbf16>
      %15 = tpu.concatenate %9, %14, %9 in 0 : vector<1x16xbf16>, vector<4x16xbf16>, vector<1x16xbf16> -> vector<6x16xbf16>
      %16 = vector.extract_strided_slice %15 {offsets = [0, 0], sizes = [4, 16], strides = [1, 1]} : vector<6x16xbf16> to vector<4x16xbf16>
      %17 = vector.extract_strided_slice %15 {offsets = [1, 0], sizes = [4, 16], strides = [1, 1]} : vector<6x16xbf16> to vector<4x16xbf16>
      %18 = vector.extract_strided_slice %15 {offsets = [2, 0], sizes = [4, 16], strides = [1, 1]} : vector<6x16xbf16> to vector<4x16xbf16>
      %c1_i32_24 = arith.constant 1 : i32
      %19 = arith.addi %arg8, %c1_i32_24 : i32
      %20 = arith.index_cast %19 : i32 to index
      %c0_25 = arith.constant 0 : index
      %c0_26 = arith.constant 0 : index
      %21 = vector.load %arg7[%20, %c0_25, %c0_26] : memref<6x4x16xbf16, #tpu.memory_space<vmem>>, vector<1x4x16xbf16>
      %22 = vector.shape_cast %21 : vector<1x4x16xbf16> to vector<4x16xbf16>
      %23 = tpu.concatenate %9, %22, %9 in 0 : vector<1x16xbf16>, vector<4x16xbf16>, vector<1x16xbf16> -> vector<6x16xbf16>
      %24 = vector.extract_strided_slice %23 {offsets = [0, 0], sizes = [4, 16], strides = [1, 1]} : vector<6x16xbf16> to vector<4x16xbf16>
      %25 = vector.extract_strided_slice %23 {offsets = [1, 0], sizes = [4, 16], strides = [1, 1]} : vector<6x16xbf16> to vector<4x16xbf16>
      %26 = vector.extract_strided_slice %23 {offsets = [2, 0], sizes = [4, 16], strides = [1, 1]} : vector<6x16xbf16> to vector<4x16xbf16>
      %c2_i32 = arith.constant 2 : i32
      %27 = arith.addi %arg8, %c2_i32 : i32
      %28 = arith.index_cast %27 : i32 to index
      %c0_27 = arith.constant 0 : index
      %c0_28 = arith.constant 0 : index
      %29 = vector.load %arg7[%28, %c0_27, %c0_28] : memref<6x4x16xbf16, #tpu.memory_space<vmem>>, vector<1x4x16xbf16>
      %30 = vector.shape_cast %29 : vector<1x4x16xbf16> to vector<4x16xbf16>
      %31 = tpu.concatenate %9, %30, %9 in 0 : vector<1x16xbf16>, vector<4x16xbf16>, vector<1x16xbf16> -> vector<6x16xbf16>
      %32 = vector.extract_strided_slice %31 {offsets = [0, 0], sizes = [4, 16], strides = [1, 1]} : vector<6x16xbf16> to vector<4x16xbf16>
      %33 = vector.extract_strided_slice %31 {offsets = [1, 0], sizes = [4, 16], strides = [1, 1]} : vector<6x16xbf16> to vector<4x16xbf16>
      %34 = vector.extract_strided_slice %31 {offsets = [2, 0], sizes = [4, 16], strides = [1, 1]} : vector<6x16xbf16> to vector<4x16xbf16>
      %35 = tpu.concatenate %16, %17, %18, %24, %25, %26, %32, %33, %34 in 1 : vector<4x16xbf16>, vector<4x16xbf16>, vector<4x16xbf16>, vector<4x16xbf16>, vector<4x16xbf16>, vector<4x16xbf16>, vector<4x16xbf16>, vector<4x16xbf16>, vector<4x16xbf16> -> vector<4x144xbf16>
      %c0_29 = arith.constant 0 : index
      %c0_30 = arith.constant 0 : index
      %36 = vector.load %arg4[%c0_29, %c0_30] : memref<144x32xbf16, #tpu.memory_space<vmem>>, vector<144x32xbf16>
      %cst_31 = arith.constant dense<0.000000e+00> : vector<4x32xf32>
      %37 = tpu.matmul %35, %36, %cst_31 {dimension_numbers = #tpu.dot_dimension_numbers<[1], [0], [0], [1], [0, 0, 1, 1], [], []>} : vector<4x144xbf16>, vector<144x32xbf16>, vector<4x32xf32> -> vector<4x32xf32>
      %c0_32 = arith.constant 0 : index
      %c0_33 = arith.constant 0 : index
      %38 = vector.load %arg5[%c0_32, %c0_33] : memref<1x32xf32, #tpu.memory_space<vmem>>, vector<1x32xf32>
      %39 = vector.broadcast %38 : vector<1x32xf32> to vector<4x32xf32>
      %40 = arith.addf %37, %39 : vector<4x32xf32>
      %cst_34 = arith.constant 0.000000e+00 : f32
      %41 = vector.broadcast %cst_34 : f32 to vector<4x32xf32>
      %42 = arith.maximumf %40, %41 : vector<4x32xf32>
      %43 = arith.truncf %42 : vector<4x32xf32> to vector<4x32xbf16>
      %c0_35 = arith.constant 0 : index
      %44 = arith.index_cast %arg8 : i32 to index
      %c0_36 = arith.constant 0 : index
      %c0_37 = arith.constant 0 : index
      %45 = vector.load %arg6[%c0_35, %44, %c0_36, %c0_37] : memref<1x4x4x32xbf16, #tpu.memory_space<vmem>>, vector<1x1x4x32xbf16>
      %46 = vector.shape_cast %45 : vector<1x1x4x32xbf16> to vector<4x32xbf16>
      %47 = vector.shape_cast %43 : vector<4x32xbf16> to vector<1x1x4x32xbf16>
      tpu.vector_store %arg6[%c0_35, %44, %c0_36, %c0_37], %47 {strides = array<i32>} : memref<1x4x4x32xbf16, #tpu.memory_space<vmem>>, vector<1x1x4x32xbf16>,
    }
    %c4_i32_20 = arith.constant 4 : i32
    return
  }
  func.func @transform_0(%arg0: i32, %arg1: i32) -> (i32, i32, i32, i32) {
    %c0_i32 = arith.constant 0 : i32
    %c0_i32_0 = arith.constant 0 : i32
    %c0_i32_1 = arith.constant 0 : i32
    return %arg0, %arg1, %c0_i32, %c0_i32_0 : i32, i32, i32, i32
  }
  func.func @transform_1(%arg0: i32, %arg1: i32) -> (i32, i32, i32, i32, i32) {
    %c0_i32 = arith.constant 0 : i32
    %c0_i32_0 = arith.constant 0 : i32
    %c0_i32_1 = arith.constant 0 : i32
    %c0_i32_2 = arith.constant 0 : i32
    return %arg0, %arg1, %c0_i32, %c0_i32_0, %c0_i32_1 : i32, i32, i32, i32, i32
  }
  func.func @transform_2(%arg0: i32, %arg1: i32) -> (i32, i32) {
    %c0_i32 = arith.constant 0 : i32
    %c0_i32_0 = arith.constant 0 : i32
    %c0_i32_1 = arith.constant 0 : i32
    return %c0_i32, %c0_i32_0 : i32, i32
  }
  func.func @transform_3(%arg0: i32, %arg1: i32) -> (i32, i32) {
    %c0_i32 = arith.constant 0 : i32
    %c0_i32_0 = arith.constant 0 : i32
    %c0_i32_1 = arith.constant 0 : i32
    return %c0_i32, %c0_i32_0 : i32, i32
  }
  func.func @transform_4(%arg0: i32, %arg1: i32) -> (i32, i32, i32, i32) {
    %c0_i32 = arith.constant 0 : i32
    %c0_i32_0 = arith.constant 0 : i32
    %c0_i32_1 = arith.constant 0 : i32
    return %arg0, %arg1, %c0_i32, %c0_i32_0 : i32, i32, i32, i32
  }
}

module attributes {stable_mosaic.version = 11 : i64} {
  func.func @_conv3x3_kernel(%arg0: i32, %arg1: i32, %arg2: memref<1x4x4x32xbf16, #tpu.memory_space<vmem>>, %arg3: memref<1x1x2x4x32xbf16, #tpu.memory_space<vmem>>, %arg4: memref<288x32xbf16, #tpu.memory_space<vmem>>, %arg5: memref<1x32xf32, #tpu.memory_space<vmem>>, %arg6: memref<1x4x4x32xbf16, #tpu.memory_space<vmem>>, %arg7: memref<1x4x4x32xbf16, #tpu.memory_space<vmem>>, %arg8: memref<6x4x32xbf16, #tpu.memory_space<vmem>>) attributes {dimension_semantics = [#tpu.dimension_semantics<parallel>, #tpu.dimension_semantics<parallel>], iteration_bounds = array<i64: 1, 1>, scalar_prefetch = 0 : i64, scratch_operands = 1 : i64, tpu.core_type = #tpu.core_type<tc>, window_params = [{transform_indices = @transform_0, window_bounds = array<i64: 1, 4, 4, 32>}, {transform_indices = @transform_1, window_bounds = array<i64: 1, 1, 2, 4, 32>}, {pipeline_mode = #tpu.pipeline_mode<synchronous>, transform_indices = @transform_2, window_bounds = array<i64: 288, 32>}, {pipeline_mode = #tpu.pipeline_mode<synchronous>, transform_indices = @transform_3, window_bounds = array<i64: 1, 32>}, {transform_indices = @transform_4, window_bounds = array<i64: 1, 4, 4, 32>}, {transform_indices = @transform_5, window_bounds = array<i64: 1, 4, 4, 32>}]} {
    %c0 = arith.constant 0 : index
    %c0_0 = arith.constant 0 : index
    %c0_1 = arith.constant 0 : index
    %c0_2 = arith.constant 0 : index
    %c0_3 = arith.constant 0 : index
    %0 = vector.load %arg3[%c0, %c0_0, %c0_1, %c0_2, %c0_3] : memref<1x1x2x4x32xbf16, #tpu.memory_space<vmem>>, vector<1x1x1x4x32xbf16>
    %1 = vector.shape_cast %0 : vector<1x1x1x4x32xbf16> to vector<1x4x32xbf16>
    %c0_4 = arith.constant 0 : index
    %c0_5 = arith.constant 0 : index
    %c0_6 = arith.constant 0 : index
    %2 = vector.load %arg8[%c0_4, %c0_5, %c0_6] : memref<6x4x32xbf16, #tpu.memory_space<vmem>>, vector<1x4x32xbf16>
    tpu.vector_store %arg8[%c0_4, %c0_5, %c0_6], %1 {strides = array<i32>} : memref<6x4x32xbf16, #tpu.memory_space<vmem>>, vector<1x4x32xbf16>,
    %c0_7 = arith.constant 0 : index
    %c0_8 = arith.constant 0 : index
    %c0_9 = arith.constant 0 : index
    %c0_10 = arith.constant 0 : index
    %3 = vector.load %arg2[%c0_7, %c0_8, %c0_9, %c0_10] : memref<1x4x4x32xbf16, #tpu.memory_space<vmem>>, vector<1x4x4x32xbf16>
    %4 = vector.shape_cast %3 : vector<1x4x4x32xbf16> to vector<4x4x32xbf16>
    %c1 = arith.constant 1 : index
    %c0_11 = arith.constant 0 : index
    %c0_12 = arith.constant 0 : index
    %5 = vector.load %arg8[%c1, %c0_11, %c0_12] : memref<6x4x32xbf16, #tpu.memory_space<vmem>>, vector<4x4x32xbf16>
    tpu.vector_store %arg8[%c1, %c0_11, %c0_12], %4 {strides = array<i32>} : memref<6x4x32xbf16, #tpu.memory_space<vmem>>, vector<4x4x32xbf16>,
    %c0_13 = arith.constant 0 : index
    %c0_14 = arith.constant 0 : index
    %c1_15 = arith.constant 1 : index
    %c0_16 = arith.constant 0 : index
    %c0_17 = arith.constant 0 : index
    %6 = vector.load %arg3[%c0_13, %c0_14, %c1_15, %c0_16, %c0_17] : memref<1x1x2x4x32xbf16, #tpu.memory_space<vmem>>, vector<1x1x1x4x32xbf16>
    %7 = vector.shape_cast %6 : vector<1x1x1x4x32xbf16> to vector<1x4x32xbf16>
    %c5 = arith.constant 5 : index
    %c0_18 = arith.constant 0 : index
    %c0_19 = arith.constant 0 : index
    %8 = vector.load %arg8[%c5, %c0_18, %c0_19] : memref<6x4x32xbf16, #tpu.memory_space<vmem>>, vector<1x4x32xbf16>
    tpu.vector_store %arg8[%c5, %c0_18, %c0_19], %7 {strides = array<i32>} : memref<6x4x32xbf16, #tpu.memory_space<vmem>>, vector<1x4x32xbf16>,
    %cst = arith.constant 0.000000e+00 : bf16
    %9 = vector.broadcast %cst : bf16 to vector<1x32xbf16>
    %c0_i32 = arith.constant 0 : i32
    %c4_i32 = arith.constant 4 : i32
    %10 = arith.addi %c0_i32, %c4_i32 : i32
    %c1_i32 = arith.constant 1 : i32
    scf.for %arg9 = %c0_i32 to %10 step %c1_i32  : i32 {
      %c0_i32_21 = arith.constant 0 : i32
      %11 = arith.addi %arg9, %c0_i32_21 : i32
      %12 = arith.index_cast %11 : i32 to index
      %c0_22 = arith.constant 0 : index
      %c0_23 = arith.constant 0 : index
      %13 = vector.load %arg8[%12, %c0_22, %c0_23] : memref<6x4x32xbf16, #tpu.memory_space<vmem>>, vector<1x4x32xbf16>
      %14 = vector.shape_cast %13 : vector<1x4x32xbf16> to vector<4x32xbf16>
      %15 = tpu.concatenate %9, %14, %9 in 0 : vector<1x32xbf16>, vector<4x32xbf16>, vector<1x32xbf16> -> vector<6x32xbf16>
      %16 = vector.extract_strided_slice %15 {offsets = [0, 0], sizes = [4, 32], strides = [1, 1]} : vector<6x32xbf16> to vector<4x32xbf16>
      %17 = vector.extract_strided_slice %15 {offsets = [1, 0], sizes = [4, 32], strides = [1, 1]} : vector<6x32xbf16> to vector<4x32xbf16>
      %18 = vector.extract_strided_slice %15 {offsets = [2, 0], sizes = [4, 32], strides = [1, 1]} : vector<6x32xbf16> to vector<4x32xbf16>
      %c1_i32_24 = arith.constant 1 : i32
      %19 = arith.addi %arg9, %c1_i32_24 : i32
      %20 = arith.index_cast %19 : i32 to index
      %c0_25 = arith.constant 0 : index
      %c0_26 = arith.constant 0 : index
      %21 = vector.load %arg8[%20, %c0_25, %c0_26] : memref<6x4x32xbf16, #tpu.memory_space<vmem>>, vector<1x4x32xbf16>
      %22 = vector.shape_cast %21 : vector<1x4x32xbf16> to vector<4x32xbf16>
      %23 = tpu.concatenate %9, %22, %9 in 0 : vector<1x32xbf16>, vector<4x32xbf16>, vector<1x32xbf16> -> vector<6x32xbf16>
      %24 = vector.extract_strided_slice %23 {offsets = [0, 0], sizes = [4, 32], strides = [1, 1]} : vector<6x32xbf16> to vector<4x32xbf16>
      %25 = vector.extract_strided_slice %23 {offsets = [1, 0], sizes = [4, 32], strides = [1, 1]} : vector<6x32xbf16> to vector<4x32xbf16>
      %26 = vector.extract_strided_slice %23 {offsets = [2, 0], sizes = [4, 32], strides = [1, 1]} : vector<6x32xbf16> to vector<4x32xbf16>
      %c2_i32 = arith.constant 2 : i32
      %27 = arith.addi %arg9, %c2_i32 : i32
      %28 = arith.index_cast %27 : i32 to index
      %c0_27 = arith.constant 0 : index
      %c0_28 = arith.constant 0 : index
      %29 = vector.load %arg8[%28, %c0_27, %c0_28] : memref<6x4x32xbf16, #tpu.memory_space<vmem>>, vector<1x4x32xbf16>
      %30 = vector.shape_cast %29 : vector<1x4x32xbf16> to vector<4x32xbf16>
      %31 = tpu.concatenate %9, %30, %9 in 0 : vector<1x32xbf16>, vector<4x32xbf16>, vector<1x32xbf16> -> vector<6x32xbf16>
      %32 = vector.extract_strided_slice %31 {offsets = [0, 0], sizes = [4, 32], strides = [1, 1]} : vector<6x32xbf16> to vector<4x32xbf16>
      %33 = vector.extract_strided_slice %31 {offsets = [1, 0], sizes = [4, 32], strides = [1, 1]} : vector<6x32xbf16> to vector<4x32xbf16>
      %34 = vector.extract_strided_slice %31 {offsets = [2, 0], sizes = [4, 32], strides = [1, 1]} : vector<6x32xbf16> to vector<4x32xbf16>
      %35 = tpu.concatenate %16, %17, %18, %24, %25, %26, %32, %33, %34 in 1 : vector<4x32xbf16>, vector<4x32xbf16>, vector<4x32xbf16>, vector<4x32xbf16>, vector<4x32xbf16>, vector<4x32xbf16>, vector<4x32xbf16>, vector<4x32xbf16>, vector<4x32xbf16> -> vector<4x288xbf16>
      %c0_29 = arith.constant 0 : index
      %c0_30 = arith.constant 0 : index
      %36 = vector.load %arg4[%c0_29, %c0_30] : memref<288x32xbf16, #tpu.memory_space<vmem>>, vector<288x32xbf16>
      %cst_31 = arith.constant dense<0.000000e+00> : vector<4x32xf32>
      %37 = tpu.matmul %35, %36, %cst_31 {dimension_numbers = #tpu.dot_dimension_numbers<[1], [0], [0], [1], [0, 0, 1, 1], [], []>} : vector<4x288xbf16>, vector<288x32xbf16>, vector<4x32xf32> -> vector<4x32xf32>
      %c0_32 = arith.constant 0 : index
      %c0_33 = arith.constant 0 : index
      %38 = vector.load %arg5[%c0_32, %c0_33] : memref<1x32xf32, #tpu.memory_space<vmem>>, vector<1x32xf32>
      %39 = vector.broadcast %38 : vector<1x32xf32> to vector<4x32xf32>
      %40 = arith.addf %37, %39 : vector<4x32xf32>
      %c0_34 = arith.constant 0 : index
      %41 = arith.index_cast %arg9 : i32 to index
      %c0_35 = arith.constant 0 : index
      %c0_36 = arith.constant 0 : index
      %42 = vector.load %arg6[%c0_34, %41, %c0_35, %c0_36] : memref<1x4x4x32xbf16, #tpu.memory_space<vmem>>, vector<1x1x4x32xbf16>
      %43 = vector.shape_cast %42 : vector<1x1x4x32xbf16> to vector<4x32xbf16>
      %44 = arith.extf %43 : vector<4x32xbf16> to vector<4x32xf32>
      %45 = arith.addf %40, %44 : vector<4x32xf32>
      %cst_37 = arith.constant 0.000000e+00 : f32
      %46 = vector.broadcast %cst_37 : f32 to vector<4x32xf32>
      %47 = arith.maximumf %45, %46 : vector<4x32xf32>
      %48 = arith.truncf %47 : vector<4x32xf32> to vector<4x32xbf16>
      %c0_38 = arith.constant 0 : index
      %49 = arith.index_cast %arg9 : i32 to index
      %c0_39 = arith.constant 0 : index
      %c0_40 = arith.constant 0 : index
      %50 = vector.load %arg7[%c0_38, %49, %c0_39, %c0_40] : memref<1x4x4x32xbf16, #tpu.memory_space<vmem>>, vector<1x1x4x32xbf16>
      %51 = vector.shape_cast %50 : vector<1x1x4x32xbf16> to vector<4x32xbf16>
      %52 = vector.shape_cast %48 : vector<4x32xbf16> to vector<1x1x4x32xbf16>
      tpu.vector_store %arg7[%c0_38, %49, %c0_39, %c0_40], %52 {strides = array<i32>} : memref<1x4x4x32xbf16, #tpu.memory_space<vmem>>, vector<1x1x4x32xbf16>,
    }
    %c4_i32_20 = arith.constant 4 : i32
    return
  }
  func.func @transform_0(%arg0: i32, %arg1: i32) -> (i32, i32, i32, i32) {
    %c0_i32 = arith.constant 0 : i32
    %c0_i32_0 = arith.constant 0 : i32
    %c0_i32_1 = arith.constant 0 : i32
    return %arg0, %arg1, %c0_i32, %c0_i32_0 : i32, i32, i32, i32
  }
  func.func @transform_1(%arg0: i32, %arg1: i32) -> (i32, i32, i32, i32, i32) {
    %c0_i32 = arith.constant 0 : i32
    %c0_i32_0 = arith.constant 0 : i32
    %c0_i32_1 = arith.constant 0 : i32
    %c0_i32_2 = arith.constant 0 : i32
    return %arg0, %arg1, %c0_i32, %c0_i32_0, %c0_i32_1 : i32, i32, i32, i32, i32
  }
  func.func @transform_2(%arg0: i32, %arg1: i32) -> (i32, i32) {
    %c0_i32 = arith.constant 0 : i32
    %c0_i32_0 = arith.constant 0 : i32
    %c0_i32_1 = arith.constant 0 : i32
    return %c0_i32, %c0_i32_0 : i32, i32
  }
  func.func @transform_3(%arg0: i32, %arg1: i32) -> (i32, i32) {
    %c0_i32 = arith.constant 0 : i32
    %c0_i32_0 = arith.constant 0 : i32
    %c0_i32_1 = arith.constant 0 : i32
    return %c0_i32, %c0_i32_0 : i32, i32
  }
  func.func @transform_4(%arg0: i32, %arg1: i32) -> (i32, i32, i32, i32) {
    %c0_i32 = arith.constant 0 : i32
    %c0_i32_0 = arith.constant 0 : i32
    %c0_i32_1 = arith.constant 0 : i32
    return %arg0, %arg1, %c0_i32, %c0_i32_0 : i32, i32, i32, i32
  }
  func.func @transform_5(%arg0: i32, %arg1: i32) -> (i32, i32, i32, i32) {
    %c0_i32 = arith.constant 0 : i32
    %c0_i32_0 = arith.constant 0 : i32
    %c0_i32_1 = arith.constant 0 : i32
    return %arg0, %arg1, %c0_i32, %c0_i32_0 : i32, i32, i32, i32
  }
}

module attributes {stable_mosaic.version = 11 : i64} {
  func.func @_conv3x3_kernel(%arg0: i32, %arg1: i32, %arg2: memref<1x1x1x32xbf16, #tpu.memory_space<vmem>>, %arg3: memref<1x1x2x1x32xbf16, #tpu.memory_space<vmem>>, %arg4: memref<288x32xbf16, #tpu.memory_space<vmem>>, %arg5: memref<1x32xf32, #tpu.memory_space<vmem>>, %arg6: memref<1x1x1x32xbf16, #tpu.memory_space<vmem>>, %arg7: memref<3x1x32xbf16, #tpu.memory_space<vmem>>) attributes {dimension_semantics = [#tpu.dimension_semantics<parallel>, #tpu.dimension_semantics<parallel>], iteration_bounds = array<i64: 1, 1>, scalar_prefetch = 0 : i64, scratch_operands = 1 : i64, tpu.core_type = #tpu.core_type<tc>, window_params = [{transform_indices = @transform_0, window_bounds = array<i64: 1, 1, 1, 32>}, {transform_indices = @transform_1, window_bounds = array<i64: 1, 1, 2, 1, 32>}, {pipeline_mode = #tpu.pipeline_mode<synchronous>, transform_indices = @transform_2, window_bounds = array<i64: 288, 32>}, {pipeline_mode = #tpu.pipeline_mode<synchronous>, transform_indices = @transform_3, window_bounds = array<i64: 1, 32>}, {transform_indices = @transform_4, window_bounds = array<i64: 1, 1, 1, 32>}]} {
    %c0 = arith.constant 0 : index
    %c0_0 = arith.constant 0 : index
    %c0_1 = arith.constant 0 : index
    %c0_2 = arith.constant 0 : index
    %c0_3 = arith.constant 0 : index
    %0 = vector.load %arg3[%c0, %c0_0, %c0_1, %c0_2, %c0_3] : memref<1x1x2x1x32xbf16, #tpu.memory_space<vmem>>, vector<1x1x1x1x32xbf16>
    %1 = vector.shape_cast %0 : vector<1x1x1x1x32xbf16> to vector<1x1x32xbf16>
    %c0_4 = arith.constant 0 : index
    %c0_5 = arith.constant 0 : index
    %c0_6 = arith.constant 0 : index
    %2 = vector.load %arg7[%c0_4, %c0_5, %c0_6] : memref<3x1x32xbf16, #tpu.memory_space<vmem>>, vector<1x1x32xbf16>
    tpu.vector_store %arg7[%c0_4, %c0_5, %c0_6], %1 {strides = array<i32>} : memref<3x1x32xbf16, #tpu.memory_space<vmem>>, vector<1x1x32xbf16>,
    %c0_7 = arith.constant 0 : index
    %c0_8 = arith.constant 0 : index
    %c0_9 = arith.constant 0 : index
    %c0_10 = arith.constant 0 : index
    %3 = vector.load %arg2[%c0_7, %c0_8, %c0_9, %c0_10] : memref<1x1x1x32xbf16, #tpu.memory_space<vmem>>, vector<1x1x1x32xbf16>
    %4 = vector.shape_cast %3 : vector<1x1x1x32xbf16> to vector<1x1x32xbf16>
    %c1 = arith.constant 1 : index
    %c0_11 = arith.constant 0 : index
    %c0_12 = arith.constant 0 : index
    %5 = vector.load %arg7[%c1, %c0_11, %c0_12] : memref<3x1x32xbf16, #tpu.memory_space<vmem>>, vector<1x1x32xbf16>
    tpu.vector_store %arg7[%c1, %c0_11, %c0_12], %4 {strides = array<i32>} : memref<3x1x32xbf16, #tpu.memory_space<vmem>>, vector<1x1x32xbf16>,
    %c0_13 = arith.constant 0 : index
    %c0_14 = arith.constant 0 : index
    %c1_15 = arith.constant 1 : index
    %c0_16 = arith.constant 0 : index
    %c0_17 = arith.constant 0 : index
    %6 = vector.load %arg3[%c0_13, %c0_14, %c1_15, %c0_16, %c0_17] : memref<1x1x2x1x32xbf16, #tpu.memory_space<vmem>>, vector<1x1x1x1x32xbf16>
    %7 = vector.shape_cast %6 : vector<1x1x1x1x32xbf16> to vector<1x1x32xbf16>
    %c2 = arith.constant 2 : index
    %c0_18 = arith.constant 0 : index
    %c0_19 = arith.constant 0 : index
    %8 = vector.load %arg7[%c2, %c0_18, %c0_19] : memref<3x1x32xbf16, #tpu.memory_space<vmem>>, vector<1x1x32xbf16>
    tpu.vector_store %arg7[%c2, %c0_18, %c0_19], %7 {strides = array<i32>} : memref<3x1x32xbf16, #tpu.memory_space<vmem>>, vector<1x1x32xbf16>,
    %cst = arith.constant 0.000000e+00 : bf16
    %9 = vector.broadcast %cst : bf16 to vector<1x32xbf16>
    %c0_i32 = arith.constant 0 : i32
    %c0_i32_20 = arith.constant 0 : i32
    %10 = arith.addi %c0_i32, %c0_i32_20 : i32
    %11 = arith.index_cast %10 : i32 to index
    %c0_21 = arith.constant 0 : index
    %c0_22 = arith.constant 0 : index
    %12 = vector.load %arg7[%11, %c0_21, %c0_22] : memref<3x1x32xbf16, #tpu.memory_space<vmem>>, vector<1x1x32xbf16>
    %13 = vector.shape_cast %12 : vector<1x1x32xbf16> to vector<1x32xbf16>
    %14 = tpu.concatenate %9, %13, %9 in 0 : vector<1x32xbf16>, vector<1x32xbf16>, vector<1x32xbf16> -> vector<3x32xbf16>
    %15 = vector.extract_strided_slice %14 {offsets = [0, 0], sizes = [1, 32], strides = [1, 1]} : vector<3x32xbf16> to vector<1x32xbf16>
    %16 = vector.extract_strided_slice %14 {offsets = [1, 0], sizes = [1, 32], strides = [1, 1]} : vector<3x32xbf16> to vector<1x32xbf16>
    %17 = vector.extract_strided_slice %14 {offsets = [2, 0], sizes = [1, 32], strides = [1, 1]} : vector<3x32xbf16> to vector<1x32xbf16>
    %c1_i32 = arith.constant 1 : i32
    %18 = arith.addi %c0_i32, %c1_i32 : i32
    %19 = arith.index_cast %18 : i32 to index
    %c0_23 = arith.constant 0 : index
    %c0_24 = arith.constant 0 : index
    %20 = vector.load %arg7[%19, %c0_23, %c0_24] : memref<3x1x32xbf16, #tpu.memory_space<vmem>>, vector<1x1x32xbf16>
    %21 = vector.shape_cast %20 : vector<1x1x32xbf16> to vector<1x32xbf16>
    %22 = tpu.concatenate %9, %21, %9 in 0 : vector<1x32xbf16>, vector<1x32xbf16>, vector<1x32xbf16> -> vector<3x32xbf16>
    %23 = vector.extract_strided_slice %22 {offsets = [0, 0], sizes = [1, 32], strides = [1, 1]} : vector<3x32xbf16> to vector<1x32xbf16>
    %24 = vector.extract_strided_slice %22 {offsets = [1, 0], sizes = [1, 32], strides = [1, 1]} : vector<3x32xbf16> to vector<1x32xbf16>
    %25 = vector.extract_strided_slice %22 {offsets = [2, 0], sizes = [1, 32], strides = [1, 1]} : vector<3x32xbf16> to vector<1x32xbf16>
    %c2_i32 = arith.constant 2 : i32
    %26 = arith.addi %c0_i32, %c2_i32 : i32
    %27 = arith.index_cast %26 : i32 to index
    %c0_25 = arith.constant 0 : index
    %c0_26 = arith.constant 0 : index
    %28 = vector.load %arg7[%27, %c0_25, %c0_26] : memref<3x1x32xbf16, #tpu.memory_space<vmem>>, vector<1x1x32xbf16>
    %29 = vector.shape_cast %28 : vector<1x1x32xbf16> to vector<1x32xbf16>
    %30 = tpu.concatenate %9, %29, %9 in 0 : vector<1x32xbf16>, vector<1x32xbf16>, vector<1x32xbf16> -> vector<3x32xbf16>
    %31 = vector.extract_strided_slice %30 {offsets = [0, 0], sizes = [1, 32], strides = [1, 1]} : vector<3x32xbf16> to vector<1x32xbf16>
    %32 = vector.extract_strided_slice %30 {offsets = [1, 0], sizes = [1, 32], strides = [1, 1]} : vector<3x32xbf16> to vector<1x32xbf16>
    %33 = vector.extract_strided_slice %30 {offsets = [2, 0], sizes = [1, 32], strides = [1, 1]} : vector<3x32xbf16> to vector<1x32xbf16>
    %34 = tpu.concatenate %15, %16, %17, %23, %24, %25, %31, %32, %33 in 1 : vector<1x32xbf16>, vector<1x32xbf16>, vector<1x32xbf16>, vector<1x32xbf16>, vector<1x32xbf16>, vector<1x32xbf16>, vector<1x32xbf16>, vector<1x32xbf16>, vector<1x32xbf16> -> vector<1x288xbf16>
    %c0_27 = arith.constant 0 : index
    %c0_28 = arith.constant 0 : index
    %35 = vector.load %arg4[%c0_27, %c0_28] : memref<288x32xbf16, #tpu.memory_space<vmem>>, vector<288x32xbf16>
    %cst_29 = arith.constant dense<0.000000e+00> : vector<1x32xf32>
    %36 = tpu.matmul %34, %35, %cst_29 {dimension_numbers = #tpu.dot_dimension_numbers<[1], [0], [0], [1], [0, 0, 1, 1], [], []>} : vector<1x288xbf16>, vector<288x32xbf16>, vector<1x32xf32> -> vector<1x32xf32>
    %c0_30 = arith.constant 0 : index
    %c0_31 = arith.constant 0 : index
    %37 = vector.load %arg5[%c0_30, %c0_31] : memref<1x32xf32, #tpu.memory_space<vmem>>, vector<1x32xf32>
    %38 = arith.addf %36, %37 : vector<1x32xf32>
    %cst_32 = arith.constant 0.000000e+00 : f32
    %39 = vector.broadcast %cst_32 : f32 to vector<1x32xf32>
    %40 = arith.maximumf %38, %39 : vector<1x32xf32>
    %41 = arith.truncf %40 : vector<1x32xf32> to vector<1x32xbf16>
    %c0_33 = arith.constant 0 : index
    %42 = arith.index_cast %c0_i32 : i32 to index
    %c0_34 = arith.constant 0 : index
    %c0_35 = arith.constant 0 : index
    %43 = vector.load %arg6[%c0_33, %42, %c0_34, %c0_35] : memref<1x1x1x32xbf16, #tpu.memory_space<vmem>>, vector<1x1x1x32xbf16>
    %44 = vector.shape_cast %43 : vector<1x1x1x32xbf16> to vector<1x32xbf16>
    %45 = vector.shape_cast %41 : vector<1x32xbf16> to vector<1x1x1x32xbf16>
    tpu.vector_store %arg6[%c0_33, %42, %c0_34, %c0_35], %45 {strides = array<i32>} : memref<1x1x1x32xbf16, #tpu.memory_space<vmem>>, vector<1x1x1x32xbf16>,
    %c1_i32_36 = arith.constant 1 : i32
    return
  }
  func.func @transform_0(%arg0: i32, %arg1: i32) -> (i32, i32, i32, i32) {
    %c0_i32 = arith.constant 0 : i32
    %c0_i32_0 = arith.constant 0 : i32
    %c0_i32_1 = arith.constant 0 : i32
    return %arg0, %arg1, %c0_i32, %c0_i32_0 : i32, i32, i32, i32
  }
  func.func @transform_1(%arg0: i32, %arg1: i32) -> (i32, i32, i32, i32, i32) {
    %c0_i32 = arith.constant 0 : i32
    %c0_i32_0 = arith.constant 0 : i32
    %c0_i32_1 = arith.constant 0 : i32
    %c0_i32_2 = arith.constant 0 : i32
    return %arg0, %arg1, %c0_i32, %c0_i32_0, %c0_i32_1 : i32, i32, i32, i32, i32
  }
  func.func @transform_2(%arg0: i32, %arg1: i32) -> (i32, i32) {
    %c0_i32 = arith.constant 0 : i32
    %c0_i32_0 = arith.constant 0 : i32
    %c0_i32_1 = arith.constant 0 : i32
    return %c0_i32, %c0_i32_0 : i32, i32
  }
  func.func @transform_3(%arg0: i32, %arg1: i32) -> (i32, i32) {
    %c0_i32 = arith.constant 0 : i32
    %c0_i32_0 = arith.constant 0 : i32
    %c0_i32_1 = arith.constant 0 : i32
    return %c0_i32, %c0_i32_0 : i32, i32
  }
  func.func @transform_4(%arg0: i32, %arg1: i32) -> (i32, i32, i32, i32) {
    %c0_i32 = arith.constant 0 : i32
    %c0_i32_0 = arith.constant 0 : i32
    %c0_i32_1 = arith.constant 0 : i32
    return %arg0, %arg1, %c0_i32, %c0_i32_0 : i32, i32, i32, i32
  }
}

module attributes {stable_mosaic.version = 11 : i64} {
  func.func @_conv1x1_kernel(%arg0: i32, %arg1: i32, %arg2: memref<1x1x32xbf16, #tpu.memory_space<vmem>>, %arg3: memref<32x32xbf16, #tpu.memory_space<vmem>>, %arg4: memref<1x32xf32, #tpu.memory_space<vmem>>, %arg5: memref<1x1x32xbf16, #tpu.memory_space<vmem>>) attributes {dimension_semantics = [#tpu.dimension_semantics<parallel>, #tpu.dimension_semantics<parallel>], iteration_bounds = array<i64: 1, 1>, scalar_prefetch = 0 : i64, scratch_operands = 0 : i64, tpu.core_type = #tpu.core_type<tc>, window_params = [{transform_indices = @transform_0, window_bounds = array<i64: 1, 1, 32>}, {pipeline_mode = #tpu.pipeline_mode<synchronous>, transform_indices = @transform_1, window_bounds = array<i64: 32, 32>}, {pipeline_mode = #tpu.pipeline_mode<synchronous>, transform_indices = @transform_2, window_bounds = array<i64: 1, 32>}, {transform_indices = @transform_3, window_bounds = array<i64: 1, 1, 32>}]} {
    %c0 = arith.constant 0 : index
    %c0_0 = arith.constant 0 : index
    %c0_1 = arith.constant 0 : index
    %0 = vector.load %arg2[%c0, %c0_0, %c0_1] : memref<1x1x32xbf16, #tpu.memory_space<vmem>>, vector<1x1x32xbf16>
    %1 = vector.shape_cast %0 : vector<1x1x32xbf16> to vector<1x32xbf16>
    %c0_2 = arith.constant 0 : index
    %c0_3 = arith.constant 0 : index
    %2 = vector.load %arg3[%c0_2, %c0_3] : memref<32x32xbf16, #tpu.memory_space<vmem>>, vector<32x32xbf16>
    %cst = arith.constant dense<0.000000e+00> : vector<1x32xf32>
    %3 = tpu.matmul %1, %2, %cst {dimension_numbers = #tpu.dot_dimension_numbers<[1], [0], [0], [1], [0, 0, 1, 1], [], []>} : vector<1x32xbf16>, vector<32x32xbf16>, vector<1x32xf32> -> vector<1x32xf32>
    %c0_4 = arith.constant 0 : index
    %c0_5 = arith.constant 0 : index
    %4 = vector.load %arg4[%c0_4, %c0_5] : memref<1x32xf32, #tpu.memory_space<vmem>>, vector<1x32xf32>
    %5 = arith.addf %3, %4 : vector<1x32xf32>
    %6 = arith.truncf %5 : vector<1x32xf32> to vector<1x32xbf16>
    %c0_6 = arith.constant 0 : index
    %c0_7 = arith.constant 0 : index
    %c0_8 = arith.constant 0 : index
    %7 = vector.load %arg5[%c0_6, %c0_7, %c0_8] : memref<1x1x32xbf16, #tpu.memory_space<vmem>>, vector<1x1x32xbf16>
    %8 = vector.shape_cast %7 : vector<1x1x32xbf16> to vector<1x32xbf16>
    %9 = vector.shape_cast %6 : vector<1x32xbf16> to vector<1x1x32xbf16>
    tpu.vector_store %arg5[%c0_6, %c0_7, %c0_8], %9 {strides = array<i32>} : memref<1x1x32xbf16, #tpu.memory_space<vmem>>, vector<1x1x32xbf16>,
    return
  }
  func.func @transform_0(%arg0: i32, %arg1: i32) -> (i32, i32, i32) {
    %c0_i32 = arith.constant 0 : i32
    %c0_i32_0 = arith.constant 0 : i32
    return %arg0, %arg1, %c0_i32 : i32, i32, i32
  }
  func.func @transform_1(%arg0: i32, %arg1: i32) -> (i32, i32) {
    %c0_i32 = arith.constant 0 : i32
    %c0_i32_0 = arith.constant 0 : i32
    %c0_i32_1 = arith.constant 0 : i32
    return %c0_i32, %c0_i32_0 : i32, i32
  }
  func.func @transform_2(%arg0: i32, %arg1: i32) -> (i32, i32) {
    %c0_i32 = arith.constant 0 : i32
    %c0_i32_0 = arith.constant 0 : i32
    %c0_i32_1 = arith.constant 0 : i32
    return %c0_i32, %c0_i32_0 : i32, i32
  }
  func.func @transform_3(%arg0: i32, %arg1: i32) -> (i32, i32, i32) {
    %c0_i32 = arith.constant 0 : i32
    %c0_i32_0 = arith.constant 0 : i32
    return %arg0, %arg1, %c0_i32 : i32, i32, i32
  }
}

module attributes {stable_mosaic.version = 11 : i64} {
  func.func @_conv3x3_kernel(%arg0: i32, %arg1: i32, %arg2: memref<1x1x1x32xbf16, #tpu.memory_space<vmem>>, %arg3: memref<1x1x2x1x32xbf16, #tpu.memory_space<vmem>>, %arg4: memref<288x32xbf16, #tpu.memory_space<vmem>>, %arg5: memref<1x32xf32, #tpu.memory_space<vmem>>, %arg6: memref<1x1x1x32xbf16, #tpu.memory_space<vmem>>, %arg7: memref<1x1x1x32xbf16, #tpu.memory_space<vmem>>, %arg8: memref<3x1x32xbf16, #tpu.memory_space<vmem>>) attributes {dimension_semantics = [#tpu.dimension_semantics<parallel>, #tpu.dimension_semantics<parallel>], iteration_bounds = array<i64: 1, 1>, scalar_prefetch = 0 : i64, scratch_operands = 1 : i64, tpu.core_type = #tpu.core_type<tc>, window_params = [{transform_indices = @transform_0, window_bounds = array<i64: 1, 1, 1, 32>}, {transform_indices = @transform_1, window_bounds = array<i64: 1, 1, 2, 1, 32>}, {pipeline_mode = #tpu.pipeline_mode<synchronous>, transform_indices = @transform_2, window_bounds = array<i64: 288, 32>}, {pipeline_mode = #tpu.pipeline_mode<synchronous>, transform_indices = @transform_3, window_bounds = array<i64: 1, 32>}, {transform_indices = @transform_4, window_bounds = array<i64: 1, 1, 1, 32>}, {transform_indices = @transform_5, window_bounds = array<i64: 1, 1, 1, 32>}]} {
    %c0 = arith.constant 0 : index
    %c0_0 = arith.constant 0 : index
    %c0_1 = arith.constant 0 : index
    %c0_2 = arith.constant 0 : index
    %c0_3 = arith.constant 0 : index
    %0 = vector.load %arg3[%c0, %c0_0, %c0_1, %c0_2, %c0_3] : memref<1x1x2x1x32xbf16, #tpu.memory_space<vmem>>, vector<1x1x1x1x32xbf16>
    %1 = vector.shape_cast %0 : vector<1x1x1x1x32xbf16> to vector<1x1x32xbf16>
    %c0_4 = arith.constant 0 : index
    %c0_5 = arith.constant 0 : index
    %c0_6 = arith.constant 0 : index
    %2 = vector.load %arg8[%c0_4, %c0_5, %c0_6] : memref<3x1x32xbf16, #tpu.memory_space<vmem>>, vector<1x1x32xbf16>
    tpu.vector_store %arg8[%c0_4, %c0_5, %c0_6], %1 {strides = array<i32>} : memref<3x1x32xbf16, #tpu.memory_space<vmem>>, vector<1x1x32xbf16>,
    %c0_7 = arith.constant 0 : index
    %c0_8 = arith.constant 0 : index
    %c0_9 = arith.constant 0 : index
    %c0_10 = arith.constant 0 : index
    %3 = vector.load %arg2[%c0_7, %c0_8, %c0_9, %c0_10] : memref<1x1x1x32xbf16, #tpu.memory_space<vmem>>, vector<1x1x1x32xbf16>
    %4 = vector.shape_cast %3 : vector<1x1x1x32xbf16> to vector<1x1x32xbf16>
    %c1 = arith.constant 1 : index
    %c0_11 = arith.constant 0 : index
    %c0_12 = arith.constant 0 : index
    %5 = vector.load %arg8[%c1, %c0_11, %c0_12] : memref<3x1x32xbf16, #tpu.memory_space<vmem>>, vector<1x1x32xbf16>
    tpu.vector_store %arg8[%c1, %c0_11, %c0_12], %4 {strides = array<i32>} : memref<3x1x32xbf16, #tpu.memory_space<vmem>>, vector<1x1x32xbf16>,
    %c0_13 = arith.constant 0 : index
    %c0_14 = arith.constant 0 : index
    %c1_15 = arith.constant 1 : index
    %c0_16 = arith.constant 0 : index
    %c0_17 = arith.constant 0 : index
    %6 = vector.load %arg3[%c0_13, %c0_14, %c1_15, %c0_16, %c0_17] : memref<1x1x2x1x32xbf16, #tpu.memory_space<vmem>>, vector<1x1x1x1x32xbf16>
    %7 = vector.shape_cast %6 : vector<1x1x1x1x32xbf16> to vector<1x1x32xbf16>
    %c2 = arith.constant 2 : index
    %c0_18 = arith.constant 0 : index
    %c0_19 = arith.constant 0 : index
    %8 = vector.load %arg8[%c2, %c0_18, %c0_19] : memref<3x1x32xbf16, #tpu.memory_space<vmem>>, vector<1x1x32xbf16>
    tpu.vector_store %arg8[%c2, %c0_18, %c0_19], %7 {strides = array<i32>} : memref<3x1x32xbf16, #tpu.memory_space<vmem>>, vector<1x1x32xbf16>,
    %cst = arith.constant 0.000000e+00 : bf16
    %9 = vector.broadcast %cst : bf16 to vector<1x32xbf16>
    %c0_i32 = arith.constant 0 : i32
    %c0_i32_20 = arith.constant 0 : i32
    %10 = arith.addi %c0_i32, %c0_i32_20 : i32
    %11 = arith.index_cast %10 : i32 to index
    %c0_21 = arith.constant 0 : index
    %c0_22 = arith.constant 0 : index
    %12 = vector.load %arg8[%11, %c0_21, %c0_22] : memref<3x1x32xbf16, #tpu.memory_space<vmem>>, vector<1x1x32xbf16>
    %13 = vector.shape_cast %12 : vector<1x1x32xbf16> to vector<1x32xbf16>
    %14 = tpu.concatenate %9, %13, %9 in 0 : vector<1x32xbf16>, vector<1x32xbf16>, vector<1x32xbf16> -> vector<3x32xbf16>
    %15 = vector.extract_strided_slice %14 {offsets = [0, 0], sizes = [1, 32], strides = [1, 1]} : vector<3x32xbf16> to vector<1x32xbf16>
    %16 = vector.extract_strided_slice %14 {offsets = [1, 0], sizes = [1, 32], strides = [1, 1]} : vector<3x32xbf16> to vector<1x32xbf16>
    %17 = vector.extract_strided_slice %14 {offsets = [2, 0], sizes = [1, 32], strides = [1, 1]} : vector<3x32xbf16> to vector<1x32xbf16>
    %c1_i32 = arith.constant 1 : i32
    %18 = arith.addi %c0_i32, %c1_i32 : i32
    %19 = arith.index_cast %18 : i32 to index
    %c0_23 = arith.constant 0 : index
    %c0_24 = arith.constant 0 : index
    %20 = vector.load %arg8[%19, %c0_23, %c0_24] : memref<3x1x32xbf16, #tpu.memory_space<vmem>>, vector<1x1x32xbf16>
    %21 = vector.shape_cast %20 : vector<1x1x32xbf16> to vector<1x32xbf16>
    %22 = tpu.concatenate %9, %21, %9 in 0 : vector<1x32xbf16>, vector<1x32xbf16>, vector<1x32xbf16> -> vector<3x32xbf16>
    %23 = vector.extract_strided_slice %22 {offsets = [0, 0], sizes = [1, 32], strides = [1, 1]} : vector<3x32xbf16> to vector<1x32xbf16>
    %24 = vector.extract_strided_slice %22 {offsets = [1, 0], sizes = [1, 32], strides = [1, 1]} : vector<3x32xbf16> to vector<1x32xbf16>
    %25 = vector.extract_strided_slice %22 {offsets = [2, 0], sizes = [1, 32], strides = [1, 1]} : vector<3x32xbf16> to vector<1x32xbf16>
    %c2_i32 = arith.constant 2 : i32
    %26 = arith.addi %c0_i32, %c2_i32 : i32
    %27 = arith.index_cast %26 : i32 to index
    %c0_25 = arith.constant 0 : index
    %c0_26 = arith.constant 0 : index
    %28 = vector.load %arg8[%27, %c0_25, %c0_26] : memref<3x1x32xbf16, #tpu.memory_space<vmem>>, vector<1x1x32xbf16>
    %29 = vector.shape_cast %28 : vector<1x1x32xbf16> to vector<1x32xbf16>
    %30 = tpu.concatenate %9, %29, %9 in 0 : vector<1x32xbf16>, vector<1x32xbf16>, vector<1x32xbf16> -> vector<3x32xbf16>
    %31 = vector.extract_strided_slice %30 {offsets = [0, 0], sizes = [1, 32], strides = [1, 1]} : vector<3x32xbf16> to vector<1x32xbf16>
    %32 = vector.extract_strided_slice %30 {offsets = [1, 0], sizes = [1, 32], strides = [1, 1]} : vector<3x32xbf16> to vector<1x32xbf16>
    %33 = vector.extract_strided_slice %30 {offsets = [2, 0], sizes = [1, 32], strides = [1, 1]} : vector<3x32xbf16> to vector<1x32xbf16>
    %34 = tpu.concatenate %15, %16, %17, %23, %24, %25, %31, %32, %33 in 1 : vector<1x32xbf16>, vector<1x32xbf16>, vector<1x32xbf16>, vector<1x32xbf16>, vector<1x32xbf16>, vector<1x32xbf16>, vector<1x32xbf16>, vector<1x32xbf16>, vector<1x32xbf16> -> vector<1x288xbf16>
    %c0_27 = arith.constant 0 : index
    %c0_28 = arith.constant 0 : index
    %35 = vector.load %arg4[%c0_27, %c0_28] : memref<288x32xbf16, #tpu.memory_space<vmem>>, vector<288x32xbf16>
    %cst_29 = arith.constant dense<0.000000e+00> : vector<1x32xf32>
    %36 = tpu.matmul %34, %35, %cst_29 {dimension_numbers = #tpu.dot_dimension_numbers<[1], [0], [0], [1], [0, 0, 1, 1], [], []>} : vector<1x288xbf16>, vector<288x32xbf16>, vector<1x32xf32> -> vector<1x32xf32>
    %c0_30 = arith.constant 0 : index
    %c0_31 = arith.constant 0 : index
    %37 = vector.load %arg5[%c0_30, %c0_31] : memref<1x32xf32, #tpu.memory_space<vmem>>, vector<1x32xf32>
    %38 = arith.addf %36, %37 : vector<1x32xf32>
    %c0_32 = arith.constant 0 : index
    %39 = arith.index_cast %c0_i32 : i32 to index
    %c0_33 = arith.constant 0 : index
    %c0_34 = arith.constant 0 : index
    %40 = vector.load %arg6[%c0_32, %39, %c0_33, %c0_34] : memref<1x1x1x32xbf16, #tpu.memory_space<vmem>>, vector<1x1x1x32xbf16>
    %41 = vector.shape_cast %40 : vector<1x1x1x32xbf16> to vector<1x32xbf16>
    %42 = arith.extf %41 : vector<1x32xbf16> to vector<1x32xf32>
    %43 = arith.addf %38, %42 : vector<1x32xf32>
    %cst_35 = arith.constant 0.000000e+00 : f32
    %44 = vector.broadcast %cst_35 : f32 to vector<1x32xf32>
    %45 = arith.maximumf %43, %44 : vector<1x32xf32>
    %46 = arith.truncf %45 : vector<1x32xf32> to vector<1x32xbf16>
    %c0_36 = arith.constant 0 : index
    %47 = arith.index_cast %c0_i32 : i32 to index
    %c0_37 = arith.constant 0 : index
    %c0_38 = arith.constant 0 : index
    %48 = vector.load %arg7[%c0_36, %47, %c0_37, %c0_38] : memref<1x1x1x32xbf16, #tpu.memory_space<vmem>>, vector<1x1x1x32xbf16>
    %49 = vector.shape_cast %48 : vector<1x1x1x32xbf16> to vector<1x32xbf16>
    %50 = vector.shape_cast %46 : vector<1x32xbf16> to vector<1x1x1x32xbf16>
    tpu.vector_store %arg7[%c0_36, %47, %c0_37, %c0_38], %50 {strides = array<i32>} : memref<1x1x1x32xbf16, #tpu.memory_space<vmem>>, vector<1x1x1x32xbf16>,
    %c1_i32_39 = arith.constant 1 : i32
    return
  }
  func.func @transform_0(%arg0: i32, %arg1: i32) -> (i32, i32, i32, i32) {
    %c0_i32 = arith.constant 0 : i32
    %c0_i32_0 = arith.constant 0 : i32
    %c0_i32_1 = arith.constant 0 : i32
    return %arg0, %arg1, %c0_i32, %c0_i32_0 : i32, i32, i32, i32
  }
  func.func @transform_1(%arg0: i32, %arg1: i32) -> (i32, i32, i32, i32, i32) {
    %c0_i32 = arith.constant 0 : i32
    %c0_i32_0 = arith.constant 0 : i32
    %c0_i32_1 = arith.constant 0 : i32
    %c0_i32_2 = arith.constant 0 : i32
    return %arg0, %arg1, %c0_i32, %c0_i32_0, %c0_i32_1 : i32, i32, i32, i32, i32
  }
  func.func @transform_2(%arg0: i32, %arg1: i32) -> (i32, i32) {
    %c0_i32 = arith.constant 0 : i32
    %c0_i32_0 = arith.constant 0 : i32
    %c0_i32_1 = arith.constant 0 : i32
    return %c0_i32, %c0_i32_0 : i32, i32
  }
  func.func @transform_3(%arg0: i32, %arg1: i32) -> (i32, i32) {
    %c0_i32 = arith.constant 0 : i32
    %c0_i32_0 = arith.constant 0 : i32
    %c0_i32_1 = arith.constant 0 : i32
    return %c0_i32, %c0_i32_0 : i32, i32
  }
  func.func @transform_4(%arg0: i32, %arg1: i32) -> (i32, i32, i32, i32) {
    %c0_i32 = arith.constant 0 : i32
    %c0_i32_0 = arith.constant 0 : i32
    %c0_i32_1 = arith.constant 0 : i32
    return %arg0, %arg1, %c0_i32, %c0_i32_0 : i32, i32, i32, i32
  }
  func.func @transform_5(%arg0: i32, %arg1: i32) -> (i32, i32, i32, i32) {
    %c0_i32 = arith.constant 0 : i32
    %c0_i32_0 = arith.constant 0 : i32
    %c0_i32_1 = arith.constant 0 : i32
    return %arg0, %arg1, %c0_i32, %c0_i32_0 : i32, i32, i32, i32
  }
}

module attributes {stable_mosaic.version = 11 : i64} {
  func.func @_conv1x1_kernel(%arg0: i32, %arg1: i32, %arg2: memref<1x1x32xbf16, #tpu.memory_space<vmem>>, %arg3: memref<32x8xbf16, #tpu.memory_space<vmem>>, %arg4: memref<1x8xf32, #tpu.memory_space<vmem>>, %arg5: memref<1x1x8xbf16, #tpu.memory_space<vmem>>) attributes {dimension_semantics = [#tpu.dimension_semantics<parallel>, #tpu.dimension_semantics<parallel>], iteration_bounds = array<i64: 1, 1>, scalar_prefetch = 0 : i64, scratch_operands = 0 : i64, tpu.core_type = #tpu.core_type<tc>, window_params = [{transform_indices = @transform_0, window_bounds = array<i64: 1, 1, 32>}, {pipeline_mode = #tpu.pipeline_mode<synchronous>, transform_indices = @transform_1, window_bounds = array<i64: 32, 8>}, {pipeline_mode = #tpu.pipeline_mode<synchronous>, transform_indices = @transform_2, window_bounds = array<i64: 1, 8>}, {transform_indices = @transform_3, window_bounds = array<i64: 1, 1, 8>}]} {
    %c0 = arith.constant 0 : index
    %c0_0 = arith.constant 0 : index
    %c0_1 = arith.constant 0 : index
    %0 = vector.load %arg2[%c0, %c0_0, %c0_1] : memref<1x1x32xbf16, #tpu.memory_space<vmem>>, vector<1x1x32xbf16>
    %1 = vector.shape_cast %0 : vector<1x1x32xbf16> to vector<1x32xbf16>
    %c0_2 = arith.constant 0 : index
    %c0_3 = arith.constant 0 : index
    %2 = vector.load %arg3[%c0_2, %c0_3] : memref<32x8xbf16, #tpu.memory_space<vmem>>, vector<32x8xbf16>
    %cst = arith.constant dense<0.000000e+00> : vector<1x8xf32>
    %3 = tpu.matmul %1, %2, %cst {dimension_numbers = #tpu.dot_dimension_numbers<[1], [0], [0], [1], [0, 0, 1, 1], [], []>} : vector<1x32xbf16>, vector<32x8xbf16>, vector<1x8xf32> -> vector<1x8xf32>
    %c0_4 = arith.constant 0 : index
    %c0_5 = arith.constant 0 : index
    %4 = vector.load %arg4[%c0_4, %c0_5] : memref<1x8xf32, #tpu.memory_space<vmem>>, vector<1x8xf32>
    %5 = arith.addf %3, %4 : vector<1x8xf32>
    %cst_6 = arith.constant 0.000000e+00 : f32
    %6 = vector.broadcast %cst_6 : f32 to vector<1x8xf32>
    %7 = arith.maximumf %5, %6 : vector<1x8xf32>
    %8 = arith.truncf %7 : vector<1x8xf32> to vector<1x8xbf16>
    %c0_7 = arith.constant 0 : index
    %c0_8 = arith.constant 0 : index
    %c0_9 = arith.constant 0 : index
    %9 = vector.load %arg5[%c0_7, %c0_8, %c0_9] : memref<1x1x8xbf16, #tpu.memory_space<vmem>>, vector<1x1x8xbf16>
    %10 = vector.shape_cast %9 : vector<1x1x8xbf16> to vector<1x8xbf16>
    %11 = vector.shape_cast %8 : vector<1x8xbf16> to vector<1x1x8xbf16>
    tpu.vector_store %arg5[%c0_7, %c0_8, %c0_9], %11 {strides = array<i32>} : memref<1x1x8xbf16, #tpu.memory_space<vmem>>, vector<1x1x8xbf16>,
    return
  }
  func.func @transform_0(%arg0: i32, %arg1: i32) -> (i32, i32, i32) {
    %c0_i32 = arith.constant 0 : i32
    %c0_i32_0 = arith.constant 0 : i32
    return %arg0, %arg1, %c0_i32 : i32, i32, i32
  }
  func.func @transform_1(%arg0: i32, %arg1: i32) -> (i32, i32) {
    %c0_i32 = arith.constant 0 : i32
    %c0_i32_0 = arith.constant 0 : i32
    %c0_i32_1 = arith.constant 0 : i32
    return %c0_i32, %c0_i32_0 : i32, i32
  }
  func.func @transform_2(%arg0: i32, %arg1: i32) -> (i32, i32) {
    %c0_i32 = arith.constant 0 : i32
    %c0_i32_0 = arith.constant 0 : i32
    %c0_i32_1 = arith.constant 0 : i32
    return %c0_i32, %c0_i32_0 : i32, i32
  }
  func.func @transform_3(%arg0: i32, %arg1: i32) -> (i32, i32, i32) {
    %c0_i32 = arith.constant 0 : i32
    %c0_i32_0 = arith.constant 0 : i32
    return %arg0, %arg1, %c0_i32 : i32, i32, i32
  }
}

module attributes {stable_mosaic.version = 11 : i64} {
  func.func @_conv1x1_kernel(%arg0: i32, %arg1: i32, %arg2: memref<1x16x32xbf16, #tpu.memory_space<vmem>>, %arg3: memref<32x8xbf16, #tpu.memory_space<vmem>>, %arg4: memref<1x8xf32, #tpu.memory_space<vmem>>, %arg5: memref<1x16x8xbf16, #tpu.memory_space<vmem>>) attributes {dimension_semantics = [#tpu.dimension_semantics<parallel>, #tpu.dimension_semantics<parallel>], iteration_bounds = array<i64: 1, 1>, scalar_prefetch = 0 : i64, scratch_operands = 0 : i64, tpu.core_type = #tpu.core_type<tc>, window_params = [{transform_indices = @transform_0, window_bounds = array<i64: 1, 16, 32>}, {pipeline_mode = #tpu.pipeline_mode<synchronous>, transform_indices = @transform_1, window_bounds = array<i64: 32, 8>}, {pipeline_mode = #tpu.pipeline_mode<synchronous>, transform_indices = @transform_2, window_bounds = array<i64: 1, 8>}, {transform_indices = @transform_3, window_bounds = array<i64: 1, 16, 8>}]} {
    %c0 = arith.constant 0 : index
    %c0_0 = arith.constant 0 : index
    %c0_1 = arith.constant 0 : index
    %0 = vector.load %arg2[%c0, %c0_0, %c0_1] : memref<1x16x32xbf16, #tpu.memory_space<vmem>>, vector<1x16x32xbf16>
    %1 = vector.shape_cast %0 : vector<1x16x32xbf16> to vector<16x32xbf16>
    %c0_2 = arith.constant 0 : index
    %c0_3 = arith.constant 0 : index
    %2 = vector.load %arg3[%c0_2, %c0_3] : memref<32x8xbf16, #tpu.memory_space<vmem>>, vector<32x8xbf16>
    %cst = arith.constant dense<0.000000e+00> : vector<16x8xf32>
    %3 = tpu.matmul %1, %2, %cst {dimension_numbers = #tpu.dot_dimension_numbers<[1], [0], [0], [1], [0, 0, 1, 1], [], []>} : vector<16x32xbf16>, vector<32x8xbf16>, vector<16x8xf32> -> vector<16x8xf32>
    %c0_4 = arith.constant 0 : index
    %c0_5 = arith.constant 0 : index
    %4 = vector.load %arg4[%c0_4, %c0_5] : memref<1x8xf32, #tpu.memory_space<vmem>>, vector<1x8xf32>
    %5 = vector.broadcast %4 : vector<1x8xf32> to vector<16x8xf32>
    %6 = arith.addf %3, %5 : vector<16x8xf32>
    %cst_6 = arith.constant 0.000000e+00 : f32
    %7 = vector.broadcast %cst_6 : f32 to vector<16x8xf32>
    %8 = arith.maximumf %6, %7 : vector<16x8xf32>
    %9 = arith.truncf %8 : vector<16x8xf32> to vector<16x8xbf16>
    %c0_7 = arith.constant 0 : index
    %c0_8 = arith.constant 0 : index
    %c0_9 = arith.constant 0 : index
    %10 = vector.load %arg5[%c0_7, %c0_8, %c0_9] : memref<1x16x8xbf16, #tpu.memory_space<vmem>>, vector<1x16x8xbf16>
    %11 = vector.shape_cast %10 : vector<1x16x8xbf16> to vector<16x8xbf16>
    %12 = vector.shape_cast %9 : vector<16x8xbf16> to vector<1x16x8xbf16>
    tpu.vector_store %arg5[%c0_7, %c0_8, %c0_9], %12 {strides = array<i32>} : memref<1x16x8xbf16, #tpu.memory_space<vmem>>, vector<1x16x8xbf16>,
    return
  }
  func.func @transform_0(%arg0: i32, %arg1: i32) -> (i32, i32, i32) {
    %c0_i32 = arith.constant 0 : i32
    %c0_i32_0 = arith.constant 0 : i32
    return %arg0, %arg1, %c0_i32 : i32, i32, i32
  }
  func.func @transform_1(%arg0: i32, %arg1: i32) -> (i32, i32) {
    %c0_i32 = arith.constant 0 : i32
    %c0_i32_0 = arith.constant 0 : i32
    %c0_i32_1 = arith.constant 0 : i32
    return %c0_i32, %c0_i32_0 : i32, i32
  }
  func.func @transform_2(%arg0: i32, %arg1: i32) -> (i32, i32) {
    %c0_i32 = arith.constant 0 : i32
    %c0_i32_0 = arith.constant 0 : i32
    %c0_i32_1 = arith.constant 0 : i32
    return %c0_i32, %c0_i32_0 : i32, i32
  }
  func.func @transform_3(%arg0: i32, %arg1: i32) -> (i32, i32, i32) {
    %c0_i32 = arith.constant 0 : i32
    %c0_i32_0 = arith.constant 0 : i32
    return %arg0, %arg1, %c0_i32 : i32, i32, i32
  }
}

module attributes {stable_mosaic.version = 11 : i64} {
  func.func @_head_kernel(%arg0: i32, %arg1: i32, %arg2: memref<1x128x8xbf16, #tpu.memory_space<vmem>>, %arg3: memref<1x128x24xbf16, #tpu.memory_space<vmem>>, %arg4: memref<8x8xbf16, #tpu.memory_space<vmem>>, %arg5: memref<32x32xbf16, #tpu.memory_space<vmem>>, %arg6: memref<32x33xbf16, #tpu.memory_space<vmem>>, %arg7: memref<1x128x32xbf16, #tpu.memory_space<vmem>>, %arg8: memref<1x128x1xf32, #tpu.memory_space<vmem>>) attributes {dimension_semantics = [#tpu.dimension_semantics<parallel>, #tpu.dimension_semantics<parallel>], iteration_bounds = array<i64: 1, 8>, scalar_prefetch = 0 : i64, scratch_operands = 0 : i64, tpu.core_type = #tpu.core_type<tc>, window_params = [{transform_indices = @transform_0, window_bounds = array<i64: 1, 128, 8>}, {transform_indices = @transform_1, window_bounds = array<i64: 1, 128, 24>}, {pipeline_mode = #tpu.pipeline_mode<synchronous>, transform_indices = @transform_2, window_bounds = array<i64: 8, 8>}, {pipeline_mode = #tpu.pipeline_mode<synchronous>, transform_indices = @transform_3, window_bounds = array<i64: 32, 32>}, {pipeline_mode = #tpu.pipeline_mode<synchronous>, transform_indices = @transform_4, window_bounds = array<i64: 32, 33>}, {transform_indices = @transform_5, window_bounds = array<i64: 1, 128, 32>}, {transform_indices = @transform_6, window_bounds = array<i64: 1, 128, 1>}]} {
    %c0 = arith.constant 0 : index
    %c0_0 = arith.constant 0 : index
    %c0_1 = arith.constant 0 : index
    %0 = vector.load %arg2[%c0, %c0_0, %c0_1] : memref<1x128x8xbf16, #tpu.memory_space<vmem>>, vector<1x128x8xbf16>
    %1 = vector.shape_cast %0 : vector<1x128x8xbf16> to vector<128x8xbf16>
    %c0_2 = arith.constant 0 : index
    %c0_3 = arith.constant 0 : index
    %2 = vector.load %arg4[%c0_2, %c0_3] : memref<8x8xbf16, #tpu.memory_space<vmem>>, vector<8x8xbf16>
    %cst = arith.constant dense<0.000000e+00> : vector<128x8xf32>
    %3 = tpu.matmul %1, %2, %cst {dimension_numbers = #tpu.dot_dimension_numbers<[1], [0], [0], [1], [0, 0, 1, 1], [], []>} : vector<128x8xbf16>, vector<8x8xbf16>, vector<128x8xf32> -> vector<128x8xf32>
    %cst_4 = arith.constant 0.000000e+00 : f32
    %4 = vector.broadcast %cst_4 : f32 to vector<128x8xf32>
    %5 = arith.maximumf %3, %4 : vector<128x8xf32>
    %6 = arith.truncf %5 : vector<128x8xf32> to vector<128x8xbf16>
    %c0_5 = arith.constant 0 : index
    %c0_6 = arith.constant 0 : index
    %c0_7 = arith.constant 0 : index
    %7 = vector.load %arg3[%c0_5, %c0_6, %c0_7] : memref<1x128x24xbf16, #tpu.memory_space<vmem>>, vector<1x128x24xbf16>
    %8 = vector.shape_cast %7 : vector<1x128x24xbf16> to vector<128x24xbf16>
    %9 = tpu.concatenate %6, %8 in 1 : vector<128x8xbf16>, vector<128x24xbf16> -> vector<128x32xbf16>
    %c0_8 = arith.constant 0 : index
    %c0_9 = arith.constant 0 : index
    %10 = vector.load %arg5[%c0_8, %c0_9] : memref<32x32xbf16, #tpu.memory_space<vmem>>, vector<32x32xbf16>
    %cst_10 = arith.constant dense<0.000000e+00> : vector<128x32xf32>
    %11 = tpu.matmul %9, %10, %cst_10 {dimension_numbers = #tpu.dot_dimension_numbers<[1], [0], [0], [1], [0, 0, 1, 1], [], []>} : vector<128x32xbf16>, vector<32x32xbf16>, vector<128x32xf32> -> vector<128x32xf32>
    %cst_11 = arith.constant 0.000000e+00 : f32
    %12 = vector.broadcast %cst_11 : f32 to vector<128x32xf32>
    %13 = arith.maximumf %11, %12 : vector<128x32xf32>
    %14 = arith.truncf %13 : vector<128x32xf32> to vector<128x32xbf16>
    %c0_12 = arith.constant 0 : index
    %c0_13 = arith.constant 0 : index
    %15 = vector.load %arg6[%c0_12, %c0_13] : memref<32x33xbf16, #tpu.memory_space<vmem>>, vector<32x33xbf16>
    %cst_14 = arith.constant dense<0.000000e+00> : vector<128x33xf32>
    %16 = tpu.matmul %14, %15, %cst_14 {dimension_numbers = #tpu.dot_dimension_numbers<[1], [0], [0], [1], [0, 0, 1, 1], [], []>} : vector<128x32xbf16>, vector<32x33xbf16>, vector<128x33xf32> -> vector<128x33xf32>
    %17 = vector.extract_strided_slice %16 {offsets = [0, 0], sizes = [128, 32], strides = [1, 1]} : vector<128x33xf32> to vector<128x32xf32>
    %18 = arith.mulf %17, %17 : vector<128x32xf32>
    %cst_15 = arith.constant dense<0.000000e+00> : vector<128xf32>
    %19 = vector.multi_reduction <add>, %18, %cst_15 [1] : vector<128x32xf32> to vector<128xf32>
    %20 = vector.shape_cast %19 : vector<128xf32> to vector<128x1xf32>
    %cst_16 = arith.constant 1.000000e-24 : f32
    %21 = vector.broadcast %cst_16 : f32 to vector<128x1xf32>
    %22 = arith.maximumf %20, %21 : vector<128x1xf32>
    %23 = math.rsqrt %22 : vector<128x1xf32>
    %24 = vector.broadcast %23 : vector<128x1xf32> to vector<128x32xf32>
    %25 = arith.mulf %17, %24 : vector<128x32xf32>
    %26 = arith.truncf %25 : vector<128x32xf32> to vector<128x32xbf16>
    %c0_17 = arith.constant 0 : index
    %c0_18 = arith.constant 0 : index
    %c0_19 = arith.constant 0 : index
    %27 = vector.load %arg7[%c0_17, %c0_18, %c0_19] : memref<1x128x32xbf16, #tpu.memory_space<vmem>>, vector<1x128x32xbf16>
    %28 = vector.shape_cast %27 : vector<1x128x32xbf16> to vector<128x32xbf16>
    %29 = vector.shape_cast %26 : vector<128x32xbf16> to vector<1x128x32xbf16>
    tpu.vector_store %arg7[%c0_17, %c0_18, %c0_19], %29 {strides = array<i32>} : memref<1x128x32xbf16, #tpu.memory_space<vmem>>, vector<1x128x32xbf16>,
    %30 = vector.extract_strided_slice %16 {offsets = [0, 32], sizes = [128, 1], strides = [1, 1]} : vector<128x33xf32> to vector<128x1xf32>
    %31 = arith.negf %30 : vector<128x1xf32>
    %32 = math.exp %31 : vector<128x1xf32>
    %cst_20 = arith.constant 1.000000e+00 : f32
    %33 = vector.broadcast %cst_20 : f32 to vector<128x1xf32>
    %34 = arith.addf %33, %32 : vector<128x1xf32>
    %35 = arith.divf %33, %34 : vector<128x1xf32>
    %c0_21 = arith.constant 0 : index
    %c0_22 = arith.constant 0 : index
    %c0_23 = arith.constant 0 : index
    %36 = vector.load %arg8[%c0_21, %c0_22, %c0_23] : memref<1x128x1xf32, #tpu.memory_space<vmem>>, vector<1x128x1xf32>
    %37 = vector.shape_cast %36 : vector<1x128x1xf32> to vector<128x1xf32>
    %38 = vector.shape_cast %35 : vector<128x1xf32> to vector<1x128x1xf32>
    tpu.vector_store %arg8[%c0_21, %c0_22, %c0_23], %38 {strides = array<i32>} : memref<1x128x1xf32, #tpu.memory_space<vmem>>, vector<1x128x1xf32>,
    return
  }
  func.func @transform_0(%arg0: i32, %arg1: i32) -> (i32, i32, i32) {
    %c0_i32 = arith.constant 0 : i32
    %c0_i32_0 = arith.constant 0 : i32
    return %arg0, %arg1, %c0_i32 : i32, i32, i32
  }
  func.func @transform_1(%arg0: i32, %arg1: i32) -> (i32, i32, i32) {
    %c0_i32 = arith.constant 0 : i32
    %c0_i32_0 = arith.constant 0 : i32
    return %arg0, %arg1, %c0_i32 : i32, i32, i32
  }
  func.func @transform_2(%arg0: i32, %arg1: i32) -> (i32, i32) {
    %c0_i32 = arith.constant 0 : i32
    %c0_i32_0 = arith.constant 0 : i32
    %c0_i32_1 = arith.constant 0 : i32
    return %c0_i32, %c0_i32_0 : i32, i32
  }
  func.func @transform_3(%arg0: i32, %arg1: i32) -> (i32, i32) {
    %c0_i32 = arith.constant 0 : i32
    %c0_i32_0 = arith.constant 0 : i32
    %c0_i32_1 = arith.constant 0 : i32
    return %c0_i32, %c0_i32_0 : i32, i32
  }
  func.func @transform_4(%arg0: i32, %arg1: i32) -> (i32, i32) {
    %c0_i32 = arith.constant 0 : i32
    %c0_i32_0 = arith.constant 0 : i32
    %c0_i32_1 = arith.constant 0 : i32
    return %c0_i32, %c0_i32_0 : i32, i32
  }
  func.func @transform_5(%arg0: i32, %arg1: i32) -> (i32, i32, i32) {
    %c0_i32 = arith.constant 0 : i32
    %c0_i32_0 = arith.constant 0 : i32
    return %arg0, %arg1, %c0_i32 : i32, i32, i32
  }
  func.func @transform_6(%arg0: i32, %arg1: i32) -> (i32, i32, i32) {
    %c0_i32 = arith.constant 0 : i32
    %c0_i32_0 = arith.constant 0 : i32
    return %arg0, %arg1, %c0_i32 : i32, i32, i32
  }
}

module attributes {stable_mosaic.version = 11 : i64} {
  func.func @_nms_kernel(%arg0: i32, %arg1: i32, %arg2: memref<1x52x32xf32, #tpu.memory_space<vmem>>, %arg3: memref<1x8x32xf32, #tpu.memory_space<vmem>>) attributes {dimension_semantics = [#tpu.dimension_semantics<parallel>, #tpu.dimension_semantics<parallel>], iteration_bounds = array<i64: 1, 4>, scalar_prefetch = 0 : i64, scratch_operands = 0 : i64, tpu.core_type = #tpu.core_type<tc>, window_params = [{transform_indices = @transform_0, window_bounds = array<i64: 1, 52, 32>}, {transform_indices = @transform_1, window_bounds = array<i64: 1, 8, 32>}]} {
    %c8_i32 = arith.constant 8 : i32
    %0 = arith.muli %arg1, %c8_i32 : i32
    %1 = tpu.assume_multiple %0, 8 : i32
    %c0 = arith.constant 0 : index
    %2 = arith.index_cast %1 : i32 to index
    %c0_0 = arith.constant 0 : index
    %3 = vector.load %arg2[%c0, %2, %c0_0] : memref<1x52x32xf32, #tpu.memory_space<vmem>>, vector<1x28x32xf32>
    %4 = vector.shape_cast %3 : vector<1x28x32xf32> to vector<28x32xf32>
    %cst = arith.constant 0.000000e+00 : f32
    %5 = vector.broadcast %cst : f32 to vector<28x32xf32>
    %cst_1 = arith.constant 0.000000e+00 : f32
    %6 = vector.broadcast %cst_1 : f32 to vector<28x1xf32>
    %7 = vector.extract_strided_slice %4 {offsets = [0, 1], sizes = [28, 31], strides = [1, 1]} : vector<28x32xf32> to vector<28x31xf32>
    %8 = tpu.concatenate %7, %6 in 1 : vector<28x31xf32>, vector<28x1xf32> -> vector<28x32xf32>
    %cst_2 = arith.constant 0.000000e+00 : f32
    %9 = vector.broadcast %cst_2 : f32 to vector<28x1xf32>
    %10 = vector.extract_strided_slice %4 {offsets = [0, 0], sizes = [28, 31], strides = [1, 1]} : vector<28x32xf32> to vector<28x31xf32>
    %11 = tpu.concatenate %9, %10 in 1 : vector<28x1xf32>, vector<28x31xf32> -> vector<28x32xf32>
    %12 = arith.maximumf %8, %11 : vector<28x32xf32>
    %13 = arith.maximumf %4, %12 : vector<28x32xf32>
    %cst_3 = arith.constant 0.000000e+00 : f32
    %14 = vector.broadcast %cst_3 : f32 to vector<28x2xf32>
    %15 = vector.extract_strided_slice %4 {offsets = [0, 2], sizes = [28, 30], strides = [1, 1]} : vector<28x32xf32> to vector<28x30xf32>
    %16 = tpu.concatenate %15, %14 in 1 : vector<28x30xf32>, vector<28x2xf32> -> vector<28x32xf32>
    %cst_4 = arith.constant 0.000000e+00 : f32
    %17 = vector.broadcast %cst_4 : f32 to vector<28x2xf32>
    %18 = vector.extract_strided_slice %4 {offsets = [0, 0], sizes = [28, 30], strides = [1, 1]} : vector<28x32xf32> to vector<28x30xf32>
    %19 = tpu.concatenate %17, %18 in 1 : vector<28x2xf32>, vector<28x30xf32> -> vector<28x32xf32>
    %20 = arith.maximumf %16, %19 : vector<28x32xf32>
    %21 = arith.maximumf %13, %20 : vector<28x32xf32>
    %cst_5 = arith.constant 0.000000e+00 : f32
    %22 = vector.broadcast %cst_5 : f32 to vector<1x32xf32>
    %23 = vector.extract_strided_slice %21 {offsets = [1, 0], sizes = [27, 32], strides = [1, 1]} : vector<28x32xf32> to vector<27x32xf32>
    %24 = tpu.concatenate %23, %22 in 0 : vector<27x32xf32>, vector<1x32xf32> -> vector<28x32xf32>
    %cst_6 = arith.constant 0.000000e+00 : f32
    %25 = vector.broadcast %cst_6 : f32 to vector<1x32xf32>
    %26 = vector.extract_strided_slice %21 {offsets = [0, 0], sizes = [27, 32], strides = [1, 1]} : vector<28x32xf32> to vector<27x32xf32>
    %27 = tpu.concatenate %25, %26 in 0 : vector<1x32xf32>, vector<27x32xf32> -> vector<28x32xf32>
    %28 = arith.maximumf %24, %27 : vector<28x32xf32>
    %29 = arith.maximumf %21, %28 : vector<28x32xf32>
    %cst_7 = arith.constant 0.000000e+00 : f32
    %30 = vector.broadcast %cst_7 : f32 to vector<2x32xf32>
    %31 = vector.extract_strided_slice %21 {offsets = [2, 0], sizes = [26, 32], strides = [1, 1]} : vector<28x32xf32> to vector<26x32xf32>
    %32 = tpu.concatenate %31, %30 in 0 : vector<26x32xf32>, vector<2x32xf32> -> vector<28x32xf32>
    %cst_8 = arith.constant 0.000000e+00 : f32
    %33 = vector.broadcast %cst_8 : f32 to vector<2x32xf32>
    %34 = vector.extract_strided_slice %21 {offsets = [0, 0], sizes = [26, 32], strides = [1, 1]} : vector<28x32xf32> to vector<26x32xf32>
    %35 = tpu.concatenate %33, %34 in 0 : vector<2x32xf32>, vector<26x32xf32> -> vector<28x32xf32>
    %36 = arith.maximumf %32, %35 : vector<28x32xf32>
    %37 = arith.maximumf %29, %36 : vector<28x32xf32>
    %38 = arith.cmpf oeq, %4, %37 : vector<28x32xf32>
    %39 = arith.extui %38 : vector<28x32xi1> to vector<28x32xi32>
    %40 = arith.sitofp %39 : vector<28x32xi32> to vector<28x32xf32>
    %cst_9 = arith.constant 0.000000e+00 : f32
    %41 = vector.broadcast %cst_9 : f32 to vector<28x1xf32>
    %42 = vector.extract_strided_slice %40 {offsets = [0, 1], sizes = [28, 31], strides = [1, 1]} : vector<28x32xf32> to vector<28x31xf32>
    %43 = tpu.concatenate %42, %41 in 1 : vector<28x31xf32>, vector<28x1xf32> -> vector<28x32xf32>
    %cst_10 = arith.constant 0.000000e+00 : f32
    %44 = vector.broadcast %cst_10 : f32 to vector<28x1xf32>
    %45 = vector.extract_strided_slice %40 {offsets = [0, 0], sizes = [28, 31], strides = [1, 1]} : vector<28x32xf32> to vector<28x31xf32>
    %46 = tpu.concatenate %44, %45 in 1 : vector<28x1xf32>, vector<28x31xf32> -> vector<28x32xf32>
    %47 = arith.maximumf %43, %46 : vector<28x32xf32>
    %48 = arith.maximumf %40, %47 : vector<28x32xf32>
    %cst_11 = arith.constant 0.000000e+00 : f32
    %49 = vector.broadcast %cst_11 : f32 to vector<28x2xf32>
    %50 = vector.extract_strided_slice %40 {offsets = [0, 2], sizes = [28, 30], strides = [1, 1]} : vector<28x32xf32> to vector<28x30xf32>
    %51 = tpu.concatenate %50, %49 in 1 : vector<28x30xf32>, vector<28x2xf32> -> vector<28x32xf32>
    %cst_12 = arith.constant 0.000000e+00 : f32
    %52 = vector.broadcast %cst_12 : f32 to vector<28x2xf32>
    %53 = vector.extract_strided_slice %40 {offsets = [0, 0], sizes = [28, 30], strides = [1, 1]} : vector<28x32xf32> to vector<28x30xf32>
    %54 = tpu.concatenate %52, %53 in 1 : vector<28x2xf32>, vector<28x30xf32> -> vector<28x32xf32>
    %55 = arith.maximumf %51, %54 : vector<28x32xf32>
    %56 = arith.maximumf %48, %55 : vector<28x32xf32>
    %cst_13 = arith.constant 0.000000e+00 : f32
    %57 = vector.broadcast %cst_13 : f32 to vector<1x32xf32>
    %58 = vector.extract_strided_slice %56 {offsets = [1, 0], sizes = [27, 32], strides = [1, 1]} : vector<28x32xf32> to vector<27x32xf32>
    %59 = tpu.concatenate %58, %57 in 0 : vector<27x32xf32>, vector<1x32xf32> -> vector<28x32xf32>
    %cst_14 = arith.constant 0.000000e+00 : f32
    %60 = vector.broadcast %cst_14 : f32 to vector<1x32xf32>
    %61 = vector.extract_strided_slice %56 {offsets = [0, 0], sizes = [27, 32], strides = [1, 1]} : vector<28x32xf32> to vector<27x32xf32>
    %62 = tpu.concatenate %60, %61 in 0 : vector<1x32xf32>, vector<27x32xf32> -> vector<28x32xf32>
    %63 = arith.maximumf %59, %62 : vector<28x32xf32>
    %64 = arith.maximumf %56, %63 : vector<28x32xf32>
    %cst_15 = arith.constant 0.000000e+00 : f32
    %65 = vector.broadcast %cst_15 : f32 to vector<2x32xf32>
    %66 = vector.extract_strided_slice %56 {offsets = [2, 0], sizes = [26, 32], strides = [1, 1]} : vector<28x32xf32> to vector<26x32xf32>
    %67 = tpu.concatenate %66, %65 in 0 : vector<26x32xf32>, vector<2x32xf32> -> vector<28x32xf32>
    %cst_16 = arith.constant 0.000000e+00 : f32
    %68 = vector.broadcast %cst_16 : f32 to vector<2x32xf32>
    %69 = vector.extract_strided_slice %56 {offsets = [0, 0], sizes = [26, 32], strides = [1, 1]} : vector<28x32xf32> to vector<26x32xf32>
    %70 = tpu.concatenate %68, %69 in 0 : vector<2x32xf32>, vector<26x32xf32> -> vector<28x32xf32>
    %71 = arith.maximumf %67, %70 : vector<28x32xf32>
    %72 = arith.maximumf %64, %71 : vector<28x32xf32>
    %cst_17 = arith.constant 0.000000e+00 : f32
    %73 = vector.broadcast %cst_17 : f32 to vector<28x32xf32>
    %74 = arith.cmpf ogt, %72, %73 : vector<28x32xf32>
    %75 = arith.select %74, %5, %4 : vector<28x32xi1>, vector<28x32xf32>
    %cst_18 = arith.constant 0.000000e+00 : f32
    %76 = vector.broadcast %cst_18 : f32 to vector<28x1xf32>
    %77 = vector.extract_strided_slice %75 {offsets = [0, 1], sizes = [28, 31], strides = [1, 1]} : vector<28x32xf32> to vector<28x31xf32>
    %78 = tpu.concatenate %77, %76 in 1 : vector<28x31xf32>, vector<28x1xf32> -> vector<28x32xf32>
    %cst_19 = arith.constant 0.000000e+00 : f32
    %79 = vector.broadcast %cst_19 : f32 to vector<28x1xf32>
    %80 = vector.extract_strided_slice %75 {offsets = [0, 0], sizes = [28, 31], strides = [1, 1]} : vector<28x32xf32> to vector<28x31xf32>
    %81 = tpu.concatenate %79, %80 in 1 : vector<28x1xf32>, vector<28x31xf32> -> vector<28x32xf32>
    %82 = arith.maximumf %78, %81 : vector<28x32xf32>
    %83 = arith.maximumf %75, %82 : vector<28x32xf32>
    %cst_20 = arith.constant 0.000000e+00 : f32
    %84 = vector.broadcast %cst_20 : f32 to vector<28x2xf32>
    %85 = vector.extract_strided_slice %75 {offsets = [0, 2], sizes = [28, 30], strides = [1, 1]} : vector<28x32xf32> to vector<28x30xf32>
    %86 = tpu.concatenate %85, %84 in 1 : vector<28x30xf32>, vector<28x2xf32> -> vector<28x32xf32>
    %cst_21 = arith.constant 0.000000e+00 : f32
    %87 = vector.broadcast %cst_21 : f32 to vector<28x2xf32>
    %88 = vector.extract_strided_slice %75 {offsets = [0, 0], sizes = [28, 30], strides = [1, 1]} : vector<28x32xf32> to vector<28x30xf32>
    %89 = tpu.concatenate %87, %88 in 1 : vector<28x2xf32>, vector<28x30xf32> -> vector<28x32xf32>
    %90 = arith.maximumf %86, %89 : vector<28x32xf32>
    %91 = arith.maximumf %83, %90 : vector<28x32xf32>
    %cst_22 = arith.constant 0.000000e+00 : f32
    %92 = vector.broadcast %cst_22 : f32 to vector<1x32xf32>
    %93 = vector.extract_strided_slice %91 {offsets = [1, 0], sizes = [27, 32], strides = [1, 1]} : vector<28x32xf32> to vector<27x32xf32>
    %94 = tpu.concatenate %93, %92 in 0 : vector<27x32xf32>, vector<1x32xf32> -> vector<28x32xf32>
    %cst_23 = arith.constant 0.000000e+00 : f32
    %95 = vector.broadcast %cst_23 : f32 to vector<1x32xf32>
    %96 = vector.extract_strided_slice %91 {offsets = [0, 0], sizes = [27, 32], strides = [1, 1]} : vector<28x32xf32> to vector<27x32xf32>
    %97 = tpu.concatenate %95, %96 in 0 : vector<1x32xf32>, vector<27x32xf32> -> vector<28x32xf32>
    %98 = arith.maximumf %94, %97 : vector<28x32xf32>
    %99 = arith.maximumf %91, %98 : vector<28x32xf32>
    %cst_24 = arith.constant 0.000000e+00 : f32
    %100 = vector.broadcast %cst_24 : f32 to vector<2x32xf32>
    %101 = vector.extract_strided_slice %91 {offsets = [2, 0], sizes = [26, 32], strides = [1, 1]} : vector<28x32xf32> to vector<26x32xf32>
    %102 = tpu.concatenate %101, %100 in 0 : vector<26x32xf32>, vector<2x32xf32> -> vector<28x32xf32>
    %cst_25 = arith.constant 0.000000e+00 : f32
    %103 = vector.broadcast %cst_25 : f32 to vector<2x32xf32>
    %104 = vector.extract_strided_slice %91 {offsets = [0, 0], sizes = [26, 32], strides = [1, 1]} : vector<28x32xf32> to vector<26x32xf32>
    %105 = tpu.concatenate %103, %104 in 0 : vector<2x32xf32>, vector<26x32xf32> -> vector<28x32xf32>
    %106 = arith.maximumf %102, %105 : vector<28x32xf32>
    %107 = arith.maximumf %99, %106 : vector<28x32xf32>
    %108 = arith.cmpf oeq, %75, %107 : vector<28x32xf32>
    %cst_26 = arith.constant dense<true> : vector<28x32xi1>
    %109 = arith.xori %74, %cst_26 : vector<28x32xi1>
    %110 = arith.andi %108, %109 : vector<28x32xi1>
    %111 = arith.ori %38, %110 : vector<28x32xi1>
    %112 = arith.extui %111 : vector<28x32xi1> to vector<28x32xi32>
    %113 = arith.sitofp %112 : vector<28x32xi32> to vector<28x32xf32>
    %cst_27 = arith.constant 0.000000e+00 : f32
    %114 = vector.broadcast %cst_27 : f32 to vector<28x1xf32>
    %115 = vector.extract_strided_slice %113 {offsets = [0, 1], sizes = [28, 31], strides = [1, 1]} : vector<28x32xf32> to vector<28x31xf32>
    %116 = tpu.concatenate %115, %114 in 1 : vector<28x31xf32>, vector<28x1xf32> -> vector<28x32xf32>
    %cst_28 = arith.constant 0.000000e+00 : f32
    %117 = vector.broadcast %cst_28 : f32 to vector<28x1xf32>
    %118 = vector.extract_strided_slice %113 {offsets = [0, 0], sizes = [28, 31], strides = [1, 1]} : vector<28x32xf32> to vector<28x31xf32>
    %119 = tpu.concatenate %117, %118 in 1 : vector<28x1xf32>, vector<28x31xf32> -> vector<28x32xf32>
    %120 = arith.maximumf %116, %119 : vector<28x32xf32>
    %121 = arith.maximumf %113, %120 : vector<28x32xf32>
    %cst_29 = arith.constant 0.000000e+00 : f32
    %122 = vector.broadcast %cst_29 : f32 to vector<28x2xf32>
    %123 = vector.extract_strided_slice %113 {offsets = [0, 2], sizes = [28, 30], strides = [1, 1]} : vector<28x32xf32> to vector<28x30xf32>
    %124 = tpu.concatenate %123, %122 in 1 : vector<28x30xf32>, vector<28x2xf32> -> vector<28x32xf32>
    %cst_30 = arith.constant 0.000000e+00 : f32
    %125 = vector.broadcast %cst_30 : f32 to vector<28x2xf32>
    %126 = vector.extract_strided_slice %113 {offsets = [0, 0], sizes = [28, 30], strides = [1, 1]} : vector<28x32xf32> to vector<28x30xf32>
    %127 = tpu.concatenate %125, %126 in 1 : vector<28x2xf32>, vector<28x30xf32> -> vector<28x32xf32>
    %128 = arith.maximumf %124, %127 : vector<28x32xf32>
    %129 = arith.maximumf %121, %128 : vector<28x32xf32>
    %cst_31 = arith.constant 0.000000e+00 : f32
    %130 = vector.broadcast %cst_31 : f32 to vector<1x32xf32>
    %131 = vector.extract_strided_slice %129 {offsets = [1, 0], sizes = [27, 32], strides = [1, 1]} : vector<28x32xf32> to vector<27x32xf32>
    %132 = tpu.concatenate %131, %130 in 0 : vector<27x32xf32>, vector<1x32xf32> -> vector<28x32xf32>
    %cst_32 = arith.constant 0.000000e+00 : f32
    %133 = vector.broadcast %cst_32 : f32 to vector<1x32xf32>
    %134 = vector.extract_strided_slice %129 {offsets = [0, 0], sizes = [27, 32], strides = [1, 1]} : vector<28x32xf32> to vector<27x32xf32>
    %135 = tpu.concatenate %133, %134 in 0 : vector<1x32xf32>, vector<27x32xf32> -> vector<28x32xf32>
    %136 = arith.maximumf %132, %135 : vector<28x32xf32>
    %137 = arith.maximumf %129, %136 : vector<28x32xf32>
    %cst_33 = arith.constant 0.000000e+00 : f32
    %138 = vector.broadcast %cst_33 : f32 to vector<2x32xf32>
    %139 = vector.extract_strided_slice %129 {offsets = [2, 0], sizes = [26, 32], strides = [1, 1]} : vector<28x32xf32> to vector<26x32xf32>
    %140 = tpu.concatenate %139, %138 in 0 : vector<26x32xf32>, vector<2x32xf32> -> vector<28x32xf32>
    %cst_34 = arith.constant 0.000000e+00 : f32
    %141 = vector.broadcast %cst_34 : f32 to vector<2x32xf32>
    %142 = vector.extract_strided_slice %129 {offsets = [0, 0], sizes = [26, 32], strides = [1, 1]} : vector<28x32xf32> to vector<26x32xf32>
    %143 = tpu.concatenate %141, %142 in 0 : vector<2x32xf32>, vector<26x32xf32> -> vector<28x32xf32>
    %144 = arith.maximumf %140, %143 : vector<28x32xf32>
    %145 = arith.maximumf %137, %144 : vector<28x32xf32>
    %cst_35 = arith.constant 0.000000e+00 : f32
    %146 = vector.broadcast %cst_35 : f32 to vector<28x32xf32>
    %147 = arith.cmpf ogt, %145, %146 : vector<28x32xf32>
    %148 = arith.select %147, %5, %4 : vector<28x32xi1>, vector<28x32xf32>
    %cst_36 = arith.constant 0.000000e+00 : f32
    %149 = vector.broadcast %cst_36 : f32 to vector<28x1xf32>
    %150 = vector.extract_strided_slice %148 {offsets = [0, 1], sizes = [28, 31], strides = [1, 1]} : vector<28x32xf32> to vector<28x31xf32>
    %151 = tpu.concatenate %150, %149 in 1 : vector<28x31xf32>, vector<28x1xf32> -> vector<28x32xf32>
    %cst_37 = arith.constant 0.000000e+00 : f32
    %152 = vector.broadcast %cst_37 : f32 to vector<28x1xf32>
    %153 = vector.extract_strided_slice %148 {offsets = [0, 0], sizes = [28, 31], strides = [1, 1]} : vector<28x32xf32> to vector<28x31xf32>
    %154 = tpu.concatenate %152, %153 in 1 : vector<28x1xf32>, vector<28x31xf32> -> vector<28x32xf32>
    %155 = arith.maximumf %151, %154 : vector<28x32xf32>
    %156 = arith.maximumf %148, %155 : vector<28x32xf32>
    %cst_38 = arith.constant 0.000000e+00 : f32
    %157 = vector.broadcast %cst_38 : f32 to vector<28x2xf32>
    %158 = vector.extract_strided_slice %148 {offsets = [0, 2], sizes = [28, 30], strides = [1, 1]} : vector<28x32xf32> to vector<28x30xf32>
    %159 = tpu.concatenate %158, %157 in 1 : vector<28x30xf32>, vector<28x2xf32> -> vector<28x32xf32>
    %cst_39 = arith.constant 0.000000e+00 : f32
    %160 = vector.broadcast %cst_39 : f32 to vector<28x2xf32>
    %161 = vector.extract_strided_slice %148 {offsets = [0, 0], sizes = [28, 30], strides = [1, 1]} : vector<28x32xf32> to vector<28x30xf32>
    %162 = tpu.concatenate %160, %161 in 1 : vector<28x2xf32>, vector<28x30xf32> -> vector<28x32xf32>
    %163 = arith.maximumf %159, %162 : vector<28x32xf32>
    %164 = arith.maximumf %156, %163 : vector<28x32xf32>
    %cst_40 = arith.constant 0.000000e+00 : f32
    %165 = vector.broadcast %cst_40 : f32 to vector<1x32xf32>
    %166 = vector.extract_strided_slice %164 {offsets = [1, 0], sizes = [27, 32], strides = [1, 1]} : vector<28x32xf32> to vector<27x32xf32>
    %167 = tpu.concatenate %166, %165 in 0 : vector<27x32xf32>, vector<1x32xf32> -> vector<28x32xf32>
    %cst_41 = arith.constant 0.000000e+00 : f32
    %168 = vector.broadcast %cst_41 : f32 to vector<1x32xf32>
    %169 = vector.extract_strided_slice %164 {offsets = [0, 0], sizes = [27, 32], strides = [1, 1]} : vector<28x32xf32> to vector<27x32xf32>
    %170 = tpu.concatenate %168, %169 in 0 : vector<1x32xf32>, vector<27x32xf32> -> vector<28x32xf32>
    %171 = arith.maximumf %167, %170 : vector<28x32xf32>
    %172 = arith.maximumf %164, %171 : vector<28x32xf32>
    %cst_42 = arith.constant 0.000000e+00 : f32
    %173 = vector.broadcast %cst_42 : f32 to vector<2x32xf32>
    %174 = vector.extract_strided_slice %164 {offsets = [2, 0], sizes = [26, 32], strides = [1, 1]} : vector<28x32xf32> to vector<26x32xf32>
    %175 = tpu.concatenate %174, %173 in 0 : vector<26x32xf32>, vector<2x32xf32> -> vector<28x32xf32>
    %cst_43 = arith.constant 0.000000e+00 : f32
    %176 = vector.broadcast %cst_43 : f32 to vector<2x32xf32>
    %177 = vector.extract_strided_slice %164 {offsets = [0, 0], sizes = [26, 32], strides = [1, 1]} : vector<28x32xf32> to vector<26x32xf32>
    %178 = tpu.concatenate %176, %177 in 0 : vector<2x32xf32>, vector<26x32xf32> -> vector<28x32xf32>
    %179 = arith.maximumf %175, %178 : vector<28x32xf32>
    %180 = arith.maximumf %172, %179 : vector<28x32xf32>
    %181 = arith.cmpf oeq, %148, %180 : vector<28x32xf32>
    %cst_44 = arith.constant dense<true> : vector<28x32xi1>
    %182 = arith.xori %147, %cst_44 : vector<28x32xi1>
    %183 = arith.andi %181, %182 : vector<28x32xi1>
    %184 = arith.ori %111, %183 : vector<28x32xi1>
    %185 = arith.select %184, %4, %5 : vector<28x32xi1>, vector<28x32xf32>
    %186 = vector.extract_strided_slice %185 {offsets = [10, 0], sizes = [8, 32], strides = [1, 1]} : vector<28x32xf32> to vector<8x32xf32>
    %187 = tpu.iota {dimensions = array<i32: 0>} : vector<8x32xi32>
    %c8_i32_45 = arith.constant 8 : i32
    %188 = arith.muli %arg1, %c8_i32_45 : i32
    %189 = vector.broadcast %188 : i32 to vector<8x32xi32>
    %190 = arith.addi %187, %189 : vector<8x32xi32>
    %191 = tpu.iota {dimensions = array<i32: 1>} : vector<8x32xi32>
    %c3_i32 = arith.constant 3 : i32
    %192 = vector.broadcast %c3_i32 : i32 to vector<8x32xi32>
    %193 = arith.cmpi sge, %190, %192 : vector<8x32xi32>
    %c30_i32 = arith.constant 30 : i32
    %194 = vector.broadcast %c30_i32 : i32 to vector<8x32xi32>
    %195 = arith.cmpi slt, %190, %194 : vector<8x32xi32>
    %196 = arith.andi %193, %195 : vector<8x32xi1>
    %c3_i32_46 = arith.constant 3 : i32
    %197 = vector.broadcast %c3_i32_46 : i32 to vector<8x32xi32>
    %198 = arith.cmpi sge, %191, %197 : vector<8x32xi32>
    %199 = arith.andi %196, %198 : vector<8x32xi1>
    %c30_i32_47 = arith.constant 30 : i32
    %200 = vector.broadcast %c30_i32_47 : i32 to vector<8x32xi32>
    %201 = arith.cmpi slt, %191, %200 : vector<8x32xi32>
    %202 = arith.andi %199, %201 : vector<8x32xi1>
    %cst_48 = arith.constant 0.000000e+00 : f32
    %203 = vector.broadcast %cst_48 : f32 to vector<8x32xf32>
    %204 = arith.select %202, %186, %203 : vector<8x32xi1>, vector<8x32xf32>
    %c0_49 = arith.constant 0 : index
    %c0_50 = arith.constant 0 : index
    %c0_51 = arith.constant 0 : index
    %205 = vector.load %arg3[%c0_49, %c0_50, %c0_51] : memref<1x8x32xf32, #tpu.memory_space<vmem>>, vector<1x8x32xf32>
    %206 = vector.shape_cast %205 : vector<1x8x32xf32> to vector<8x32xf32>
    %207 = vector.shape_cast %204 : vector<8x32xf32> to vector<1x8x32xf32>
    tpu.vector_store %arg3[%c0_49, %c0_50, %c0_51], %207 {strides = array<i32>} : memref<1x8x32xf32, #tpu.memory_space<vmem>>, vector<1x8x32xf32>,
    return
  }
  func.func @transform_0(%arg0: i32, %arg1: i32) -> (i32, i32, i32) {
    %c0_i32 = arith.constant 0 : i32
    %c0_i32_0 = arith.constant 0 : i32
    %c0_i32_1 = arith.constant 0 : i32
    return %arg0, %c0_i32, %c0_i32_0 : i32, i32, i32
  }
  func.func @transform_1(%arg0: i32, %arg1: i32) -> (i32, i32, i32) {
    %c0_i32 = arith.constant 0 : i32
    %c0_i32_0 = arith.constant 0 : i32
    return %arg0, %arg1, %c0_i32 : i32, i32, i32
  }
}

</mosaic_0001>

<bundles_post_ra>
// kernel: alike_forward.16
= control target key start
LH: loop header
LB: loop body
LE: loop exit
PB: predicated region body
PF: predicated region fallthrough
CT: control target
= control target key end

     0   :  { %s1061_s15 = smov 0   ;;  %s1063_s16 = smov 0   ;;  %s1183_s0 = inlined_call_operand.vmem [shape: bf16[1,32,32,3], index: 0, kind: input, shape index: {}]   ;;  %s1184_s1 = inlined_call_operand.vmem [shape: bf16[1,8,2,32,3], index: 1, kind: input, shape index: {}]   ;;  %s1185_s2 = inlined_call_operand.vmem [shape: bf16[27,8], index: 2, kind: input, shape index: {}]   ;;  %s1186_s3 = inlined_call_operand.vmem [shape: f32[1,8], index: 3, kind: input, shape index: {}]   ;;  %s1187_s4 = inlined_call_operand.vmem [shape: bf16[1,32,32,8], index: 4, kind: output, shape index: {}]  }
   0x1   :  { %s1065_s17 = smov 0  }
   0x2 LB: > { %s23_s18 = sadd.s32 1, %s1017_s16  ;;  %p873_p0 = scmp.ge.s32.totalorder %s1021_s17, 1  ;;  %s1021_s17 = sphi %s1065_s17, %s14_s17   ;;  %s1017_s16 = sphi %s1063_s16, %s1191_s16   ;;  %s1013_s15 = sphi %s1061_s15, %s1190_s15  }
   0x3   : > { %p24_p1 = scmp.ge.s32.totalorder %s23_s18, 8  ;;  %p200_p2 = scmp.lt.s32.totalorder %s1021_s17, 9 }
   0x5   : > { %s1193_s18 = smov (%p24_p1, %s23_s18), 0  ;;  %p201_p3 = pnand %p873_p0, %p200_p2 }
   0x6   : > { %p258_p4 = scmp.lt.s32.totalorder (!%p201_p3), %s1013_s15, 7  ;;  %s874_s19 = sshll.u32 (!%p201_p3), %s1013_s15, 2  ;;  %vm293_vm0 = vcmask (!%p201_p3), 23552  }
   0x7   : > { %204 = sbr.rel (%p201_p3) target bundleno = 407 (0x197), region = 36  ;;  %p248_p5 = scmp.lt.s32.totalorder (!%p201_p3), %s874_s19, 31 }
   0x8   : > { %s1102_s5 = smov (!%p201_p3), 0  }
   0xe   : > { %s1195_s15 = smov (!%p258_p4, %s1013_s15), 7  ;;  %s1197_s19 = smov (!%p248_p5, %s874_s19), 31 }
   0xf   : > { %s920_s20 = sshll.u32 %s1195_s15, 5  ;;  %s919_s24 = sshll.u32 %s1197_s19, 4 }
  0x10   : > { %s264_s23 = scalar_lea.vmem %s1184_s1, %s920_s20  ;;  %s254_s27 = scalar_lea.vmem %s1183_s0, %s919_s24 }
  0x11   : > { %v981_v0 = vld [vmem:[%s264_s23] sm:$0xff]   ;;  %s1088_s30 = scalar_lea.vmem %s1187_s4, %s919_s24  ;;  %v982_v1 = vld [vmem:[%s264_s23 + $0x8] sm:$0xff]   ;;  %v985_v4 = vld [vmem:[%s254_s27 + $0x10] sm:$0xff]  }
  0x12   : > { %294 = vst.msk [vmem:[#allocation2] sm:$0xff] %vm293_vm0, %v981_v0  ;;  %v983_v2 = vld [vmem:[%s254_s27] sm:$0xff]   ;;  %295 = vst.msk [vmem:[#allocation2 + $0x8] sm:$0xff] %vm293_vm0, %v982_v1  ;;  %v984_v3 = vld [vmem:[%s254_s27 + $0x8] sm:$0xff]  }
  0x13   : > { %361 = vst.msk [vmem:[#allocation2 + $0x10] sm:$0xff] %vm293_vm0, %v983_v2  ;;  %362 = vst.msk [vmem:[#allocation2 + $0x18] sm:$0xff] %vm293_vm0, %v984_v3  ;;  %v986_v5 = vld [vmem:[%s254_s27 + $0x18] sm:$0xff]   ;;  %v987_v6 = vld [vmem:[%s254_s27 + $0x20] sm:$0xff]  }
  0x14   : > { %363 = vst.msk [vmem:[#allocation2 + $0x20] sm:$0xff] %vm293_vm0, %v985_v4  ;;  %364 = vst.msk [vmem:[#allocation2 + $0x28] sm:$0xff] %vm293_vm0, %v986_v5  ;;  %v988_v7 = vld [vmem:[%s254_s27 + $0x28] sm:$0xff]   ;;  %v989_v8 = vld [vmem:[%s254_s27 + $0x30] sm:$0xff]  }
  0x15   : > { %365 = vst.msk [vmem:[#allocation2 + $0x30] sm:$0xff] %vm293_vm0, %v987_v6  ;;  %366 = vst.msk [vmem:[#allocation2 + $0x38] sm:$0xff] %vm293_vm0, %v988_v7  ;;  %v990_v9 = vld [vmem:[%s254_s27 + $0x38] sm:$0xff]   ;;  %v991_v10 = vld [vmem:[%s264_s23 + $0x10] sm:$0xff]  }
  0x16   : > { %367 = vst.msk [vmem:[#allocation2 + $0x40] sm:$0xff] %vm293_vm0, %v989_v8  ;;  %368 = vst.msk [vmem:[#allocation2 + $0x48] sm:$0xff] %vm293_vm0, %v990_v9  ;;  %v992_v11 = vld [vmem:[%s264_s23 + $0x18] sm:$0xff]  }
  0x17   : > { %387 = vst.msk [vmem:[#allocation2 + $0x50] sm:$0xff] %vm293_vm0, %v991_v10  ;;  %388 = vst.msk [vmem:[#allocation2 + $0x58] sm:$0xff] %vm293_vm0, %v992_v11 }
  0x18 LB: >> { %s922_s6 = sshll.u32 %s1025_s5, 4  ;;  %vm400_vm1 = vsmask.f32 256  ;;  %vm418_vm2 = vcmask 1040384   ;;  %vm499_vm4 = vcmask 1046528   ;;  %s1027_s8 = smov 9   ;;  %s1025_s5 = sphi %s1102_s5, %s394_s5  }
  0x19   : >> { %s397_s7 = scalar_lea.vmem [#allocation2], %s922_s6  ;;  %vm1112_vm3 = vmand %vm418_vm2, %vm400_vm1  ;;  %vm472_vm5 = vsmask.f32 7424  ;;  %s1028_s9 = smov 15   ;;  %vm653_vm6 = vcmask 1044480   ;;  %vm654_vm7 = vcmask 1045504  }
  0x1a   : >> { %s1029_s10 = smov 6   ;;  %s1030_s13 = smov 3   ;;  %vm591_vm8 = vcmask 48128   ;;  %vm596_vm9 = vcmask 72704   ;;  %vm601_vm10 = vcmask 97280   ;;  %vm606_vm11 = vcmask 121856  }
  0x1b   : >> { %s1032_s19 = smov 12   ;;  %s1033_s20 = smov 18   ;;  %vm611_vm12 = vcmask 146432   ;;  %vm616_vm13 = vcmask 171008   ;;  %vm621_vm14 = vcmask 195584   ;;  %vm648_vm15 = vcmask 220160  }
  0x1c   : >> { %s1034_s21 = smov 21   ;;  %s1035_s22 = smov 24  }
  0x1d   : >> { %s731_s25 = scalar_lea.vmem %s1088_s30, %s922_s6  ;;  %s394_s5 = sadd.s32 1, %s1025_s5  }
  0x1e   : >> { %v901_v12 = vld [vmem:[%s397_s7 + $0x10] sm:$0xff]  ;;  %v902_v13 = vld [vmem:[%s397_s7 + $0x18] sm:$0xff]  ;;  %v398_v14 = vld [vmem:[%s397_s7] sm:$0xff]  ;;  %p391_p6 = scmp.ge.s32.totalorder %s394_s5, 4  }
  0x1f   : >> { %v429_v15 = vshrl.u32 %v901_v12, 16  ;;  %v436_v16 = vshrl.u32 %v902_v13, 16  ;;  %v439_v17 = vshll.u32 %v902_v13, 16  ;;  %v432_v18 = vshll.u32 %v901_v12, 16  ;;  %v399_v19 = vld [vmem:[%s397_s7 + $0x8] sm:$0xff]  ;;  %v904_v20 = vld [vmem:[%s397_s7 + $0x20] sm:$0xff] }
  0x20   : >> { %v402_v21 = vshrl.u32 %v398_v14, 16  ;;  %v405_v22 = vshll.u32 %v398_v14, 16  ;;  %v409_v23 = vshrl.u32 %v399_v19, 16  ;;  %v412_v24 = vshll.u32 %v399_v19, 16  ;;  %v905_v27 = vld [vmem:[%s397_s7 + $0x28] sm:$0xff] }
  0x21   : >> { %v431_v25 = vrot.slane %v429_v15, 7  ;;  %v438_v26 = vrot.slane %v436_v16, 7  ;;  %v454_v31 = vshrl.u32 %v904_v20, 16  ;;  %v461_v37 = vshrl.u32 %v905_v27, 16  ;;  %v993_v16 = vld [vmem:[%s1185_s2] sm:$0xff]  }
  0x22   : >> { %v404_v29 = vrot.slane %v402_v21, 7  ;;  %v411_v30 = vrot.slane %v409_v23, 7  ;;  %v464_v38 = vshll.u32 %v905_v27, 16  ;;  %v457_v42 = vshll.u32 %v904_v20, 16  ;;  %932 = vmatprep.subr.bf16.mxu0 %v993_v16 }
  0x23   : >> { %v441_v32 = vor.u32 %v439_v17, %v438_v26  ;;  %v434_v33 = vor.u32 %v432_v18, %v431_v25  ;;  %v446_v34 = vsel %vm1112_vm3, %v438_v26, 0  ;;  %v456_v46 = vrot.slane %v454_v31, 7  ;;  %933 = vmatpush3.bf16.msra.mxu0 %v993_v16 }
  0x24   : >> { %v407_v35 = vor.u32 %v405_v22, %v404_v29  ;;  %v414_v36 = vor.u32 %v412_v24, %v411_v30  ;;  %v421_v41 = vsel %vm1112_vm3, %v411_v30, 0  ;;  %v542_v45 = vrot.slane %v446_v34, 1 }
  0x25   : >> { %v442_v39 = vsel %vm400_vm1, %v431_v25, %v441_v32  ;;  %v445_v40 = vsel %vm1112_vm3, 0, %v434_v33  ;;  %v503_v53 = vrot.slane %v421_v41, 1  ;;  %v489_v54 = vshll.u32 %v421_v41, 16 }
  0x26   : >> { %512 = vrot.lane.b32.xlu1 %v442_v39, %s1027_s8  ;;  %v522_v43 = vshll.u32 %v442_v39, 16  ;;  %510 = vrot.lane.b32.xlu0 %v445_v40, %s1027_s8  ;;  %v517_v44 = vshll.u32 %v445_v40, 16  ;;  %v539_v47 = vrot.slane %v445_v40, 1  ;;  %v540_v48 = vrot.slane %v442_v39, 1 }
  0x27   : >> { %v1124_v49 = vsel %vm400_vm1, %v404_v29, %v414_v36  ;;  %v1128_v50 = vsel %vm1112_vm3, 0, %v407_v35  ;;  %v526_v59 = vshrl.u32 %v442_v39, 16  ;;  %v515_v60 = vshrl.u32 %v445_v40, 16  ;;  %v994_v29 = vld [vmem:[%s1185_s2 + $0x8] sm:$0x3f]  }
  0x28   : >> { %v500_v51 = vrot.slane %v1128_v50, 1  ;;  %v501_v52 = vrot.slane %v1124_v49, 1  ;;  %v541_v55 = vsel %vm499_vm4, %v539_v47, %v540_v48  ;;  %v474_v56 = vshrl.u32 %v1128_v50, 16 }
  0x29   : >> { %v476_v57 = vshll.u32 %v1128_v50, 16  ;;  %v481_v58 = vshll.u32 %v1124_v49, 16  ;;  %v485_v62 = vshrl.u32 %v1124_v49, 16  ;;  %v524_v63 = vrot.slane %v522_v43, 1 }
  0x2a   : >> { %544 = vrot.lane.b32.xlu0 %v541_v55, %s1028_s9  ;;  %v502_v61 = vsel %vm499_vm4, %v500_v51, %v501_v52  ;;  %v519_v0 = vrot.slane %v517_v44, 1  ;;  %v504_v3 = vsel %vm499_vm4, %v501_v52, %v503_v53  ;;  %v530_v4 = vshll.u32 %v446_v34, 16 }
  0x2b   : >> { %505 = vrot.lane.b32.xlu1 %v502_v61, %s1029_s10  ;;  %v478_v1 = vrot.slane %v476_v57, 1  ;;  %v483_v2 = vrot.slane %v481_v58, 1  ;;  %v463_v5 = vrot.slane %v461_v37, 7  ;;  %v459_v6 = vor.u32 %v457_v42, %v456_v46 }
  0x2c   : >> { %v491_v9 = vrot.slane %v489_v54, 1  ;;  %v528_v13 = vor.u32 %v526_v59, %v524_v63  ;;  %v532_v14 = vrot.slane %v530_v4, 1  ;;  %v520_v15 = vor.u32 %v519_v0, %v515_v60 }
  0x2d   : >> { %v479_v7 = vor.u32 %v478_v1, %v474_v56  ;;  %v487_v8 = vor.u32 %v485_v62, %v483_v2  ;;  %v466_v10 = vor.u32 %v464_v38, %v463_v5  ;;  %v470_v11 = vsel %vm1112_vm3, 0, %v459_v6 }
  0x2e   : >> { %v543_v17 = vsel %vm499_vm4, %v540_v48, %v542_v45  ;;  %v556_v21 = vshll.u32 %v470_v11, 16  ;;  %v471_v22 = vsel %vm1112_vm3, %v463_v5, 0  ;;  %v533_v23 = vsel %vm472_vm5, %v528_v13, %v532_v14  ;;  %v906_v13 = vld [vmem:[%s1186_s3] ss:$0 sm:$0xff] }
  0x2f   : >> { %507 = vrot.lane.b32.xlu1 %v504_v3, %s1029_s10  ;;  %v484_v12 = vsel %vm472_vm5, %v479_v7, %v483_v2  ;;  %v467_v18 = vsel %vm400_vm1, %v456_v46, %v466_v10  ;;  %v492_v19 = vsel %vm472_vm5, %v487_v8, %v491_v9  ;;  %v525_v24 = vsel %vm472_vm5, %v520_v15, %v524_v63 }
  0x30   : >> { %493 = vrot.lane.b32.xlu0 %v484_v12, %s1030_s13  ;;  %v561_v20 = vshll.u32 %v467_v18, 16  ;;  %v565_v26 = vshrl.u32 %v467_v18, 16  ;;  %v569_v27 = vshll.u32 %v471_v22, 16  ;;  %v554_v30 = vshrl.u32 %v470_v11, 16 }
  0x31   : >> { %v558_v28 = vrot.slane %v556_v21, 1  ;;  %v1031_v31 = vmov 65535   ;;  %v579_v39 = vrot.slane %v467_v18, 1  ;;  %v581_v40 = vrot.slane %v471_v22, 1 }
  0x32   : >> { %v563_v25 = vrot.slane %v561_v20, 1  ;;  %v655_v32 = vsel %vm653_vm6, 4294967295, %v1031_v31  ;;  %v571_v35 = vrot.slane %v569_v27, 1  ;;  %v578_v42 = vrot.slane %v470_v11, 1 }
  0x33   : >> { %546 = vrot.lane.b32.xlu1 %v543_v17, %s1028_s9  ;;  %v656_v33 = vsel %vm654_vm7, %v655_v32, 0  ;;  %v559_v37 = vor.u32 %v558_v28, %v554_v30  ;;  %v582_v43 = vsel %vm499_vm4, %v579_v39, %v581_v40  ;;  %vm732_vm1 = vcmask 60416  }
  0x34   : >> { %495 = vrot.lane.b32.xlu0 %v492_v19, %s1030_s13  ;;  %v567_v34 = vor.u32 %v565_v26, %v563_v25  ;;  %v658_v36 = vand.u32 %v994_v29, %v656_v33  ;;  %v580_v44 = vsel %vm499_vm4, %v578_v42, %v579_v39 }
  0x35   : >> { %v564_v41 = vsel %vm472_vm5, %v559_v37, %v563_v25 }
  0x36   : >> { %934 = vmatprep.subr.bf16.mxu0 %v658_v36  ;;  %v572_v38 = vsel %vm472_vm5, %v567_v34, %v571_v35 }
  0x37   : >> { %536 = vrot.lane.b32.xlu1 %v533_v23, %s1032_s19  ;;  %935 = vmatpush3.bf16.msra.mxu0 %v658_v36 }
  0x38   : >> { %534 = vrot.lane.b32.xlu0 %v525_v24, %s1032_s19 }
  0x3b   : >> { %551 = vrot.lane.b32.xlu1 %v467_v18, %s1033_s20 }
  0x3c   : >> { %549 = vrot.lane.b32.xlu0 %v470_v11, %s1033_s20 }
  0x3f   : >> { %575 = vrot.lane.b32.xlu1 %v572_v38, %s1034_s21 }
  0x40   : >> { %573 = vrot.lane.b32.xlu0 %v564_v41, %s1034_s21 }
  0x43   : >> { %585 = vrot.lane.b32.xlu1 %v582_v43, %s1035_s22 }
  0x44   : >> { %583 = vrot.lane.b32.xlu0 %v580_v44, %s1035_s22 }
  0x98   : >> { %v513_v45 = vpop.permute.xlu1 %512  ;;  %v511_v46 = vpop.permute.xlu0 %510 }
  0x9c   : >> { %v545_v47 = vpop.permute.xlu0 %544 }
  0x9d   : >> { %v506_v48 = vpop.permute.xlu1 %505 }
  0xa1   : >> { %v508_v51 = vpop.permute.xlu1 %507 }
  0xa2   : >> { %v494_v52 = vpop.permute.xlu0 %493 }
  0xa3   : >> { %v588_v57 = vsel %vm293_vm0, %v1128_v50, %v494_v52 }
  0xa4   : >> { %v593_v60 = vsel %vm591_vm8, %v588_v57, %v506_v48 }
  0xa5   : >> { %v547_v53 = vpop.permute.xlu1 %546  ;;  %v598_v1 = vsel %vm596_vm9, %v593_v60, %v511_v46 }
  0xa6   : >> { %v496_v54 = vpop.permute.xlu0 %495 }
  0xa7   : >> { %v590_v55 = vsel %vm293_vm0, %v1124_v49, %v496_v54 }
  0xa8   : >> { %v595_v58 = vsel %vm591_vm8, %v590_v55, %v508_v51 }
  0xa9   : >> { %v537_v56 = vpop.permute.xlu1 %536  ;;  %v600_v61 = vsel %vm596_vm9, %v595_v58, %v513_v45 }
  0xaa   : >> { %v535_v59 = vpop.permute.xlu0 %534  ;;  %v605_v0 = vsel %vm601_vm10, %v600_v61, %v537_v56 }
  0xab   : >> { %v603_v2 = vsel %vm601_vm10, %v598_v1, %v535_v59  ;;  %v610_v4 = vsel %vm606_vm11, %v605_v0, %v547_v53 }
  0xac   : >> { %v608_v50 = vsel %vm606_vm11, %v603_v2, %v545_v47 }
  0xad   : >> { %v552_v62 = vpop.permute.xlu1 %551 }
  0xae   : >> { %v550_v63 = vpop.permute.xlu0 %549  ;;  %v615_v5 = vsel %vm611_vm12, %v610_v4, %v552_v62 }
  0xaf   : >> { %v613_v6 = vsel %vm611_vm12, %v608_v50, %v550_v63 }
  0xb1   : >> { %v576_v3 = vpop.permute.xlu1 %575 }
  0xb2   : >> { %v574_v49 = vpop.permute.xlu0 %573  ;;  %v620_v7 = vsel %vm616_vm13, %v615_v5, %v576_v3 }
  0xb3   : >> { %v618_v9 = vsel %vm616_vm13, %v613_v6, %v574_v49 }
  0xb5   : >> { %v586_v8 = vpop.permute.xlu1 %585 }
  0xb6   : >> { %v625_v10 = vsel %vm621_vm14, %v620_v7, %v586_v8  ;;  %v584_v11 = vpop.permute.xlu0 %583 }
  0xb7   : >> { %v623_v12 = vsel %vm621_vm14, %v618_v9, %v584_v11 }
  0xb8   : >> { %936 = vmatprep.mubr.msk.bf16.mxu0 %vm648_vm15, %v623_v12 }
  0xb9   : >> { %937 = vmatmul.mubr.msk.bf16.vlgmr.msra.gmra.mrb[0].mxu0 %vm648_vm15, %v625_v10 }
 0x18c   : >> { %v938_v14 = vpop.f32.mrb[0].mxu0 }
 0x18d   : >> { %v703_v15 = vadd.f32 %v938_v14, %v906_v13  ;;  %v694_v16 = vpop.f32.mrb[1].mxu0 }
 0x18e   : >> { %v695_v17 = vadd.f32 %v906_v13, %v694_v16  ;;  %v939_v18 = vpop.f32.mrb[2].mxu0 }
 0x18f   : >> { %v711_v19 = vmax.f32 %v703_v15, 0.0  ;;  %v706_v20 = vadd.f32 %v939_v18, %v906_v13  ;;  %v697_v21 = vpop.f32.mrb[3].mxu0 }
 0x190   : >> { %v709_v22 = vmax.f32 %v695_v17, 0.0  ;;  %v698_v23 = vadd.f32 %v906_v13, %v697_v21  ;;  %393 = sbr.rel (!%p391_p6) target bundleno = 24 (0x18), region = 83 }
 0x191   : >> { %v925_v24 = vpack.c.bf16 %v711_v19, %v711_v19  ;;  %v712_v25 = vmax.f32 %v706_v20, 0.0 }
 0x192   : >> { %v923_v26 = vpack.c.bf16 %v709_v22, %v709_v22  ;;  %v710_v27 = vmax.f32 %v698_v23, 0.0 }
 0x193   : >> { %735 = vst.msk [vmem:[%s731_s25 + $0x8] sm:$0xf] %vm732_vm1, %v925_v24  ;;  %v926_v29 = vpack.c.bf16 %v712_v25, %v712_v25 }
 0x194   : >> { %733 = vst.msk [vmem:[%s731_s25] sm:$0xf] %vm732_vm1, %v923_v26  ;;  %v924_v30 = vpack.c.bf16 %v710_v27, %v710_v27 }
 0x195   : >> { %736 = vst.msk [vmem:[%s731_s25 + $0xc] sm:$0xf] %vm732_vm1, %v926_v29 }
 0x196   : >> { %734 = vst.msk [vmem:[%s731_s25 + $0x4] sm:$0xf] %vm732_vm1, %v924_v30 }
 0x197 PF: > { %s14_s17 = sadd.s32 1, %s1021_s17   ;;  %s1190_s15 = smov %s1017_s16 }
 0x198   : > { %p11_p7 = scmp.ge.s32.totalorder %s14_s17, 10   ;;  %s1191_s16 = smov %s1193_s18 }
 0x19a   :  { %13 = sbr.rel (!%p11_p7) target bundleno = 2 (0x2), region = 94 }

// kernel: alike_forward.17
= control target key start
LH: loop header
LB: loop body
LE: loop exit
PB: predicated region body
PF: predicated region fallthrough
CT: control target
= control target key end

     0   :  { %s1093_s15 = smov 0   ;;  %s1095_s16 = smov 0   ;;  %s1236_s0 = inlined_call_operand.vmem [shape: bf16[1,32,32,8], index: 0, kind: input, shape index: {}]   ;;  %s1237_s1 = inlined_call_operand.vmem [shape: bf16[1,8,2,32,8], index: 1, kind: input, shape index: {}]   ;;  %s1238_s2 = inlined_call_operand.vmem [shape: bf16[72,8], index: 2, kind: input, shape index: {}]   ;;  %s1239_s3 = inlined_call_operand.vmem [shape: f32[1,8], index: 3, kind: input, shape index: {}]   ;;  %s1240_s4 = inlined_call_operand.vmem [shape: bf16[1,32,32,8], index: 4, kind: output, shape index: {}]  }
   0x1   :  { %s1097_s17 = smov 0  }
   0x2 LB: > { %s23_s18 = sadd.s32 1, %s1050_s16  ;;  %p891_p0 = scmp.ge.s32.totalorder %s1054_s17, 1  ;;  %s1054_s17 = sphi %s1097_s17, %s14_s17   ;;  %s1050_s16 = sphi %s1095_s16, %s1244_s16   ;;  %s1046_s15 = sphi %s1093_s15, %s1243_s15  }
   0x3   : > { %p24_p1 = scmp.ge.s32.totalorder %s23_s18, 8  ;;  %p200_p2 = scmp.lt.s32.totalorder %s1054_s17, 9 }
   0x5   : > { %s1246_s18 = smov (%p24_p1, %s23_s18), 0  ;;  %p201_p3 = pnand %p891_p0, %p200_p2 }
   0x6   : > { %p258_p4 = scmp.lt.s32.totalorder (!%p201_p3), %s1046_s15, 7  ;;  %s892_s19 = sshll.u32 (!%p201_p3), %s1046_s15, 2  ;;  %vm293_vm0 = vcmask (!%p201_p3), 64512  }
   0x7   : > { %204 = sbr.rel (%p201_p3) target bundleno = 407 (0x197), region = 36  ;;  %p248_p5 = scmp.lt.s32.totalorder (!%p201_p3), %s892_s19, 31 }
   0x8   : > { %s1134_s5 = smov (!%p201_p3), 0  }
   0xe   : > { %s1248_s15 = smov (!%p258_p4, %s1046_s15), 7  ;;  %s1250_s19 = smov (!%p248_p5, %s892_s19), 31 }
   0xf   : > { %s941_s20 = sshll.u32 %s1248_s15, 5  ;;  %s940_s24 = sshll.u32 %s1250_s19, 4 }
  0x10   : > { %s264_s23 = scalar_lea.vmem %s1237_s1, %s941_s20  ;;  %s254_s27 = scalar_lea.vmem %s1236_s0, %s940_s24 }
  0x11   : > { %v1011_v0 = vld [vmem:[%s264_s23] sm:$0xff]   ;;  %s1120_s30 = scalar_lea.vmem %s1240_s4, %s940_s24  ;;  %v1012_v1 = vld [vmem:[%s264_s23 + $0x8] sm:$0xff]   ;;  %v1015_v4 = vld [vmem:[%s254_s27 + $0x10] sm:$0xff]  }
  0x12   : > { %294 = vst.msk [vmem:[#allocation2] sm:$0xff] %vm293_vm0, %v1011_v0  ;;  %v1013_v2 = vld [vmem:[%s254_s27] sm:$0xff]   ;;  %295 = vst.msk [vmem:[#allocation2 + $0x8] sm:$0xff] %vm293_vm0, %v1012_v1  ;;  %v1014_v3 = vld [vmem:[%s254_s27 + $0x8] sm:$0xff]  }
  0x13   : > { %361 = vst.msk [vmem:[#allocation2 + $0x10] sm:$0xff] %vm293_vm0, %v1013_v2  ;;  %362 = vst.msk [vmem:[#allocation2 + $0x18] sm:$0xff] %vm293_vm0, %v1014_v3  ;;  %v1016_v5 = vld [vmem:[%s254_s27 + $0x18] sm:$0xff]   ;;  %v1017_v6 = vld [vmem:[%s254_s27 + $0x20] sm:$0xff]  }
  0x14   : > { %363 = vst.msk [vmem:[#allocation2 + $0x20] sm:$0xff] %vm293_vm0, %v1015_v4  ;;  %364 = vst.msk [vmem:[#allocation2 + $0x28] sm:$0xff] %vm293_vm0, %v1016_v5  ;;  %v1018_v7 = vld [vmem:[%s254_s27 + $0x28] sm:$0xff]   ;;  %v1019_v8 = vld [vmem:[%s254_s27 + $0x30] sm:$0xff]  }
  0x15   : > { %365 = vst.msk [vmem:[#allocation2 + $0x30] sm:$0xff] %vm293_vm0, %v1017_v6  ;;  %366 = vst.msk [vmem:[#allocation2 + $0x38] sm:$0xff] %vm293_vm0, %v1018_v7  ;;  %v1020_v9 = vld [vmem:[%s254_s27 + $0x38] sm:$0xff]   ;;  %v1021_v10 = vld [vmem:[%s264_s23 + $0x10] sm:$0xff]  }
  0x16   : > { %367 = vst.msk [vmem:[#allocation2 + $0x40] sm:$0xff] %vm293_vm0, %v1019_v8  ;;  %368 = vst.msk [vmem:[#allocation2 + $0x48] sm:$0xff] %vm293_vm0, %v1020_v9  ;;  %v1022_v11 = vld [vmem:[%s264_s23 + $0x18] sm:$0xff]  }
  0x17   : > { %387 = vst.msk [vmem:[#allocation2 + $0x50] sm:$0xff] %vm293_vm0, %v1021_v10  ;;  %388 = vst.msk [vmem:[#allocation2 + $0x58] sm:$0xff] %vm293_vm0, %v1022_v11 }
  0x18 LB: >> { %s943_s6 = sshll.u32 %s1058_s5, 4  ;;  %vm400_vm1 = vsmask.f32 256  ;;  %vm418_vm2 = vcmask 1040384   ;;  %vm499_vm4 = vcmask 1046528   ;;  %v1023_v35 = vld [vmem:[%s1238_s2] sm:$0xff]   ;;  %s1058_s5 = sphi %s1134_s5, %s394_s5  }
  0x19   : >> { %s397_s7 = scalar_lea.vmem [#allocation2], %s943_s6  ;;  %vm1148_vm3 = vmand %vm418_vm2, %vm400_vm1  ;;  %vm472_vm5 = vsmask.f32 7424  ;;  %956 = vmatprep.subr.bf16.mxu0 %v1023_v35  ;;  %s1060_s10 = smov 24   ;;  %v1024_v52 = vld [vmem:[%s1238_s2 + $0x8] sm:$0xff]   ;;  %v1025_v5 = vld [vmem:[%s1238_s2 + $0x10] sm:$0xff]  }
  0x1a   : >> { %957 = vmatpush3.bf16.msra.mxu0 %v1023_v35  ;;  %s1061_s13 = smov 40   ;;  %s1062_s14 = smov 16   ;;  %vm674_vm6 = vcmask 1043456   ;;  %vm591_vm7 = vcmask 130048   ;;  %vm596_vm8 = vcmask 195584   ;;  %vm601_vm9 = vcmask 261120  }
  0x1b   : >> { %958 = vmatprep.subr.bf16.mxu0 %v1024_v52  ;;  %s1063_s22 = smov 8   ;;  %s1064_s25 = smov 32   ;;  %vm606_vm10 = vcmask 326656   ;;  %vm611_vm11 = vcmask 392192   ;;  %vm616_vm12 = vcmask 457728   ;;  %vm621_vm13 = vcmask 523264  }
  0x1c   : >> { %s1065_s26 = smov 48   ;;  %s1066_s27 = smov 56   ;;  %vm669_vm14 = vcmask 588800   ;;  %vm750_vm15 = vcmask 60416  }
  0x1d   : >> { %s1067_s28 = smov 64   ;;  %s749_s8 = scalar_lea.vmem %s1120_s30, %s943_s6 }
  0x1e   : >> { %v919_v12 = vld [vmem:[%s397_s7 + $0x10] sm:$0xff]  ;;  %v920_v13 = vld [vmem:[%s397_s7 + $0x18] sm:$0xff]  ;;  %v398_v14 = vld [vmem:[%s397_s7] sm:$0xff]  ;;  %959 = vmatpush3.bf16.msra.mxu0 %v1024_v52  ;;  %s394_s5 = sadd.s32 1, %s1058_s5  }
  0x1f   : >> { %v429_v15 = vshrl.u32 %v919_v12, 16  ;;  %v436_v16 = vshrl.u32 %v920_v13, 16  ;;  %v439_v17 = vshll.u32 %v920_v13, 16  ;;  %v432_v18 = vshll.u32 %v919_v12, 16  ;;  %v399_v19 = vld [vmem:[%s397_s7 + $0x8] sm:$0xff]  ;;  %v1142_v20 = vld [vmem:[%s397_s7 + $0x20] sm:$0xff]  ;;  %960 = vmatprep.subr.bf16.mxu0 %v1025_v5 }
  0x20   : >> { %v402_v21 = vshrl.u32 %v398_v14, 16  ;;  %v405_v22 = vshll.u32 %v398_v14, 16  ;;  %v409_v23 = vshrl.u32 %v399_v19, 16  ;;  %v412_v24 = vshll.u32 %v399_v19, 16  ;;  %v1144_v27 = vld [vmem:[%s397_s7 + $0x28] sm:$0xff]  ;;  %p391_p6 = scmp.ge.s32.totalorder %s394_s5, 4  }
  0x21   : >> { %v431_v25 = vrot.slane %v429_v15, 7  ;;  %v438_v26 = vrot.slane %v436_v16, 7  ;;  %v454_v31 = vshrl.u32 %v1142_v20, 16  ;;  %v461_v38 = vshrl.u32 %v1144_v27, 16 }
  0x22   : >> { %v404_v29 = vrot.slane %v402_v21, 7  ;;  %v411_v30 = vrot.slane %v409_v23, 7  ;;  %v464_v39 = vshll.u32 %v1144_v27, 16  ;;  %v457_v43 = vshll.u32 %v1142_v20, 16  ;;  %961 = vmatpush3.bf16.msra.mxu0 %v1025_v5  ;;  %v1027_v27 = vld [vmem:[%s1238_s2 + $0x20] ss:$0 sps:$4 sm:$0xff]  }
  0x23   : >> { %v441_v32 = vor.u32 %v439_v17, %v438_v26  ;;  %v434_v33 = vor.u32 %v432_v18, %v431_v25  ;;  %v1155_v34 = vsel %vm1148_vm3, %v438_v26, 0  ;;  %v456_v47 = vrot.slane %v454_v31, 7  ;;  %v1026_v18 = vld [vmem:[%s1238_s2 + $0x18] sm:$0xff]  }
  0x24   : >> { %v407_v36 = vor.u32 %v405_v22, %v404_v29  ;;  %v414_v37 = vor.u32 %v412_v24, %v411_v30  ;;  %v421_v42 = vsel %vm1148_vm3, %v411_v30, 0  ;;  %v542_v46 = vrot.slane %v1155_v34, 1  ;;  %962 = vmatprep.subr.bf16.mxu0 %v1026_v18 }
  0x25   : >> { %v442_v40 = vsel %vm400_vm1, %v431_v25, %v441_v32  ;;  %v445_v41 = vsel %vm1148_vm3, 0, %v434_v33  ;;  %v503_v55 = vrot.slane %v421_v42, 1  ;;  %v489_v56 = vshll.u32 %v421_v42, 16 }
  0x26   : >> { %512 = vrot.lane.b32.xlu1 %v442_v40, %s1060_s10  ;;  %v522_v44 = vshll.u32 %v442_v40, 16  ;;  %510 = vrot.lane.b32.xlu0 %v445_v41, %s1060_s10  ;;  %v517_v45 = vshll.u32 %v445_v41, 16  ;;  %v539_v48 = vrot.slane %v445_v41, 1  ;;  %v540_v49 = vrot.slane %v442_v40, 1 }
  0x27   : >> { %v1170_v50 = vsel %vm400_vm1, %v404_v29, %v414_v37  ;;  %v1174_v51 = vsel %vm1148_vm3, 0, %v407_v36  ;;  %v526_v61 = vshrl.u32 %v442_v40, 16  ;;  %v515_v62 = vshrl.u32 %v445_v41, 16  ;;  %963 = vmatpush3.bf16.msra.mxu0 %v1026_v18 }
  0x28   : >> { %v500_v53 = vrot.slane %v1174_v51, 1  ;;  %v501_v54 = vrot.slane %v1170_v50, 1  ;;  %v541_v57 = vsel %vm499_vm4, %v539_v48, %v540_v49  ;;  %v474_v58 = vshrl.u32 %v1174_v51, 16  ;;  %970 = vmatprep.subr.msk.bf16.mxu0 %vm674_vm6, %v1027_v27 }
  0x29   : >> { %v476_v59 = vshll.u32 %v1174_v51, 16  ;;  %v481_v60 = vshll.u32 %v1170_v50, 16  ;;  %v485_v0 = vshrl.u32 %v1170_v50, 16  ;;  %v524_v1 = vrot.slane %v522_v44, 1 }
  0x2a   : >> { %544 = vrot.lane.b32.xlu0 %v541_v57, %s1061_s13  ;;  %v502_v63 = vsel %vm499_vm4, %v500_v53, %v501_v54  ;;  %v519_v2 = vrot.slane %v517_v45, 1  ;;  %v504_v6 = vsel %vm499_vm4, %v501_v54, %v503_v55  ;;  %v530_v7 = vshll.u32 %v1155_v34, 16 }
  0x2b   : >> { %505 = vrot.lane.b32.xlu1 %v502_v63, %s1062_s14  ;;  %v478_v3 = vrot.slane %v476_v59, 1  ;;  %v483_v4 = vrot.slane %v481_v60, 1  ;;  %v463_v8 = vrot.slane %v461_v38, 7  ;;  %v459_v9 = vor.u32 %v457_v43, %v456_v47 }
  0x2c   : >> { %v491_v12 = vrot.slane %v489_v56, 1  ;;  %v528_v16 = vor.u32 %v526_v61, %v524_v1  ;;  %v532_v17 = vrot.slane %v530_v7, 1  ;;  %v543_v19 = vsel %vm499_vm4, %v540_v49, %v542_v46 }
  0x2d   : >> { %v479_v10 = vor.u32 %v478_v3, %v474_v58  ;;  %v487_v11 = vor.u32 %v485_v0, %v483_v4  ;;  %v466_v13 = vor.u32 %v464_v39, %v463_v8  ;;  %v470_v14 = vsel %vm1148_vm3, 0, %v459_v9 }
  0x2e   : >> { %v520_v20 = vor.u32 %v519_v2, %v515_v62  ;;  %v556_v24 = vshll.u32 %v470_v14, 16  ;;  %v471_v25 = vsel %vm1148_vm3, %v463_v8, 0  ;;  %v533_v26 = vsel %vm472_vm5, %v528_v16, %v532_v17 }
  0x2f   : >> { %507 = vrot.lane.b32.xlu1 %v504_v6, %s1062_s14  ;;  %v484_v15 = vsel %vm472_vm5, %v479_v10, %v483_v4  ;;  %v467_v21 = vsel %vm400_vm1, %v456_v47, %v466_v13  ;;  %v492_v22 = vsel %vm472_vm5, %v487_v11, %v491_v12  ;;  %v569_v31 = vshll.u32 %v471_v25, 16  ;;  %v924_v13 = vld [vmem:[%s1239_s3] ss:$0 sm:$0xff] }
  0x30   : >> { %493 = vrot.lane.b32.xlu0 %v484_v15, %s1063_s22  ;;  %v561_v23 = vshll.u32 %v467_v21, 16  ;;  %v565_v30 = vshrl.u32 %v467_v21, 16  ;;  %v525_v32 = vsel %vm472_vm5, %v520_v20, %v524_v1  ;;  %v554_v33 = vshrl.u32 %v470_v14, 16 }
  0x31   : >> { %v558_v28 = vrot.slane %v556_v24, 1  ;;  %v676_v34 = vsel %vm674_vm6, %v1027_v27, 0  ;;  %v571_v36 = vrot.slane %v569_v31, 1  ;;  %v579_v39 = vrot.slane %v467_v21, 1 }
  0x32   : >> { %v563_v29 = vrot.slane %v561_v23, 1  ;;  %965 = vmatpush3.bf16.msra.mxu0 %v676_v34  ;;  %v581_v40 = vrot.slane %v471_v25, 1  ;;  %v578_v42 = vrot.slane %v470_v14, 1 }
  0x33   : >> { %546 = vrot.lane.b32.xlu1 %v543_v19, %s1061_s13  ;;  %v559_v37 = vor.u32 %v558_v28, %v554_v33 }
  0x34   : >> { %495 = vrot.lane.b32.xlu0 %v492_v22, %s1063_s22  ;;  %v567_v35 = vor.u32 %v565_v30, %v563_v29  ;;  %v582_v43 = vsel %vm499_vm4, %v579_v39, %v581_v40  ;;  %v580_v44 = vsel %vm499_vm4, %v578_v42, %v579_v39 }
  0x35   : >> { %v564_v41 = vsel %vm472_vm5, %v559_v37, %v563_v29 }
  0x36   : >> { %v572_v38 = vsel %vm472_vm5, %v567_v35, %v571_v36 }
  0x37   : >> { %536 = vrot.lane.b32.xlu1 %v533_v26, %s1064_s25 }
  0x38   : >> { %534 = vrot.lane.b32.xlu0 %v525_v32, %s1064_s25 }
  0x3b   : >> { %551 = vrot.lane.b32.xlu1 %v467_v21, %s1065_s26 }
  0x3c   : >> { %549 = vrot.lane.b32.xlu0 %v470_v14, %s1065_s26 }
  0x3f   : >> { %575 = vrot.lane.b32.xlu1 %v572_v38, %s1066_s27 }
  0x40   : >> { %573 = vrot.lane.b32.xlu0 %v564_v41, %s1066_s27 }
  0x43   : >> { %585 = vrot.lane.b32.xlu1 %v582_v43, %s1067_s28 }
  0x44   : >> { %583 = vrot.lane.b32.xlu0 %v580_v44, %s1067_s28 }
  0x98   : >> { %v513_v45 = vpop.permute.xlu1 %512  ;;  %v511_v46 = vpop.permute.xlu0 %510 }
  0x9c   : >> { %v545_v47 = vpop.permute.xlu0 %544 }
  0x9d   : >> { %v506_v48 = vpop.permute.xlu1 %505 }
  0xa1   : >> { %v508_v49 = vpop.permute.xlu1 %507 }
  0xa2   : >> { %v494_v52 = vpop.permute.xlu0 %493 }
  0xa3   : >> { %v588_v57 = vsel %vm293_vm0, %v1174_v51, %v494_v52 }
  0xa4   : >> { %v593_v60 = vsel %vm591_vm7, %v588_v57, %v506_v48 }
  0xa5   : >> { %v547_v53 = vpop.permute.xlu1 %546  ;;  %v598_v1 = vsel %vm596_vm8, %v593_v60, %v511_v46 }
  0xa6   : >> { %v496_v54 = vpop.permute.xlu0 %495 }
  0xa7   : >> { %v590_v55 = vsel %vm293_vm0, %v1170_v50, %v496_v54 }
  0xa8   : >> { %v595_v58 = vsel %vm591_vm7, %v590_v55, %v508_v49 }
  0xa9   : >> { %v537_v56 = vpop.permute.xlu1 %536  ;;  %v600_v61 = vsel %vm596_vm8, %v595_v58, %v513_v45 }
  0xaa   : >> { %v535_v59 = vpop.permute.xlu0 %534  ;;  %v605_v0 = vsel %vm601_vm9, %v600_v61, %v537_v56 }
  0xab   : >> { %v603_v2 = vsel %vm601_vm9, %v598_v1, %v535_v59  ;;  %v610_v4 = vsel %vm606_vm10, %v605_v0, %v547_v53 }
  0xac   : >> { %v608_v51 = vsel %vm606_vm10, %v603_v2, %v545_v47 }
  0xad   : >> { %v552_v62 = vpop.permute.xlu1 %551 }
  0xae   : >> { %v550_v63 = vpop.permute.xlu0 %549  ;;  %v615_v5 = vsel %vm611_vm11, %v610_v4, %v552_v62 }
  0xaf   : >> { %v613_v6 = vsel %vm611_vm11, %v608_v51, %v550_v63 }
  0xb1   : >> { %v576_v3 = vpop.permute.xlu1 %575 }
  0xb2   : >> { %v574_v50 = vpop.permute.xlu0 %573  ;;  %v620_v7 = vsel %vm616_vm12, %v615_v5, %v576_v3 }
  0xb3   : >> { %v618_v9 = vsel %vm616_vm12, %v613_v6, %v574_v50 }
  0xb5   : >> { %v586_v8 = vpop.permute.xlu1 %585 }
  0xb6   : >> { %v625_v10 = vsel %vm621_vm13, %v620_v7, %v586_v8  ;;  %v584_v11 = vpop.permute.xlu0 %583 }
  0xb7   : >> { %v623_v12 = vsel %vm621_vm13, %v618_v9, %v584_v11 }
  0xb8   : >> { %966 = vmatprep.mubr.msk.bf16.mxu0 %vm669_vm14, %v623_v12 }
  0xb9   : >> { %967 = vmatmul.mubr.msk.bf16.vlgmr.msra.gmra.mrb[0].mxu0 %vm669_vm14, %v625_v10 }
 0x18c   : >> { %v968_v14 = vpop.f32.mrb[0].mxu0 }
 0x18d   : >> { %v721_v15 = vadd.f32 %v968_v14, %v924_v13  ;;  %v712_v16 = vpop.f32.mrb[1].mxu0 }
 0x18e   : >> { %v713_v17 = vadd.f32 %v924_v13, %v712_v16  ;;  %v969_v18 = vpop.f32.mrb[2].mxu0 }
 0x18f   : >> { %v729_v19 = vmax.f32 %v721_v15, 0.0  ;;  %v724_v20 = vadd.f32 %v969_v18, %v924_v13  ;;  %v715_v21 = vpop.f32.mrb[3].mxu0 }
 0x190   : >> { %v727_v22 = vmax.f32 %v713_v17, 0.0  ;;  %v716_v23 = vadd.f32 %v924_v13, %v715_v21  ;;  %393 = sbr.rel (!%p391_p6) target bundleno = 24 (0x18), region = 83 }
 0x191   : >> { %v946_v24 = vpack.c.bf16 %v729_v19, %v729_v19  ;;  %v730_v25 = vmax.f32 %v724_v20, 0.0 }
 0x192   : >> { %v944_v26 = vpack.c.bf16 %v727_v22, %v727_v22  ;;  %v728_v27 = vmax.f32 %v716_v23, 0.0 }
 0x193   : >> { %753 = vst.msk [vmem:[%s749_s8 + $0x8] sm:$0xf] %vm750_vm15, %v946_v24  ;;  %v947_v29 = vpack.c.bf16 %v730_v25, %v730_v25 }
 0x194   : >> { %751 = vst.msk [vmem:[%s749_s8] sm:$0xf] %vm750_vm15, %v944_v26  ;;  %v945_v30 = vpack.c.bf16 %v728_v27, %v728_v27 }
 0x195   : >> { %754 = vst.msk [vmem:[%s749_s8 + $0xc] sm:$0xf] %vm750_vm15, %v947_v29 }
 0x196   : >> { %752 = vst.msk [vmem:[%s749_s8 + $0x4] sm:$0xf] %vm750_vm15, %v945_v30 }
 0x197 PF: > { %s14_s17 = sadd.s32 1, %s1054_s17   ;;  %s1243_s15 = smov %s1050_s16 }
 0x198   : > { %p11_p7 = scmp.ge.s32.totalorder %s14_s17, 10   ;;  %s1244_s16 = smov %s1246_s18 }
 0x19a   :  { %13 = sbr.rel (!%p11_p7) target bundleno = 2 (0x2), region = 94 }

// kernel: alike_forward.18
= control target key start
LH: loop header
LB: loop body
LE: loop exit
PB: predicated region body
PF: predicated region fallthrough
CT: control target
= control target key end

     0   :  { %s948_s15 = smov 0   ;;  %s950_s16 = smov 0   ;;  %s1063_s0 = inlined_call_operand.vmem [shape: bf16[1,16,16,8], index: 0, kind: input, shape index: {}]   ;;  %s1064_s1 = inlined_call_operand.vmem [shape: bf16[1,2,2,16,8], index: 1, kind: input, shape index: {}]   ;;  %s1065_s2 = inlined_call_operand.vmem [shape: bf16[72,16], index: 2, kind: input, shape index: {}]   ;;  %s1066_s3 = inlined_call_operand.vmem [shape: f32[1,16], index: 3, kind: input, shape index: {}]   ;;  %s1067_s4 = inlined_call_operand.vmem [shape: bf16[1,16,16,16], index: 4, kind: output, shape index: {}]  }
   0x1   :  { %s952_s17 = smov 0  }
   0x2 LB: > { %s23_s18 = sadd.s32 1, %s903_s16  ;;  %p759_p0 = scmp.ge.s32.totalorder %s907_s17, 1  ;;  %s907_s17 = sphi %s952_s17, %s14_s17   ;;  %s903_s16 = sphi %s950_s16, %s1071_s16   ;;  %s899_s15 = sphi %s948_s15, %s1070_s15  }
   0x3   : > { %p24_p1 = scmp.ge.s32.totalorder %s23_s18, 2  ;;  %p200_p2 = scmp.lt.s32.totalorder %s907_s17, 3 }
   0x5   : > { %s1073_s18 = smov (%p24_p1, %s23_s18), 0  ;;  %p201_p3 = pnand %p759_p0, %p200_p2 }
   0x6   : > { %p258_p4 = scmp.lt.s32.totalorder (!%p201_p3), %s899_s15, 1  ;;  %s760_s19 = sshll.u32 (!%p201_p3), %s899_s15, 3  ;;  %vm285_vm0 = vcmask (!%p201_p3), 64512  }
   0x7   : > { %204 = sbr.rel (%p201_p3) target bundleno = 391 (0x187), region = 36  ;;  %p248_p5 = scmp.lt.s32.totalorder (!%p201_p3), %s760_s19, 15 }
   0x8   : > { %s987_s5 = smov (!%p201_p3), 0  }
   0xe   : > { %s1075_s15 = smov (!%p258_p4, %s899_s15), 1  ;;  %s1077_s19 = smov (!%p248_p5, %s760_s19), 15 }
   0xf   : > { %s799_s20 = sshll.u32 %s1075_s15, 4  ;;  %s798_s24 = sshll.u32 %s1077_s19, 3 }
  0x10   : > { %s264_s23 = scalar_lea.vmem %s1064_s1, %s799_s20  ;;  %s254_s27 = scalar_lea.vmem %s1063_s0, %s798_s24 }
  0x11   : > { %v866_v0 = vld [vmem:[%s264_s23] sm:$0xff]   ;;  %s975_s30 = scalar_lea.vmem %s1067_s4, %s798_s24  ;;  %v868_v2 = vld [vmem:[%s254_s27 + $0x8] sm:$0xff]   ;;  %v869_v3 = vld [vmem:[%s254_s27 + $0x10] sm:$0xff]  }
  0x12   : > { %v867_v1 = vld [vmem:[%s254_s27] sm:$0xff]   ;;  %286 = vst.msk [vmem:[#allocation2] sm:$0xff] %vm285_vm0, %v866_v0  ;;  %353 = vst.msk [vmem:[#allocation2 + $0x10] sm:$0xff] %vm285_vm0, %v868_v2  ;;  %v870_v4 = vld [vmem:[%s254_s27 + $0x18] sm:$0xff]  }
  0x13   : > { %352 = vst.msk [vmem:[#allocation2 + $0x8] sm:$0xff] %vm285_vm0, %v867_v1  ;;  %354 = vst.msk [vmem:[#allocation2 + $0x18] sm:$0xff] %vm285_vm0, %v869_v3  ;;  %v871_v5 = vld [vmem:[%s254_s27 + $0x20] sm:$0xff]   ;;  %v872_v6 = vld [vmem:[%s254_s27 + $0x28] sm:$0xff]  }
  0x14   : > { %355 = vst.msk [vmem:[#allocation2 + $0x20] sm:$0xff] %vm285_vm0, %v870_v4  ;;  %356 = vst.msk [vmem:[#allocation2 + $0x28] sm:$0xff] %vm285_vm0, %v871_v5  ;;  %v873_v7 = vld [vmem:[%s254_s27 + $0x30] sm:$0xff]   ;;  %v874_v8 = vld [vmem:[%s254_s27 + $0x38] sm:$0xff]  }
  0x15   : > { %357 = vst.msk [vmem:[#allocation2 + $0x30] sm:$0xff] %vm285_vm0, %v872_v6  ;;  %358 = vst.msk [vmem:[#allocation2 + $0x38] sm:$0xff] %vm285_vm0, %v873_v7  ;;  %v875_v9 = vld [vmem:[%s264_s23 + $0x8] sm:$0xff]  }
  0x16   : > { %359 = vst.msk [vmem:[#allocation2 + $0x40] sm:$0xff] %vm285_vm0, %v874_v8  ;;  %370 = vst.msk [vmem:[#allocation2 + $0x48] sm:$0xff] %vm285_vm0, %v875_v9 }
  0x17 LB: >> { %v913_v10 = vmov 0.0   ;;  %v876_v11 = vld [vmem:[%s1065_s2] sm:$0xff]   ;;  %s780_s8 = sshll.u32 %s911_s5, 3  ;;  %vm389_vm1 = vcmask 1040384   ;;  %vm390_vm2 = vsmask.f32 256  ;;  %s911_s5 = sphi %s987_s5, %s376_s5  }
  0x18   : >> { %810 = vmatprep.subr.bf16.mxu0 %v913_v10  ;;  %v877_v12 = vld [vmem:[%s1065_s2 + $0x8] sm:$0xff]   ;;  %s378_s11 = scalar_lea.vmem [#allocation2], %s780_s8  ;;  %v878_v20 = vld [vmem:[%s1065_s2 + $0x10] sm:$0xff]   ;;  %vm1006_vm3 = vmand %vm389_vm1, %vm390_vm2  ;;  %vm441_vm4 = vcmask 1046528   ;;  %s914_s19 = smov 24   ;;  %vm562_vm6 = vcmask 1043456  }
  0x19   : >> { %811 = vmatpush3.bf16.msra.mxu0 %v876_v11  ;;  %v879_v37 = vld [vmem:[%s1065_s2 + $0x18] sm:$0xff]   ;;  %vm424_vm5 = vsmask.f32 7424  ;;  %s915_s20 = smov 16   ;;  %v880_v52 = vld [vmem:[%s1065_s2 + $0x20] ss:$0 sps:$4 sm:$0xff]   ;;  %s619_s7 = scalar_lea.vmem %s975_s30, %s780_s8 }
  0x1a   : >> { %812 = vmatprep.subr.bf16.mxu0 %v913_v10  ;;  %s916_s23 = smov 48   ;;  %v564_v63 = vsel %vm562_vm6, %v880_v52, 0  ;;  %s917_s24 = smov 8   ;;  %vm919_vm7 = vmmov 0   ;;  %vm495_vm8 = vcmask 130048   ;;  %vm498_vm9 = vcmask 195584  }
  0x1b   : >> { %s918_s25 = smov 32   ;;  %820 = vmatprep.mubr.msk.bf16.mxu0 %vm919_vm7, %v913_v10  ;;  %s920_s26 = smov 40   ;;  %vm501_vm10 = vcmask 261120   ;;  %vm504_vm11 = vcmask 326656   ;;  %vm507_vm12 = vcmask 392192   ;;  %vm510_vm13 = vcmask 457728  }
  0x1c   : >> { %s921_s27 = smov 64   ;;  %s922_s28 = smov 56   ;;  %vm513_vm14 = vcmask 523264   ;;  %vm559_vm15 = vcmask 588800   ;;  %v785_v21 = vld [vmem:[%s1066_s3] ss:$0 sm:$0xff] }
  0x1d   : >> { %v782_v13 = vld [vmem:[%s378_s11 + $0x8] sm:$0xff]  ;;  %v379_v14 = vld [vmem:[%s378_s11] sm:$0xff]  ;;  %v784_v15 = vld [vmem:[%s378_s11 + $0x10] sm:$0xff]  ;;  %813 = vmatpush3.bf16.msra.mxu0 %v877_v12  ;;  %vm620_vm1 = vcmask 125952   ;;  %s376_s5 = sadd.s32 1, %s911_s5  }
  0x1e   : >> { %v399_v16 = vshrl.u32 %v782_v13, 16  ;;  %v402_v17 = vshll.u32 %v782_v13, 16  ;;  %v381_v18 = vshrl.u32 %v379_v14, 16  ;;  %v384_v19 = vshll.u32 %v379_v14, 16  ;;  %814 = vmatprep.subr.bf16.mxu0 %v913_v10  ;;  %p373_p6 = scmp.ge.s32.totalorder %s376_s5, 8  }
  0x1f   : >> { %v414_v22 = vshrl.u32 %v784_v15, 16  ;;  %v417_v23 = vshll.u32 %v784_v15, 16 }
  0x20   : >> { %v401_v24 = vrot.slane %v399_v16, 7  ;;  %v383_v25 = vrot.slane %v381_v18, 7 }
  0x21   : >> { %v416_v26 = vrot.slane %v414_v22, 7  ;;  %815 = vmatpush3.bf16.msra.mxu0 %v878_v20 }
  0x22   : >> { %v404_v27 = vor.u32 %v402_v17, %v401_v24  ;;  %v386_v28 = vor.u32 %v384_v19, %v383_v25  ;;  %v393_v29 = vsel %vm1006_vm3, %v383_v25, 0  ;;  %v408_v30 = vsel %vm1006_vm3, %v401_v24, 0  ;;  %816 = vmatprep.subr.bf16.mxu0 %v913_v10 }
  0x23   : >> { %v443_v31 = vrot.slane %v393_v29, 1  ;;  %v419_v32 = vor.u32 %v417_v23, %v416_v26  ;;  %v458_v33 = vshll.u32 %v408_v30, 16  ;;  %v433_v36 = vshll.u32 %v393_v29, 16 }
  0x24   : >> { %v407_v34 = vsel %vm1006_vm3, 0, %v404_v27  ;;  %v1019_v35 = vsel %vm1006_vm3, 0, %v386_v28  ;;  %v423_v48 = vsel %vm1006_vm3, %v416_v26, 0  ;;  %v466_v51 = vrot.slane %v408_v30, 1 }
  0x25   : >> { %448 = vrot.lane.b32.xlu1 %v407_v34, %s914_s19  ;;  %v451_v38 = vshrl.u32 %v407_v34, 16  ;;  %v453_v39 = vshll.u32 %v407_v34, 16  ;;  %v442_v40 = vrot.slane %v1019_v35, 1  ;;  %v422_v41 = vsel %vm1006_vm3, 0, %v419_v32  ;;  %817 = vmatpush3.bf16.msra.mxu0 %v879_v37 }
  0x26   : >> { %v476_v42 = vshll.u32 %v422_v41, 16  ;;  %v426_v43 = vshrl.u32 %v1019_v35, 16  ;;  %v428_v44 = vshll.u32 %v1019_v35, 16  ;;  %v460_v47 = vrot.slane %v458_v33, 1  ;;  %818 = vmatprep.subr.bf16.mxu0 %v913_v10 }
  0x27   : >> { %v455_v45 = vrot.slane %v453_v39, 1  ;;  %v444_v46 = vsel %vm441_vm4, %v442_v40, %v443_v31  ;;  %v435_v50 = vrot.slane %v433_v36, 1  ;;  %v474_v53 = vshrl.u32 %v422_v41, 16 }
  0x28   : >> { %445 = vrot.lane.b32.xlu0 %v444_v46, %s915_s20  ;;  %v430_v49 = vrot.slane %v428_v44, 1  ;;  %v478_v54 = vrot.slane %v476_v42, 1  ;;  %v465_v56 = vrot.slane %v407_v34, 1  ;;  %v481_v58 = vshll.u32 %v423_v48, 16 }
  0x29   : >> { %471 = vrot.lane.b32.xlu1 %v422_v41, %s916_s23  ;;  %v456_v55 = vor.u32 %v455_v45, %v451_v38  ;;  %v488_v59 = vrot.slane %v422_v41, 1  ;;  %v489_v60 = vrot.slane %v423_v48, 1  ;;  %819 = vmatpush3.bf16.msra.mxu0 %v564_v63 }
  0x2a   : >> { %v431_v57 = vor.u32 %v430_v49, %v426_v43  ;;  %v467_v0 = vsel %vm441_vm4, %v465_v56, %v466_v51  ;;  %v479_v1 = vor.u32 %v478_v54, %v474_v53  ;;  %v483_v2 = vrot.slane %v481_v58, 1 }
  0x2b   : >> { %v461_v61 = vsel %vm424_vm5, %v456_v55, %v460_v47  ;;  %v490_v3 = vsel %vm441_vm4, %v488_v59, %v489_v60 }
  0x2c   : >> { %v436_v62 = vsel %vm424_vm5, %v431_v57, %v435_v50  ;;  %v484_v4 = vsel %vm424_vm5, %v479_v1, %v483_v2 }
  0x2d   : >> { %437 = vrot.lane.b32.xlu0 %v436_v62, %s917_s24  ;;  %462 = vrot.lane.b32.xlu1 %v461_v61, %s918_s25 }
  0x31   : >> { %468 = vrot.lane.b32.xlu0 %v467_v0, %s920_s26  ;;  %491 = vrot.lane.b32.xlu1 %v490_v3, %s921_s27 }
  0x35   : >> { %485 = vrot.lane.b32.xlu0 %v484_v4, %s922_s28 }
  0x97   : >> { %v449_v5 = vpop.permute.xlu1 %448 }
  0x9a   : >> { %v446_v6 = vpop.permute.xlu0 %445 }
  0x9b   : >> { %v472_v7 = vpop.permute.xlu1 %471 }
  0x9f   : >> { %v438_v8 = vpop.permute.xlu0 %437  ;;  %v463_v11 = vpop.permute.xlu1 %462 }
  0xa0   : >> { %v494_v9 = vsel %vm285_vm0, %v1019_v35, %v438_v8 }
  0xa1   : >> { %v497_v10 = vsel %vm495_vm8, %v494_v9, %v446_v6 }
  0xa2   : >> { %v500_v12 = vsel %vm498_vm9, %v497_v10, %v449_v5 }
  0xa3   : >> { %v503_v13 = vsel %vm501_vm10, %v500_v12, %v463_v11  ;;  %v469_v14 = vpop.permute.xlu0 %468  ;;  %v492_v16 = vpop.permute.xlu1 %491 }
  0xa4   : >> { %v506_v15 = vsel %vm504_vm11, %v503_v13, %v469_v14 }
  0xa5   : >> { %v509_v17 = vsel %vm507_vm12, %v506_v15, %v472_v7 }
  0xa7   : >> { %v486_v18 = vpop.permute.xlu0 %485 }
  0xa8   : >> { %v512_v19 = vsel %vm510_vm13, %v509_v17, %v486_v18 }
  0xa9   : >> { %v515_v20 = vsel %vm513_vm14, %v512_v19, %v492_v16 }
  0xaa   : >> { %821 = vmatmul.mubr.msk.bf16.vlgmr.msra.gmra.mrb[0].mxu0 %vm559_vm15, %v515_v20 }
 0x17d   : >> { %v600_v22 = vpop.f32.mrb[0].mxu0 }
 0x17e   : >> { %v601_v23 = vadd.f32 %v785_v21, %v600_v22  ;;  %v822_v24 = vpop.f32.mrb[1].mxu0 }
 0x17f   : >> { %v603_v25 = vpop.f32.mrb[2].mxu0 }
 0x180   : >> { %v607_v26 = vmax.f32 %v601_v23, 0.0  ;;  %v604_v27 = vadd.f32 %v785_v21, %v603_v25  ;;  %v823_v28 = vpop.f32.mrb[3].mxu0  ;;  %375 = sbr.rel (!%p373_p6) target bundleno = 23 (0x17), region = 83 }
 0x182   : >> { %v801_v29 = vpack.c.bf16 %v607_v26, %v607_v26  ;;  %v608_v30 = vmax.f32 %v604_v27, 0.0 }
 0x184   : >> { %621 = vst.msk [vmem:[%s619_s7] sm:$0xf] %vm620_vm1, %v801_v29  ;;  %v802_v31 = vpack.c.bf16 %v608_v30, %v608_v30 }
 0x186   : >> { %622 = vst.msk [vmem:[%s619_s7 + $0x4] sm:$0xf] %vm620_vm1, %v802_v31 }
 0x187 PF: > { %s14_s17 = sadd.s32 1, %s907_s17   ;;  %s1070_s15 = smov %s903_s16 }
 0x188   : > { %p11_p7 = scmp.ge.s32.totalorder %s14_s17, 4   ;;  %s1071_s16 = smov %s1073_s18 }
 0x18a   :  { %13 = sbr.rel (!%p11_p7) target bundleno = 2 (0x2), region = 94 }

// kernel: alike_forward.19
= control target key start
LH: loop header
LB: loop body
LE: loop exit
PB: predicated region body
PF: predicated region fallthrough
CT: control target
= control target key end

     0   :  { %s736_s12 = smov 0   ;;  %s738_s13 = smov 0   ;;  %s817_s0 = inlined_call_operand.vmem [shape: bf16[1,256,8], index: 0, kind: input, shape index: {}]   ;;  %s818_s1 = inlined_call_operand.vmem [shape: bf16[8,16], index: 1, kind: input, shape index: {}]   ;;  %s819_s2 = inlined_call_operand.vmem [shape: f32[1,16], index: 2, kind: input, shape index: {}]   ;;  %s820_s3 = inlined_call_operand.vmem [shape: bf16[1,256,16], index: 3, kind: output, shape index: {}]  }
   0x1   :  { %s740_s14 = smov 0  }
   0x2 LB: > { %s22_s15 = sadd.s32 1, %s710_s13  ;;  %p573_p0 = scmp.ge.s32.totalorder %s714_s14, 1  ;;  %s714_s14 = sphi %s740_s14, %s13_s14   ;;  %s710_s13 = sphi %s738_s13, %s822_s13   ;;  %s706_s12 = sphi %s736_s12, %s821_s12  }
   0x3   : > { %p23_p1 = scmp.ge.s32.totalorder %s22_s15, 2  ;;  %p158_p2 = scmp.lt.s32.totalorder %s714_s14, 3 }
   0x5   : > { %s824_s15 = smov (%p23_p1, %s22_s15), 0  ;;  %p159_p3 = pnand %p573_p0, %p158_p2 }
   0x6   : > { %v227_v0 = vld [vmem:[%s818_s1] sm:$0xf] (!%p159_p3)  ;;  %vm300_vm0 = vcmask (!%p159_p3), 1043456   ;;  %s574_s18 = sshll.u32 (!%p159_p3), %s706_s12, 4  ;;  %vm275_vm1 = vcmask (!%p159_p3), 64512   ;;  %vm465_vm2 = vcmask (!%p159_p3), 125952  }
   0x7   : > { %162 = sbr.rel (%p159_p3) target bundleno = 248 (0xf8), region = 32  ;;  %658 = vmatprep.subr.msk.bf16.mxu0 (!%p159_p3), %vm300_vm0, %v227_v0  ;;  %659 = vmatprep.subr.msk.bf16.mxu1 (!%p159_p3), %vm300_vm0, %v227_v0  ;;  %v302_v1 = vsel (!%p159_p3), %vm300_vm0, %v227_v0, 0  ;;  %p193_p4 = scmp.lt.s32.totalorder (!%p159_p3), %s574_s18, 31  ;;  %v578_v10 = vld [vmem:[%s819_s2] ss:$0 sm:$0xff] (!%p159_p3) }
   0x8   : > { %639 = vmatpush3.bf16.msra.mxu0 (!%p159_p3), %v302_v1  ;;  %657 = vmatpush3.bf16.msra.mxu1 (!%p159_p3), %v302_v1 }
   0xe   : > { %s826_s18 = smov (!%p193_p4, %s574_s18), 31 }
   0xf   : > { %s575_s19 = sshll.u32 %s826_s18, 2 }
  0x10   : > { %s198_s22 = scalar_lea.vmem %s817_s0, %s575_s19  ;;  %s774_s27 = scalar_lea.vmem %s820_s3, %s575_s19 }
  0x11   : > { %v684_v2 = vld [vmem:[%s198_s22] sm:$0xff]   ;;  %v686_v4 = vld [vmem:[%s198_s22 + $0x8] sm:$0xff]   ;;  %v688_v6 = vld [vmem:[%s198_s22 + $0x10] sm:$0xff]  }
  0x12   : > { %v685_v3 = vld [vmem:[%s198_s22 + $0x20] sm:$0xff]   ;;  %640 = vmatprep.mubr.msk.bf16.mxu0 %vm275_vm1, %v684_v2  ;;  %v687_v5 = vld [vmem:[%s198_s22 + $0x28] sm:$0xff]   ;;  %v689_v7 = vld [vmem:[%s198_s22 + $0x30] sm:$0xff]  }
  0x13   : > { %648 = vmatprep.mubr.msk.bf16.mxu1 %vm275_vm1, %v685_v3  ;;  %641 = vmatmul.mubr.msk.bf16.vlgmr.msra.gmra.mrb[0].mxu0 %vm275_vm1, %v686_v4  ;;  %v690_v8 = vld [vmem:[%s198_s22 + $0x18] sm:$0xff]  }
  0x14   : > { %649 = vmatmul.mubr.msk.bf16.vlgmr.msra.gmra.mrb[0].mxu1 %vm275_vm1, %v687_v5  ;;  %644 = vmatprep.mubr.msk.bf16.mxu0 %vm275_vm1, %v688_v6  ;;  %v691_v9 = vld [vmem:[%s198_s22 + $0x38] sm:$0xff]  }
  0x15   : > { %652 = vmatprep.mubr.msk.bf16.mxu1 %vm275_vm1, %v689_v7 }
  0x1b   : > { %645 = vmatmul.mubr.msk.bf16.gmra.mrb[4].mxu0 %vm275_vm1, %v690_v8 }
  0x1c   : > { %653 = vmatmul.mubr.msk.bf16.gmra.mrb[4].mxu1 %vm275_vm1, %v691_v9 }
  0xe6   : > { %v642_v11 = vpop.f32.mrb[0].mxu0 }
  0xe7   : > { %v347_v12 = vadd.f32 %v642_v11, %v578_v10  ;;  %v650_v13 = vpop.f32.mrb[0].mxu1  ;;  %v338_v14 = vpop.f32.mrb[1].mxu0 }
  0xe8   : > { %v379_v15 = vadd.f32 %v650_v13, %v578_v10  ;;  %v339_v16 = vadd.f32 %v578_v10, %v338_v14  ;;  %v370_v17 = vpop.f32.mrb[1].mxu1  ;;  %v643_v18 = vpop.f32.mrb[2].mxu0 }
  0xe9   : > { %v615_v19 = vpack.c.bf16 %v347_v12, %v347_v12  ;;  %v371_v20 = vadd.f32 %v578_v10, %v370_v17  ;;  %v350_v21 = vadd.f32 %v643_v18, %v578_v10  ;;  %v651_v22 = vpop.f32.mrb[2].mxu1  ;;  %v341_v23 = vpop.f32.mrb[3].mxu0 }
  0xea   : > { %v623_v24 = vpack.c.bf16 %v379_v15, %v379_v15  ;;  %v613_v25 = vpack.c.bf16 %v339_v16, %v339_v16  ;;  %v382_v26 = vadd.f32 %v651_v22, %v578_v10  ;;  %v342_v27 = vadd.f32 %v578_v10, %v341_v23  ;;  %v373_v28 = vpop.f32.mrb[3].mxu1 }
  0xeb   : > { %468 = vst.msk [vmem:[%s774_s27 + $0x8] sm:$0xf] %vm465_vm2, %v615_v19  ;;  %v621_v29 = vpack.c.bf16 %v371_v20, %v371_v20  ;;  %v616_v30 = vpack.c.bf16 %v350_v21, %v350_v21  ;;  %v374_v31 = vadd.f32 %v578_v10, %v373_v28 }
  0xec   : > { %476 = vst.msk [vmem:[%s774_s27 + $0x28] sm:$0xf] %vm465_vm2, %v623_v24  ;;  %466 = vst.msk [vmem:[%s774_s27] sm:$0xf] %vm465_vm2, %v613_v25  ;;  %v624_v32 = vpack.c.bf16 %v382_v26, %v382_v26  ;;  %v614_v33 = vpack.c.bf16 %v342_v27, %v342_v27 }
  0xed   : > { %474 = vst.msk [vmem:[%s774_s27 + $0x20] sm:$0xf] %vm465_vm2, %v621_v29  ;;  %469 = vst.msk [vmem:[%s774_s27 + $0xc] sm:$0xf] %vm465_vm2, %v616_v30  ;;  %v622_v34 = vpack.c.bf16 %v374_v31, %v374_v31 }
  0xee   : > { %477 = vst.msk [vmem:[%s774_s27 + $0x2c] sm:$0xf] %vm465_vm2, %v624_v32  ;;  %467 = vst.msk [vmem:[%s774_s27 + $0x4] sm:$0xf] %vm465_vm2, %v614_v33  ;;  %v646_v35 = vpop.f32.mrb[4].mxu0 }
  0xef   : > { %475 = vst.msk [vmem:[%s774_s27 + $0x24] sm:$0xf] %vm465_vm2, %v622_v34  ;;  %v363_v36 = vadd.f32 %v646_v35, %v578_v10  ;;  %v654_v37 = vpop.f32.mrb[4].mxu1  ;;  %v354_v38 = vpop.f32.mrb[5].mxu0 }
  0xf0   : > { %v395_v39 = vadd.f32 %v654_v37, %v578_v10  ;;  %v355_v40 = vadd.f32 %v578_v10, %v354_v38  ;;  %v386_v41 = vpop.f32.mrb[5].mxu1  ;;  %v647_v42 = vpop.f32.mrb[6].mxu0 }
  0xf1   : > { %v619_v43 = vpack.c.bf16 %v363_v36, %v363_v36  ;;  %v387_v44 = vadd.f32 %v578_v10, %v386_v41  ;;  %v366_v45 = vadd.f32 %v647_v42, %v578_v10  ;;  %v655_v46 = vpop.f32.mrb[6].mxu1  ;;  %v357_v47 = vpop.f32.mrb[7].mxu0 }
  0xf2   : > { %v627_v48 = vpack.c.bf16 %v395_v39, %v395_v39  ;;  %v617_v49 = vpack.c.bf16 %v355_v40, %v355_v40  ;;  %v398_v50 = vadd.f32 %v655_v46, %v578_v10  ;;  %v358_v51 = vadd.f32 %v578_v10, %v357_v47  ;;  %v389_v52 = vpop.f32.mrb[7].mxu1 }
  0xf3   : > { %472 = vst.msk [vmem:[%s774_s27 + $0x18] sm:$0xf] %vm465_vm2, %v619_v43  ;;  %v625_v53 = vpack.c.bf16 %v387_v44, %v387_v44  ;;  %v620_v54 = vpack.c.bf16 %v366_v45, %v366_v45  ;;  %v390_v55 = vadd.f32 %v578_v10, %v389_v52 }
  0xf4   : > { %480 = vst.msk [vmem:[%s774_s27 + $0x38] sm:$0xf] %vm465_vm2, %v627_v48  ;;  %470 = vst.msk [vmem:[%s774_s27 + $0x10] sm:$0xf] %vm465_vm2, %v617_v49  ;;  %v628_v56 = vpack.c.bf16 %v398_v50, %v398_v50  ;;  %v618_v57 = vpack.c.bf16 %v358_v51, %v358_v51 }
  0xf5   : > { %478 = vst.msk [vmem:[%s774_s27 + $0x30] sm:$0xf] %vm465_vm2, %v625_v53  ;;  %473 = vst.msk [vmem:[%s774_s27 + $0x1c] sm:$0xf] %vm465_vm2, %v620_v54  ;;  %v626_v58 = vpack.c.bf16 %v390_v55, %v390_v55 }
  0xf6   : > { %481 = vst.msk [vmem:[%s774_s27 + $0x3c] sm:$0xf] %vm465_vm2, %v628_v56  ;;  %471 = vst.msk [vmem:[%s774_s27 + $0x14] sm:$0xf] %vm465_vm2, %v618_v57 }
  0xf7   : > { %479 = vst.msk [vmem:[%s774_s27 + $0x34] sm:$0xf] %vm465_vm2, %v626_v58 }
  0xf8 PF: > { %s13_s14 = sadd.s32 1, %s714_s14   ;;  %s821_s12 = smov %s710_s13 }
  0xf9   : > { %p10_p5 = scmp.ge.s32.totalorder %s13_s14, 4   ;;  %s822_s13 = smov %s824_s15 }
  0xfb   :  { %12 = sbr.rel (!%p10_p5) target bundleno = 2 (0x2), region = 62 }

// kernel: alike_forward.20
= control target key start
LH: loop header
LB: loop body
LE: loop exit
PB: predicated region body
PF: predicated region fallthrough
CT: control target
= control target key end

     0   :  { %s1072_s18 = smov 0   ;;  %s1074_s19 = smov 0   ;;  %s1219_s0 = inlined_call_operand.vmem [shape: bf16[1,16,16,16], index: 0, kind: input, shape index: {}]   ;;  %s1220_s1 = inlined_call_operand.vmem [shape: bf16[1,2,2,16,16], index: 1, kind: input, shape index: {}]   ;;  %s1221_s2 = inlined_call_operand.vmem [shape: bf16[144,16], index: 2, kind: input, shape index: {}]   ;;  %s1222_s3 = inlined_call_operand.vmem [shape: f32[1,16], index: 3, kind: input, shape index: {}]   ;;  %s1223_s4 = inlined_call_operand.vmem [shape: bf16[1,16,16,16], index: 4, kind: input, shape index: {}]   ;;  %s1224_s5 = inlined_call_operand.vmem [shape: bf16[1,16,16,16], index: 5, kind: output, shape index: {}]  }
   0x1   :  { %s1076_s20 = smov 0  }
   0x2 LB: > { %s24_s21 = sadd.s32 1, %s1024_s19  ;;  %p884_p0 = scmp.ge.s32.totalorder %s1028_s20, 1  ;;  %s1028_s20 = sphi %s1076_s20, %s15_s20   ;;  %s1024_s19 = sphi %s1074_s19, %s1228_s19   ;;  %s1020_s18 = sphi %s1072_s18, %s1227_s18  }
   0x3   : > { %p25_p1 = scmp.ge.s32.totalorder %s24_s21, 2  ;;  %p243_p2 = scmp.lt.s32.totalorder %s1028_s20, 3 }
   0x5   : > { %s1230_s21 = smov (%p25_p1, %s24_s21), 0  ;;  %p244_p3 = pnand %p884_p0, %p243_p2 }
   0x6   : > { %p313_p4 = scmp.lt.s32.totalorder (!%p244_p3), %s1020_s18, 1  ;;  %s885_s22 = sshll.u32 (!%p244_p3), %s1020_s18, 3  ;;  %vm351_vm0 = vcmask (!%p244_p3), 130048  }
   0x7   : > { %247 = sbr.rel (%p244_p3) target bundleno = 392 (0x188), region = 40  ;;  %p303_p5 = scmp.lt.s32.totalorder (!%p244_p3), %s885_s22, 15 }
   0x8   : > { %s1117_s12 = smov (!%p244_p3), 0  }
   0xe   : > { %s1232_s18 = smov (!%p313_p4, %s1020_s18), 1  ;;  %s1234_s22 = smov (!%p303_p5, %s885_s22), 15 }
   0xf   : > { %s932_s23 = sshll.u32 %s1232_s18, 4  ;;  %s1093_s27 = sshll.u32 %s1234_s22, 3 }
  0x10   : > { %s319_s26 = scalar_lea.vmem %s1220_s1, %s932_s23  ;;  %s309_s30 = scalar_lea.vmem %s1219_s0, %s1093_s27 }
  0x11   : > { %v983_v0 = vld [vmem:[%s319_s26] sm:$0xff]   ;;  %s329_s8 = scalar_lea.vmem %s1223_s4, %s1093_s27  ;;  %s340_s11 = scalar_lea.vmem %s1224_s5, %s1093_s27  ;;  %v985_v2 = vld [vmem:[%s309_s30 + $0x8] sm:$0xff]   ;;  %v986_v3 = vld [vmem:[%s309_s30 + $0x10] sm:$0xff]  }
  0x12   : > { %v984_v1 = vld [vmem:[%s309_s30] sm:$0xff]   ;;  %352 = vst.msk [vmem:[#allocation2] sm:$0xff] %vm351_vm0, %v983_v0  ;;  %419 = vst.msk [vmem:[#allocation2 + $0x10] sm:$0xff] %vm351_vm0, %v985_v2  ;;  %v987_v4 = vld [vmem:[%s309_s30 + $0x18] sm:$0xff]  }
  0x13   : > { %418 = vst.msk [vmem:[#allocation2 + $0x8] sm:$0xff] %vm351_vm0, %v984_v1  ;;  %420 = vst.msk [vmem:[#allocation2 + $0x18] sm:$0xff] %vm351_vm0, %v986_v3  ;;  %v988_v5 = vld [vmem:[%s309_s30 + $0x20] sm:$0xff]   ;;  %v989_v6 = vld [vmem:[%s309_s30 + $0x28] sm:$0xff]  }
  0x14   : > { %421 = vst.msk [vmem:[#allocation2 + $0x20] sm:$0xff] %vm351_vm0, %v987_v4  ;;  %422 = vst.msk [vmem:[#allocation2 + $0x28] sm:$0xff] %vm351_vm0, %v988_v5  ;;  %v990_v7 = vld [vmem:[%s309_s30 + $0x30] sm:$0xff]   ;;  %v991_v8 = vld [vmem:[%s309_s30 + $0x38] sm:$0xff]  }
  0x15   : > { %423 = vst.msk [vmem:[#allocation2 + $0x30] sm:$0xff] %vm351_vm0, %v989_v6  ;;  %424 = vst.msk [vmem:[#allocation2 + $0x38] sm:$0xff] %vm351_vm0, %v990_v7  ;;  %v992_v9 = vld [vmem:[%s319_s26 + $0x8] sm:$0xff]  }
  0x16   : > { %425 = vst.msk [vmem:[#allocation2 + $0x40] sm:$0xff] %vm351_vm0, %v991_v8  ;;  %436 = vst.msk [vmem:[#allocation2 + $0x48] sm:$0xff] %vm351_vm0, %v992_v9 }
  0x17 LB: >> { %v1034_v10 = vmov 0   ;;  %v993_v11 = vld [vmem:[%s1221_s2] sm:$0xff]   ;;  %s1127_s15 = sshll.u32 %s1032_s12, 3  ;;  %vm455_vm1 = vcmask 1040384   ;;  %vm456_vm2 = vsmask.f32 256  ;;  %s1032_s12 = sphi %s1117_s12, %s442_s12  }
  0x18   : >> { %660 = vmatprep.subr.bf16.mxu0 %v1034_v10  ;;  %v994_v12 = vld [vmem:[%s1221_s2 + $0x8] sm:$0xff]   ;;  %s444_s18 = scalar_lea.vmem [#allocation2], %s1127_s15  ;;  %v995_v20 = vld [vmem:[%s1221_s2 + $0x10] sm:$0xff]   ;;  %vm1137_vm3 = vmand %vm455_vm1, %vm456_vm2  ;;  %vm507_vm4 = vcmask 1046528   ;;  %vm490_vm5 = vsmask.f32 7424  ;;  %s703_s29 = scalar_lea.vmem %s329_s8, %s1127_s15 }
  0x19   : >> { %661 = vmatpush1.bf16.msra.mxu0 %v993_v11  ;;  %v996_v37 = vld [vmem:[%s1221_s2 + $0x18] sm:$0xff]   ;;  %s1035_s26 = smov 48   ;;  %s1036_s28 = smov 32   ;;  %v997_v51 = vld [vmem:[%s1221_s2 + $0x20] sm:$0xff]   ;;  %v998_v63 = vld [vmem:[%s1221_s2 + $0x28] sm:$0xff]   ;;  %vm559_vm6 = vcmask 261120  }
  0x1a   : >> { %662 = vmatprep.subr.bf16.mxu0 %v1034_v10  ;;  %s1037_s6 = smov 64   ;;  %s1038_s10 = smov 16   ;;  %v999_v4 = vld [vmem:[%s1221_s2 + $0x30] sm:$0xff]   ;;  %v1000_v6 = vld [vmem:[%s1221_s2 + $0x38] sm:$0xff]   ;;  %v1001_v7 = vld [vmem:[%s1221_s2 + $0x40] sm:$0xff]   ;;  %vm562_vm7 = vcmask 392192  }
  0x1b   : >> { %s1039_s13 = smov 96   ;;  %s1040_s17 = smov 80   ;;  %vm565_vm8 = vcmask 523264   ;;  %vm568_vm9 = vcmask 654336   ;;  %vm571_vm10 = vcmask 785408   ;;  %vm574_vm11 = vcmask 916480  }
  0x1c   : >> { %s1041_s23 = smov 112   ;;  %vm722_vm12 = vcmask 125952   ;;  %s442_s12 = sadd.s32 1, %s1032_s12  }
  0x1d   : >> { %v445_v13 = vld [vmem:[%s444_s18] sm:$0xff]  ;;  %v910_v14 = vld [vmem:[%s444_s18 + $0x8] sm:$0xff]  ;;  %v912_v15 = vld [vmem:[%s444_s18 + $0x10] sm:$0xff]  ;;  %663 = vmatpush1.bf16.msra.mxu0 %v994_v12  ;;  %p439_p6 = scmp.ge.s32.totalorder %s442_s12, 8  }
  0x1e   : >> { %v447_v16 = vshrl.u32 %v445_v13, 16  ;;  %v450_v17 = vshll.u32 %v445_v13, 16  ;;  %v465_v18 = vshrl.u32 %v910_v14, 16  ;;  %v468_v19 = vshll.u32 %v910_v14, 16  ;;  %664 = vmatprep.subr.bf16.mxu0 %v1034_v10 }
  0x1f   : >> { %v480_v22 = vshrl.u32 %v912_v15, 16  ;;  %v483_v23 = vshll.u32 %v912_v15, 16 }
  0x20   : >> { %v449_v24 = vrot.slane %v447_v16, 7  ;;  %v467_v25 = vrot.slane %v465_v18, 7 }
  0x21   : >> { %v482_v26 = vrot.slane %v480_v22, 7  ;;  %665 = vmatpush1.bf16.msra.mxu0 %v995_v20  ;;  %v940_v22 = vld [vmem:[%s703_s29] sm:$0xff]  }
  0x22   : >> { %v452_v27 = vor.u32 %v450_v17, %v449_v24  ;;  %v459_v28 = vsel %vm1137_vm3, %v449_v24, 0  ;;  %v470_v29 = vor.u32 %v468_v19, %v467_v25  ;;  %v474_v30 = vsel %vm1137_vm3, %v467_v25, 0  ;;  %666 = vmatprep.subr.bf16.mxu0 %v1034_v10 }
  0x23   : >> { %v509_v31 = vrot.slane %v459_v28, 1  ;;  %v524_v32 = vshll.u32 %v474_v30, 16  ;;  %v499_v35 = vshll.u32 %v459_v28, 16  ;;  %v485_v36 = vor.u32 %v483_v23, %v482_v26  ;;  %v913_v23 = vld [vmem:[%s1222_s3] ss:$0 sm:$0xff] }
  0x24   : >> { %v1148_v33 = vsel %vm1137_vm3, 0, %v452_v27  ;;  %v473_v34 = vsel %vm1137_vm3, 0, %v470_v29  ;;  %v489_v43 = vsel %vm1137_vm3, %v482_v26, 0  ;;  %v532_v54 = vrot.slane %v474_v30, 1 }
  0x25   : >> { %v508_v38 = vrot.slane %v1148_v33, 1  ;;  %514 = vrot.lane.b32.xlu1 %v473_v34, %s1035_s26  ;;  %v517_v39 = vshrl.u32 %v473_v34, 16  ;;  %v519_v40 = vshll.u32 %v473_v34, 16  ;;  %v492_v41 = vshrl.u32 %v1148_v33, 16  ;;  %667 = vmatpush1.bf16.msra.mxu0 %v996_v37 }
  0x26   : >> { %v494_v42 = vshll.u32 %v1148_v33, 16  ;;  %v526_v46 = vrot.slane %v524_v32, 1  ;;  %v488_v47 = vsel %vm1137_vm3, 0, %v485_v36  ;;  %v501_v49 = vrot.slane %v499_v35, 1  ;;  %668 = vmatprep.subr.bf16.mxu0 %v1034_v10 }
  0x27   : >> { %v510_v44 = vsel %vm507_vm4, %v508_v38, %v509_v31  ;;  %v521_v45 = vrot.slane %v519_v40, 1  ;;  %v542_v50 = vshll.u32 %v488_v47, 16  ;;  %v531_v53 = vrot.slane %v473_v34, 1 }
  0x28   : >> { %511 = vrot.lane.b32.xlu0 %v510_v44, %s1036_s28  ;;  %v496_v48 = vrot.slane %v494_v42, 1  ;;  %v540_v56 = vshrl.u32 %v488_v47, 16  ;;  %v547_v58 = vshll.u32 %v489_v43, 16  ;;  %v554_v60 = vrot.slane %v488_v47, 1 }
  0x29   : >> { %v522_v52 = vor.u32 %v521_v45, %v517_v39  ;;  %v544_v57 = vrot.slane %v542_v50, 1  ;;  %v555_v61 = vrot.slane %v489_v43, 1  ;;  %669 = vmatpush1.bf16.msra.mxu0 %v997_v51  ;;  %v533_v1 = vsel %vm507_vm4, %v531_v53, %v532_v54 }
  0x2a   : >> { %v497_v55 = vor.u32 %v496_v48, %v492_v41  ;;  %670 = vmatprep.subr.bf16.mxu0 %v1034_v10  ;;  %v549_v3 = vrot.slane %v547_v58, 1  ;;  %v941_v24 = vunpack.c.l.bf16 %v940_v22  ;;  %v942_v28 = vunpack.c.h.bf16 %v940_v22 }
  0x2b   : >> { %v527_v59 = vsel %vm490_vm5, %v522_v52, %v526_v46  ;;  %v556_v0 = vsel %vm507_vm4, %v554_v60, %v555_v61  ;;  %v545_v2 = vor.u32 %v544_v57, %v540_v56 }
  0x2c   : >> { %v502_v62 = vsel %vm490_vm5, %v497_v55, %v501_v49  ;;  %528 = vrot.lane.b32.xlu1 %v527_v59, %s1037_s6  ;;  %923 = vmatprep.mubr.msk.bf16.mxu0 %vm351_vm0, %v556_v0 }
  0x2d   : >> { %503 = vrot.lane.b32.xlu0 %v502_v62, %s1038_s10  ;;  %671 = vmatpush1.bf16.msra.mxu0 %v998_v63  ;;  %v550_v5 = vsel %vm490_vm5, %v545_v2, %v549_v3  ;;  %s721_s10 = scalar_lea.vmem %s340_s11, %s1127_s15 }
  0x2e   : >> { %672 = vmatprep.subr.bf16.mxu0 %v1034_v10 }
  0x30   : >> { %537 = vrot.lane.b32.xlu1 %v488_v47, %s1039_s13 }
  0x31   : >> { %534 = vrot.lane.b32.xlu0 %v533_v1, %s1040_s17  ;;  %673 = vmatpush1.bf16.msra.mxu0 %v999_v4 }
  0x32   : >> { %674 = vmatprep.subr.bf16.mxu0 %v1034_v10 }
  0x35   : >> { %551 = vrot.lane.b32.xlu0 %v550_v5, %s1041_s23  ;;  %675 = vmatpush1.bf16.msra.mxu0 %v1000_v6 }
  0x36   : >> { %676 = vmatprep.subr.bf16.mxu0 %v1034_v10 }
  0x39   : >> { %677 = vmatpush1.bf16.msra.mxu0 %v1001_v7 }
  0x97   : >> { %v515_v8 = vpop.permute.xlu1 %514 }
  0x9a   : >> { %v512_v9 = vpop.permute.xlu0 %511 }
  0x9e   : >> { %v529_v11 = vpop.permute.xlu1 %528 }
  0x9f   : >> { %v504_v12 = vpop.permute.xlu0 %503 }
  0xa0   : >> { %v558_v13 = vsel %vm351_vm0, %v1148_v33, %v504_v12 }
  0xa1   : >> { %v561_v14 = vsel %vm559_vm6, %v558_v13, %v512_v9 }
  0xa2   : >> { %v564_v15 = vsel %vm562_vm7, %v561_v14, %v515_v8  ;;  %v538_v10 = vpop.permute.xlu1 %537 }
  0xa3   : >> { %v567_v16 = vsel %vm565_vm8, %v564_v15, %v529_v11  ;;  %v535_v17 = vpop.permute.xlu0 %534 }
  0xa4   : >> { %v570_v18 = vsel %vm568_vm9, %v567_v16, %v535_v17 }
  0xa5   : >> { %v573_v19 = vsel %vm571_vm10, %v570_v18, %v538_v10 }
  0xa7   : >> { %v552_v20 = vpop.permute.xlu0 %551 }
  0xa8   : >> { %v576_v21 = vsel %vm574_vm11, %v573_v19, %v552_v20 }
  0xa9   : >> { %693 = vmatmul.mubr.bf16.vlgmr.msra.gmra.mrb[0].mxu0 %v576_v21 }
 0x17c   : >> { %v694_v25 = vpop.f32.mrb[0].mxu0 }
 0x17d   : >> { %v695_v26 = vadd.f32 %v913_v23, %v694_v25  ;;  %v696_v27 = vpop.f32.mrb[1].mxu0 }
 0x17e   : >> { %v697_v29 = vpop.f32.mrb[2].mxu0 }
 0x17f   : >> { %v708_v30 = vadd.f32 %v941_v24, %v695_v26  ;;  %v698_v31 = vadd.f32 %v913_v23, %v697_v29  ;;  %v699_v32 = vpop.f32.mrb[3].mxu0 }
 0x181   : >> { %v710_v33 = vmax.f32 %v708_v30, 0.0  ;;  %v709_v34 = vadd.f32 %v942_v28, %v698_v31  ;;  %441 = sbr.rel (!%p439_p6) target bundleno = 23 (0x17), region = 91 }
 0x183   : >> { %v936_v35 = vpack.c.bf16 %v710_v33, %v710_v33  ;;  %v711_v36 = vmax.f32 %v709_v34, 0.0 }
 0x185   : >> { %723 = vst.msk [vmem:[%s721_s10] sm:$0xf] %vm722_vm12, %v936_v35  ;;  %v937_v37 = vpack.c.bf16 %v711_v36, %v711_v36 }
 0x187   : >> { %724 = vst.msk [vmem:[%s721_s10 + $0x4] sm:$0xf] %vm722_vm12, %v937_v37 }
 0x188 PF: > { %s15_s20 = sadd.s32 1, %s1028_s20   ;;  %s1227_s18 = smov %s1024_s19 }
 0x189   : > { %p12_p7 = scmp.ge.s32.totalorder %s15_s20, 4   ;;  %s1228_s19 = smov %s1230_s21 }
 0x18b   :  { %14 = sbr.rel (!%p12_p7) target bundleno = 2 (0x2), region = 102 }

// kernel: alike_forward.27
= control target key start
LH: loop header
LB: loop body
LE: loop exit
PB: predicated region body
PF: predicated region fallthrough
CT: control target
= control target key end

     0   :  { %s755_s12 = smov 0   ;;  %s757_s13 = smov 0   ;;  %s861_s0 = inlined_call_operand.vmem [shape: bf16[1,256,16], index: 0, kind: input, shape index: {}]   ;;  %s862_s1 = inlined_call_operand.vmem [shape: bf16[16,8], index: 1, kind: input, shape index: {}]   ;;  %s863_s2 = inlined_call_operand.vmem [shape: f32[1,8], index: 2, kind: input, shape index: {}]   ;;  %s864_s3 = inlined_call_operand.vmem [shape: bf16[1,256,8], index: 3, kind: output, shape index: {}]  }
   0x1   :  { %s759_s14 = smov 0  }
   0x2 LB: > { %s22_s15 = sadd.s32 1, %s729_s13  ;;  %p592_p0 = scmp.ge.s32.totalorder %s733_s14, 1  ;;  %s733_s14 = sphi %s759_s14, %s13_s14   ;;  %s729_s13 = sphi %s757_s13, %s866_s13   ;;  %s725_s12 = sphi %s755_s12, %s865_s12  }
   0x3   : > { %p23_p1 = scmp.ge.s32.totalorder %s22_s15, 2  ;;  %p158_p2 = scmp.lt.s32.totalorder %s733_s14, 3 }
   0x5   : > { %s868_s15 = smov (%p23_p1, %s22_s15), 0  ;;  %p159_p3 = pnand %p592_p0, %p158_p2 }
   0x6   : > { %v702_v0 = vld [vmem:[%s862_s1] sm:$0xff] (!%p159_p3)   ;;  %s593_s18 = sshll.u32 (!%p159_p3), %s725_s12, 4  ;;  %vm282_vm0 = vcmask (!%p159_p3), 130048   ;;  %vm484_vm1 = vcmask (!%p159_p3), 60416  }
   0x7   : > { %162 = sbr.rel (%p159_p3) target bundleno = 250 (0xfa), region = 32  ;;  %p193_p4 = scmp.lt.s32.totalorder (!%p159_p3), %s593_s18, 31  ;;  %658 = vmatprep.subr.bf16.mxu0 (!%p159_p3), %v702_v0  ;;  %676 = vmatprep.subr.bf16.mxu1 (!%p159_p3), %v702_v0  ;;  %v795_v9 = vld [vmem:[%s863_s2] ss:$0 sm:$0xff] (!%p159_p3) }
   0x8   : > { %659 = vmatpush3.bf16.msra.mxu0 (!%p159_p3), %v702_v0  ;;  %677 = vmatpush3.bf16.msra.mxu1 (!%p159_p3), %v702_v0 }
   0xe   : > { %s870_s18 = smov (!%p193_p4, %s593_s18), 31 }
   0xf   : > { %s594_s19 = sshll.u32 %s870_s18, 2 }
  0x10   : > { %s198_s22 = scalar_lea.vmem %s861_s0, %s594_s19  ;;  %s807_s27 = scalar_lea.vmem %s864_s3, %s594_s19 }
  0x11   : > { %v703_v1 = vld [vmem:[%s198_s22] sm:$0xff]   ;;  %v705_v3 = vld [vmem:[%s198_s22 + $0x8] sm:$0xff]   ;;  %v707_v5 = vld [vmem:[%s198_s22 + $0x10] sm:$0xff]  }
  0x12   : > { %v704_v2 = vld [vmem:[%s198_s22 + $0x20] sm:$0xff]   ;;  %660 = vmatprep.mubr.msk.bf16.mxu0 %vm282_vm0, %v703_v1  ;;  %v706_v4 = vld [vmem:[%s198_s22 + $0x28] sm:$0xff]   ;;  %v708_v6 = vld [vmem:[%s198_s22 + $0x30] sm:$0xff]  }
  0x13   : > { %668 = vmatprep.mubr.msk.bf16.mxu1 %vm282_vm0, %v704_v2  ;;  %661 = vmatmul.mubr.msk.bf16.vlgmr.msra.gmra.mrb[0].mxu0 %vm282_vm0, %v705_v3  ;;  %v709_v7 = vld [vmem:[%s198_s22 + $0x18] sm:$0xff]  }
  0x14   : > { %669 = vmatmul.mubr.msk.bf16.vlgmr.msra.gmra.mrb[0].mxu1 %vm282_vm0, %v706_v4  ;;  %664 = vmatprep.mubr.msk.bf16.mxu0 %vm282_vm0, %v707_v5  ;;  %v710_v8 = vld [vmem:[%s198_s22 + $0x38] sm:$0xff]  }
  0x15   : > { %672 = vmatprep.mubr.msk.bf16.mxu1 %vm282_vm0, %v708_v6 }
  0x1b   : > { %665 = vmatmul.mubr.msk.bf16.gmra.mrb[4].mxu0 %vm282_vm0, %v709_v7 }
  0x1c   : > { %673 = vmatmul.mubr.msk.bf16.gmra.mrb[4].mxu1 %vm282_vm0, %v710_v8 }
  0xe6   : > { %v662_v10 = vpop.f32.mrb[0].mxu0 }
  0xe7   : > { %v350_v11 = vadd.f32 %v662_v10, %v795_v9  ;;  %v670_v12 = vpop.f32.mrb[0].mxu1  ;;  %v341_v13 = vpop.f32.mrb[1].mxu0 }
  0xe8   : > { %v382_v14 = vadd.f32 %v670_v12, %v795_v9  ;;  %v342_v15 = vadd.f32 %v795_v9, %v341_v13  ;;  %v373_v16 = vpop.f32.mrb[1].mxu1  ;;  %v663_v17 = vpop.f32.mrb[2].mxu0 }
  0xe9   : > { %v406_v18 = vmax.f32 %v350_v11, 0.0  ;;  %v374_v19 = vadd.f32 %v795_v9, %v373_v16  ;;  %v353_v20 = vadd.f32 %v663_v17, %v795_v9  ;;  %v671_v21 = vpop.f32.mrb[2].mxu1  ;;  %v344_v22 = vpop.f32.mrb[3].mxu0 }
  0xea   : > { %v414_v23 = vmax.f32 %v382_v14, 0.0  ;;  %v404_v24 = vmax.f32 %v342_v15, 0.0  ;;  %v385_v25 = vadd.f32 %v671_v21, %v795_v9  ;;  %v345_v26 = vadd.f32 %v795_v9, %v344_v22  ;;  %v376_v27 = vpop.f32.mrb[3].mxu1 }
  0xeb   : > { %v635_v28 = vpack.c.bf16 %v406_v18, %v406_v18  ;;  %v412_v29 = vmax.f32 %v374_v19, 0.0  ;;  %v407_v30 = vmax.f32 %v353_v20, 0.0  ;;  %v377_v31 = vadd.f32 %v795_v9, %v376_v27 }
  0xec   : > { %v643_v32 = vpack.c.bf16 %v414_v23, %v414_v23  ;;  %v633_v33 = vpack.c.bf16 %v404_v24, %v404_v24  ;;  %v415_v34 = vmax.f32 %v385_v25, 0.0  ;;  %v405_v35 = vmax.f32 %v345_v26, 0.0 }
  0xed   : > { %487 = vst.msk [vmem:[%s807_s27 + $0x8] sm:$0xf] %vm484_vm1, %v635_v28  ;;  %v641_v36 = vpack.c.bf16 %v412_v29, %v412_v29  ;;  %v636_v37 = vpack.c.bf16 %v407_v30, %v407_v30  ;;  %v413_v38 = vmax.f32 %v377_v31, 0.0 }
  0xee   : > { %495 = vst.msk [vmem:[%s807_s27 + $0x28] sm:$0xf] %vm484_vm1, %v643_v32  ;;  %485 = vst.msk [vmem:[%s807_s27] sm:$0xf] %vm484_vm1, %v633_v33  ;;  %v644_v39 = vpack.c.bf16 %v415_v34, %v415_v34  ;;  %v634_v40 = vpack.c.bf16 %v405_v35, %v405_v35  ;;  %v666_v41 = vpop.f32.mrb[4].mxu0 }
  0xef   : > { %493 = vst.msk [vmem:[%s807_s27 + $0x20] sm:$0xf] %vm484_vm1, %v641_v36  ;;  %488 = vst.msk [vmem:[%s807_s27 + $0xc] sm:$0xf] %vm484_vm1, %v636_v37  ;;  %v642_v42 = vpack.c.bf16 %v413_v38, %v413_v38  ;;  %v366_v43 = vadd.f32 %v666_v41, %v795_v9  ;;  %v674_v44 = vpop.f32.mrb[4].mxu1  ;;  %v357_v45 = vpop.f32.mrb[5].mxu0 }
  0xf0   : > { %496 = vst.msk [vmem:[%s807_s27 + $0x2c] sm:$0xf] %vm484_vm1, %v644_v39  ;;  %486 = vst.msk [vmem:[%s807_s27 + $0x4] sm:$0xf] %vm484_vm1, %v634_v40  ;;  %v398_v46 = vadd.f32 %v674_v44, %v795_v9  ;;  %v358_v47 = vadd.f32 %v795_v9, %v357_v45  ;;  %v389_v48 = vpop.f32.mrb[5].mxu1  ;;  %v667_v49 = vpop.f32.mrb[6].mxu0 }
  0xf1   : > { %494 = vst.msk [vmem:[%s807_s27 + $0x24] sm:$0xf] %vm484_vm1, %v642_v42  ;;  %v410_v50 = vmax.f32 %v366_v43, 0.0  ;;  %v390_v51 = vadd.f32 %v795_v9, %v389_v48  ;;  %v369_v52 = vadd.f32 %v667_v49, %v795_v9  ;;  %v675_v53 = vpop.f32.mrb[6].mxu1  ;;  %v360_v54 = vpop.f32.mrb[7].mxu0 }
  0xf2   : > { %v418_v55 = vmax.f32 %v398_v46, 0.0  ;;  %v408_v56 = vmax.f32 %v358_v47, 0.0  ;;  %v401_v57 = vadd.f32 %v675_v53, %v795_v9  ;;  %v361_v58 = vadd.f32 %v795_v9, %v360_v54  ;;  %v392_v59 = vpop.f32.mrb[7].mxu1 }
  0xf3   : > { %v639_v60 = vpack.c.bf16 %v410_v50, %v410_v50  ;;  %v416_v61 = vmax.f32 %v390_v51, 0.0  ;;  %v411_v62 = vmax.f32 %v369_v52, 0.0  ;;  %v393_v63 = vadd.f32 %v795_v9, %v392_v59 }
  0xf4   : > { %v647_v0 = vpack.c.bf16 %v418_v55, %v418_v55  ;;  %v637_v1 = vpack.c.bf16 %v408_v56, %v408_v56  ;;  %v419_v2 = vmax.f32 %v401_v57, 0.0  ;;  %v409_v3 = vmax.f32 %v361_v58, 0.0 }
  0xf5   : > { %491 = vst.msk [vmem:[%s807_s27 + $0x18] sm:$0xf] %vm484_vm1, %v639_v60  ;;  %v645_v4 = vpack.c.bf16 %v416_v61, %v416_v61  ;;  %v640_v5 = vpack.c.bf16 %v411_v62, %v411_v62  ;;  %v417_v6 = vmax.f32 %v393_v63, 0.0 }
  0xf6   : > { %499 = vst.msk [vmem:[%s807_s27 + $0x38] sm:$0xf] %vm484_vm1, %v647_v0  ;;  %489 = vst.msk [vmem:[%s807_s27 + $0x10] sm:$0xf] %vm484_vm1, %v637_v1  ;;  %v648_v7 = vpack.c.bf16 %v419_v2, %v419_v2  ;;  %v638_v8 = vpack.c.bf16 %v409_v3, %v409_v3 }
  0xf7   : > { %497 = vst.msk [vmem:[%s807_s27 + $0x30] sm:$0xf] %vm484_vm1, %v645_v4  ;;  %492 = vst.msk [vmem:[%s807_s27 + $0x1c] sm:$0xf] %vm484_vm1, %v640_v5  ;;  %v646_v9 = vpack.c.bf16 %v417_v6, %v417_v6 }
  0xf8   : > { %500 = vst.msk [vmem:[%s807_s27 + $0x3c] sm:$0xf] %vm484_vm1, %v648_v7  ;;  %490 = vst.msk [vmem:[%s807_s27 + $0x14] sm:$0xf] %vm484_vm1, %v638_v8 }
  0xf9   : > { %498 = vst.msk [vmem:[%s807_s27 + $0x34] sm:$0xf] %vm484_vm1, %v646_v9 }
  0xfa PF: > { %s13_s14 = sadd.s32 1, %s733_s14   ;;  %s865_s12 = smov %s729_s13 }
  0xfb   : > { %p10_p5 = scmp.ge.s32.totalorder %s13_s14, 4   ;;  %s866_s13 = smov %s868_s15 }
  0xfd   :  { %12 = sbr.rel (!%p10_p5) target bundleno = 2 (0x2), region = 62 }

// kernel: alike_forward.22
= control target key start
LH: loop header
LB: loop body
LE: loop exit
PB: predicated region body
PF: predicated region fallthrough
CT: control target
= control target key end

     0   :  { %v117_v0 = vmov 0.0   ;;  %vm118_vm0 = vmmov 0   ;;  %vm37_vm1 = vcmask 130048   ;;  %vm90_vm2 = vcmask 257024   ;;  %s154_s1 = inlined_call_operand.vmem [shape: bf16[16,32], index: 1, kind: input, shape index: {}]   ;;  %s155_s0 = inlined_call_operand.vmem [shape: bf16[1,16,16], index: 0, kind: input, shape index: {}]   ;;  %s156_s2 = inlined_call_operand.vmem [shape: f32[1,32], index: 2, kind: input, shape index: {}]   ;;  %s157_s3 = inlined_call_operand.vmem [shape: bf16[1,16,32], index: 3, kind: output, shape index: {}]  }
   0x1   :  { %107 = vmatprep.subr.bf16.mxu0 %v117_v0  ;;  %v115_v1 = vld [vmem:[%s154_s1] sm:$0xff]   ;;  %109 = vmatprep.mubr.msk.bf16.mxu0 %vm118_vm0, %v117_v0 }
   0x2   :  { %v116_v2 = vld [vmem:[%s155_s0] sm:$0xff]   ;;  %108 = vmatpush3.bf16.msra.mxu0 %v115_v1 }
   0x3   :  { %v97_v3 = vld [vmem:[%s156_s2] ss:$0 sm:$0xff] }
   0x5   :  { %110 = vmatmul.mubr.msk.bf16.vlgmr.msra.gmra.mrb[0].mxu0 %vm37_vm1, %v116_v2 }
  0xd8   :  { %v75_v4 = vpop.f32.mrb[0].mxu0 }
  0xd9   :  { %v76_v5 = vadd.f32 %v97_v3, %v75_v4  ;;  %v111_v6 = vpop.f32.mrb[1].mxu0 }
  0xda   :  { %v78_v7 = vpop.f32.mrb[2].mxu0 }
  0xdb   :  { %v103_v8 = vpack.c.bf16 %v76_v5, %v76_v5  ;;  %v79_v9 = vadd.f32 %v97_v3, %v78_v7  ;;  %v112_v10 = vpop.f32.mrb[3].mxu0 }
  0xdd   :  { %91 = vst.msk [vmem:[%s157_s3] sm:$0xf] %vm90_vm2, %v103_v8  ;;  %v104_v11 = vpack.c.bf16 %v79_v9, %v79_v9 }
  0xdf   :  { %92 = vst.msk [vmem:[%s157_s3 + $0x4] sm:$0xf] %vm90_vm2, %v104_v11 }

// kernel: alike_forward.21
= control target key start
LH: loop header
LB: loop body
LE: loop exit
PB: predicated region body
PF: predicated region fallthrough
CT: control target
= control target key end

     0   :  { %vm19_vm0 = vcmask 123904   ;;  %s426_s27 = smov 0   ;;  %s507_s1 = inlined_call_operand.vmem [shape: bf16[1,1,2,4,16], index: 1, kind: input, shape index: {}]   ;;  %s508_s2 = inlined_call_operand.vmem [shape: bf16[144,32], index: 2, kind: input, shape index: {}]   ;;  %s509_s3 = inlined_call_operand.vmem [shape: f32[1,32], index: 3, kind: input, shape index: {}]   ;;  %s510_s4 = inlined_call_operand.vmem [shape: bf16[1,4,4,32], index: 4, kind: output, shape index: {}]   ;;  %s511_s0 = inlined_call_operand.vmem [shape: bf16[1,4,4,16], index: 0, kind: input, shape index: {}]  }
   0x1   :  { %v18_v0 = vld [vmem:[%s507_s1] sm:$0x3]  ;;  %v22_v2 = vld [vmem:[%s511_s0 + $0x2] sm:$0x3]  ;;  %v23_v3 = vld [vmem:[%s511_s0 + $0x4] sm:$0x3] }
   0x2   :  { %v21_v1 = vld [vmem:[%s511_s0] sm:$0x3]  ;;  %20 = vst.msk [vmem:[#allocation2] sm:$0x3] %vm19_vm0, %v18_v0  ;;  %27 = vst.msk [vmem:[#allocation2 + $0x4] sm:$0x3] %vm19_vm0, %v22_v2 }
   0x3   :  { %26 = vst.msk [vmem:[#allocation2 + $0x2] sm:$0x3] %vm19_vm0, %v21_v1  ;;  %v24_v4 = vld [vmem:[%s511_s0 + $0x6] sm:$0x3]  ;;  %v321_v5 = vld [vmem:[%s507_s1 + $0x2] sm:$0x3] }
   0x4   :  { %28 = vst.msk [vmem:[#allocation2 + $0x6] sm:$0x3] %vm19_vm0, %v23_v3  ;;  %29 = vst.msk [vmem:[#allocation2 + $0x8] sm:$0x3] %vm19_vm0, %v24_v4 }
   0x5   :  { %33 = vst.msk [vmem:[#allocation2 + $0xa] sm:$0x3] %vm19_vm0, %v321_v5 }
   0x6 LB: > { %s322_s28 = sshll.u32 %s373_s27, 1  ;;  %vm60_vm1 = vsmask.f32 256  ;;  %v375_v6 = vmov 0   ;;  %v358_v7 = vld [vmem:[%s508_s2] sm:$0xff]   ;;  %vm59_vm2 = vcmask 1040384   ;;  %s373_s27 = sphi %s426_s27, %s39_s27  }
   0x7   : > { %256 = vmatprep.subr.bf16.mxu0 %v375_v6  ;;  %vm64_vm3 = vsmask.f32 2304  ;;  %s41_s1 = scalar_lea.vmem [#allocation2], %s322_s28  ;;  %vm63_vm4 = vcmask 1042432   ;;  %v359_v9 = vld [vmem:[%s508_s2 + $0x8] sm:$0xff]   ;;  %vm444_vm5 = vmand %vm59_vm2, %vm60_vm1  ;;  %v360_v21 = vld [vmem:[%s508_s2 + $0x10] sm:$0xff]   ;;  %s299_s5 = scalar_lea.vmem %s510_s4, %s322_s28 }
   0x8   : > { %257 = vmatpush1.bf16.msra.mxu0 %v358_v7  ;;  %vm453_vm6 = vmand %vm63_vm4, %vm64_vm3  ;;  %v361_v28 = vld [vmem:[%s508_s2 + $0x18] sm:$0xff]   ;;  %s376_s10 = smov 48   ;;  %s377_s11 = smov 32   ;;  %v362_v42 = vld [vmem:[%s508_s2 + $0x20] sm:$0xff]   ;;  %vm152_vm7 = vcmask 130048   ;;  %vm155_vm8 = vcmask 261120  }
   0x9   : > { %258 = vmatprep.subr.bf16.mxu0 %v375_v6  ;;  %s378_s14 = smov 16   ;;  %s379_s15 = smov 64   ;;  %v363_v49 = vld [vmem:[%s508_s2 + $0x28] sm:$0xff]   ;;  %v364_v51 = vld [vmem:[%s508_s2 + $0x30] sm:$0xff]   ;;  %v365_v52 = vld [vmem:[%s508_s2 + $0x38] sm:$0xff]   ;;  %vm158_vm9 = vcmask 392192  }
   0xa   : > { %s380_s18 = smov 80   ;;  %s381_s19 = smov 96   ;;  %v366_v53 = vld [vmem:[%s508_s2 + $0x40] sm:$0xff]   ;;  %vm161_vm10 = vcmask 523264   ;;  %vm164_vm11 = vcmask 654336   ;;  %vm167_vm12 = vcmask 785408  }
   0xb   : > { %s382_s22 = smov 112   ;;  %vm170_vm13 = vcmask 916480   ;;  %v330_v4 = vld [vmem:[%s509_s3] ss:$0 sm:$0xff]  ;;  %vm300_vm14 = vcmask 254976   ;;  %s39_s27 = sadd.s32 1, %s373_s27  }
   0xc   : > { %v323_v8 = vld.sshfl [vmem:[%s41_s1] sm:$0x3 pattern:$0x76325410]  ;;  %259 = vmatpush1.bf16.msra.mxu0 %v359_v9  ;;  %p36_p0 = scmp.ge.s32.totalorder %s39_s27, 4  }
   0xd   : > { %v52_v10 = vshrl.u32 %v323_v8, 16  ;;  %v55_v11 = vshll.u32 %v323_v8, 16  ;;  %v326_v12 = vld.sshfl [vmem:[%s41_s1 + $0x2] sm:$0x3 pattern:$0x76325410]  ;;  %260 = vmatprep.subr.bf16.mxu0 %v375_v6 }
   0xe   : > { %v80_v13 = vshrl.u32 %v326_v12, 16  ;;  %v83_v14 = vshll.u32 %v326_v12, 16  ;;  %v329_v15 = vld.sshfl [vmem:[%s41_s1 + $0x4] sm:$0x3 pattern:$0x76325410] }
   0xf   : > { %v54_v16 = vrot.slane %v52_v10, 7  ;;  %v102_v18 = vshrl.u32 %v329_v15, 16  ;;  %v105_v19 = vshll.u32 %v329_v15, 16 }
  0x10   : > { %v82_v20 = vrot.slane %v80_v13, 7  ;;  %261 = vmatpush1.bf16.msra.mxu0 %v360_v21 }
  0x11   : > { %v57_v22 = vor.u32 %v55_v11, %v54_v16  ;;  %v104_v24 = vrot.slane %v102_v18, 7  ;;  %262 = vmatprep.subr.bf16.mxu0 %v375_v6 }
  0x12   : > { %v85_v25 = vor.u32 %v83_v14, %v82_v20 }
  0x13   : > { %v62_v26 = vsel %vm444_vm5, 0, %v57_v22  ;;  %v107_v27 = vor.u32 %v105_v19, %v104_v24 }
  0x14   : > { %v66_v29 = vsel %vm453_vm6, %v62_v26, 0  ;;  %v87_v30 = vsel %vm444_vm5, 0, %v85_v25  ;;  %263 = vmatpush1.bf16.msra.mxu0 %v361_v28 }
  0x15   : > { %v121_v31 = vrot.slane %v66_v29, 1  ;;  %v88_v32 = vsel %vm453_vm6, %v87_v30, 0  ;;  %v112_v33 = vshrl.u32 %v66_v29, 16  ;;  %v114_v34 = vshll.u32 %v66_v29, 16  ;;  %264 = vmatprep.subr.bf16.mxu0 %v375_v6 }
  0x16   : > { %125 = vrot.lane.b32.xlu1 %v88_v32, %s376_s10  ;;  %v128_v35 = vshrl.u32 %v88_v32, 16  ;;  %v130_v36 = vshll.u32 %v88_v32, 16  ;;  %v109_v37 = vsel %vm444_vm5, 0, %v107_v27  ;;  %v136_v46 = vrot.slane %v88_v32, 1 }
  0x17   : > { %122 = vrot.lane.b32.xlu0 %v121_v31, %s377_s11  ;;  %v116_v38 = vrot.slane %v114_v34, 1  ;;  %v110_v39 = vsel %vm453_vm6, %v109_v37, 0 }
  0x18   : > { %v132_v40 = vrot.slane %v130_v36, 1  ;;  %v145_v41 = vshll.u32 %v110_v39, 16  ;;  %v151_v43 = vrot.slane %v110_v39, 1  ;;  %v143_v47 = vshrl.u32 %v110_v39, 16  ;;  %265 = vmatpush1.bf16.msra.mxu0 %v362_v42 }
  0x19   : > { %v117_v44 = vor.u32 %v116_v38, %v112_v33  ;;  %266 = vmatprep.subr.bf16.mxu0 %v375_v6 }
  0x1a   : > { %v133_v45 = vor.u32 %v132_v40, %v128_v35  ;;  %340 = vmatprep.mubr.msk.bf16.mxu0 %vm152_vm7, %v151_v43  ;;  %v147_v48 = vrot.slane %v145_v41, 1 }
  0x1b   : > { %118 = vrot.lane.b32.xlu0 %v117_v44, %s378_s14 }
  0x1c   : > { %134 = vrot.lane.b32.xlu1 %v133_v45, %s379_s15  ;;  %v148_v50 = vor.u32 %v147_v48, %v143_v47  ;;  %267 = vmatpush1.bf16.msra.mxu0 %v363_v49 }
  0x1d   : > { %268 = vmatprep.subr.bf16.mxu0 %v375_v6 }
  0x1f   : > { %137 = vrot.lane.b32.xlu0 %v136_v46, %s380_s18 }
  0x20   : > { %140 = vrot.lane.b32.xlu1 %v110_v39, %s381_s19  ;;  %269 = vmatpush1.bf16.msra.mxu0 %v364_v51 }
  0x21   : > { %270 = vmatprep.subr.bf16.mxu0 %v375_v6 }
  0x23   : > { %149 = vrot.lane.b32.xlu0 %v148_v50, %s382_s22 }
  0x24   : > { %271 = vmatpush1.bf16.msra.mxu0 %v365_v52 }
  0x25   : > { %272 = vmatprep.subr.bf16.mxu0 %v375_v6 }
  0x28   : > { %273 = vmatpush1.bf16.msra.mxu0 %v366_v53 }
  0x88   : > { %v126_v54 = vpop.permute.xlu1 %125 }
  0x89   : > { %v123_v55 = vpop.permute.xlu0 %122 }
  0x8d   : > { %v119_v56 = vpop.permute.xlu0 %118 }
  0x8e   : > { %v135_v57 = vpop.permute.xlu1 %134  ;;  %v154_v58 = vsel %vm152_vm7, %v66_v29, %v119_v56 }
  0x8f   : > { %v157_v59 = vsel %vm155_vm8, %v154_v58, %v123_v55 }
  0x90   : > { %v160_v60 = vsel %vm158_vm9, %v157_v59, %v126_v54 }
  0x91   : > { %v138_v61 = vpop.permute.xlu0 %137  ;;  %v163_v62 = vsel %vm161_vm10, %v160_v60, %v135_v57 }
  0x92   : > { %v141_v63 = vpop.permute.xlu1 %140  ;;  %v166_v0 = vsel %vm164_vm11, %v163_v62, %v138_v61 }
  0x93   : > { %v169_v2 = vsel %vm167_vm12, %v166_v0, %v141_v63 }
  0x95   : > { %v150_v1 = vpop.permute.xlu0 %149 }
  0x96   : > { %v172_v3 = vsel %vm170_vm13, %v169_v2, %v150_v1 }
  0x97   : > { %289 = vmatmul.mubr.bf16.vlgmr.msra.gmra.mrb[0].mxu0 %v172_v3 }
 0x16a   : > { %v290_v5 = vpop.f32.mrb[0].mxu0 }
 0x16b   : > { %v291_v6 = vadd.f32 %v330_v4, %v290_v5  ;;  %v292_v7 = vpop.f32.mrb[1].mxu0  ;;  %38 = sbr.rel (!%p36_p0) target bundleno = 6 (0x6), region = 50 }
 0x16c   : > { %v293_v8 = vpop.f32.mrb[2].mxu0 }
 0x16d   : > { %v296_v9 = vmax.f32 %v291_v6, 0.0  ;;  %v294_v10 = vpop.f32.mrb[3].mxu0 }
 0x16f   : > { %v297_v11 = vpack.c.bf16 %v296_v9, %v296_v9 }
 0x171   : > { %301 = vst.msk [vmem:[%s299_s5] sm:$0x3] %vm300_vm14, %v297_v11 }

// kernel: alike_forward.23
= control target key start
LH: loop header
LB: loop body
LE: loop exit
PB: predicated region body
PF: predicated region fallthrough
CT: control target
= control target key end

     0   :  { %vm22_vm0 = vcmask 254976   ;;  %s598_s30 = smov 0   ;;  %s699_s1 = inlined_call_operand.vmem [shape: bf16[1,1,2,4,32], index: 1, kind: input, shape index: {}]   ;;  %s700_s2 = inlined_call_operand.vmem [shape: bf16[288,32], index: 2, kind: input, shape index: {}]   ;;  %s701_s3 = inlined_call_operand.vmem [shape: f32[1,32], index: 3, kind: input, shape index: {}]   ;;  %s702_s4 = inlined_call_operand.vmem [shape: bf16[1,4,4,32], index: 4, kind: input, shape index: {}]   ;;  %s703_s5 = inlined_call_operand.vmem [shape: bf16[1,4,4,32], index: 5, kind: output, shape index: {}]   ;;  %s704_s0 = inlined_call_operand.vmem [shape: bf16[1,4,4,32], index: 0, kind: input, shape index: {}]  }
   0x1   :  { %v21_v0 = vld [vmem:[%s699_s1] sm:$0x3]  ;;  %v25_v2 = vld [vmem:[%s704_s0 + $0x2] sm:$0x3]  ;;  %v26_v3 = vld [vmem:[%s704_s0 + $0x4] sm:$0x3] }
   0x2   :  { %v24_v1 = vld [vmem:[%s704_s0] sm:$0x3]  ;;  %23 = vst.msk [vmem:[#allocation2] sm:$0x3] %vm22_vm0, %v21_v0  ;;  %30 = vst.msk [vmem:[#allocation2 + $0x4] sm:$0x3] %vm22_vm0, %v25_v2 }
   0x3   :  { %29 = vst.msk [vmem:[#allocation2 + $0x2] sm:$0x3] %vm22_vm0, %v24_v1  ;;  %v27_v4 = vld [vmem:[%s704_s0 + $0x6] sm:$0x3]  ;;  %v436_v5 = vld [vmem:[%s699_s1 + $0x2] sm:$0x3] }
   0x4   :  { %31 = vst.msk [vmem:[#allocation2 + $0x6] sm:$0x3] %vm22_vm0, %v26_v3  ;;  %32 = vst.msk [vmem:[#allocation2 + $0x8] sm:$0x3] %vm22_vm0, %v27_v4 }
   0x5   :  { %36 = vst.msk [vmem:[#allocation2 + $0xa] sm:$0x3] %vm22_vm0, %v436_v5 }
   0x6 LB: > { %vm63_vm1 = vsmask.f32 256  ;;  %vm62_vm2 = vcmask 1040384   ;;  %vm66_vm3 = vcmask 1042432   ;;  %s604_s0 = sshll.u32 %s537_s30, 1  ;;  %v513_v6 = vld [vmem:[%s700_s2 + $0x40] sm:$0xff]   ;;  %s537_s30 = sphi %s598_s30, %s42_s30  }
   0x7   : > { %vm67_vm4 = vsmask.f32 2304  ;;  %v514_v7 = vld [vmem:[%s700_s2] sm:$0xff]   ;;  %v515_v8 = vld [vmem:[%s700_s2 + $0x48] sm:$0xff]   ;;  %s44_s11 = scalar_lea.vmem [#allocation2], %s604_s0  ;;  %467 = vmatprep.subr.bf16.mxu0 %v513_v6  ;;  %vm617_vm5 = vmand %vm62_vm2, %vm63_vm1  ;;  %s539_s22 = smov 64  }
   0x8   : > { %468 = vmatpush3.bf16.msra.mxu0 %v514_v7  ;;  %vm623_vm6 = vmand %vm66_vm3, %vm67_vm4  ;;  %v516_v21 = vld [vmem:[%s700_s2 + $0x8] sm:$0xff]   ;;  %v517_v23 = vld [vmem:[%s700_s2 + $0x50] sm:$0xff]   ;;  %s540_s25 = smov 32   ;;  %v541_v49 = vmov 0.0   ;;  %s542_s1 = smov 96   ;;  %vm543_vm7 = vmmov 0  }
   0x9   : > { %469 = vmatprep.subr.bf16.mxu0 %v515_v8  ;;  %v518_v26 = vld [vmem:[%s700_s2 + $0x10] sm:$0xff]   ;;  %v519_v30 = vld [vmem:[%s700_s2 + $0x58] sm:$0xff]   ;;  %v521_v37 = vld [vmem:[%s700_s2 + $0x60] sm:$0xff]   ;;  %492 = vmatprep.subr.bf16.mxu1 %v541_v49  ;;  %vm153_vm8 = vcmask 261120   ;;  %vm156_vm9 = vcmask 523264   ;;  %vm159_vm10 = vcmask 785408   ;;  %s413_s27 = scalar_lea.vmem %s703_s5, %s604_s0 }
   0xa   : > { %v520_v33 = vld [vmem:[%s700_s2 + $0x18] sm:$0xff]   ;;  %v522_v46 = vld [vmem:[%s700_s2 + $0x20] sm:$0xff]   ;;  %v523_v48 = vld [vmem:[%s700_s2 + $0x68] sm:$0xff]   ;;  %496 = vmatprep.mubr.msk.bf16.mxu1 %vm543_vm7, %v541_v49  ;;  %s42_s30 = sadd.s32 1, %s537_s30  }
   0xb   : > { %v527_v51 = vld [vmem:[%s700_s2 + $0x80] sm:$0xff]   ;;  %v524_v52 = vld [vmem:[%s700_s2 + $0x28] sm:$0xff]   ;;  %v525_v53 = vld [vmem:[%s700_s2 + $0x70] sm:$0xff]   ;;  %p39_p0 = scmp.ge.s32.totalorder %s42_s30, 4  }
   0xc   : > { %v444_v9 = vld.sshfl [vmem:[%s44_s11 + $0x4] sm:$0x3 pattern:$0x76325410]  ;;  %470 = vmatpush3.bf16.msra.mxu0 %v516_v21  ;;  %493 = vmatpush3.bf16.msra.mxu1 %v527_v51  ;;  %v530_v54 = vld [vmem:[%s700_s2 + $0x88] sm:$0xff]   ;;  %v526_v55 = vld [vmem:[%s700_s2 + $0x30] sm:$0xff]  }
   0xd   : > { %v105_v10 = vshrl.u32 %v444_v9, 16  ;;  %v108_v11 = vshll.u32 %v444_v9, 16  ;;  %v441_v12 = vld.sshfl [vmem:[%s44_s11 + $0x2] sm:$0x3 pattern:$0x76325410]  ;;  %471 = vmatprep.subr.bf16.mxu0 %v517_v23  ;;  %494 = vmatprep.subr.bf16.mxu1 %v541_v49 }
   0xe   : > { %v83_v14 = vshrl.u32 %v441_v12, 16  ;;  %v86_v15 = vshll.u32 %v441_v12, 16  ;;  %v438_v16 = vld.sshfl [vmem:[%s44_s11] sm:$0x3 pattern:$0x76325410] }
   0xf   : > { %v107_v18 = vrot.slane %v105_v10, 7  ;;  %v55_v19 = vshrl.u32 %v438_v16, 16  ;;  %v58_v20 = vshll.u32 %v438_v16, 16  ;;  %v528_v57 = vld [vmem:[%s700_s2 + $0x78] sm:$0xff]   ;;  %v445_v17 = vld [vmem:[%s701_s3] ss:$0 sm:$0xff] }
  0x10   : > { %v85_v22 = vrot.slane %v83_v14, 7  ;;  %472 = vmatpush3.bf16.msra.mxu0 %v518_v26  ;;  %495 = vmatpush3.bf16.msra.mxu1 %v530_v54  ;;  %v529_v58 = vld [vmem:[%s700_s2 + $0x38] sm:$0xff]  }
  0x11   : > { %v110_v24 = vor.u32 %v108_v11, %v107_v18  ;;  %v57_v25 = vrot.slane %v55_v19, 7  ;;  %473 = vmatprep.subr.bf16.mxu0 %v519_v30 }
  0x12   : > { %v88_v27 = vor.u32 %v86_v15, %v85_v22 }
  0x13   : > { %v112_v28 = vsel %vm617_vm5, 0, %v110_v24  ;;  %v60_v29 = vor.u32 %v58_v20, %v57_v25 }
  0x14   : > { %v113_v31 = vsel %vm623_vm6, %v112_v28, 0  ;;  %v90_v32 = vsel %vm617_vm5, 0, %v88_v27  ;;  %474 = vmatpush3.bf16.msra.mxu0 %v520_v33 }
  0x15   : > { %141 = vrot.lane.b32.xlu1 %v113_v31, %s539_s22  ;;  %v91_v34 = vsel %vm623_vm6, %v90_v32, 0  ;;  %v65_v35 = vsel %vm617_vm5, 0, %v60_v29  ;;  %v146_v36 = vshll.u32 %v113_v31, 16  ;;  %v144_v43 = vshrl.u32 %v113_v31, 16  ;;  %475 = vmatprep.subr.bf16.mxu0 %v521_v37 }
  0x16   : > { %v137_v38 = vrot.slane %v91_v34, 1  ;;  %v69_v39 = vsel %vm623_vm6, %v65_v35, 0  ;;  %v152_v56 = vrot.slane %v113_v31, 1  ;;  %v133_v59 = vshll.u32 %v91_v34, 16 }
  0x17   : > { %v124_v40 = vrot.slane %v69_v39, 1  ;;  %v115_v41 = vshrl.u32 %v69_v39, 16  ;;  %v117_v42 = vshll.u32 %v69_v39, 16  ;;  %v148_v45 = vrot.slane %v146_v36, 1 }
  0x18   : > { %138 = vrot.lane.b32.xlu0 %v137_v38, %s540_s25  ;;  %476 = vmatpush3.bf16.msra.mxu0 %v522_v46  ;;  %v131_v61 = vshrl.u32 %v91_v34, 16  ;;  %v135_v62 = vrot.slane %v133_v59, 1 }
  0x19   : > { %125 = vrot.lane.b32.xlu1 %v124_v40, %s539_s22  ;;  %v119_v44 = vrot.slane %v117_v42, 1  ;;  %v149_v50 = vor.u32 %v148_v45, %v144_v43  ;;  %477 = vmatprep.subr.bf16.mxu0 %v523_v48  ;;  %s406_s22 = scalar_lea.vmem %s702_s4, %s604_s0 }
  0x1a   : > { %497 = vmatmul.mubr.msk.bf16.vlgmr.msra.gmra.mrb[0].mxu1 %vm153_vm8, %v152_v56  ;;  %v136_v0 = vor.u32 %v135_v62, %v131_v61  ;;  %v407_v18 = vld [vmem:[%s406_s22] sm:$0x3] }
  0x1b   : > { %v120_v47 = vor.u32 %v119_v44, %v115_v41  ;;  %v408_v23 = vunpack.c.l.bf16 %v407_v18 }
  0x1c   : > { %478 = vmatpush3.bf16.msra.mxu0 %v524_v52 }
  0x1d   : > { %121 = vrot.lane.b32.xlu0 %v120_v47, %s540_s25  ;;  %128 = vrot.lane.b32.xlu1 %v91_v34, %s542_s1 }
  0x1e   : > { %479 = vmatprep.subr.bf16.mxu0 %v525_v53 }
  0x20   : > { %480 = vmatpush3.bf16.msra.mxu0 %v526_v55 }
  0x21   : > { %150 = vrot.lane.b32.xlu0 %v149_v50, %s542_s1  ;;  %481 = vmatprep.subr.bf16.mxu0 %v528_v57 }
  0x24   : > { %482 = vmatpush3.bf16.msra.mxu0 %v529_v58 }
  0x87   : > { %v142_v60 = vpop.permute.xlu1 %141 }
  0x8a   : > { %v139_v63 = vpop.permute.xlu0 %138 }
  0x8b   : > { %v126_v1 = vpop.permute.xlu1 %125  ;;  %v165_v3 = vsel %vm153_vm8, %v136_v0, %v139_v63 }
  0x8c   : > { %v167_v8 = vsel %vm156_vm9, %v165_v3, %v142_v60 }
  0x8f   : > { %v122_v2 = vpop.permute.xlu0 %121  ;;  %v129_v5 = vpop.permute.xlu1 %128 }
  0x90   : > { %v155_v4 = vsel %vm153_vm8, %v69_v39, %v122_v2 }
  0x91   : > { %v158_v6 = vsel %vm156_vm9, %v155_v4, %v126_v1 }
  0x92   : > { %v161_v10 = vsel %vm159_vm10, %v158_v6, %v129_v5 }
  0x93   : > { %v151_v7 = vpop.permute.xlu0 %150 }
  0x94   : > { %v169_v9 = vsel %vm159_vm10, %v167_v8, %v151_v7 }
  0x95   : > { %357 = vmatprep.mubr.bf16.mxu0 %v169_v9 }
  0x96   : > { %358 = vmatmul.mubr.bf16.vlgmr.msra.gmra.mrb[0].mxu0 %v161_v10 }
  0xed   : > { %v399_v11 = vpop.f32.mrb[0].mxu1 }
  0xee   : > { %v498_v12 = vpop.f32.mrb[1].mxu1 }
  0xef   : > { %v402_v13 = vpop.f32.mrb[2].mxu1 }
  0xf0   : > { %v499_v14 = vpop.f32.mrb[3].mxu1 }
 0x169   : > { %v483_v15 = vpop.f32.mrb[0].mxu0 }
 0x16a   : > { %v484_v16 = vpop.f32.mrb[1].mxu0 }
 0x16b   : > { %v485_v19 = vadd.f32 %v484_v16, %v483_v15  ;;  %v486_v20 = vpop.f32.mrb[2].mxu0 }
 0x16c   : > { %v487_v21 = vpop.f32.mrb[3].mxu0 }
 0x16d   : > { %v360_v22 = vadd.f32 %v485_v19, %v445_v17 }
 0x16f   : > { %v400_v24 = vadd.f32 %v399_v11, %v360_v22 }
 0x171   : > { %v409_v25 = vadd.f32 %v408_v23, %v400_v24  ;;  %41 = sbr.rel (!%p39_p0) target bundleno = 6 (0x6), region = 55 }
 0x173   : > { %v410_v26 = vmax.f32 %v409_v25, 0.0 }
 0x175   : > { %v411_v27 = vpack.c.bf16 %v410_v26, %v410_v26 }
 0x177   : > { %414 = vst.msk [vmem:[%s413_s27] sm:$0x3] %vm22_vm0, %v411_v27 }

// kernel: alike_forward.24
= control target key start
LH: loop header
LB: loop body
LE: loop exit
PB: predicated region body
PF: predicated region fallthrough
CT: control target
= control target key end

     0   :  { %vm19_vm0 = vcmask 253952   ;;  %vm20_vm1 = vsmask.f32 256  ;;  %v22_v0 = vld [vmem:[#allocation2] sm:$0x1]  ;;  %v48_v1 = vlaneseq  ;;  %vm56_vm3 = vcmask 1040384   ;;  %s607_s0 = inlined_call_operand.vmem [shape: bf16[1,1,1,32], index: 0, kind: input, shape index: {}]   ;;  %s608_s1 = inlined_call_operand.vmem [shape: bf16[1,1,2,1,32], index: 1, kind: input, shape index: {}]   ;;  %s609_s2 = inlined_call_operand.vmem [shape: bf16[288,32], index: 2, kind: input, shape index: {}]   ;;  %s610_s3 = inlined_call_operand.vmem [shape: f32[1,32], index: 3, kind: input, shape index: {}]   ;;  %s611_s4 = inlined_call_operand.vmem [shape: bf16[1,1,1,32], index: 4, kind: output, shape index: {}]  }
   0x1   :  { %v18_v2 = vld [vmem:[%s608_s1] sm:$0x1]  ;;  %vm508_vm2 = vmand %vm19_vm0, %vm20_vm1  ;;  %v27_v6 = vld [vmem:[#allocation2 + $0x1] sm:$0x1]  ;;  %v473_v9 = vmov 1966171168  }
   0x2   :  { %v25_v4 = vld [vmem:[%s607_s0] sm:$0x1]  ;;  %v23_v5 = vsel %vm508_vm2, %v18_v2, %v22_v0  ;;  %v388_v7 = vld [vmem:[%s608_s1 + $0x1] sm:$0x1]  ;;  %v33_v8 = vld [vmem:[#allocation2 + $0x2] sm:$0x1]  ;;  %v46_v10 = vunpack.c.l.s4 %v473_v9 }
   0x3   :  { %24 = vst [vmem:[#allocation2] sm:$0x1] %v23_v5  ;;  %v28_v11 = vsel %vm508_vm2, %v25_v4, %v27_v6  ;;  %v34_v12 = vsel %vm508_vm2, %v388_v7, %v33_v8  ;;  %v49_v13 = vshrl.u32 %v48_v1, 7  ;;  %v455_v14 = vld [vmem:[%s609_s2 + $0x40] sm:$0xff]   ;;  %v457_v17 = vld [vmem:[%s609_s2 + $0x48] sm:$0xff]   ;;  %v459_v20 = vld [vmem:[%s609_s2 + $0x50] sm:$0xff]  }
   0x4   :  { %29 = vst [vmem:[#allocation2 + $0x1] sm:$0x1] %v28_v11  ;;  %35 = vst [vmem:[#allocation2 + $0x2] sm:$0x1] %v34_v12  ;;  %v47_v15 = vunpack.c.0.s8 %v46_v10  ;;  %v456_v16 = vld [vmem:[%s609_s2] sm:$0xff]   ;;  %411 = vmatprep.subr.bf16.mxu0 %v455_v14  ;;  %v458_v19 = vld [vmem:[%s609_s2 + $0x8] sm:$0xff]  }
   0x5   :  { %412 = vmatpush3.bf16.msra.mxu0 %v456_v16  ;;  %v474_v21 = vmov 0.0   ;;  %v460_v23 = vld [vmem:[%s609_s2 + $0x10] sm:$0xff]   ;;  %v461_v24 = vld [vmem:[%s609_s2 + $0x58] sm:$0xff]   ;;  %vm547_vm4 = vmand %vm56_vm3, %vm20_vm1  ;;  %s475_s15 = smov 32   ;;  %s476_s16 = smov 64   ;;  %vm478_vm5 = vmmov 0  }
   0x6   :  { %v50_v18 = vsub.s32 %v47_v15, %v49_v13  ;;  %413 = vmatprep.subr.bf16.mxu0 %v457_v17  ;;  %436 = vmatprep.subr.bf16.mxu1 %v474_v21  ;;  %v462_v32 = vld [vmem:[%s609_s2 + $0x18] sm:$0xff]   ;;  %v463_v34 = vld [vmem:[%s609_s2 + $0x60] sm:$0xff]   ;;  %v465_v46 = vld [vmem:[%s609_s2 + $0x68] sm:$0xff]   ;;  %s477_s23 = smov 96   ;;  %vm133_vm6 = vcmask 261120   ;;  %vm136_vm7 = vcmask 523264  }
   0x7   :  { %v464_v44 = vld [vmem:[%s609_s2 + $0x20] sm:$0xff]   ;;  %v466_v50 = vld [vmem:[%s609_s2 + $0x28] sm:$0xff]   ;;  %v467_v51 = vld [vmem:[%s609_s2 + $0x70] sm:$0xff]   ;;  %440 = vmatprep.mubr.msk.bf16.mxu1 %vm478_vm5, %v474_v21  ;;  %vm139_vm8 = vcmask 785408  }
   0x8   :  { %v469_v49 = vld [vmem:[%s609_s2 + $0x80] sm:$0xff]   ;;  %v472_v52 = vld [vmem:[%s609_s2 + $0x88] sm:$0xff]   ;;  %v468_v54 = vld [vmem:[%s609_s2 + $0x30] sm:$0xff]  }
   0x9   :  { %414 = vmatpush3.bf16.msra.mxu0 %v458_v19  ;;  %437 = vmatpush3.bf16.msra.mxu1 %v469_v49  ;;  %v470_v55 = vld [vmem:[%s609_s2 + $0x78] sm:$0xff]   ;;  %v187_v14 = vld [vmem:[%s610_s3] sm:$0x1] }
   0xa   :  { %v389_v22 = vld.sshfl [vmem:[#allocation2] sm:$0x1 pattern:$0x75316420]  ;;  %415 = vmatprep.subr.bf16.mxu0 %v459_v20  ;;  %438 = vmatprep.subr.bf16.mxu1 %v474_v21  ;;  %v471_v56 = vld [vmem:[%s609_s2 + $0x38] sm:$0xff]  }
   0xb   :  { %v390_v25 = vld.sshfl [vmem:[#allocation2 + $0x1] sm:$0x1 pattern:$0x75316420]  ;;  %v51_v26 = vrot.slane %v389_v22, %v50_v18  ;;  %v381_v21 = vld [vmem:[%s611_s4] sm:$0x1] }
   0xc   :  { %v78_v28 = vrot.slane %v390_v25, %v50_v18  ;;  %v391_v29 = vld.sshfl [vmem:[#allocation2 + $0x2] sm:$0x1 pattern:$0x75316420] }
   0xd   :  { %v53_v30 = vshll.u32 %v51_v26, 16  ;;  %v101_v31 = vrot.slane %v391_v29, %v50_v18  ;;  %416 = vmatpush3.bf16.msra.mxu0 %v460_v23  ;;  %439 = vmatpush3.bf16.msra.mxu1 %v472_v52 }
   0xe   :  { %v80_v33 = vshll.u32 %v78_v28, 16  ;;  %417 = vmatprep.subr.bf16.mxu0 %v461_v24 }
   0xf   :  { %v58_v35 = vsel %vm547_vm4, 0, %v53_v30  ;;  %v103_v36 = vshll.u32 %v101_v31, 16 }
  0x10   :  { %v83_v37 = vsel %vm547_vm4, 0, %v80_v33  ;;  %v62_v38 = vsel %vm56_vm3, %v58_v35, 0 }
  0x11   :  { %v85_v39 = vsel %vm56_vm3, %v83_v37, 0  ;;  %v106_v40 = vsel %vm547_vm4, 0, %v103_v36  ;;  %v114_v41 = vrot.slane %v62_v38, 1  ;;  %418 = vmatpush3.bf16.msra.mxu0 %v462_v32  ;;  %v109_v47 = vshrl.u32 %v62_v38, 16 }
  0x12   :  { %v122_v42 = vrot.slane %v85_v39, 1  ;;  %v108_v43 = vsel %vm56_vm3, %v106_v40, 0  ;;  %419 = vmatprep.subr.bf16.mxu0 %v463_v34  ;;  %v120_v57 = vshrl.u32 %v85_v39, 16 }
  0x13   :  { %v450_v45 = vpack.i.bf16 %v114_v41, %v108_v43  ;;  %v128_v48 = vshrl.u32 %v108_v43, 16  ;;  %v132_v53 = vrot.slane %v108_v43, 1 }
  0x14   :  { %123 = vrot.lane.b32.xlu0 %v122_v42, %s475_s15 }
  0x15   :  { %451 = vrot.lane.b32.xlu1 %v450_v45, %s476_s16  ;;  %420 = vmatpush3.bf16.msra.mxu0 %v464_v44 }
  0x16   :  { %421 = vmatprep.subr.bf16.mxu0 %v465_v46  ;;  %441 = vmatmul.mubr.msk.bf16.vlgmr.msra.gmra.mrb[0].mxu1 %vm133_vm6, %v132_v53 }
  0x18   :  { %111 = vrot.lane.b32.xlu0 %v109_v47, %s475_s15 }
  0x19   :  { %130 = vrot.lane.b32.xlu1 %v128_v48, %s477_s23  ;;  %422 = vmatpush3.bf16.msra.mxu0 %v466_v50 }
  0x1a   :  { %423 = vmatprep.subr.bf16.mxu0 %v467_v51 }
  0x1c   :  { %118 = vrot.lane.b32.xlu0 %v85_v39, %s477_s23 }
  0x1d   :  { %424 = vmatpush3.bf16.msra.mxu0 %v468_v54 }
  0x1e   :  { %425 = vmatprep.subr.bf16.mxu0 %v470_v55 }
  0x21   :  { %426 = vmatpush3.bf16.msra.mxu0 %v471_v56 }
  0x86   :  { %v124_v58 = vpop.permute.xlu0 %123 }
  0x87   :  { %v452_v59 = vpop.permute.xlu1 %451  ;;  %v145_v61 = vsel %vm133_vm6, %v120_v57, %v124_v58 }
  0x88   :  { %v453_v60 = vunpack.i.l.bf16 %v452_v59  ;;  %v454_v62 = vunpack.i.h.bf16 %v452_v59 }
  0x8a   :  { %v112_v63 = vpop.permute.xlu0 %111  ;;  %v147_v0 = vsel %vm136_vm7, %v145_v61, %v453_v60 }
  0x8b   :  { %v135_v1 = vsel %vm133_vm6, %v62_v38, %v112_v63  ;;  %v131_v2 = vpop.permute.xlu1 %130 }
  0x8c   :  { %v149_v4 = vsel %vm139_vm8, %v147_v0, %v131_v2  ;;  %v138_v6 = vsel %vm136_vm7, %v135_v1, %v454_v62 }
  0x8d   :  { %331 = vmatprep.mubr.bf16.mxu0 %v149_v4 }
  0x8e   :  { %v119_v5 = vpop.permute.xlu0 %118 }
  0x8f   :  { %v141_v7 = vsel %vm139_vm8, %v138_v6, %v119_v5 }
  0x90   :  { %332 = vmatmul.mubr.bf16.vlgmr.msra.gmra.mrb[0].mxu0 %v141_v7 }
  0xe9   :  { %v373_v8 = vpop.f32.mrb[0].mxu1 }
  0xea   :  { %v442_v9 = vpop.f32.mrb[1].mxu1 }
  0xeb   :  { %v376_v10 = vpop.f32.mrb[2].mxu1 }
  0xec   :  { %v443_v11 = vpop.f32.mrb[3].mxu1 }
 0x163   :  { %v427_v12 = vpop.f32.mrb[0].mxu0 }
 0x164   :  { %v428_v13 = vpop.f32.mrb[1].mxu0 }
 0x165   :  { %v429_v15 = vadd.f32 %v428_v13, %v427_v12  ;;  %v430_v16 = vpop.f32.mrb[2].mxu0 }
 0x166   :  { %v431_v17 = vpop.f32.mrb[3].mxu0 }
 0x167   :  { %v334_v18 = vadd.f32 %v429_v15, %v187_v14 }
 0x169   :  { %v374_v19 = vadd.f32 %v373_v8, %v334_v18 }
 0x16b   :  { %v379_v20 = vmax.f32 %v374_v19, 0.0 }
 0x16d   :  { %v380_v22 = vpack.c.bf16 %v379_v20, %v379_v20 }
 0x16f   :  { %v382_v23 = vsel %vm508_vm2, %v380_v22, %v381_v21 }
 0x170   :  { %383 = vst [vmem:[%s611_s4] sm:$0x1] %v382_v23 }

// kernel: alike_forward.25
= control target key start
LH: loop header
LB: loop body
LE: loop exit
PB: predicated region body
PF: predicated region fallthrough
CT: control target
= control target key end

     0   :  { %v106_v0 = vmov 0.0   ;;  %vm107_vm0 = vmmov 0   ;;  %vm33_vm1 = vcmask 261120   ;;  %vm78_vm2 = vcmask 253952   ;;  %s146_s1 = inlined_call_operand.vmem [shape: bf16[32,32], index: 1, kind: input, shape index: {}]   ;;  %s147_s0 = inlined_call_operand.vmem [shape: bf16[1,1,32], index: 0, kind: input, shape index: {}]   ;;  %s148_s2 = inlined_call_operand.vmem [shape: f32[1,32], index: 2, kind: input, shape index: {}]   ;;  %s149_s3 = inlined_call_operand.vmem [shape: bf16[1,1,32], index: 3, kind: output, shape index: {}]  }
   0x1   :  { %94 = vmatprep.subr.bf16.mxu0 %v106_v0  ;;  %v104_v1 = vld [vmem:[%s146_s1] sm:$0xff]   ;;  %98 = vmatprep.mubr.msk.bf16.mxu0 %vm107_vm0, %v106_v0  ;;  %v105_v2 = vld [vmem:[%s146_s1 + $0x8] sm:$0xff]   ;;  %vm79_vm3 = vsmask.f32 256 }
   0x2   :  { %95 = vmatpush3.bf16.msra.mxu0 %v104_v1  ;;  %v15_v3 = vld [vmem:[%s147_s0] sm:$0x1]  ;;  %vm80_vm4 = vmand %vm78_vm2, %vm79_vm3 }
   0x3   :  { %96 = vmatprep.subr.bf16.mxu0 %v106_v0  ;;  %v20_v4 = vld [vmem:[%s148_s2] sm:$0x1] }
   0x4   :  { %v81_v8 = vld [vmem:[%s149_s3] sm:$0x1] }
   0x6   :  { %97 = vmatpush3.bf16.msra.mxu0 %v105_v2 }
   0x9   :  { %99 = vmatmul.mubr.msk.bf16.vlgmr.msra.gmra.mrb[0].mxu0 %vm33_vm1, %v15_v3 }
  0xdc   :  { %v71_v5 = vpop.f32.mrb[0].mxu0 }
  0xdd   :  { %v72_v6 = vadd.f32 %v71_v5, %v20_v4  ;;  %v100_v7 = vpop.f32.mrb[1].mxu0 }
  0xde   :  { %v74_v9 = vpop.f32.mrb[2].mxu0 }
  0xdf   :  { %v77_v10 = vpack.c.bf16 %v72_v6, %v72_v6  ;;  %v101_v11 = vpop.f32.mrb[3].mxu0 }
  0xe1   :  { %v82_v12 = vsel %vm80_vm4, %v77_v10, %v81_v8 }
  0xe2   :  { %83 = vst [vmem:[%s149_s3] sm:$0x1] %v82_v12 }

// kernel: alike_forward.26
= control target key start
LH: loop header
LB: loop body
LE: loop exit
PB: predicated region body
PF: predicated region fallthrough
CT: control target
= control target key end

     0   :  { %vm22_vm0 = vcmask 253952   ;;  %vm23_vm1 = vsmask.f32 256  ;;  %v25_v0 = vld [vmem:[#allocation2] sm:$0x1]  ;;  %v51_v1 = vlaneseq  ;;  %vm59_vm3 = vcmask 1040384   ;;  %s621_s0 = inlined_call_operand.vmem [shape: bf16[1,1,1,32], index: 0, kind: input, shape index: {}]   ;;  %s622_s1 = inlined_call_operand.vmem [shape: bf16[1,1,2,1,32], index: 1, kind: input, shape index: {}]   ;;  %s623_s2 = inlined_call_operand.vmem [shape: bf16[288,32], index: 2, kind: input, shape index: {}]   ;;  %s624_s3 = inlined_call_operand.vmem [shape: f32[1,32], index: 3, kind: input, shape index: {}]   ;;  %s625_s4 = inlined_call_operand.vmem [shape: bf16[1,1,1,32], index: 4, kind: input, shape index: {}]   ;;  %s626_s5 = inlined_call_operand.vmem [shape: bf16[1,1,1,32], index: 5, kind: output, shape index: {}]  }
   0x1   :  { %v21_v2 = vld [vmem:[%s622_s1] sm:$0x1]  ;;  %vm519_vm2 = vmand %vm22_vm0, %vm23_vm1  ;;  %v30_v6 = vld [vmem:[#allocation2 + $0x1] sm:$0x1]  ;;  %v479_v9 = vmov 1966171168  }
   0x2   :  { %v28_v4 = vld [vmem:[%s621_s0] sm:$0x1]  ;;  %v26_v5 = vsel %vm519_vm2, %v21_v2, %v25_v0  ;;  %v394_v7 = vld [vmem:[%s622_s1 + $0x1] sm:$0x1]  ;;  %v36_v8 = vld [vmem:[#allocation2 + $0x2] sm:$0x1]  ;;  %v49_v10 = vunpack.c.l.s4 %v479_v9 }
   0x3   :  { %27 = vst [vmem:[#allocation2] sm:$0x1] %v26_v5  ;;  %v31_v11 = vsel %vm519_vm2, %v28_v4, %v30_v6  ;;  %v37_v12 = vsel %vm519_vm2, %v394_v7, %v36_v8  ;;  %v52_v13 = vshrl.u32 %v51_v1, 7  ;;  %v461_v14 = vld [vmem:[%s623_s2 + $0x40] sm:$0xff]   ;;  %v463_v17 = vld [vmem:[%s623_s2 + $0x48] sm:$0xff]   ;;  %v465_v20 = vld [vmem:[%s623_s2 + $0x50] sm:$0xff]  }
   0x4   :  { %32 = vst [vmem:[#allocation2 + $0x1] sm:$0x1] %v31_v11  ;;  %38 = vst [vmem:[#allocation2 + $0x2] sm:$0x1] %v37_v12  ;;  %v50_v15 = vunpack.c.0.s8 %v49_v10  ;;  %v462_v16 = vld [vmem:[%s623_s2] sm:$0xff]   ;;  %417 = vmatprep.subr.bf16.mxu0 %v461_v14  ;;  %v464_v19 = vld [vmem:[%s623_s2 + $0x8] sm:$0xff]  }
   0x5   :  { %418 = vmatpush3.bf16.msra.mxu0 %v462_v16  ;;  %v480_v21 = vmov 0.0   ;;  %v466_v23 = vld [vmem:[%s623_s2 + $0x10] sm:$0xff]   ;;  %v467_v24 = vld [vmem:[%s623_s2 + $0x58] sm:$0xff]   ;;  %vm558_vm4 = vmand %vm59_vm3, %vm23_vm1  ;;  %s481_s19 = smov 32   ;;  %s482_s20 = smov 64   ;;  %vm484_vm5 = vmmov 0  }
   0x6   :  { %v53_v18 = vsub.s32 %v50_v15, %v52_v13  ;;  %419 = vmatprep.subr.bf16.mxu0 %v463_v17  ;;  %442 = vmatprep.subr.bf16.mxu1 %v480_v21  ;;  %v468_v32 = vld [vmem:[%s623_s2 + $0x18] sm:$0xff]   ;;  %v469_v34 = vld [vmem:[%s623_s2 + $0x60] sm:$0xff]   ;;  %v471_v46 = vld [vmem:[%s623_s2 + $0x68] sm:$0xff]   ;;  %s483_s27 = smov 96   ;;  %vm136_vm6 = vcmask 261120   ;;  %vm139_vm7 = vcmask 523264  }
   0x7   :  { %v470_v44 = vld [vmem:[%s623_s2 + $0x20] sm:$0xff]   ;;  %v472_v50 = vld [vmem:[%s623_s2 + $0x28] sm:$0xff]   ;;  %v473_v51 = vld [vmem:[%s623_s2 + $0x70] sm:$0xff]   ;;  %446 = vmatprep.mubr.msk.bf16.mxu1 %vm484_vm5, %v480_v21  ;;  %vm142_vm8 = vcmask 785408  }
   0x8   :  { %v475_v49 = vld [vmem:[%s623_s2 + $0x80] sm:$0xff]   ;;  %v478_v52 = vld [vmem:[%s623_s2 + $0x88] sm:$0xff]   ;;  %v474_v54 = vld [vmem:[%s623_s2 + $0x30] sm:$0xff]  }
   0x9   :  { %420 = vmatpush3.bf16.msra.mxu0 %v464_v19  ;;  %443 = vmatpush3.bf16.msra.mxu1 %v475_v49  ;;  %v476_v55 = vld [vmem:[%s623_s2 + $0x78] sm:$0xff]   ;;  %v190_v14 = vld [vmem:[%s624_s3] sm:$0x1] }
   0xa   :  { %v395_v22 = vld.sshfl [vmem:[#allocation2] sm:$0x1 pattern:$0x75316420]  ;;  %421 = vmatprep.subr.bf16.mxu0 %v465_v20  ;;  %444 = vmatprep.subr.bf16.mxu1 %v480_v21  ;;  %v477_v56 = vld [vmem:[%s623_s2 + $0x38] sm:$0xff]  }
   0xb   :  { %v396_v25 = vld.sshfl [vmem:[#allocation2 + $0x1] sm:$0x1 pattern:$0x75316420]  ;;  %v54_v26 = vrot.slane %v395_v22, %v53_v18  ;;  %v382_v15 = vld [vmem:[%s625_s4] sm:$0x1] }
   0xc   :  { %v81_v28 = vrot.slane %v396_v25, %v53_v18  ;;  %v397_v29 = vld.sshfl [vmem:[#allocation2 + $0x2] sm:$0x1 pattern:$0x75316420]  ;;  %v383_v20 = vunpack.c.l.bf16 %v382_v15 }
   0xd   :  { %v56_v30 = vshll.u32 %v54_v26, 16  ;;  %v104_v31 = vrot.slane %v397_v29, %v53_v18  ;;  %422 = vmatpush3.bf16.msra.mxu0 %v466_v23  ;;  %445 = vmatpush3.bf16.msra.mxu1 %v478_v52 }
   0xe   :  { %v83_v33 = vshll.u32 %v81_v28, 16  ;;  %423 = vmatprep.subr.bf16.mxu0 %v467_v24  ;;  %v387_v24 = vld [vmem:[%s626_s5] sm:$0x1] }
   0xf   :  { %v61_v35 = vsel %vm558_vm4, 0, %v56_v30  ;;  %v106_v36 = vshll.u32 %v104_v31, 16 }
  0x10   :  { %v86_v37 = vsel %vm558_vm4, 0, %v83_v33  ;;  %v65_v38 = vsel %vm59_vm3, %v61_v35, 0 }
  0x11   :  { %v88_v39 = vsel %vm59_vm3, %v86_v37, 0  ;;  %v109_v40 = vsel %vm558_vm4, 0, %v106_v36  ;;  %v117_v41 = vrot.slane %v65_v38, 1  ;;  %424 = vmatpush3.bf16.msra.mxu0 %v468_v32  ;;  %v112_v47 = vshrl.u32 %v65_v38, 16 }
  0x12   :  { %v125_v42 = vrot.slane %v88_v39, 1  ;;  %v111_v43 = vsel %vm59_vm3, %v109_v40, 0  ;;  %425 = vmatprep.subr.bf16.mxu0 %v469_v34  ;;  %v123_v57 = vshrl.u32 %v88_v39, 16 }
  0x13   :  { %v456_v45 = vpack.i.bf16 %v117_v41, %v111_v43  ;;  %v131_v48 = vshrl.u32 %v111_v43, 16  ;;  %v135_v53 = vrot.slane %v111_v43, 1 }
  0x14   :  { %126 = vrot.lane.b32.xlu0 %v125_v42, %s481_s19 }
  0x15   :  { %457 = vrot.lane.b32.xlu1 %v456_v45, %s482_s20  ;;  %426 = vmatpush3.bf16.msra.mxu0 %v470_v44 }
  0x16   :  { %427 = vmatprep.subr.bf16.mxu0 %v471_v46  ;;  %447 = vmatmul.mubr.msk.bf16.vlgmr.msra.gmra.mrb[0].mxu1 %vm136_vm6, %v135_v53 }
  0x18   :  { %114 = vrot.lane.b32.xlu0 %v112_v47, %s481_s19 }
  0x19   :  { %133 = vrot.lane.b32.xlu1 %v131_v48, %s483_s27  ;;  %428 = vmatpush3.bf16.msra.mxu0 %v472_v50 }
  0x1a   :  { %429 = vmatprep.subr.bf16.mxu0 %v473_v51 }
  0x1c   :  { %121 = vrot.lane.b32.xlu0 %v88_v39, %s483_s27 }
  0x1d   :  { %430 = vmatpush3.bf16.msra.mxu0 %v474_v54 }
  0x1e   :  { %431 = vmatprep.subr.bf16.mxu0 %v476_v55 }
  0x21   :  { %432 = vmatpush3.bf16.msra.mxu0 %v477_v56 }
  0x86   :  { %v127_v58 = vpop.permute.xlu0 %126 }
  0x87   :  { %v458_v59 = vpop.permute.xlu1 %457  ;;  %v148_v61 = vsel %vm136_vm6, %v123_v57, %v127_v58 }
  0x88   :  { %v459_v60 = vunpack.i.l.bf16 %v458_v59  ;;  %v460_v62 = vunpack.i.h.bf16 %v458_v59 }
  0x8a   :  { %v115_v63 = vpop.permute.xlu0 %114  ;;  %v150_v0 = vsel %vm139_vm7, %v148_v61, %v459_v60 }
  0x8b   :  { %v138_v1 = vsel %vm136_vm6, %v65_v38, %v115_v63  ;;  %v134_v2 = vpop.permute.xlu1 %133 }
  0x8c   :  { %v152_v4 = vsel %vm142_vm8, %v150_v0, %v134_v2  ;;  %v141_v6 = vsel %vm139_vm7, %v138_v1, %v460_v62 }
  0x8d   :  { %334 = vmatprep.mubr.bf16.mxu0 %v152_v4 }
  0x8e   :  { %v122_v5 = vpop.permute.xlu0 %121 }
  0x8f   :  { %v144_v7 = vsel %vm142_vm8, %v141_v6, %v122_v5 }
  0x90   :  { %335 = vmatmul.mubr.bf16.vlgmr.msra.gmra.mrb[0].mxu0 %v144_v7 }
  0xe9   :  { %v376_v8 = vpop.f32.mrb[0].mxu1 }
  0xea   :  { %v448_v9 = vpop.f32.mrb[1].mxu1 }
  0xeb   :  { %v379_v10 = vpop.f32.mrb[2].mxu1 }
  0xec   :  { %v449_v11 = vpop.f32.mrb[3].mxu1 }
 0x163   :  { %v433_v12 = vpop.f32.mrb[0].mxu0 }
 0x164   :  { %v434_v13 = vpop.f32.mrb[1].mxu0 }
 0x165   :  { %v435_v16 = vadd.f32 %v434_v13, %v433_v12  ;;  %v436_v17 = vpop.f32.mrb[2].mxu0 }
 0x166   :  { %v437_v18 = vpop.f32.mrb[3].mxu0 }
 0x167   :  { %v337_v19 = vadd.f32 %v435_v16, %v190_v14 }
 0x169   :  { %v377_v21 = vadd.f32 %v376_v8, %v337_v19 }
 0x16b   :  { %v384_v22 = vadd.f32 %v383_v20, %v377_v21 }
 0x16d   :  { %v385_v23 = vmax.f32 %v384_v22, 0.0 }
 0x16f   :  { %v386_v25 = vpack.c.bf16 %v385_v23, %v385_v23 }
 0x171   :  { %v388_v26 = vsel %vm519_vm2, %v386_v25, %v387_v24 }
 0x172   :  { %389 = vst [vmem:[%s626_s5] sm:$0x1] %v388_v26 }

// kernel: alike_forward.29
= control target key start
LH: loop header
LB: loop body
LE: loop exit
PB: predicated region body
PF: predicated region fallthrough
CT: control target
= control target key end

     0   :  { %v107_v0 = vmov 0.0   ;;  %vm108_vm0 = vmmov 0   ;;  %vm33_vm1 = vcmask 261120   ;;  %vm79_vm2 = vcmask 57344   ;;  %s147_s1 = inlined_call_operand.vmem [shape: bf16[32,8], index: 1, kind: input, shape index: {}]   ;;  %s148_s0 = inlined_call_operand.vmem [shape: bf16[1,1,32], index: 0, kind: input, shape index: {}]   ;;  %s149_s2 = inlined_call_operand.vmem [shape: f32[1,8], index: 2, kind: input, shape index: {}]   ;;  %s150_s3 = inlined_call_operand.vmem [shape: bf16[1,1,8], index: 3, kind: output, shape index: {}]  }
   0x1   :  { %95 = vmatprep.subr.bf16.mxu0 %v107_v0  ;;  %v105_v1 = vld [vmem:[%s147_s1] sm:$0xff]   ;;  %99 = vmatprep.mubr.msk.bf16.mxu0 %vm108_vm0, %v107_v0  ;;  %v106_v2 = vld [vmem:[%s147_s1 + $0x8] sm:$0xff]   ;;  %vm80_vm3 = vsmask.f32 256 }
   0x2   :  { %96 = vmatpush3.bf16.msra.mxu0 %v105_v1  ;;  %v15_v3 = vld [vmem:[%s148_s0] sm:$0x1]  ;;  %vm81_vm4 = vmand %vm79_vm2, %vm80_vm3 }
   0x3   :  { %97 = vmatprep.subr.bf16.mxu0 %v107_v0  ;;  %v20_v4 = vld [vmem:[%s149_s2] sm:$0x1] }
   0x4   :  { %v82_v11 = vld [vmem:[%s150_s3] sm:$0x1] }
   0x6   :  { %98 = vmatpush3.bf16.msra.mxu0 %v106_v2 }
   0x9   :  { %100 = vmatmul.mubr.msk.bf16.vlgmr.msra.gmra.mrb[0].mxu0 %vm33_vm1, %v15_v3 }
  0xdc   :  { %v71_v5 = vpop.f32.mrb[0].mxu0 }
  0xdd   :  { %v72_v6 = vadd.f32 %v71_v5, %v20_v4  ;;  %v101_v7 = vpop.f32.mrb[1].mxu0 }
  0xde   :  { %v74_v8 = vpop.f32.mrb[2].mxu0 }
  0xdf   :  { %v77_v9 = vmax.f32 %v72_v6, 0.0  ;;  %v102_v10 = vpop.f32.mrb[3].mxu0 }
  0xe1   :  { %v78_v12 = vpack.c.bf16 %v77_v9, %v77_v9 }
  0xe3   :  { %v83_v13 = vsel %vm81_vm4, %v78_v12, %v82_v11 }
  0xe4   :  { %84 = vst [vmem:[%s150_s3] sm:$0x1] %v83_v13 }

// kernel: alike_forward.28
= control target key start
LH: loop header
LB: loop body
LE: loop exit
PB: predicated region body
PF: predicated region fallthrough
CT: control target
= control target key end

     0   :  { %v132_v0 = vmov 0.0   ;;  %vm133_vm0 = vmmov 0   ;;  %vm45_vm1 = vcmask 261120   ;;  %vm100_vm2 = vcmask 60416   ;;  %s172_s1 = inlined_call_operand.vmem [shape: bf16[32,8], index: 1, kind: input, shape index: {}]   ;;  %s173_s0 = inlined_call_operand.vmem [shape: bf16[1,16,32], index: 0, kind: input, shape index: {}]   ;;  %s174_s2 = inlined_call_operand.vmem [shape: f32[1,8], index: 2, kind: input, shape index: {}]   ;;  %s175_s3 = inlined_call_operand.vmem [shape: bf16[1,16,8], index: 3, kind: output, shape index: {}]  }
   0x1   :  { %119 = vmatprep.subr.bf16.mxu0 %v132_v0  ;;  %v129_v1 = vld [vmem:[%s172_s1] sm:$0xff]   ;;  %123 = vmatprep.mubr.msk.bf16.mxu0 %vm133_vm0, %v132_v0  ;;  %v130_v2 = vld [vmem:[%s172_s1 + $0x8] sm:$0xff]  }
   0x2   :  { %120 = vmatpush3.bf16.msra.mxu0 %v129_v1  ;;  %v131_v3 = vld [vmem:[%s173_s0] sm:$0xff]  }
   0x3   :  { %121 = vmatprep.subr.bf16.mxu0 %v132_v0  ;;  %v107_v4 = vld [vmem:[%s174_s2] ss:$0 sm:$0xff] }
   0x6   :  { %122 = vmatpush3.bf16.msra.mxu0 %v130_v2 }
   0x9   :  { %124 = vmatmul.mubr.msk.bf16.vlgmr.msra.gmra.mrb[0].mxu0 %vm45_vm1, %v131_v3 }
  0xdc   :  { %v83_v5 = vpop.f32.mrb[0].mxu0 }
  0xdd   :  { %v84_v6 = vadd.f32 %v107_v4, %v83_v5  ;;  %v125_v7 = vpop.f32.mrb[1].mxu0 }
  0xde   :  { %v86_v8 = vpop.f32.mrb[2].mxu0 }
  0xdf   :  { %v90_v9 = vmax.f32 %v84_v6, 0.0  ;;  %v87_v10 = vadd.f32 %v107_v4, %v86_v8  ;;  %v126_v11 = vpop.f32.mrb[3].mxu0 }
  0xe1   :  { %v114_v12 = vpack.c.bf16 %v90_v9, %v90_v9  ;;  %v91_v13 = vmax.f32 %v87_v10, 0.0 }
  0xe3   :  { %101 = vst.msk [vmem:[%s175_s3] sm:$0xf] %vm100_vm2, %v114_v12  ;;  %v115_v14 = vpack.c.bf16 %v91_v13, %v91_v13 }
  0xe5   :  { %102 = vst.msk [vmem:[%s175_s3 + $0x4] sm:$0xf] %vm100_vm2, %v115_v14 }

// kernel: alike_forward.30
= control target key start
LH: loop header
LB: loop body
LE: loop exit
PB: predicated region body
PF: predicated region fallthrough
CT: control target
= control target key end

     0   :  { %s1872_s21 = smov 0   ;;  %s1874_s22 = smov 0   ;;  %s2163_s0 = inlined_call_operand.vmem [shape: bf16[1,1024,8], index: 0, kind: input, shape index: {}]   ;;  %s2164_s1 = inlined_call_operand.vmem [shape: bf16[1,1024,24], index: 1, kind: input, shape index: {}]   ;;  %s2165_s2 = inlined_call_operand.vmem [shape: bf16[8,8], index: 2, kind: input, shape index: {}]   ;;  %s2166_s3 = inlined_call_operand.vmem [shape: bf16[32,32], index: 3, kind: input, shape index: {}]   ;;  %s2167_s4 = inlined_call_operand.vmem [shape: bf16[32,33], index: 4, kind: input, shape index: {}]   ;;  %s2168_s5 = inlined_call_operand.vmem [shape: bf16[1,1024,32], index: 5, kind: output, shape index: {0}]   ;;  %s2169_s6 = inlined_call_operand.vmem [shape: f32[1,1024,1], index: 6, kind: output, shape index: {1}]  }
   0x1   :  { %s1876_s23 = smov 0  }
   0x2 LB: > { %s26_s24 = sadd.s32 1, %s1829_s22  ;;  %p1475_p0 = scmp.ge.s32.totalorder %s1833_s23, 1  ;;  %s1833_s23 = sphi %s1876_s23, %s17_s23   ;;  %s1829_s22 = sphi %s1874_s22, %s2171_s22   ;;  %s1825_s21 = sphi %s1872_s21, %s2170_s21  }
   0x3   : > { %p27_p1 = scmp.ge.s32.totalorder %s26_s24, 8  ;;  %p255_p2 = scmp.lt.s32.totalorder %s1833_s23, 9 }
   0x5   : > { %s2173_s24 = smov (%p27_p1, %s26_s24), 0  ;;  %p256_p3 = pnand %p1475_p0, %p255_p2 }
   0x6   : > { %v368_v0 = vld [vmem:[%s2165_s2] sm:$0xf] (!%p256_p3)  ;;  %vm434_vm0 = vcmask (!%p256_p3), 1043456   ;;  %s1476_s27 = sshll.u32 (!%p256_p3), %s1825_s21, 4  ;;  %vm409_vm1 = vcmask (!%p256_p3), 64512   ;;  %s1835_s13 = smov (!%p256_p3), 8  }
   0x7   : > { %259 = sbr.rel (%p256_p3) target bundleno = 972 (0x3cc), region = 40  ;;  %1667 = vmatprep.subr.msk.bf16.mxu0 (!%p256_p3), %vm434_vm0, %v368_v0  ;;  %v436_v1 = vsel (!%p256_p3), %vm434_vm0, %v368_v0, 0  ;;  %p314_p4 = scmp.lt.s32.totalorder (!%p256_p3), %s1476_s27, 127  ;;  %1668 = vmatprep.subr.msk.bf16.mxu1 (!%p256_p3), %vm434_vm0, %v368_v0  ;;  %v1711_v2 = vld [vmem:[%s2166_s3] sm:$0xff] (!%p256_p3)   ;;  %v1712_v19 = vld [vmem:[%s2166_s3 + $0x8] sm:$0xff] (!%p256_p3)   ;;  %vm671_vm2 = vcmask (!%p256_p3), 261120  }
   0x8   : > { %1608 = vmatpush3.bf16.msra.mxu0 (!%p256_p3), %v436_v1  ;;  %1666 = vmatpush3.bf16.msra.mxu1 (!%p256_p3), %v436_v1  ;;  %v1713_v20 = vld [vmem:[%s2167_s4] sm:$0xff] (!%p256_p3)   ;;  %s1836_s20 = smov (!%p256_p3), 96   ;;  %vm1122_vm3 = vcmask (!%p256_p3), 257024   ;;  %vm1299_vm4 = vcmask (!%p256_p3), 7168  }
   0x9   : > { %1625 = vmatprep.subr.bf16.mxu1 (!%p256_p3), %v1711_v2  ;;  %1645 = vmatprep.subr.bf16.mxu0 (!%p256_p3), %v1713_v20 }
   0xe   : > { %s2175_s27 = smov (!%p314_p4, %s1476_s27), 127 }
   0xf   : > { %s1899_s30 = sshll.u32 %s2175_s27, 2  ;;  %s1483_s28 = sshll.u32 %s2175_s27, 3 }
  0x10   : > { %s319_s9 = scalar_lea.vmem %s2163_s0, %s1899_s30  ;;  %s329_s12 = scalar_lea.vmem %s2164_s1, %s1899_s30 }
  0x11   : > { %v1695_v3 = vld [vmem:[%s319_s9] sm:$0xff]   ;;  %v1696_v4 = vld [vmem:[%s319_s9 + $0x8] sm:$0xff]   ;;  %v1697_v5 = vld [vmem:[%s319_s9 + $0x10] sm:$0xff]   ;;  %s2064_s26 = scalar_lea.vmem %s2168_s5, %s1899_s30  ;;  %s2081_s30 = scalar_lea.vmem %s2169_s6, %s1483_s28 }
  0x12   : > { %1609 = vmatprep.mubr.msk.bf16.mxu0 %vm409_vm1, %v1695_v3  ;;  %v1699_v6 = vld [vmem:[%s319_s9 + $0x20] sm:$0xff]   ;;  %v1700_v7 = vld [vmem:[%s319_s9 + $0x28] sm:$0xff]   ;;  %v1701_v8 = vld [vmem:[%s319_s9 + $0x30] sm:$0xff]  }
  0x13   : > { %1610 = vmatmul.mubr.msk.bf16.vlgmr.msra.gmra.mrb[0].mxu0 %vm409_vm1, %v1696_v4  ;;  %1617 = vmatprep.mubr.msk.bf16.mxu1 %vm409_vm1, %v1699_v6  ;;  %v1698_v9 = vld [vmem:[%s319_s9 + $0x18] sm:$0xff]   ;;  %v1703_v10 = vld [vmem:[%s329_s12] sm:$0xff]   ;;  %v1704_v11 = vld [vmem:[%s329_s12 + $0x8] sm:$0xff]  }
  0x14   : > { %1613 = vmatprep.mubr.msk.bf16.mxu0 %vm409_vm1, %v1697_v5  ;;  %1618 = vmatmul.mubr.msk.bf16.vlgmr.msra.gmra.mrb[0].mxu1 %vm409_vm1, %v1700_v7  ;;  %v1705_v12 = vld [vmem:[%s329_s12 + $0x10] sm:$0xff]   ;;  %v1702_v13 = vld [vmem:[%s319_s9 + $0x38] sm:$0xff]   ;;  %v1708_v15 = vld [vmem:[%s329_s12 + $0x20] sm:$0xff]  }
  0x15   : > { %1621 = vmatprep.mubr.msk.bf16.mxu1 %vm409_vm1, %v1701_v8  ;;  %1626 = vmatpush3.bf16.msra.mxu1 %v1711_v2  ;;  %v1706_v14 = vld [vmem:[%s329_s12 + $0x18] sm:$0xff]   ;;  %v1707_v16 = vld [vmem:[%s329_s12 + $0x28] sm:$0xff]   ;;  %v1709_v17 = vld [vmem:[%s329_s12 + $0x30] sm:$0xff]  }
  0x16   : > { %615 = vrot.lane.b32.xlu0 %v1703_v10, %s1835_s13  ;;  %619 = vrot.lane.b32.xlu1 %v1705_v12, %s1835_s13  ;;  %v1710_v18 = vld [vmem:[%s329_s12 + $0x38] sm:$0xff]  }
  0x17   : > { %1627 = vmatprep.subr.bf16.mxu1 %v1712_v19  ;;  %1646 = vmatpush3.bf16.msra.mxu0 %v1713_v20 }
  0x19   : > { %1628 = vmatpush3.bf16.msra.mxu1 %v1712_v19 }
  0x1a   : > { %617 = vrot.lane.b32.xlu0 %v1704_v11, %s1835_s13  ;;  %621 = vrot.lane.b32.xlu1 %v1706_v14, %s1835_s13 }
  0x1b   : > { %1614 = vmatmul.mubr.msk.bf16.gmra.mrb[4].mxu0 %vm409_vm1, %v1698_v9 }
  0x1c   : > { %1622 = vmatmul.mubr.msk.bf16.gmra.mrb[4].mxu1 %vm409_vm1, %v1702_v13  ;;  %v1714_v13 = vld [vmem:[%s2167_s4 + $0x8] sm:$0xff]  }
  0x1d   : > { %1647 = vmatprep.subr.bf16.mxu0 %v1714_v13 }
  0x1e   : > { %623 = vrot.lane.b32.xlu0 %v1708_v15, %s1835_s13  ;;  %625 = vrot.lane.b32.xlu1 %v1707_v16, %s1835_s13 }
  0x1f   : > { %1648 = vmatpush3.bf16.msra.mxu0 %v1714_v13 }
  0x22   : > { %627 = vrot.lane.b32.xlu0 %v1709_v17, %s1835_s13  ;;  %629 = vrot.lane.b32.xlu1 %v1710_v18, %s1835_s13 }
  0x88   : > { %v616_v22 = vpop.permute.xlu0 %615  ;;  %v620_v42 = vpop.permute.xlu1 %619 }
  0x8c   : > { %v618_v35 = vpop.permute.xlu0 %617  ;;  %v622_v60 = vpop.permute.xlu1 %621 }
  0x90   : > { %v624_v56 = vpop.permute.xlu0 %623  ;;  %v626_v8 = vpop.permute.xlu1 %625 }
  0x94   : > { %v628_v7 = vpop.permute.xlu0 %627  ;;  %v630_v11 = vpop.permute.xlu1 %629 }
  0xe6   : > { %v1611_v21 = vpop.f32.mrb[0].mxu0 }
  0xe7   : > { %v472_v23 = vpop.f32.mrb[1].mxu0  ;;  %v537_v25 = vmax.f32 %v1611_v21, 0.0  ;;  %v1619_v30 = vpop.f32.mrb[0].mxu1 }
  0xe8   : > { %v1612_v24 = vpop.f32.mrb[2].mxu0  ;;  %v535_v28 = vmax.f32 %v472_v23, 0.0  ;;  %v545_v32 = vmax.f32 %v1619_v30, 0.0  ;;  %v504_v33 = vpop.f32.mrb[1].mxu1 }
  0xe9   : > { %v538_v26 = vmax.f32 %v1612_v24, 0.0  ;;  %v475_v27 = vpop.f32.mrb[3].mxu0  ;;  %v543_v36 = vmax.f32 %v504_v33, 0.0  ;;  %v1620_v37 = vpop.f32.mrb[2].mxu1 }
  0xea   : > { %v536_v29 = vmax.f32 %v475_v27, 0.0  ;;  %v546_v38 = vmax.f32 %v1620_v37, 0.0  ;;  %v507_v39 = vpop.f32.mrb[3].mxu1 }
  0xeb   : > { %v552_v31 = vpack.c.bf16 %v538_v26, %v537_v25  ;;  %v544_v43 = vmax.f32 %v507_v39, 0.0 }
  0xec   : > { %v551_v34 = vpack.c.bf16 %v536_v29, %v535_v28  ;;  %v556_v46 = vpack.c.bf16 %v546_v38, %v545_v32 }
  0xed   : > { %v636_v44 = vsel %vm409_vm1, %v552_v31, %v618_v35  ;;  %v555_v48 = vpack.c.bf16 %v544_v43, %v543_v36 }
  0xee   : > { %v1615_v40 = vpop.f32.mrb[4].mxu0  ;;  %v633_v41 = vsel %vm409_vm1, %v551_v34, %v616_v22  ;;  %v648_v10 = vsel %vm409_vm1, %v556_v46, %v626_v8 }
  0xef   : > { %v488_v45 = vpop.f32.mrb[5].mxu0  ;;  %1629 = vmatprep.mubr.msk.bf16.mxu1 %vm671_vm2, %v633_v41  ;;  %v541_v49 = vmax.f32 %v1615_v40, 0.0  ;;  %v1623_v54 = vpop.f32.mrb[4].mxu1  ;;  %v645_v2 = vsel %vm409_vm1, %v555_v48, %v624_v56 }
  0xf0   : > { %v1616_v47 = vpop.f32.mrb[6].mxu0  ;;  %1630 = vmatmul.mubr.msk.bf16.vlgmr.msra.gmra.mrb[8].mxu1 %vm671_vm2, %v636_v44  ;;  %v539_v52 = vmax.f32 %v488_v45, 0.0  ;;  %v549_v57 = vmax.f32 %v1623_v54, 0.0  ;;  %v520_v58 = vpop.f32.mrb[5].mxu1 }
  0xf1   : > { %v542_v50 = vmax.f32 %v1616_v47, 0.0  ;;  %v491_v51 = vpop.f32.mrb[7].mxu0  ;;  %v547_v61 = vmax.f32 %v520_v58, 0.0  ;;  %v1624_v62 = vpop.f32.mrb[6].mxu1 }
  0xf2   : > { %v540_v53 = vmax.f32 %v491_v51, 0.0  ;;  %v550_v63 = vmax.f32 %v1624_v62, 0.0  ;;  %v523_v0 = vpop.f32.mrb[7].mxu1 }
  0xf3   : > { %v554_v55 = vpack.c.bf16 %v542_v50, %v541_v49  ;;  %v548_v3 = vmax.f32 %v523_v0, 0.0 }
  0xf4   : > { %v553_v59 = vpack.c.bf16 %v540_v53, %v539_v52  ;;  %v558_v5 = vpack.c.bf16 %v550_v63, %v549_v57 }
  0xf5   : > { %v642_v4 = vsel %vm409_vm1, %v554_v55, %v622_v60  ;;  %v557_v6 = vpack.c.bf16 %v548_v3, %v547_v61 }
  0xf6   : > { %v639_v1 = vsel %vm409_vm1, %v553_v59, %v620_v42  ;;  %v654_v12 = vsel %vm409_vm1, %v558_v5, %v630_v11 }
  0xf7   : > { %1633 = vmatprep.mubr.msk.bf16.mxu1 %vm671_vm2, %v639_v1  ;;  %v651_v9 = vsel %vm409_vm1, %v557_v6, %v628_v7 }
  0xf8   : > { %1634 = vmatmul.mubr.msk.bf16.gmra.mrb[12].mxu1 %vm671_vm2, %v642_v4 }
  0xf9   : > { %1637 = vmatprep.mubr.msk.bf16.mxu1 %vm671_vm2, %v645_v2 }
 0x100   : > { %1638 = vmatmul.mubr.msk.bf16.gmra.mrb[16].mxu1 %vm671_vm2, %v648_v10 }
 0x101   : > { %1641 = vmatprep.mubr.msk.bf16.mxu1 %vm671_vm2, %v651_v9 }
 0x108   : > { %1642 = vmatmul.mubr.msk.bf16.gmra.mrb[20].mxu1 %vm671_vm2, %v654_v12 }
 0x1c3   : > { %v1631_v14 = vpop.f32.mrb[8].mxu1 }
 0x1c4   : > { %v722_v15 = vpop.f32.mrb[9].mxu1  ;;  %v787_v17 = vmax.f32 %v1631_v14, 0.0 }
 0x1c5   : > { %v1632_v16 = vpop.f32.mrb[10].mxu1  ;;  %v785_v20 = vmax.f32 %v722_v15, 0.0 }
 0x1c6   : > { %v788_v18 = vmax.f32 %v1632_v16, 0.0  ;;  %v725_v19 = vpop.f32.mrb[11].mxu1 }
 0x1c7   : > { %v786_v21 = vmax.f32 %v725_v19, 0.0 }
 0x1c8   : > { %v802_v22 = vpack.c.bf16 %v788_v18, %v787_v17 }
 0x1c9   : > { %v801_v23 = vpack.c.bf16 %v786_v21, %v785_v20 }
 0x1cb   : > { %v1635_v24 = vpop.f32.mrb[12].mxu1  ;;  %1649 = vmatprep.mubr.msk.bf16.mxu0 %vm671_vm2, %v801_v23 }
 0x1cc   : > { %v738_v25 = vpop.f32.mrb[13].mxu1  ;;  %1650 = vmatmul.mubr.msk.bf16.vlgmr.msra.gmra.mrb[8].mxu0 %vm671_vm2, %v802_v22  ;;  %v791_v27 = vmax.f32 %v1635_v24, 0.0 }
 0x1cd   : > { %v1636_v26 = vpop.f32.mrb[14].mxu1  ;;  %v789_v30 = vmax.f32 %v738_v25, 0.0 }
 0x1ce   : > { %v792_v28 = vmax.f32 %v1636_v26, 0.0  ;;  %v741_v29 = vpop.f32.mrb[15].mxu1 }
 0x1cf   : > { %v790_v31 = vmax.f32 %v741_v29, 0.0 }
 0x1d0   : > { %v804_v32 = vpack.c.bf16 %v792_v28, %v791_v27 }
 0x1d1   : > { %v803_v33 = vpack.c.bf16 %v790_v31, %v789_v30 }
 0x1d3   : > { %v1639_v34 = vpop.f32.mrb[16].mxu1  ;;  %1653 = vmatprep.mubr.msk.bf16.mxu0 %vm671_vm2, %v803_v33 }
 0x1d4   : > { %v754_v35 = vpop.f32.mrb[17].mxu1  ;;  %1654 = vmatmul.mubr.msk.bf16.gmra.mrb[12].mxu0 %vm671_vm2, %v804_v32  ;;  %v795_v37 = vmax.f32 %v1639_v34, 0.0 }
 0x1d5   : > { %v1640_v36 = vpop.f32.mrb[18].mxu1  ;;  %v793_v40 = vmax.f32 %v754_v35, 0.0 }
 0x1d6   : > { %v796_v38 = vmax.f32 %v1640_v36, 0.0  ;;  %v757_v39 = vpop.f32.mrb[19].mxu1 }
 0x1d7   : > { %v794_v41 = vmax.f32 %v757_v39, 0.0 }
 0x1d8   : > { %v806_v42 = vpack.c.bf16 %v796_v38, %v795_v37 }
 0x1d9   : > { %v805_v43 = vpack.c.bf16 %v794_v41, %v793_v40 }
 0x1db   : > { %1657 = vmatprep.mubr.msk.bf16.mxu0 %vm671_vm2, %v805_v43  ;;  %v1643_v44 = vpop.f32.mrb[20].mxu1 }
 0x1dc   : > { %1658 = vmatmul.mubr.msk.bf16.gmra.mrb[16].mxu0 %vm671_vm2, %v806_v42  ;;  %v799_v45 = vmax.f32 %v1643_v44, 0.0  ;;  %v770_v46 = vpop.f32.mrb[21].mxu1 }
 0x1dd   : > { %v797_v47 = vmax.f32 %v770_v46, 0.0  ;;  %v1644_v48 = vpop.f32.mrb[22].mxu1 }
 0x1de   : > { %v800_v49 = vmax.f32 %v1644_v48, 0.0  ;;  %v773_v50 = vpop.f32.mrb[23].mxu1 }
 0x1df   : > { %v798_v51 = vmax.f32 %v773_v50, 0.0 }
 0x1e0   : > { %v808_v52 = vpack.c.bf16 %v800_v49, %v799_v45 }
 0x1e1   : > { %v807_v53 = vpack.c.bf16 %v798_v51, %v797_v47 }
 0x1e3   : > { %1661 = vmatprep.mubr.msk.bf16.mxu0 %vm671_vm2, %v807_v53 }
 0x1e4   : > { %1662 = vmatmul.mubr.msk.bf16.gmra.mrb[20].mxu0 %vm671_vm2, %v808_v52 }
 0x29f   : > { %v1950_v54 = vpop.f32.mrb[8].mxu0 }
 0x2a0   : > { %v1952_v55 = vpop.f32.mrb[9].mxu0  ;;  %v948_v56 = vmul.f32 %v1950_v54, %v1950_v54  ;;  %v1546_v2 = vmul.f32 -1.442695, %v1950_v54 }
 0x2a1   : > { %v1956_v57 = vpop.f32.mrb[10].mxu0  ;;  %v946_v60 = vmul.f32 %v1952_v55, %v1952_v55  ;;  %v1544_v40 = vmul.f32 -1.442695, %v1952_v55 }
 0x2a2   : > { %v1958_v58 = vpop.f32.mrb[11].mxu0  ;;  %v968_v59 = vsel %vm671_vm2, %v948_v56, 0.0  ;;  %v949_v0 = vmul.f32 %v1956_v57, %v1956_v57  ;;  %1715 = vpow2.f32 %v1546_v2 }
 0x2a3   : > { %969 = vadd.xlane.f32.xlu0 %v968_v59  ;;  %v947_v61 = vmul.f32 %v1958_v58, %v1958_v58  ;;  %v962_v63 = vsel %vm671_vm2, %v946_v60, 0.0  ;;  %v1545_v23 = vmul.f32 -1.442695, %v1958_v58 }
 0x2a4   : > { %v971_v7 = vsel %vm671_vm2, %v949_v0, 0.0 }
 0x2a5   : > { %v965_v62 = vsel %vm671_vm2, %v947_v61, 0.0  ;;  %1717 = vpow2.f32 %v1545_v23 }
 0x2a6   : > { %966 = vadd.xlane.f32.xlu1 %v965_v62 }
 0x2a7   : > { %963 = vadd.xlane.f32.xlu0 %v962_v63  ;;  %v1969_v1 = vpop.f32.mrb[12].mxu0 }
 0x2a8   : > { %v1972_v3 = vpop.f32.mrb[13].mxu0  ;;  %v952_v4 = vmul.f32 %v1969_v1, %v1969_v1  ;;  %v1550_v42 = vmul.f32 -1.442695, %v1969_v1 }
 0x2a9   : > { %v1976_v5 = vpop.f32.mrb[14].mxu0  ;;  %v950_v9 = vmul.f32 %v1972_v3, %v1972_v3  ;;  %v1548_v45 = vmul.f32 -1.442695, %v1972_v3 }
 0x2aa   : > { %v1978_v6 = vpop.f32.mrb[15].mxu0  ;;  %v980_v8 = vsel %vm671_vm2, %v952_v4, 0.0  ;;  %v953_v10 = vmul.f32 %v1976_v5, %v1976_v5 }
 0x2ab   : > { %972 = vadd.xlane.f32.xlu0 %v971_v7  ;;  %981 = vadd.xlane.f32.xlu1 %v980_v8  ;;  %v974_v11 = vsel %vm671_vm2, %v950_v9, 0.0  ;;  %v951_v13 = vmul.f32 %v1978_v6, %v1978_v6 }
 0x2ac   : > { %v983_v12 = vsel %vm671_vm2, %v953_v10, 0.0  ;;  %v1716_v24 = vpop.eup %1715 }
 0x2ad   : > { %v977_v19 = vsel %vm671_vm2, %v951_v13, 0.0  ;;  %v1189_v30 = vadd.f32 1.0, %v1716_v24  ;;  %v1547_v13 = vmul.f32 -1.442695, %v1956_v57 }
 0x2af   : > { %975 = vadd.xlane.f32.xlu1 %v974_v11  ;;  %984 = vadd.xlane.f32.xlu0 %v983_v12  ;;  %v1990_v14 = vpop.f32.mrb[16].mxu0  ;;  %1719 = vrcp.f32 %v1189_v30  ;;  %v1718_v36 = vpop.eup %1717 }
 0x2b0   : > { %v1992_v15 = vpop.f32.mrb[17].mxu0  ;;  %v956_v16 = vmul.f32 %v1990_v14, %v1990_v14  ;;  %v1188_v37 = vadd.f32 1.0, %v1718_v36  ;;  %v1554_v48 = vmul.f32 -1.442695, %v1990_v14 }
 0x2b1   : > { %v1996_v17 = vpop.f32.mrb[18].mxu0  ;;  %v954_v21 = vmul.f32 %v1992_v15, %v1992_v15  ;;  %v1552_v50 = vmul.f32 -1.442695, %v1992_v15 }
 0x2b2   : > { %v1998_v18 = vpop.f32.mrb[19].mxu0  ;;  %v992_v20 = vsel %vm671_vm2, %v956_v16, 0.0  ;;  %v957_v22 = vmul.f32 %v1996_v17, %v1996_v17  ;;  %1721 = vrcp.f32 %v1188_v37  ;;  %v1555_v24 = vmul.f32 -1.442695, %v1996_v17 }
 0x2b3   : > { %978 = vadd.xlane.f32.xlu0 %v977_v19  ;;  %993 = vadd.xlane.f32.xlu1 %v992_v20  ;;  %v986_v25 = vsel %vm671_vm2, %v954_v21, 0.0  ;;  %v955_v27 = vmul.f32 %v1998_v18, %v1998_v18  ;;  %1723 = vpow2.f32 %v1544_v40  ;;  %v1551_v19 = vmul.f32 -1.442695, %v1976_v5 }
 0x2b4   : > { %v995_v26 = vsel %vm671_vm2, %v957_v22, 0.0  ;;  %1725 = vpow2.f32 %v1550_v42  ;;  %v1549_v21 = vmul.f32 -1.442695, %v1978_v6 }
 0x2b5   : > { %v989_v32 = vsel %vm671_vm2, %v955_v27, 0.0  ;;  %1727 = vpow2.f32 %v1548_v45 }
 0x2b7   : > { %987 = vadd.xlane.f32.xlu1 %v986_v25  ;;  %996 = vadd.xlane.f32.xlu0 %v995_v26  ;;  %v2011_v28 = vpop.f32.mrb[20].mxu0  ;;  %v1553_v26 = vmul.f32 -1.442695, %v1998_v18 }
 0x2b8   : > { %v2013_v29 = vpop.f32.mrb[21].mxu0  ;;  %v960_v41 = vmul.f32 %v2011_v28, %v2011_v28  ;;  %v1558_v60 = vmul.f32 -1.442695, %v2011_v28 }
 0x2b9   : > { %v2015_v31 = vpop.f32.mrb[22].mxu0  ;;  %v1720_v38 = vpop.eup %1719  ;;  %v1556_v52 = vmul.f32 -1.442695, %v2013_v29  ;;  %v958_v22 = vmul.f32 %v2013_v29, %v2013_v29 }
 0x2ba   : > { %v961_v33 = vmul.f32 %v2015_v31, %v2015_v31  ;;  %v2020_v34 = vpop.f32.mrb[23].mxu0  ;;  %v1004_v44 = vsel %vm671_vm2, %v960_v41, 0.0  ;;  %v1559_v37 = vmul.f32 -1.442695, %v2015_v31 }
 0x2bb   : > { %990 = vadd.xlane.f32.xlu0 %v989_v32  ;;  %v959_v47 = vmul.f32 %v2020_v34, %v2020_v34  ;;  %v998_v27 = vsel %vm671_vm2, %v958_v22, 0.0 }
 0x2bc   : > { %v1007_v35 = vsel %vm671_vm2, %v961_v33, 0.0  ;;  %v1722_v39 = vpop.eup %1721  ;;  %v1557_v33 = vmul.f32 -1.442695, %v2020_v34 }
 0x2bd   : > { %v1724_v43 = vpop.eup %1723  ;;  %v1001_v49 = vsel %vm671_vm2, %v959_v47, 0.0 }
 0x2be   : > { %v1187_v46 = vadd.f32 1.0, %v1724_v43  ;;  %v1726_v51 = vpop.eup %1725 }
 0x2bf   : > { %1008 = vadd.xlane.f32.xlu0 %v1007_v35  ;;  %v1728_v53 = vpop.eup %1727  ;;  %v1193_v56 = vadd.f32 1.0, %v1726_v51 }
 0x2c0   : > { %1729 = vrcp.f32 %v1187_v46  ;;  %v1191_v61 = vadd.f32 1.0, %v1728_v53 }
 0x2c1   : > { %1731 = vpow2.f32 %v1554_v48 }
 0x2c2   : > { %1733 = vpow2.f32 %v1552_v50 }
 0x2c3   : > { %1735 = vpow2.f32 %v1556_v52 }
 0x2c4   : > { %1737 = vrcp.f32 %v1193_v56 }
 0x2c5   : > { %1739 = vpow2.f32 %v1558_v60 }
 0x2c6   : > { %1741 = vrcp.f32 %v1191_v61 }
 0x2c8   : > { %1255 = vrot.lane.b32.xlu1 %v1720_v38, %s1836_s20 }
 0x2ca   : > { %v1730_v59 = vpop.eup %1729 }
 0x2cb   : > { %v1732_v62 = vpop.eup %1731 }
 0x2cc   : > { %v1197_v63 = vadd.f32 1.0, %v1732_v62  ;;  %v1734_v0 = vpop.eup %1733 }
 0x2cd   : > { %v1195_v2 = vadd.f32 1.0, %v1734_v0  ;;  %v1736_v4 = vpop.eup %1735 }
 0x2ce   : > { %1743 = vrcp.f32 %v1197_v63  ;;  %v1738_v7 = vpop.eup %1737  ;;  %v1199_v8 = vadd.f32 1.0, %v1736_v4 }
 0x2cf   : > { %1745 = vrcp.f32 %v1195_v2  ;;  %v1740_v9 = vpop.eup %1739 }
 0x2d0   : > { %v1742_v10 = vpop.eup %1741  ;;  %v1201_v11 = vadd.f32 1.0, %v1740_v9  ;;  %1747 = vrcp.f32 %v1199_v8 }
 0x2d2   : > { %1749 = vrcp.f32 %v1201_v11 }
 0x2d3   : > { %1751 = vpow2.f32 %v1547_v13 }
 0x2d4   : > { %1753 = vpow2.f32 %v1551_v19 }
 0x2d5   : > { %1253 = vrot.lane.b32.xlu0 %v1722_v39, %s1836_s20  ;;  %1755 = vpow2.f32 %v1549_v21 }
 0x2d6   : > { %1757 = vpow2.f32 %v1555_v24 }
 0x2d7   : > { %1759 = vpow2.f32 %v1553_v26 }
 0x2d8   : > { %v1744_v12 = vpop.eup %1743 }
 0x2d9   : > { %v1746_v16 = vpop.eup %1745 }
 0x2da   : > { %v1748_v20 = vpop.eup %1747 }
 0x2dc   : > { %v1750_v23 = vpop.eup %1749 }
 0x2dd   : > { %v1752_v25 = vpop.eup %1751 }
 0x2de   : > { %v1190_v30 = vadd.f32 1.0, %v1752_v25  ;;  %v1754_v32 = vpop.eup %1753 }
 0x2df   : > { %v1194_v35 = vadd.f32 1.0, %v1754_v32  ;;  %v1756_v36 = vpop.eup %1755 }
 0x2e0   : > { %1761 = vrcp.f32 %v1190_v30  ;;  %v1758_v38 = vpop.eup %1757  ;;  %v1192_v39 = vadd.f32 1.0, %v1756_v36 }
 0x2e1   : > { %1763 = vpow2.f32 %v1557_v33  ;;  %v1760_v40 = vpop.eup %1759  ;;  %v1198_v41 = vadd.f32 1.0, %v1758_v38 }
 0x2e2   : > { %1765 = vrcp.f32 %v1194_v35 }
 0x2e3   : > { %1767 = vpow2.f32 %v1559_v37 }
 0x2e4   : > { %1769 = vrcp.f32 %v1192_v39 }
 0x2e5   : > { %1771 = vrcp.f32 %v1198_v41 }
 0x2ea   : > { %v1762_v43 = vpop.eup %1761 }
 0x2eb   : > { %v1764_v46 = vpop.eup %1763 }
 0x2ec   : > { %1005 = vadd.xlane.f32.xlu1 %v1004_v44  ;;  %v1196_v44 = vadd.f32 1.0, %v1760_v40  ;;  %v1766_v50 = vpop.eup %1765  ;;  %v1200_v52 = vadd.f32 1.0, %v1764_v46 }
 0x2ed   : > { %v1768_v53 = vpop.eup %1767 }
 0x2ee   : > { %v1770_v60 = vpop.eup %1769  ;;  %v1202_v63 = vadd.f32 1.0, %v1768_v53 }
 0x2ef   : > { %v1772_v0 = vpop.eup %1771 }
 0x2f4   : > { %1002 = vadd.xlane.f32.xlu0 %v1001_v49 }
 0x2fd   : > { %1251 = vrot.lane.b32.xlu1 %v1730_v59, %s1836_s20 }
 0x30a   : > { %1263 = vrot.lane.b32.xlu0 %v1738_v7, %s1836_s20 }
 0x30e   : > { %1259 = vrot.lane.b32.xlu0 %v1742_v10, %s1836_s20 }
 0x312   : > { %1271 = vrot.lane.b32.xlu0 %v1744_v12, %s1836_s20 }
 0x316   : > { %1267 = vrot.lane.b32.xlu0 %v1746_v16, %s1836_s20 }
 0x31a   : > { %1275 = vrot.lane.b32.xlu0 %v1748_v20, %s1836_s20 }
 0x31e   : > { %1279 = vrot.lane.b32.xlu0 %v1750_v23, %s1836_s20 }
 0x321   : > { %999 = vadd.xlane.f32.xlu1 %v998_v27 }
 0x330   : > { %v970_v42 = vpop.xlane.xlu0 %969 }
 0x331   : > { %v1012_v45 = vmax.f32 %v970_v42, 1e-24 }
 0x332   : > { %1257 = vrot.lane.b32.xlu1 %v1762_v43, %s1836_s20 }
 0x333   : > { %1773 = vrsqrt.f32 %v1012_v45  ;;  %v967_v47 = vpop.xlane.xlu1 %966 }
 0x334   : > { %v1011_v48 = vmax.f32 %v967_v47, 1e-24  ;;  %v964_v49 = vpop.xlane.xlu0 %963  ;;  %1775 = vrcp.f32 %v1196_v44 }
 0x335   : > { %v1010_v51 = vmax.f32 %v964_v49, 1e-24 }
 0x336   : > { %1777 = vrsqrt.f32 %v1011_v48  ;;  %1265 = vrot.lane.b32.xlu1 %v1766_v50, %s1836_s20 }
 0x337   : > { %1779 = vrsqrt.f32 %v1010_v51 }
 0x338   : > { %v973_v56 = vpop.xlane.xlu0 %972  ;;  %v982_v59 = vpop.xlane.xlu1 %981  ;;  %1781 = vrcp.f32 %v1200_v52 }
 0x339   : > { %v1013_v61 = vmax.f32 %v973_v56, 1e-24  ;;  %v1016_v62 = vmax.f32 %v982_v59, 1e-24 }
 0x33a   : > { %1261 = vrot.lane.b32.xlu1 %v1770_v60, %s1836_s20 }
 0x33b   : > { %1783 = vrsqrt.f32 %v1013_v61 }
 0x33c   : > { %1785 = vrsqrt.f32 %v1016_v62  ;;  %v976_v2 = vpop.xlane.xlu1 %975  ;;  %v985_v4 = vpop.xlane.xlu0 %984 }
 0x33d   : > { %v1774_v7 = vpop.eup %1773  ;;  %v1014_v8 = vmax.f32 %v976_v2, 1e-24  ;;  %v1017_v9 = vmax.f32 %v985_v4, 1e-24  ;;  %1787 = vrcp.f32 %v1202_v63 }
 0x33e   : > { %v1044_v10 = vmul.f32 %v1774_v7, %v1950_v54  ;;  %1273 = vrot.lane.b32.xlu1 %v1772_v0, %s1836_s20  ;;  %v1776_v11 = vpop.eup %1775 }
 0x33f   : > { %1789 = vrsqrt.f32 %v1014_v8 }
 0x340   : > { %v1778_v12 = vpop.eup %1777  ;;  %v1564_v13 = vpack.c.bf16 %v1044_v10, %v1044_v10  ;;  %1791 = vrsqrt.f32 %v1017_v9  ;;  %v979_v16 = vpop.xlane.xlu0 %978 }
 0x341   : > { %v994_v19 = vpop.xlane.xlu1 %993  ;;  %v1780_v20 = vpop.eup %1779  ;;  %v1043_v54 = vmul.f32 %v1778_v12, %v1958_v58  ;;  %v1015_v21 = vmax.f32 %v979_v16, 1e-24 }
 0x342   : > { %v1020_v22 = vmax.f32 %v994_v19, 1e-24  ;;  %1125 = vst.msk [vmem:[%s2064_s26 + $0x8] sm:$0xf] %vm1122_vm3, %v1564_v13  ;;  %v1042_v23 = vmul.f32 %v1780_v20, %v1952_v55  ;;  %1269 = vrot.lane.b32.xlu1 %v1776_v11, %s1836_s20  ;;  %v1782_v25 = vpop.eup %1781 }
 0x343   : > { %v1563_v24 = vpack.c.bf16 %v1043_v54, %v1043_v54  ;;  %1793 = vrsqrt.f32 %v1015_v21 }
 0x344   : > { %v1562_v26 = vpack.c.bf16 %v1042_v23, %v1042_v23  ;;  %1795 = vrsqrt.f32 %v1020_v22  ;;  %v997_v30 = vpop.xlane.xlu0 %996 }
 0x345   : > { %v988_v27 = vpop.xlane.xlu1 %987  ;;  %v1784_v32 = vpop.eup %1783  ;;  %1124 = vst.msk [vmem:[%s2064_s26 + $0x4] sm:$0xf] %vm1122_vm3, %v1563_v24  ;;  %v1021_v33 = vmax.f32 %v997_v30, 1e-24 }
 0x346   : > { %v1018_v58 = vmax.f32 %v988_v27, 1e-24  ;;  %v1786_v35 = vpop.eup %1785  ;;  %1123 = vst.msk [vmem:[%s2064_s26] sm:$0xf] %vm1122_vm3, %v1562_v26  ;;  %v1045_v55 = vmul.f32 %v1784_v32, %v1956_v57  ;;  %1277 = vrot.lane.b32.xlu1 %v1782_v25, %s1836_s20 }
 0x347   : > { %v1048_v36 = vmul.f32 %v1786_v35, %v1969_v1  ;;  %v1788_v37 = vpop.eup %1787 }
 0x348   : > { %1797 = vrsqrt.f32 %v1018_v58  ;;  %v1565_v38 = vpack.c.bf16 %v1045_v55, %v1045_v55  ;;  %v991_v40 = vpop.xlane.xlu0 %990 }
 0x349   : > { %1799 = vrsqrt.f32 %v1021_v33  ;;  %v1256_v39 = vpop.permute.xlu1 %1255  ;;  %v1790_v57 = vpop.eup %1789  ;;  %v1568_v41 = vpack.c.bf16 %v1048_v36, %v1048_v36  ;;  %v1019_v42 = vmax.f32 %v991_v40, 1e-24 }
 0x34a   : > { %1302 = vst.msk [vmem:[%s2081_s30 + $0x10] sm:$0xff] %vm1299_vm4, %v1256_v39  ;;  %v1792_v43 = vpop.eup %1791  ;;  %v1046_v44 = vmul.f32 %v1790_v57, %v1972_v3  ;;  %1281 = vrot.lane.b32.xlu1 %v1788_v37, %s1836_s20 }
 0x34b   : > { %1126 = vst.msk [vmem:[%s2064_s26 + $0xc] sm:$0xf] %vm1122_vm3, %v1565_v38  ;;  %1129 = vst.msk [vmem:[%s2064_s26 + $0x18] sm:$0xf] %vm1122_vm3, %v1568_v41  ;;  %v1049_v1 = vmul.f32 %v1792_v43, %v1976_v5  ;;  %1801 = vrsqrt.f32 %v1019_v42 }
 0x34c   : > { %v1566_v45 = vpack.c.bf16 %v1046_v44, %v1046_v44  ;;  %v1009_v46 = vpop.xlane.xlu0 %1008 }
 0x34d   : > { %v1794_v47 = vpop.eup %1793  ;;  %v1569_v48 = vpack.c.bf16 %v1049_v1, %v1049_v1  ;;  %v1025_v49 = vmax.f32 %v1009_v46, 1e-24 }
 0x34e   : > { %v1796_v50 = vpop.eup %1795  ;;  %1127 = vst.msk [vmem:[%s2064_s26 + $0x10] sm:$0xf] %vm1122_vm3, %v1566_v45  ;;  %v1047_v3 = vmul.f32 %v1794_v47, %v1978_v6 }
 0x34f   : > { %1130 = vst.msk [vmem:[%s2064_s26 + $0x1c] sm:$0xf] %vm1122_vm3, %v1569_v48  ;;  %v1052_v51 = vmul.f32 %v1796_v50, %v1990_v14  ;;  %1803 = vrsqrt.f32 %v1025_v49 }
 0x350   : > { %v1567_v5 = vpack.c.bf16 %v1047_v3, %v1047_v3  ;;  %v1254_v52 = vpop.permute.xlu0 %1253 }
 0x351   : > { %v1572_v56 = vpack.c.bf16 %v1052_v51, %v1052_v51  ;;  %1301 = vst.msk [vmem:[%s2081_s30 + $0x8] sm:$0xff] %vm1299_vm4, %v1254_v52 }
 0x352   : > { %v1798_v53 = vpop.eup %1797  ;;  %1128 = vst.msk [vmem:[%s2064_s26 + $0x14] sm:$0xf] %vm1122_vm3, %v1567_v5 }
 0x353   : > { %v1800_v59 = vpop.eup %1799  ;;  %v1050_v6 = vmul.f32 %v1798_v53, %v1992_v15  ;;  %1133 = vst.msk [vmem:[%s2064_s26 + $0x28] sm:$0xf] %vm1122_vm3, %v1572_v56 }
 0x354   : > { %v1053_v60 = vmul.f32 %v1800_v59, %v1996_v17 }
 0x355   : > { %v1570_v14 = vpack.c.bf16 %v1050_v6, %v1050_v6  ;;  %v1802_v61 = vpop.eup %1801 }
 0x356   : > { %v1573_v62 = vpack.c.bf16 %v1053_v60, %v1053_v60  ;;  %v1051_v63 = vmul.f32 %v1802_v61, %v1998_v18 }
 0x357   : > { %1131 = vst.msk [vmem:[%s2064_s26 + $0x20] sm:$0xf] %vm1122_vm3, %v1570_v14 }
 0x358   : > { %1134 = vst.msk [vmem:[%s2064_s26 + $0x2c] sm:$0xf] %vm1122_vm3, %v1573_v62  ;;  %v1571_v0 = vpack.c.bf16 %v1051_v63, %v1051_v63 }
 0x359   : > { %v1804_v2 = vpop.eup %1803 }
 0x35a   : > { %1132 = vst.msk [vmem:[%s2064_s26 + $0x24] sm:$0xf] %vm1122_vm3, %v1571_v0  ;;  %v1057_v15 = vmul.f32 %v1804_v2, %v2015_v31 }
 0x35c   : > { %v1577_v4 = vpack.c.bf16 %v1057_v15, %v1057_v15 }
 0x35e   : > { %1138 = vst.msk [vmem:[%s2064_s26 + $0x3c] sm:$0xf] %vm1122_vm3, %v1577_v4 }
 0x379   : > { %v1006_v17 = vpop.xlane.xlu1 %1005 }
 0x37a   : > { %v1024_v7 = vmax.f32 %v1006_v17, 1e-24 }
 0x37c   : > { %1805 = vrsqrt.f32 %v1024_v7 }
 0x37d   : > { %v1252_v8 = vpop.permute.xlu1 %1251 }
 0x37e   : > { %1300 = vst.msk [vmem:[%s2081_s30] sm:$0xff] %vm1299_vm4, %v1252_v8 }
 0x381   : > { %v1003_v18 = vpop.xlane.xlu0 %1002 }
 0x382   : > { %v1023_v9 = vmax.f32 %v1003_v18, 1e-24 }
 0x384   : > { %1807 = vrsqrt.f32 %v1023_v9 }
 0x385   : > { %v1264_v10 = vpop.permute.xlu0 %1263 }
 0x386   : > { %v1806_v11 = vpop.eup %1805  ;;  %1306 = vst.msk [vmem:[%s2081_s30 + $0x30] sm:$0xff] %vm1299_vm4, %v1264_v10 }
 0x387   : > { %v1056_v31 = vmul.f32 %v1806_v11, %v2011_v28 }
 0x389   : > { %v1576_v12 = vpack.c.bf16 %v1056_v31, %v1056_v31  ;;  %v1260_v13 = vpop.permute.xlu0 %1259 }
 0x38a   : > { %1304 = vst.msk [vmem:[%s2081_s30 + $0x20] sm:$0xff] %vm1299_vm4, %v1260_v13 }
 0x38b   : > { %1137 = vst.msk [vmem:[%s2064_s26 + $0x38] sm:$0xf] %vm1122_vm3, %v1576_v12 }
 0x38d   : > { %v1272_v16 = vpop.permute.xlu0 %1271 }
 0x38e   : > { %v1808_v19 = vpop.eup %1807  ;;  %1310 = vst.msk [vmem:[%s2081_s30 + $0x50] sm:$0xff] %vm1299_vm4, %v1272_v16 }
 0x38f   : > { %v1055_v20 = vmul.f32 %v1808_v19, %v2020_v34 }
 0x391   : > { %v1575_v54 = vpack.c.bf16 %v1055_v20, %v1055_v20  ;;  %v1268_v21 = vpop.permute.xlu0 %1267 }
 0x392   : > { %1308 = vst.msk [vmem:[%s2081_s30 + $0x40] sm:$0xff] %vm1299_vm4, %v1268_v21 }
 0x393   : > { %1136 = vst.msk [vmem:[%s2064_s26 + $0x34] sm:$0xf] %vm1122_vm3, %v1575_v54 }
 0x395   : > { %v1276_v28 = vpop.permute.xlu0 %1275 }
 0x396   : > { %1312 = vst.msk [vmem:[%s2081_s30 + $0x60] sm:$0xff] %vm1299_vm4, %v1276_v28 }
 0x399   : > { %v1280_v22 = vpop.permute.xlu0 %1279 }
 0x39a   : > { %1314 = vst.msk [vmem:[%s2081_s30 + $0x70] sm:$0xff] %vm1299_vm4, %v1280_v22 }
 0x3ae   : > { %v1000_v23 = vpop.xlane.xlu1 %999 }
 0x3af   : > { %v1022_v24 = vmax.f32 %v1000_v23, 1e-24 }
 0x3b1   : > { %1809 = vrsqrt.f32 %v1022_v24 }
 0x3b2   : > { %v1258_v34 = vpop.permute.xlu1 %1257 }
 0x3b3   : > { %1303 = vst.msk [vmem:[%s2081_s30 + $0x18] sm:$0xff] %vm1299_vm4, %v1258_v34 }
 0x3b6   : > { %v1266_v25 = vpop.permute.xlu1 %1265 }
 0x3b7   : > { %1307 = vst.msk [vmem:[%s2081_s30 + $0x38] sm:$0xff] %vm1299_vm4, %v1266_v25 }
 0x3ba   : > { %v1262_v26 = vpop.permute.xlu1 %1261 }
 0x3bb   : > { %v1810_v27 = vpop.eup %1809  ;;  %1305 = vst.msk [vmem:[%s2081_s30 + $0x28] sm:$0xff] %vm1299_vm4, %v1262_v26 }
 0x3bc   : > { %v1054_v30 = vmul.f32 %v1810_v27, %v2013_v29 }
 0x3be   : > { %v1574_v32 = vpack.c.bf16 %v1054_v30, %v1054_v30  ;;  %v1274_v58 = vpop.permute.xlu1 %1273 }
 0x3bf   : > { %1311 = vst.msk [vmem:[%s2081_s30 + $0x58] sm:$0xff] %vm1299_vm4, %v1274_v58 }
 0x3c0   : > { %1135 = vst.msk [vmem:[%s2064_s26 + $0x30] sm:$0xf] %vm1122_vm3, %v1574_v32 }
 0x3c2   : > { %v1270_v33 = vpop.permute.xlu1 %1269 }
 0x3c3   : > { %1309 = vst.msk [vmem:[%s2081_s30 + $0x48] sm:$0xff] %vm1299_vm4, %v1270_v33 }
 0x3c6   : > { %v1278_v35 = vpop.permute.xlu1 %1277 }
 0x3c7   : > { %1313 = vst.msk [vmem:[%s2081_s30 + $0x68] sm:$0xff] %vm1299_vm4, %v1278_v35 }
 0x3ca   : > { %v1282_v55 = vpop.permute.xlu1 %1281 }
 0x3cb   : > { %1315 = vst.msk [vmem:[%s2081_s30 + $0x78] sm:$0xff] %vm1299_vm4, %v1282_v55 }
 0x3cc PF: > { %s17_s23 = sadd.s32 1, %s1833_s23   ;;  %s2170_s21 = smov %s1829_s22 }
 0x3cd   : > { %p14_p5 = scmp.ge.s32.totalorder %s17_s23, 10   ;;  %s2171_s22 = smov %s2173_s24 }
 0x3cf   :  { %16 = sbr.rel (!%p14_p5) target bundleno = 2 (0x2), region = 85 }

// kernel: alike_forward.31
= control target key start
LH: loop header
LB: loop body
LE: loop exit
PB: predicated region body
PF: predicated region fallthrough
CT: control target
= control target key end

     0   :  { %s1222_s6 = smov 0   ;;  %s1224_s7 = smov 0   ;;  %s1714_s0 = inlined_call_operand.vmem [shape: f32[1,52,32], index: 0, kind: input, shape index: {}]   ;;  %s1715_s1 = inlined_call_operand.vmem [shape: f32[1,32,32], index: 1, kind: output, shape index: {}]  }
   0x1   :  { %s1226_s8 = smov 0  }
   0x2 LB: > { %s20_s9 = sadd.s32 1, %s1200_s7  ;;  %p1055_p0 = scmp.ge.s32.totalorder %s1204_s8, 1  ;;  %s1204_s8 = sphi %s1226_s8, %s11_s8   ;;  %s1200_s7 = sphi %s1224_s7, %s1793_s7   ;;  %s1196_s6 = sphi %s1222_s6, %s1792_s6  }
   0x3   : > { %p21_p1 = scmp.ge.s32.totalorder %s20_s9, 4  ;;  %p101_p2 = scmp.lt.s32.totalorder %s1204_s8, 5 }
   0x5   : > { %s1795_s9 = smov (%p21_p1, %s20_s9), 0  ;;  %p102_p3 = pnand %p1055_p0, %p101_p2 }
   0x6   : > { %s1057_s10 = sshll.u32 (!%p102_p3), %s1196_s6, 3  ;;  %s1206_s14 = smov (!%p102_p3), 127   ;;  %vm1725_vm0 = vcmask (!%p102_p3), 7168   ;;  %vm1723_vm1 = vcmask (!%p102_p3), 252928   ;;  %vm1719_vm2 = vcmask (!%p102_p3), 244736   ;;  %vm1718_vm3 = vcmask (!%p102_p3), 15360  }
   0x7   : > { %105 = sbr.rel (%p102_p3) target bundleno = 803 (0x323), region = 24  ;;  %s1248_s13 = scalar_lea.vmem (!%p102_p3), %s1714_s0, %s1057_s10  ;;  %vm1721_vm4 = vcmask (!%p102_p3), 1040384   ;;  %vm1722_vm5 = vcmask (!%p102_p3), 1046528   ;;  %vm1720_vm6 = vcmask (!%p102_p3), 1045504   ;;  %vm1717_vm7 = vcmask (!%p102_p3), 1042432  }
   0x8   : > { %v1251_v0 = vld [vmem:[%s1248_s13 + $0x10] sm:$0xff] (!%p102_p3)  ;;  %v1254_v1 = vld [vmem:[%s1248_s13] sm:$0xff] (!%p102_p3)  ;;  %v1261_v2 = vld [vmem:[%s1248_s13 + $0x18] sm:$0xf] (!%p102_p3)  ;;  %s1207_s15 = smov (!%p102_p3), 1   ;;  %s1208_s16 = smov (!%p102_p3), 126  }
   0x9   : > { %151 = vrot.lane.b32.xlu1 (!%p102_p3), %v1251_v0, %s1206_s14  ;;  %147 = vrot.lane.b32.xlu0 (!%p102_p3), %v1254_v1, %s1206_s14  ;;  %v1264_v3 = vld [vmem:[%s1248_s13 + $0x8] sm:$0xff] (!%p102_p3)  ;;  %s1209_s17 = smov (!%p102_p3), 2   ;;  %vm1724_vm8 = vcmask (!%p102_p3), 1041408   ;;  %p131_p4 = scmp.lt.s32.totalorder (!%p102_p3), %s1196_s6, 3 }
   0xd   : > { %153 = vrot.lane.b32.xlu1 (!%p102_p3), %v1261_v2, %s1206_s14  ;;  %149 = vrot.lane.b32.xlu0 (!%p102_p3), %v1264_v3, %s1206_s14 }
   0xe   : > { %s1797_s6 = smov (!%p131_p4, %s1196_s6), 3 }
   0xf   : > { %s1056_s18 = sshll.u32 %s1797_s6, 3 }
  0x10   : > { %s136_s21 = scalar_lea.vmem %s1715_s1, %s1056_s18 }
  0x11   : > { %166 = vrot.lane.b32.xlu1 %v1264_v3, %s1207_s15  ;;  %164 = vrot.lane.b32.xlu0 %v1254_v1, %s1207_s15 }
  0x15   : > { %170 = vrot.lane.b32.xlu1 %v1261_v2, %s1207_s15  ;;  %168 = vrot.lane.b32.xlu0 %v1251_v0, %s1207_s15 }
  0x19   : > { %191 = vrot.lane.b32.xlu1 %v1264_v3, %s1208_s16  ;;  %189 = vrot.lane.b32.xlu0 %v1254_v1, %s1208_s16 }
  0x1d   : > { %195 = vrot.lane.b32.xlu1 %v1261_v2, %s1208_s16  ;;  %193 = vrot.lane.b32.xlu0 %v1251_v0, %s1208_s16 }
  0x21   : > { %208 = vrot.lane.b32.xlu1 %v1264_v3, %s1209_s17  ;;  %206 = vrot.lane.b32.xlu0 %v1254_v1, %s1209_s17 }
  0x25   : > { %212 = vrot.lane.b32.xlu1 %v1261_v2, %s1209_s17  ;;  %210 = vrot.lane.b32.xlu0 %v1251_v0, %s1209_s17 }
  0x7b   : > { %v152_v4 = vpop.permute.xlu1 %151  ;;  %v148_v5 = vpop.permute.xlu0 %147 }
  0x7c   : > { %v160_v18 = vsel %vm1723_vm1, %v148_v5, 0.0  ;;  %v162_v34 = vsel %vm1723_vm1, %v152_v4, 0.0 }
  0x7f   : > { %v154_v6 = vpop.permute.xlu1 %153  ;;  %v150_v7 = vpop.permute.xlu0 %149 }
  0x80   : > { %v161_v19 = vsel %vm1723_vm1, %v150_v7, 0.0  ;;  %v163_v35 = vsel %vm1723_vm1, %v154_v6, 0.0 }
  0x83   : > { %v167_v8 = vpop.permute.xlu1 %166  ;;  %v165_v9 = vpop.permute.xlu0 %164 }
  0x84   : > { %v178_v14 = vsel %vm1725_vm0, 0.0, %v167_v8  ;;  %v177_v15 = vsel %vm1725_vm0, 0.0, %v165_v9 }
  0x85   : > { %v182_v20 = vmax.f32 %v161_v19, %v178_v14  ;;  %v181_v21 = vmax.f32 %v160_v18, %v177_v15 }
  0x87   : > { %v171_v10 = vpop.permute.xlu1 %170  ;;  %v169_v11 = vpop.permute.xlu0 %168  ;;  %v186_v30 = vmax.f32 %v1264_v3, %v182_v20  ;;  %v185_v31 = vmax.f32 %v1254_v1, %v181_v21 }
  0x88   : > { %v180_v22 = vsel %vm1725_vm0, 0.0, %v171_v10  ;;  %v179_v23 = vsel %vm1725_vm0, 0.0, %v169_v11 }
  0x89   : > { %v184_v36 = vmax.f32 %v163_v35, %v180_v22  ;;  %v183_v37 = vmax.f32 %v162_v34, %v179_v23 }
  0x8b   : > { %v192_v12 = vpop.permute.xlu1 %191  ;;  %v190_v13 = vpop.permute.xlu0 %189  ;;  %v188_v52 = vmax.f32 %v1261_v2, %v184_v36  ;;  %v187_v53 = vmax.f32 %v1251_v0, %v183_v37 }
  0x8c   : > { %v203_v26 = vsel %vm1719_vm2, %v192_v12, 0.0  ;;  %v202_v27 = vsel %vm1719_vm2, %v190_v13, 0.0 }
  0x8f   : > { %v196_v16 = vpop.permute.xlu1 %195  ;;  %v194_v17 = vpop.permute.xlu0 %193 }
  0x90   : > { %v205_v44 = vsel %vm1719_vm2, %v196_v16, 0.0  ;;  %v204_v45 = vsel %vm1719_vm2, %v194_v17, 0.0 }
  0x93   : > { %v209_v24 = vpop.permute.xlu1 %208  ;;  %v207_v25 = vpop.permute.xlu0 %206 }
  0x94   : > { %v220_v28 = vsel %vm1718_vm3, 0.0, %v209_v24  ;;  %v219_v29 = vsel %vm1718_vm3, 0.0, %v207_v25 }
  0x95   : > { %v224_v32 = vmax.f32 %v203_v26, %v220_v28  ;;  %v223_v33 = vmax.f32 %v202_v27, %v219_v29 }
  0x97   : > { %v1308_v38 = vmax.f32 %v186_v30, %v224_v32  ;;  %v227_v39 = vmax.f32 %v185_v31, %v223_v33  ;;  %v213_v40 = vpop.permute.xlu1 %212  ;;  %v211_v41 = vpop.permute.xlu0 %210 }
  0x98   : > { %v222_v42 = vsel %vm1718_vm3, 0.0, %v213_v40  ;;  %v221_v43 = vsel %vm1718_vm3, 0.0, %v211_v41  ;;  %v1210_v41 = vmov 0.0  }
  0x99   : > { %v237_v46 = vrot.slane %v1308_v38, 1  ;;  %v251_v47 = vrot.slane %v1308_v38, 7  ;;  %v272_v48 = vrot.slane %v1308_v38, 2  ;;  %v236_v49 = vrot.slane %v227_v39, 1 }
  0x9a   : > { %v250_v50 = vrot.slane %v227_v39, 7  ;;  %v271_v51 = vrot.slane %v227_v39, 2  ;;  %v226_v54 = vmax.f32 %v205_v44, %v222_v42  ;;  %v225_v55 = vmax.f32 %v204_v45, %v221_v43 }
  0x9b   : > { %v238_v57 = vsel %vm1722_vm5, %v236_v49, %v237_v46  ;;  %v284_v58 = vrot.slane %v227_v39, 6  ;;  %v285_v62 = vrot.slane %v1308_v38, 6 }
  0x9c   : > { %v261_v56 = vsel %vm1721_vm4, 0.0, %v250_v50  ;;  %v230_v59 = vmax.f32 %v188_v52, %v226_v54  ;;  %v229_v60 = vmax.f32 %v187_v53, %v225_v55  ;;  %v252_v63 = vsel %vm1721_vm4, %v250_v50, %v251_v47 }
  0x9d   : > { %v262_v61 = vmax.f32 %v238_v57, %v261_v56  ;;  %v273_v4 = vsel %vm1720_vm6, %v271_v51, %v272_v48  ;;  %v295_v16 = vsel %vm1724_vm8, 0.0, %v284_v58  ;;  %v286_v33 = vsel %vm1724_vm8, %v284_v58, %v285_v62 }
  0x9e   : > { %v241_v5 = vrot.slane %v230_v59, 1  ;;  %v255_v6 = vrot.slane %v230_v59, 7  ;;  %v276_v7 = vrot.slane %v230_v59, 2  ;;  %v289_v8 = vrot.slane %v230_v59, 6 }
  0x9f   : > { %v239_v9 = vrot.slane %v229_v60, 1  ;;  %v253_v10 = vrot.slane %v229_v60, 7  ;;  %v274_v11 = vrot.slane %v229_v60, 2  ;;  %v287_v12 = vrot.slane %v229_v60, 6 }
  0xa0   : > { %v248_v13 = vsel %vm1717_vm7, %v241_v5, 0.0  ;;  %v283_v14 = vsel %vm1724_vm8, %v276_v7, 0.0  ;;  %v266_v15 = vmax.f32 %v227_v39, %v262_v61  ;;  %v296_v28 = vmax.f32 %v273_v4, %v295_v16 }
  0xa1   : > { %v242_v17 = vsel %vm1722_vm5, %v239_v9, %v241_v5  ;;  %v254_v18 = vsel %vm1721_vm4, %v251_v47, %v253_v10  ;;  %v256_v19 = vsel %vm1721_vm4, %v253_v10, %v255_v6  ;;  %v277_v20 = vsel %vm1720_vm6, %v274_v11, %v276_v7 }
  0xa2   : > { %v264_v21 = vmax.f32 %v242_v17, %v254_v18  ;;  %v265_v22 = vmax.f32 %v248_v13, %v256_v19  ;;  %v288_v23 = vsel %vm1724_vm8, %v285_v62, %v287_v12  ;;  %v290_v24 = vsel %vm1724_vm8, %v287_v12, %v289_v8 }
  0xa3   : > { %v298_v25 = vmax.f32 %v277_v20, %v288_v23  ;;  %v240_v26 = vsel %vm1722_vm5, %v237_v46, %v239_v9  ;;  %v275_v27 = vsel %vm1720_vm6, %v272_v48, %v274_v11  ;;  %v299_v31 = vmax.f32 %v283_v14, %v290_v24 }
  0xa4   : > { %v268_v29 = vmax.f32 %v229_v60, %v264_v21  ;;  %v269_v30 = vmax.f32 %v230_v59, %v265_v22  ;;  %v263_v32 = vmax.f32 %v240_v26, %v252_v63  ;;  %v1336_v34 = vmax.f32 %v266_v15, %v296_v28 }
  0xa5   : > { %v297_v39 = vmax.f32 %v275_v27, %v286_v33 }
  0xa6   : > { %v1338_v35 = vmax.f32 %v268_v29, %v298_v25  ;;  %v1340_v36 = vmax.f32 %v269_v30, %v299_v31  ;;  %v267_v37 = vmax.f32 %v1308_v38, %v263_v32  ;;  %vm304_vm11 = vcmp.eq.f32.partialorder %v1254_v1, %v1336_v34 }
  0xa7   : > { %v1058_v44 = vsel %vm304_vm11, 1.0, %v1210_v41 }
  0xa8   : > { %vm306_vm9 = vcmp.eq.f32.partialorder %v1251_v0, %v1338_v35  ;;  %vm1726_vm10 = vcmp.eq.f32.partialorder %v1261_v2, %v1340_v36  ;;  %v1347_v40 = vmax.f32 %v267_v37, %v297_v39 }
  0xa9   : > { %v1060_v42 = vsel %vm306_vm9, 1.0, %v1210_v41  ;;  %v1061_v38 = vsel %vm1726_vm10, 1.0, %v1210_v41 }
  0xaa   : > { %v1103_v43 = vpack.i.bf16 %v1061_v38, %v1060_v42  ;;  %vm1716_vm12 = vcmp.eq.f32.partialorder %v1264_v3, %v1347_v40 }
  0xab   : > { %v1369_v45 = vsel %vm1716_vm12, 1.0, %v1210_v41 }
  0xac   : > { %1104 = vrot.lane.b32.xlu1 %v1103_v43, %s1206_s14  ;;  %v1098_v46 = vpack.i.bf16 %v1369_v45, %v1058_v44 }
  0xae   : > { %1099 = vrot.lane.b32.xlu0 %v1098_v46, %s1206_s14 }
  0xb0   : > { %1114 = vrot.lane.b32.xlu1 %v1103_v43, %s1207_s15 }
  0xb2   : > { %1109 = vrot.lane.b32.xlu0 %v1098_v46, %s1207_s15 }
  0xb4   : > { %1124 = vrot.lane.b32.xlu1 %v1103_v43, %s1208_s16 }
  0xb6   : > { %1119 = vrot.lane.b32.xlu0 %v1098_v46, %s1208_s16 }
  0xb8   : > { %1134 = vrot.lane.b32.xlu1 %v1103_v43, %s1209_s17 }
  0xba   : > { %1129 = vrot.lane.b32.xlu0 %v1098_v46, %s1209_s17 }
 0x11e   : > { %v1105_v47 = vpop.permute.xlu1 %1104 }
 0x11f   : > { %v1106_v50 = vunpack.i.l.bf16 %v1105_v47  ;;  %v1107_v53 = vunpack.i.h.bf16 %v1105_v47 }
 0x120   : > { %v1100_v48 = vpop.permute.xlu0 %1099 }
 0x121   : > { %v1101_v55 = vunpack.i.l.bf16 %v1100_v48  ;;  %v1102_v59 = vunpack.i.h.bf16 %v1100_v48  ;;  %v334_v61 = vsel %vm1723_vm1, %v1106_v50, 0.0  ;;  %v335_v8 = vsel %vm1723_vm1, %v1107_v53, 0.0 }
 0x122   : > { %v1115_v49 = vpop.permute.xlu1 %1114 }
 0x123   : > { %v1117_v51 = vunpack.i.h.bf16 %v1115_v49  ;;  %v1116_v52 = vunpack.i.l.bf16 %v1115_v49  ;;  %v332_v9 = vsel %vm1723_vm1, %v1101_v55, 0.0  ;;  %v333_v11 = vsel %vm1723_vm1, %v1102_v59, 0.0 }
 0x124   : > { %v1110_v54 = vpop.permute.xlu0 %1109 }
 0x125   : > { %v350_v56 = vsel %vm1725_vm0, 0.0, %v1116_v52  ;;  %v1112_v57 = vunpack.i.h.bf16 %v1110_v54  ;;  %v1111_v58 = vunpack.i.l.bf16 %v1110_v54  ;;  %v351_v62 = vsel %vm1725_vm0, 0.0, %v1117_v51 }
 0x126   : > { %v1125_v60 = vpop.permute.xlu1 %1124  ;;  %v354_v4 = vmax.f32 %v334_v61, %v350_v56  ;;  %v355_v12 = vmax.f32 %v335_v8, %v351_v62 }
 0x127   : > { %v348_v63 = vsel %vm1725_vm0, 0.0, %v1111_v58  ;;  %v1127_v5 = vunpack.i.h.bf16 %v1125_v60  ;;  %v1126_v6 = vunpack.i.l.bf16 %v1125_v60  ;;  %v349_v10 = vsel %vm1725_vm0, 0.0, %v1112_v57 }
 0x128   : > { %v1120_v7 = vpop.permute.xlu0 %1119  ;;  %v352_v13 = vmax.f32 %v332_v9, %v348_v63  ;;  %v358_v19 = vmax.f32 %v1060_v42, %v354_v4  ;;  %v353_v20 = vmax.f32 %v333_v11, %v349_v10  ;;  %v359_v28 = vmax.f32 %v1061_v38, %v355_v12 }
 0x129   : > { %v1122_v15 = vunpack.i.h.bf16 %v1120_v7  ;;  %v1121_v16 = vunpack.i.l.bf16 %v1120_v7  ;;  %v375_v21 = vsel %vm1719_vm2, %v1127_v5, 0.0  ;;  %v374_v22 = vsel %vm1719_vm2, %v1126_v6, 0.0 }
 0x12a   : > { %v1135_v14 = vpop.permute.xlu1 %1134  ;;  %v356_v29 = vmax.f32 %v1058_v44, %v352_v13  ;;  %v357_v48 = vmax.f32 %v1369_v45, %v353_v20 }
 0x12b   : > { %v1137_v17 = vunpack.i.h.bf16 %v1135_v14  ;;  %v1136_v18 = vunpack.i.l.bf16 %v1135_v14  ;;  %v373_v32 = vsel %vm1719_vm2, %v1122_v15, 0.0  ;;  %v372_v33 = vsel %vm1719_vm2, %v1121_v16, 0.0 }
 0x12c   : > { %v1130_v23 = vpop.permute.xlu0 %1129 }
 0x12d   : > { %v391_v24 = vsel %vm1718_vm3, 0.0, %v1137_v17  ;;  %v390_v25 = vsel %vm1718_vm3, 0.0, %v1136_v18  ;;  %v1132_v26 = vunpack.i.h.bf16 %v1130_v23  ;;  %v1131_v27 = vunpack.i.l.bf16 %v1130_v23 }
 0x12e   : > { %v394_v30 = vmax.f32 %v374_v22, %v390_v25  ;;  %v395_v31 = vmax.f32 %v375_v21, %v391_v24 }
 0x12f   : > { %v389_v37 = vsel %vm1718_vm3, 0.0, %v1132_v26  ;;  %v388_v39 = vsel %vm1718_vm3, 0.0, %v1131_v27 }
 0x130   : > { %v398_v42 = vmax.f32 %v358_v19, %v394_v30  ;;  %v399_v43 = vmax.f32 %v359_v28, %v395_v31  ;;  %v392_v46 = vmax.f32 %v372_v33, %v388_v39  ;;  %v393_v47 = vmax.f32 %v373_v32, %v389_v37 }
 0x132   : > { %v407_v49 = vrot.slane %v398_v42, 1  ;;  %v419_v50 = vrot.slane %v398_v42, 7  ;;  %v421_v38 = vrot.slane %v399_v43, 7  ;;  %v396_v44 = vmax.f32 %v356_v29, %v392_v46 }
 0x133   : > { %v397_v51 = vmax.f32 %v357_v48, %v393_v47  ;;  %v439_v52 = vrot.slane %v398_v42, 2  ;;  %v409_v53 = vrot.slane %v399_v43, 1  ;;  %v441_v54 = vrot.slane %v399_v43, 2 }
 0x134   : > { %v404_v55 = vrot.slane %v396_v44, 1  ;;  %v416_v56 = vrot.slane %v396_v44, 7  ;;  %v448_v57 = vrot.slane %v396_v44, 6  ;;  %v436_v58 = vrot.slane %v396_v44, 2 }
 0x135   : > { %v405_v59 = vrot.slane %v397_v51, 1  ;;  %v417_v60 = vrot.slane %v397_v51, 7  ;;  %v437_v61 = vrot.slane %v397_v51, 2  ;;  %v449_v62 = vrot.slane %v397_v51, 6 }
 0x136   : > { %v427_v63 = vsel %vm1721_vm4, 0.0, %v416_v56  ;;  %v459_v45 = vsel %vm1724_vm8, 0.0, %v448_v57  ;;  %v415_v4 = vsel %vm1717_vm7, %v409_v53, 0.0  ;;  %v422_v5 = vsel %vm1721_vm4, %v419_v50, %v421_v38 }
 0x137   : > { %v408_v6 = vsel %vm1722_vm5, %v405_v59, %v407_v49  ;;  %v418_v7 = vsel %vm1721_vm4, %v416_v56, %v417_v60  ;;  %v440_v8 = vsel %vm1720_vm6, %v437_v61, %v439_v52  ;;  %v450_v9 = vsel %vm1724_vm8, %v448_v57, %v449_v62 }
 0x138   : > { %v429_v10 = vmax.f32 %v408_v6, %v418_v7  ;;  %v461_v11 = vmax.f32 %v440_v8, %v450_v9  ;;  %v406_v12 = vsel %vm1722_vm5, %v404_v55, %v405_v59  ;;  %v438_v13 = vsel %vm1720_vm6, %v436_v58, %v437_v61 }
 0x139   : > { %v428_v14 = vmax.f32 %v406_v12, %v427_v63  ;;  %v460_v15 = vmax.f32 %v438_v13, %v459_v45  ;;  %v431_v16 = vmax.f32 %v415_v4, %v422_v5  ;;  %v447_v17 = vsel %vm1724_vm8, %v441_v54, 0.0 }
 0x13a   : > { %v433_v18 = vmax.f32 %v397_v51, %v429_v10  ;;  %v451_v19 = vrot.slane %v398_v42, 6  ;;  %v453_v20 = vrot.slane %v399_v43, 6  ;;  %v410_v21 = vsel %vm1722_vm5, %v407_v49, %v409_v53 }
 0x13b   : > { %v432_v22 = vmax.f32 %v396_v44, %v428_v14  ;;  %v435_v23 = vmax.f32 %v399_v43, %v431_v16  ;;  %v420_v24 = vsel %vm1721_vm4, %v417_v60, %v419_v50  ;;  %v442_v25 = vsel %vm1720_vm6, %v439_v52, %v441_v54 }
 0x13c   : > { %v1411_v26 = vmax.f32 %v433_v18, %v461_v11  ;;  %v454_v27 = vsel %vm1724_vm8, %v451_v19, %v453_v20  ;;  %v430_v28 = vmax.f32 %v410_v21, %v420_v24  ;;  %v452_v29 = vsel %vm1724_vm8, %v449_v62, %v451_v19 }
 0x13d   : > { %v1415_v30 = vmax.f32 %v432_v22, %v460_v15  ;;  %v463_v31 = vmax.f32 %v447_v17, %v454_v27  ;;  %v462_v33 = vmax.f32 %v442_v25, %v452_v29 }
 0x13e   : > { %vm469_vm13 = vcmp.gt.f32.partialorder %v1411_v26, 0.0  ;;  %v434_v32 = vmax.f32 %v398_v42, %v430_v28 }
 0x13f   : > { %v1421_v37 = vsel %vm469_vm13, 0.0, %v1264_v3  ;;  %vm468_vm14 = vcmp.gt.f32.partialorder %v1415_v30, 0.0  ;;  %v1424_v39 = vmax.f32 %v435_v23, %v463_v31 }
 0x140   : > { %482 = vrot.lane.b32.xlu1 %v1421_v37, %s1206_s14  ;;  %v1431_v43 = vsel %vm468_vm14, 0.0, %v1254_v1  ;;  %v1433_v46 = vmax.f32 %v434_v32, %v462_v33 }
 0x141   : > { %480 = vrot.lane.b32.xlu0 %v1431_v43, %s1206_s14  ;;  %vm471_vm15 = vcmp.gt.f32.partialorder %v1424_v39, 0.0 }
 0x142   : > { %vm470_vm12 = vcmp.gt.f32.partialorder %v1433_v46, 0.0  ;;  %v1442_v42 = vsel %vm471_vm15, 0.0, %v1261_v2 }
 0x143   : > { %v1449_v47 = vsel %vm470_vm12, 0.0, %v1251_v0 }
 0x144   : > { %486 = vrot.lane.b32.xlu1 %v1442_v42, %s1206_s14 }
 0x145   : > { %484 = vrot.lane.b32.xlu0 %v1449_v47, %s1206_s14 }
 0x148   : > { %498 = vrot.lane.b32.xlu1 %v1421_v37, %s1207_s15 }
 0x149   : > { %496 = vrot.lane.b32.xlu0 %v1431_v43, %s1207_s15 }
 0x14c   : > { %502 = vrot.lane.b32.xlu1 %v1442_v42, %s1207_s15 }
 0x14d   : > { %500 = vrot.lane.b32.xlu0 %v1449_v47, %s1207_s15 }
 0x150   : > { %522 = vrot.lane.b32.xlu1 %v1421_v37, %s1208_s16 }
 0x151   : > { %520 = vrot.lane.b32.xlu0 %v1431_v43, %s1208_s16 }
 0x154   : > { %526 = vrot.lane.b32.xlu1 %v1442_v42, %s1208_s16 }
 0x155   : > { %524 = vrot.lane.b32.xlu0 %v1449_v47, %s1208_s16 }
 0x158   : > { %538 = vrot.lane.b32.xlu1 %v1421_v37, %s1209_s17 }
 0x159   : > { %536 = vrot.lane.b32.xlu0 %v1431_v43, %s1209_s17 }
 0x15c   : > { %542 = vrot.lane.b32.xlu1 %v1442_v42, %s1209_s17 }
 0x15d   : > { %540 = vrot.lane.b32.xlu0 %v1449_v47, %s1209_s17 }
 0x1b2   : > { %v483_v48 = vpop.permute.xlu1 %482 }
 0x1b3   : > { %v481_v49 = vpop.permute.xlu0 %480  ;;  %v493_v57 = vsel %vm1723_vm1, %v483_v48, 0.0 }
 0x1b4   : > { %v492_v62 = vsel %vm1723_vm1, %v481_v49, 0.0 }
 0x1b6   : > { %v487_v50 = vpop.permute.xlu1 %486 }
 0x1b7   : > { %v485_v38 = vpop.permute.xlu0 %484  ;;  %v495_v4 = vsel %vm1723_vm1, %v487_v50, 0.0 }
 0x1b8   : > { %v494_v15 = vsel %vm1723_vm1, %v485_v38, 0.0 }
 0x1ba   : > { %v499_v44 = vpop.permute.xlu1 %498 }
 0x1bb   : > { %v497_v51 = vpop.permute.xlu0 %496  ;;  %v509_v56 = vsel %vm1725_vm0, 0.0, %v499_v44 }
 0x1bc   : > { %v508_v58 = vsel %vm1725_vm0, 0.0, %v497_v51  ;;  %v513_v60 = vmax.f32 %v493_v57, %v509_v56 }
 0x1bd   : > { %v512_v63 = vmax.f32 %v492_v62, %v508_v58 }
 0x1be   : > { %v503_v52 = vpop.permute.xlu1 %502  ;;  %v517_v6 = vmax.f32 %v1421_v37, %v513_v60 }
 0x1bf   : > { %v501_v53 = vpop.permute.xlu0 %500  ;;  %v511_v45 = vsel %vm1725_vm0, 0.0, %v503_v52  ;;  %v516_v16 = vmax.f32 %v1431_v43, %v512_v63 }
 0x1c0   : > { %v510_v7 = vsel %vm1725_vm0, 0.0, %v501_v53  ;;  %v515_v11 = vmax.f32 %v495_v4, %v511_v45 }
 0x1c1   : > { %v514_v18 = vmax.f32 %v494_v15, %v510_v7 }
 0x1c2   : > { %v523_v54 = vpop.permute.xlu1 %522  ;;  %v519_v24 = vmax.f32 %v1442_v42, %v515_v11 }
 0x1c3   : > { %v521_v55 = vpop.permute.xlu0 %520  ;;  %v533_v8 = vsel %vm1719_vm2, %v523_v54, 0.0  ;;  %v518_v48 = vmax.f32 %v1449_v47, %v514_v18 }
 0x1c4   : > { %v532_v12 = vsel %vm1719_vm2, %v521_v55, 0.0 }
 0x1c6   : > { %v527_v59 = vpop.permute.xlu1 %526 }
 0x1c7   : > { %v525_v61 = vpop.permute.xlu0 %524  ;;  %v535_v25 = vsel %vm1719_vm2, %v527_v59, 0.0 }
 0x1c8   : > { %v534_v49 = vsel %vm1719_vm2, %v525_v61, 0.0 }
 0x1ca   : > { %v539_v5 = vpop.permute.xlu1 %538 }
 0x1cb   : > { %v549_v9 = vsel %vm1718_vm3, 0.0, %v539_v5  ;;  %v537_v10 = vpop.permute.xlu0 %536 }
 0x1cc   : > { %v553_v13 = vmax.f32 %v533_v8, %v549_v9  ;;  %v548_v14 = vsel %vm1718_vm3, 0.0, %v537_v10 }
 0x1cd   : > { %v552_v17 = vmax.f32 %v532_v12, %v548_v14 }
 0x1ce   : > { %v1491_v19 = vmax.f32 %v517_v6, %v553_v13  ;;  %v543_v20 = vpop.permute.xlu1 %542 }
 0x1cf   : > { %v556_v21 = vmax.f32 %v516_v16, %v552_v17  ;;  %v551_v22 = vsel %vm1718_vm3, 0.0, %v543_v20  ;;  %v541_v23 = vpop.permute.xlu0 %540 }
 0x1d0   : > { %v565_v27 = vrot.slane %v1491_v19, 1  ;;  %v597_v28 = vrot.slane %v1491_v19, 2  ;;  %v555_v50 = vmax.f32 %v535_v25, %v551_v22  ;;  %v550_v38 = vsel %vm1718_vm3, 0.0, %v541_v23 }
 0x1d1   : > { %v564_v29 = vrot.slane %v556_v21, 1  ;;  %v576_v31 = vrot.slane %v556_v21, 7  ;;  %v596_v32 = vrot.slane %v556_v21, 2  ;;  %v608_v33 = vrot.slane %v556_v21, 6 }
 0x1d2   : > { %v554_v53 = vmax.f32 %v534_v49, %v550_v38  ;;  %v559_v55 = vmax.f32 %v519_v24, %v555_v50  ;;  %v577_v57 = vrot.slane %v1491_v19, 7  ;;  %v609_v58 = vrot.slane %v1491_v19, 6 }
 0x1d3   : > { %v566_v44 = vsel %vm1722_vm5, %v564_v29, %v565_v27  ;;  %v587_v51 = vsel %vm1721_vm4, 0.0, %v576_v31  ;;  %v619_v52 = vsel %vm1724_vm8, 0.0, %v608_v33  ;;  %v598_v56 = vsel %vm1720_vm6, %v596_v32, %v597_v28 }
 0x1d4   : > { %v588_v54 = vmax.f32 %v566_v44, %v587_v51  ;;  %v558_v59 = vmax.f32 %v518_v48, %v554_v53  ;;  %v620_v60 = vmax.f32 %v598_v56, %v619_v52  ;;  %v569_v62 = vrot.slane %v559_v55, 1 }
 0x1d5   : > { %v581_v63 = vrot.slane %v559_v55, 7  ;;  %v601_v45 = vrot.slane %v559_v55, 2  ;;  %v613_v4 = vrot.slane %v559_v55, 6  ;;  %v578_v23 = vsel %vm1721_vm4, %v576_v31, %v577_v57 }
 0x1d6   : > { %v592_v61 = vmax.f32 %v556_v21, %v588_v54  ;;  %v567_v5 = vrot.slane %v558_v59, 1  ;;  %v579_v6 = vrot.slane %v558_v59, 7  ;;  %v599_v7 = vrot.slane %v558_v59, 2 }
 0x1d7   : > { %v575_v8 = vsel %vm1717_vm7, %v569_v62, 0.0  ;;  %v607_v9 = vsel %vm1724_vm8, %v601_v45, 0.0  ;;  %v611_v10 = vrot.slane %v558_v59, 6  ;;  %vm1211_vm7 = vmmov 1  }
 0x1d8   : > { %v624_v11 = vmax.f32 %v592_v61, %v620_v60  ;;  %v570_v12 = vsel %vm1722_vm5, %v567_v5, %v569_v62  ;;  %v580_v13 = vsel %vm1721_vm4, %v577_v57, %v579_v6  ;;  %v582_v14 = vsel %vm1721_vm4, %v579_v6, %v581_v63  ;;  %vm1521_vm3 = vmxor %vm469_vm13, %vm1211_vm7 }
 0x1d9   : > { %v602_v15 = vsel %vm1720_vm6, %v599_v7, %v601_v45  ;;  %v590_v16 = vmax.f32 %v570_v12, %v580_v13  ;;  %v591_v17 = vmax.f32 %v575_v8, %v582_v14  ;;  %v612_v18 = vsel %vm1724_vm8, %v609_v58, %v611_v10  ;;  %vm632_vm2 = vmxor %vm468_vm14, %vm1211_vm7 }
 0x1da   : > { %v614_v20 = vsel %vm1724_vm8, %v611_v10, %v613_v4  ;;  %v622_v21 = vmax.f32 %v602_v15, %v612_v18  ;;  %v568_v22 = vsel %vm1722_vm5, %v565_v27, %v567_v5  ;;  %v600_v24 = vsel %vm1720_vm6, %v597_v28, %v599_v7  ;;  %vm635_vm6 = vmxor %vm471_vm15, %vm1211_vm7 }
 0x1db   : > { %v594_v29 = vmax.f32 %v558_v59, %v590_v16  ;;  %v595_v32 = vmax.f32 %v559_v55, %v591_v17  ;;  %v623_v48 = vmax.f32 %v607_v9, %v614_v20  ;;  %v589_v27 = vmax.f32 %v568_v22, %v578_v23  ;;  %vm634_vm14 = vmxor %vm470_vm12, %vm1211_vm7 }
 0x1dc   : > { %v610_v28 = vsel %vm1724_vm8, %v608_v33, %v609_v58  ;;  %vm628_vm4 = vcmp.eq.f32.partialorder %v1431_v43, %v624_v11 }
 0x1dd   : > { %v626_v26 = vmax.f32 %v594_v29, %v622_v21  ;;  %v627_v31 = vmax.f32 %v595_v32, %v623_v48  ;;  %v593_v49 = vmax.f32 %v1491_v19, %v589_v27  ;;  %v621_v50 = vmax.f32 %v600_v24, %v610_v28  ;;  %vm636_vm13 = vmand %vm628_vm4, %vm632_vm2 }
 0x1de   : > { %vm640_vm15 = vmor %vm304_vm11, %vm636_vm13  ;;  %vm1731_vm4 = vcmp.eq.f32.partialorder %v1261_v2, %v1340_v36 }
 0x1df   : > { %vm630_vm5 = vcmp.eq.f32.partialorder %v1449_v47, %v626_v26  ;;  %vm631_vm1 = vcmp.eq.f32.partialorder %v1442_v42, %v627_v31  ;;  %v625_v30 = vmax.f32 %v593_v49, %v621_v50  ;;  %v1062_v2 = vsel %vm640_vm15, 1.0, %v1210_v41 }
 0x1e0   : > { %vm638_vm8 = vmand %vm630_vm5, %vm634_vm14  ;;  %vm1732_vm5 = vcmp.eq.f32.partialorder %v1264_v3, %v1347_v40  ;;  %vm1743_vm15 = vcmask 244736  }
 0x1e1   : > { %vm639_vm0 = vmand %vm631_vm1, %vm635_vm6  ;;  %vm629_vm10 = vcmp.eq.f32.partialorder %v1421_v37, %v625_v30 }
 0x1e2   : > { %vm1546_vm2 = vmor %vm306_vm9, %vm638_vm8  ;;  %vm1737_vm8 = vcmask 252928  }
 0x1e3   : > { %vm643_vm12 = vmor %vm1731_vm4, %vm639_vm0  ;;  %v1064_v1 = vsel %vm1546_vm2, 1.0, %v1210_v41  ;;  %vm1735_vm0 = vcmask 7168  }
 0x1e4   : > { %v1065_v34 = vsel %vm643_vm12, 1.0, %v1210_v41  ;;  %vm637_vm1 = vmand %vm629_vm10, %vm1521_vm3  ;;  %vm1745_vm12 = vcmask 15360  }
 0x1e5   : > { %v1143_v37 = vpack.i.bf16 %v1065_v34, %v1064_v1  ;;  %vm1562_vm6 = vmor %vm1732_vm5, %vm637_vm1 }
 0x1e6   : > { %v1063_v35 = vsel %vm1562_vm6, 1.0, %v1210_v41  ;;  %vm1736_vm3 = vmmov %vm1735_vm0 }
 0x1e7   : > { %1144 = vrot.lane.b32.xlu1 %v1143_v37, %s1206_s14  ;;  %v1138_v36 = vpack.i.bf16 %v1063_v35, %v1062_v2  ;;  %vm1738_vm9 = vmmov %vm1737_vm8 }
 0x1e8   : > { %vm1739_vm10 = vmmov %vm1735_vm0 }
 0x1e9   : > { %1139 = vrot.lane.b32.xlu0 %v1138_v36, %s1206_s14  ;;  %vm1740_vm11 = vmmov %vm1735_vm0 }
 0x1ea   : > { %vm1741_vm13 = vmmov %vm1737_vm8 }
 0x1eb   : > { %1154 = vrot.lane.b32.xlu1 %v1143_v37, %s1207_s15  ;;  %vm1742_vm14 = vmmov %vm1737_vm8 }
 0x1ec   : > { %vm1744_vm4 = vmmov %vm1743_vm15 }
 0x1ed   : > { %1149 = vrot.lane.b32.xlu0 %v1138_v36, %s1207_s15  ;;  %vm1746_vm1 = vmmov %vm1745_vm12 }
 0x1ee   : > { %vm1747_vm5 = vmmov %vm1744_vm4 }
 0x1ef   : > { %1164 = vrot.lane.b32.xlu1 %v1143_v37, %s1208_s16 }
 0x1f1   : > { %1159 = vrot.lane.b32.xlu0 %v1138_v36, %s1208_s16 }
 0x1f3   : > { %1174 = vrot.lane.b32.xlu1 %v1143_v37, %s1209_s17 }
 0x1f5   : > { %1169 = vrot.lane.b32.xlu0 %v1138_v36, %s1209_s17 }
 0x259   : > { %v1145_v40 = vpop.permute.xlu1 %1144 }
 0x25a   : > { %v1147_v46 = vunpack.i.h.bf16 %v1145_v40  ;;  %v1146_v42 = vunpack.i.l.bf16 %v1145_v40 }
 0x25b   : > { %v1140_v43 = vpop.permute.xlu0 %1139 }
 0x25c   : > { %v1142_v33 = vunpack.i.h.bf16 %v1140_v43  ;;  %v1141_v38 = vunpack.i.l.bf16 %v1140_v43  ;;  %v671_v56 = vsel %vm1737_vm8, %v1147_v46, 0.0  ;;  %v670_v57 = vsel %vm1738_vm9, %v1146_v42, 0.0  ;;  %vm1750_vm8 = vmmov %vm1746_vm1 }
 0x25d   : > { %v1155_v41 = vpop.permute.xlu1 %1154  ;;  %vm1751_vm9 = vcmask 1046528  }
 0x25e   : > { %v1157_v47 = vunpack.i.h.bf16 %v1155_v41  ;;  %v1156_v19 = vunpack.i.l.bf16 %v1155_v41  ;;  %v669_v4 = vsel %vm1741_vm13, %v1142_v33, 0.0  ;;  %v668_v5 = vsel %vm1742_vm14, %v1141_v38, 0.0 }
 0x25f   : > { %v1150_v44 = vpop.permute.xlu0 %1149  ;;  %vm1755_vm14 = vcmask 1041408  }
 0x260   : > { %v687_v51 = vsel %vm1735_vm0, 0.0, %v1157_v47  ;;  %v686_v52 = vsel %vm1736_vm3, 0.0, %v1156_v19  ;;  %v1152_v53 = vunpack.i.h.bf16 %v1150_v44  ;;  %v1151_v54 = vunpack.i.l.bf16 %v1150_v44  ;;  %vm1748_vm0 = vmmov %vm1744_vm4 }
 0x261   : > { %v1165_v55 = vpop.permute.xlu1 %1164  ;;  %v690_v60 = vmax.f32 %v670_v57, %v686_v52  ;;  %v691_v61 = vmax.f32 %v671_v56, %v687_v51  ;;  %vm1749_vm3 = vmmov %vm1746_vm1 }
 0x262   : > { %v685_v58 = vsel %vm1739_vm10, 0.0, %v1152_v53  ;;  %v684_v59 = vsel %vm1740_vm11, 0.0, %v1151_v54  ;;  %v1167_v62 = vunpack.i.h.bf16 %v1165_v55  ;;  %v1166_v63 = vunpack.i.l.bf16 %v1165_v55 }
 0x263   : > { %v1160_v45 = vpop.permute.xlu0 %1159  ;;  %v688_v6 = vmax.f32 %v668_v5, %v684_v59  ;;  %v689_v7 = vmax.f32 %v669_v4, %v685_v58  ;;  %v694_v13 = vmax.f32 %v1064_v1, %v690_v60  ;;  %v695_v14 = vmax.f32 %v1065_v34, %v691_v61 }
 0x264   : > { %v1162_v9 = vunpack.i.h.bf16 %v1160_v45  ;;  %v1161_v10 = vunpack.i.l.bf16 %v1160_v45  ;;  %v711_v15 = vsel %vm1743_vm15, %v1167_v62, 0.0  ;;  %v710_v16 = vsel %vm1744_vm4, %v1166_v63, 0.0  ;;  %vm1756_vm15 = vmmov %vm1751_vm9 }
 0x265   : > { %v1175_v8 = vpop.permute.xlu1 %1174  ;;  %v692_v23 = vmax.f32 %v1062_v2, %v688_v6  ;;  %v693_v24 = vmax.f32 %v1063_v35, %v689_v7  ;;  %vm1752_vm10 = vcmask 1040384   ;;  %vm1753_vm11 = vcmask 1045504  }
 0x266   : > { %v1177_v11 = vunpack.i.h.bf16 %v1175_v8  ;;  %v1176_v12 = vunpack.i.l.bf16 %v1175_v8  ;;  %v709_v32 = vsel %vm1747_vm5, %v1162_v9, 0.0  ;;  %v708_v48 = vsel %vm1748_vm0, %v1161_v10, 0.0  ;;  %vm1754_vm13 = vmmov %vm1752_vm10 }
 0x267   : > { %v1170_v17 = vpop.permute.xlu0 %1169  ;;  %vm1757_vm4 = vmmov %vm1753_vm11 }
 0x268   : > { %v727_v18 = vsel %vm1745_vm12, 0.0, %v1177_v11  ;;  %v726_v20 = vsel %vm1746_vm1, 0.0, %v1176_v12  ;;  %v1172_v21 = vunpack.i.h.bf16 %v1170_v17  ;;  %v1171_v22 = vunpack.i.l.bf16 %v1170_v17  ;;  %vm1758_vm12 = vmmov %vm1755_vm14 }
 0x269   : > { %v730_v25 = vmax.f32 %v710_v16, %v726_v20  ;;  %v731_v29 = vmax.f32 %v711_v15, %v727_v18  ;;  %vm1759_vm1 = vcmask 1042432   ;;  %vm1760_vm5 = vmmov %vm1752_vm10 }
 0x26a   : > { %v725_v27 = vsel %vm1749_vm3, 0.0, %v1172_v21  ;;  %v724_v28 = vsel %vm1750_vm8, 0.0, %v1171_v22  ;;  %vm1761_vm0 = vmmov %vm1758_vm12 }
 0x26b   : > { %v734_v26 = vmax.f32 %v694_v13, %v730_v25  ;;  %v735_v31 = vmax.f32 %v695_v14, %v731_v29  ;;  %v728_v49 = vmax.f32 %v708_v48, %v724_v28  ;;  %v729_v50 = vmax.f32 %v709_v32, %v725_v27  ;;  %vm1762_vm3 = vmmov %vm1751_vm9  ;;  %v1179_v32 = vld [vmem:[%s1248_s13 + $0x18] sm:$0xf] }
 0x26c   : > { %vm1763_vm8 = vmmov %vm1760_vm5 }
 0x26d   : > { %v743_v30 = vrot.slane %v734_v26, 1  ;;  %v732_v1 = vmax.f32 %v692_v23, %v728_v49  ;;  %v733_v34 = vmax.f32 %v693_v24, %v729_v50  ;;  %v775_v37 = vrot.slane %v734_v26, 2  ;;  %v1178_v23 = vld [vmem:[%s1248_s13] sm:$0xff] }
 0x26e   : > { %v745_v2 = vrot.slane %v735_v31, 1  ;;  %v755_v35 = vrot.slane %v734_v26, 7  ;;  %v757_v36 = vrot.slane %v735_v31, 7  ;;  %v777_v40 = vrot.slane %v735_v31, 2 }
 0x26f   : > { %v741_v43 = vrot.slane %v733_v34, 1  ;;  %v752_v41 = vrot.slane %v732_v1, 7  ;;  %v753_v46 = vrot.slane %v733_v34, 7  ;;  %v773_v42 = vrot.slane %v733_v34, 2 }
 0x270   : > { %v784_v47 = vrot.slane %v732_v1, 6  ;;  %v785_v19 = vrot.slane %v733_v34, 6  ;;  %v740_v33 = vrot.slane %v732_v1, 1  ;;  %v772_v38 = vrot.slane %v732_v1, 2 }
 0x271   : > { %v744_v44 = vsel %vm1751_vm9, %v741_v43, %v743_v30  ;;  %v754_v51 = vsel %vm1752_vm10, %v752_v41, %v753_v46  ;;  %v776_v52 = vsel %vm1753_vm11, %v773_v42, %v775_v37  ;;  %v763_v53 = vsel %vm1754_vm13, 0.0, %v752_v41  ;;  %vm1764_vm9 = vmmov %vm1757_vm4 }
 0x272   : > { %v765_v54 = vmax.f32 %v744_v44, %v754_v51  ;;  %v786_v55 = vsel %vm1755_vm14, %v784_v47, %v785_v19  ;;  %v742_v56 = vsel %vm1756_vm15, %v740_v33, %v741_v43  ;;  %v774_v57 = vsel %vm1757_vm4, %v772_v38, %v773_v42  ;;  %vm1765_vm10 = vmmov %vm1761_vm0 }
 0x273   : > { %v797_v58 = vmax.f32 %v776_v52, %v786_v55  ;;  %v764_v59 = vmax.f32 %v742_v56, %v763_v53  ;;  %v795_v60 = vsel %vm1758_vm12, 0.0, %v784_v47  ;;  %v751_v61 = vsel %vm1759_vm1, %v745_v2, 0.0  ;;  %vm1766_vm13 = vmmov %vm1761_vm0 }
 0x274   : > { %v769_v62 = vmax.f32 %v733_v34, %v765_v54  ;;  %v796_v63 = vmax.f32 %v774_v57, %v795_v60  ;;  %v758_v45 = vsel %vm1760_vm5, %v755_v35, %v757_v36  ;;  %v783_v4 = vsel %vm1761_vm0, %v777_v40, 0.0 }
 0x275   : > { %v768_v5 = vmax.f32 %v732_v1, %v764_v59  ;;  %v767_v6 = vmax.f32 %v751_v61, %v758_v45  ;;  %v787_v7 = vrot.slane %v734_v26, 6  ;;  %v789_v8 = vrot.slane %v735_v31, 6 }
 0x276   : > { %v1605_v9 = vmax.f32 %v769_v62, %v797_v58  ;;  %v746_v10 = vsel %vm1762_vm3, %v743_v30, %v745_v2  ;;  %v756_v11 = vsel %vm1763_vm8, %v753_v46, %v755_v35  ;;  %v778_v12 = vsel %vm1764_vm9, %v775_v37, %v777_v40 }
 0x277   : > { %v800_v13 = vmax.f32 %v768_v5, %v796_v63  ;;  %v771_v14 = vmax.f32 %v735_v31, %v767_v6  ;;  %v790_v15 = vsel %vm1765_vm10, %v787_v7, %v789_v8  ;;  %v766_v16 = vmax.f32 %v746_v10, %v756_v11 }
 0x278   : > { %vm805_vm11 = vcmp.gt.f32.partialorder %v1605_v9, 0.0  ;;  %v799_v17 = vmax.f32 %v783_v4, %v790_v15  ;;  %v788_v18 = vsel %vm1766_vm13, %v785_v19, %v787_v7  ;;  %vm1767_vm12 = vcmask 7168   ;;  %v1181_v9 = vld [vmem:[%s1248_s13 + $0x8] sm:$0xff] }
 0x279   : > { %v1616_v20 = vsel %vm805_vm11, 0.0, %v1264_v3  ;;  %vm804_vm14 = vcmp.gt.f32.partialorder %v800_v13, 0.0  ;;  %v770_v21 = vmax.f32 %v734_v26, %v766_v16  ;;  %v798_v22 = vmax.f32 %v778_v12, %v788_v18  ;;  %v1628_v3 = vld [vmem:[%s1248_s13 + $0x10] sm:$0xff]  ;;  %vm1768_vm1 = vmmov %vm1767_vm12 }
 0x27a   : > { %818 = vrot.lane.b32.xlu1 %v1616_v20, %s1206_s14  ;;  %v808_v24 = vsel %vm804_vm14, 0.0, %v1178_v23  ;;  %v803_v25 = vmax.f32 %v771_v14, %v799_v17  ;;  %vm1769_vm5 = vcmask 252928   ;;  %v946_v19 = vlaneseq  ;;  %vm1771_vm3 = vmmov %vm1768_vm1 }
 0x27b   : > { %816 = vrot.lane.b32.xlu0 %v808_v24, %s1206_s14  ;;  %v1622_v29 = vmax.f32 %v770_v21, %v798_v22  ;;  %vm1770_vm0 = vmmov %vm1769_vm5  ;;  %vm1774_vm10 = vcmask 244736   ;;  %vm1775_vm13 = vcmask 15360   ;;  %v948_v10 = vstv %s1057_s10 }
 0x27c   : > { %vm807_vm15 = vcmp.gt.f32.partialorder %v803_v25, 0.0  ;;  %vm1772_vm8 = vmmov %vm1770_vm0  ;;  %v947_v4 = vshrl.u32 %v946_v19, 7 }
 0x27d   : > { %v811_v48 = vsel %vm807_vm15, 0.0, %v1179_v32  ;;  %vm806_vm4 = vcmp.gt.f32.partialorder %v1622_v29, 0.0  ;;  %vm1773_vm9 = vmmov %vm1768_vm1 }
 0x27e   : > { %822 = vrot.lane.b32.xlu1 %v811_v48, %s1206_s14  ;;  %v1633_v27 = vsel %vm806_vm4, 0.0, %v1628_v3  ;;  %vm1776_vm14 = vmmov %vm1770_vm0  ;;  %v949_v18 = vadd.s32 %v948_v10, %v947_v4 }
 0x27f   : > { %820 = vrot.lane.b32.xlu0 %v1633_v27, %s1206_s14  ;;  %vm1777_vm15 = vmmov %vm1774_vm10 }
 0x282   : > { %834 = vrot.lane.b32.xlu1 %v1616_v20, %s1207_s15 }
 0x283   : > { %832 = vrot.lane.b32.xlu0 %v808_v24, %s1207_s15 }
 0x286   : > { %838 = vrot.lane.b32.xlu1 %v811_v48, %s1207_s15 }
 0x287   : > { %836 = vrot.lane.b32.xlu0 %v1633_v27, %s1207_s15 }
 0x28a   : > { %858 = vrot.lane.b32.xlu1 %v1616_v20, %s1208_s16 }
 0x28b   : > { %856 = vrot.lane.b32.xlu0 %v808_v24, %s1208_s16 }
 0x28e   : > { %862 = vrot.lane.b32.xlu1 %v811_v48, %s1208_s16 }
 0x28f   : > { %860 = vrot.lane.b32.xlu0 %v1633_v27, %s1208_s16 }
 0x292   : > { %874 = vrot.lane.b32.xlu1 %v1616_v20, %s1209_s17 }
 0x293   : > { %872 = vrot.lane.b32.xlu0 %v808_v24, %s1209_s17 }
 0x296   : > { %878 = vrot.lane.b32.xlu1 %v811_v48, %s1209_s17 }
 0x297   : > { %876 = vrot.lane.b32.xlu0 %v1633_v27, %s1209_s17 }
 0x2ec   : > { %v819_v28 = vpop.permute.xlu1 %818 }
 0x2ed   : > { %v817_v26 = vpop.permute.xlu0 %816  ;;  %v829_v41 = vsel %vm1769_vm5, %v819_v28, 0.0  ;;  %vm1780_vm5 = vmmov %vm1774_vm10 }
 0x2ee   : > { %v828_v46 = vsel %vm1770_vm0, %v817_v26, 0.0  ;;  %vm1781_vm0 = vmmov %vm1780_vm5 }
 0x2f0   : > { %v823_v31 = vpop.permute.xlu1 %822 }
 0x2f1   : > { %v821_v49 = vpop.permute.xlu0 %820  ;;  %v831_v44 = vsel %vm1772_vm8, %v823_v31, 0.0  ;;  %vm952_vm8 = vcmp.ge.s32.totalorder %v949_v18, 3 }
 0x2f2   : > { %v830_v55 = vsel %vm1776_vm14, %v821_v49, 0.0 }
 0x2f4   : > { %v835_v50 = vpop.permute.xlu1 %834 }
 0x2f5   : > { %v833_v30 = vpop.permute.xlu0 %832  ;;  %v845_v35 = vsel %vm1767_vm12, 0.0, %v835_v50  ;;  %vm1778_vm12 = vmmov %vm1775_vm13 }
 0x2f6   : > { %v844_v36 = vsel %vm1768_vm1, 0.0, %v833_v30  ;;  %v849_v42 = vmax.f32 %v829_v41, %v845_v35  ;;  %vm1779_vm1 = vmmov %vm1778_vm12 }
 0x2f7   : > { %v848_v47 = vmax.f32 %v828_v46, %v844_v36 }
 0x2f8   : > { %v839_v1 = vpop.permute.xlu1 %838  ;;  %v853_v59 = vmax.f32 %v1616_v20, %v849_v42 }
 0x2f9   : > { %v837_v34 = vpop.permute.xlu0 %836  ;;  %v847_v33 = vsel %vm1771_vm3, 0.0, %v839_v1  ;;  %v852_v60 = vmax.f32 %v808_v24, %v848_v47  ;;  %vm1782_vm3 = vmmov %vm1779_vm1 }
 0x2fa   : > { %v846_v51 = vsel %vm1773_vm9, 0.0, %v837_v34  ;;  %v851_v61 = vmax.f32 %v831_v44, %v847_v33  ;;  %vm953_vm9 = vcmp.lt.s32.totalorder %v949_v18, 30 }
 0x2fb   : > { %v850_v63 = vmax.f32 %v830_v55, %v846_v51 }
 0x2fc   : > { %v859_v37 = vpop.permute.xlu1 %858  ;;  %v855_v12 = vmax.f32 %v811_v48, %v851_v61 }
 0x2fd   : > { %v857_v2 = vpop.permute.xlu0 %856  ;;  %v869_v52 = vsel %vm1774_vm10, %v859_v37, 0.0  ;;  %v854_v16 = vmax.f32 %v1633_v27, %v850_v63  ;;  %vm1783_vm10 = vcmask 1040384   ;;  %v951_v37 = vand.u32 127, %v946_v19 }
 0x2fe   : > { %v868_v56 = vsel %vm1777_vm15, %v857_v2, 0.0  ;;  %vm1786_vm15 = vmmov %vm1783_vm10 }
 0x300   : > { %v863_v40 = vpop.permute.xlu1 %862 }
 0x301   : > { %v861_v43 = vpop.permute.xlu0 %860  ;;  %v871_v11 = vsel %vm1780_vm5, %v863_v40, 0.0  ;;  %vm1789_vm5 = vcmask 1041408  }
 0x302   : > { %v870_v13 = vsel %vm1781_vm0, %v861_v43, 0.0  ;;  %vm1790_vm0 = vmmov %vm1789_vm5 }
 0x304   : > { %v875_v38 = vpop.permute.xlu1 %874 }
 0x305   : > { %v885_v53 = vsel %vm1775_vm13, 0.0, %v875_v38  ;;  %v873_v54 = vpop.permute.xlu0 %872  ;;  %vm1784_vm13 = vcmask 1046528  }
 0x306   : > { %v889_v57 = vmax.f32 %v869_v52, %v885_v53  ;;  %v884_v58 = vsel %vm1778_vm12, 0.0, %v873_v54  ;;  %vm1785_vm14 = vmmov %vm1784_vm13  ;;  %vm1787_vm12 = vcmask 1045504  }
 0x307   : > { %v888_v62 = vmax.f32 %v868_v56, %v884_v58 }
 0x308   : > { %v879_v45 = vpop.permute.xlu1 %878  ;;  %v893_v5 = vmax.f32 %v853_v59, %v889_v57 }
 0x309   : > { %v892_v6 = vmax.f32 %v852_v60, %v888_v62  ;;  %v887_v7 = vsel %vm1779_vm1, 0.0, %v879_v45  ;;  %v877_v8 = vpop.permute.xlu0 %876  ;;  %vm1788_vm1 = vmmov %vm1787_vm12 }
 0x30a   : > { %v891_v14 = vmax.f32 %v871_v11, %v887_v7  ;;  %v886_v15 = vsel %vm1782_vm3, 0.0, %v877_v8  ;;  %v908_v21 = vrot.slane %v893_v5, 7  ;;  %v899_v24 = vrot.slane %v893_v5, 1  ;;  %vm954_vm3 = vmand %vm952_vm8, %vm953_vm9 }
 0x30b   : > { %v890_v17 = vmax.f32 %v870_v13, %v886_v15  ;;  %v907_v22 = vrot.slane %v892_v6, 7  ;;  %v918_v25 = vrot.slane %v893_v5, 2  ;;  %v926_v28 = vrot.slane %v893_v5, 6 }
 0x30c   : > { %v895_v23 = vmax.f32 %v855_v12, %v891_v14  ;;  %v925_v26 = vrot.slane %v892_v6, 6  ;;  %vm957_vm9 = vcmp.lt.s32.totalorder %v951_v37, 30 }
 0x30d   : > { %v894_v32 = vmax.f32 %v854_v16, %v890_v17  ;;  %v909_v34 = vsel %vm1783_vm10, %v907_v22, %v908_v21  ;;  %vm955_vm10 = vcmp.ge.s32.totalorder %v951_v37, 3 }
 0x30e   : > { %v902_v31 = vrot.slane %v895_v23, 1  ;;  %v921_v49 = vrot.slane %v895_v23, 2  ;;  %v927_v47 = vsel %vm1790_vm0, %v925_v26, %v926_v28 }
 0x30f   : > { %v900_v48 = vrot.slane %v894_v32, 1  ;;  %v910_v50 = vrot.slane %v894_v32, 7  ;;  %v919_v30 = vrot.slane %v894_v32, 2  ;;  %v928_v1 = vrot.slane %v894_v32, 6 }
 0x311   : > { %v901_v2 = vsel %vm1784_vm13, %v899_v24, %v900_v48  ;;  %v903_v35 = vsel %vm1785_vm14, %v900_v48, %v902_v31  ;;  %v911_v36 = vsel %vm1786_vm15, %v908_v21, %v910_v50  ;;  %v920_v40 = vsel %vm1787_vm12, %v918_v25, %v919_v30  ;;  %vm938_vm13 = vmxor %vm805_vm11, %vm1211_vm7 }
 0x312   : > { %v914_v43 = vmax.f32 %v901_v2, %v909_v34  ;;  %v915_v41 = vmax.f32 %v903_v35, %v911_v36  ;;  %v922_v46 = vsel %vm1788_vm1, %v919_v30, %v921_v49  ;;  %v929_v42 = vsel %vm1789_vm5, %v926_v28, %v928_v1  ;;  %vm939_vm14 = vmxor %vm806_vm4, %vm1211_vm7 }
 0x313   : > { %v932_v38 = vmax.f32 %v920_v40, %v927_v47  ;;  %v933_v44 = vmax.f32 %v922_v46, %v929_v42  ;;  %vm956_vm15 = vmand %vm954_vm3, %vm955_vm10  ;;  %vm966_vm4 = vcmask 261120   ;;  %vm1791_vm3 = vcmask 1045504  }
 0x314   : > { %v916_v33 = vmax.f32 %v893_v5, %v914_v43  ;;  %v917_v19 = vmax.f32 %v894_v32, %v915_v41  ;;  %vm958_vm7 = vmand %vm956_vm15, %vm957_vm9 }
 0x316   : > { %v934_v51 = vmax.f32 %v916_v33, %v932_v38  ;;  %v935_v52 = vmax.f32 %v917_v19, %v933_v44 }
 0x318   : > { %vm936_vm12 = vcmp.eq.f32.partialorder %v1616_v20, %v934_v51  ;;  %vm937_vm1 = vcmp.eq.f32.partialorder %v1633_v27, %v935_v52 }
 0x319   : > { %vm940_vm5 = vmand %vm936_vm12, %vm938_vm13 }
 0x31a   : > { %vm941_vm8 = vmand %vm937_vm1, %vm939_vm14 }
 0x31b   : > { %vm942_vm0 = vmor %vm1562_vm6, %vm940_vm5 }
 0x31c   : > { %vm943_vm11 = vmor %vm1546_vm2, %vm941_vm8  ;;  %v944_v53 = vsel %vm942_vm0, %v1181_v9, 0.0 }
 0x31d   : > { %v945_v29 = vsel %vm943_vm11, %v1628_v3, 0.0  ;;  %v961_v54 = vrot.slane %v944_v53, 2 }
 0x31e   : > { %v962_v55 = vrot.slane %v945_v29, 2 }
 0x320   : > { %v963_v20 = vsel %vm1791_vm3, %v961_v54, %v962_v55 }
 0x321   : > { %v965_v0 = vsel %vm958_vm7, %v963_v20, 0.0 }
 0x322   : > { %967 = vst.msk [vmem:[%s136_s21] sm:$0xff] %vm966_vm4, %v965_v0 }
 0x323 PF: > { %s11_s8 = sadd.s32 1, %s1204_s8   ;;  %s1792_s6 = smov %s1200_s7 }
 0x324   : > { %p8_p5 = scmp.ge.s32.totalorder %s11_s8, 6   ;;  %s1793_s7 = smov %s1795_s9 }
 0x326   :  { %10 = sbr.rel (!%p8_p5) target bundleno = 2 (0x2), region = 55 }

</bundles_post_ra>
